<compile_context>
chip_gen: v7x
topology: tpu7x:2x2x1
jax: 0.10.0
libtpu: 0.0.40
codegen_flags: <defaults>
</compile_context>

<pallas_src>
import math
from functools import partial

import jax
import jax.numpy as jnp
from jax.experimental import pallas as pl
from jax.experimental.pallas import tpu as pltpu

_NEG_INF = -1e9
_MIB = 1024 * 1024


def _round_up(x, m):
    return ((x + m - 1) // m) * m


def _vmem_limit_bytes():
    """Per-generation scoped-VMEM limit.

    v5e/v6e have 128 MiB physical VMEM, v7x has 64 MiB.  Leave generous
    headroom for Mosaic internal scratch and the double-buffered pipeline.
    """
    try:
        cap = pltpu.get_tpu_info().vmem_capacity_bytes
    except Exception:
        cap = 64 * _MIB  # conservative fallback (v7x physical size)
    return int(min(cap * 3 // 4, 64 * _MIB))


def _choose_tq(S, D, Cp, in_itemsize, budget_bytes):
    """Largest query tile (divisor of S; multiple of 8 or == S) whose
    double-buffered VMEM footprint fits `budget_bytes`."""

    def footprint(tq):
        blocks = (tq * D * in_itemsize      # key tile
                  + S * D * in_itemsize     # full value (resident across q)
                  + tq * S                  # int8 keep-mask tile (dense-mask worst case)
                  + tq * Cp * 4             # merged output slab tile (f32)
                  + D * Cp * 4 + Cp * 4)    # augmented head weight / bias (f32)
        # Conservative live-temp estimate: scores f32 + masked f32 + exp f32 +
        # compute-dtype copy of p (review concern: don't undercount).
        temps = tq * S * 12
        return 2 * blocks + temps

    candidates = [S] + [t for t in (2048, 1024, 512, 256, 128, 64, 32, 16, 8) if t < S]
    for tq in candidates:
        if S % tq == 0 and (tq == S or tq % 8 == 0) and footprint(tq) <= budget_bytes:
            return tq
    return S  # tiny-S fallback: one query tile (full dim is always legal)


def _wrapper_kernel(k_ref, v_ref, m_ref, w_ref, b_ref, slab_ref, *,
                    scale, compute_dtype, exp_dtype, approx_recip):
    # Per-grid-step views:
    #   k_ref:    (1, TQ, D)        query tile of `key` (compute dtype, unpadded)
    #   v_ref:    (1, S,  D)        full `value` (block index constant across q axis)
    #   m_ref:    (1, TQ, S) int8   dense keep mask, OR
    #             (1, 1,  S) int8   key-padding mask (broadcast over queries)
    #   w_ref:    (D, Cp) f32       [ I_D | W_head | 0 ]  (augmented head weight)
    #   b_ref:    (1, Cp) f32       [ 0   | b_head | 0 ]
    #   slab_ref: (1, TQ, Cp) f32   merged output: lanes [0:D]=_out, [D:D+H]=head(_out)

    # Fold 1/sqrt(D) into the small (TQ, D) key tile instead of a (TQ, S) pass.
    k = (k_ref[0].astype(jnp.float32) * scale).astype(compute_dtype)
    v = v_ref[0]
    keep = m_ref[0]                      # (TQ, S) or (1, S); broadcasts below

    # scores = (K . V^T) / sqrt(D): contract the feature dims directly on the
    # MXU (no materialized V.T), f32 accumulation.  Mask fused as one select.
    s = jax.lax.dot_general(
        k, v, dimension_numbers=(((1,), (1,)), ((), ())),
        preferred_element_type=jnp.float32)
    s = jnp.where(keep != 0, s, _NEG_INF)

    # Numerically stable softmax with DEFERRED normalization.
    s_max = jnp.max(s, axis=-1, keepdims=True)
    x = s - s_max
    if exp_dtype is not None:
        x = x.astype(exp_dtype)          # opt-in bf16 EUP path (v6e/v7x)
    p = jnp.exp(x)
    denom = jnp.sum(p.astype(jnp.float32), axis=-1, keepdims=True)

    out_un = jnp.dot(p.astype(compute_dtype), v,
                     preferred_element_type=jnp.float32)          # (TQ, D)
    out = out_un * pl.reciprocal(denom, approx=approx_recip)      # (TQ, D) mul only

    # One augmented f32 matmul emits the merged slab:
    #   lanes [0:D]   = out @ I_D        (== _out, exact)
    #   lanes [D:D+H] = out @ W_head + b (== head(_out))
    slab = jnp.dot(out, w_ref[...], preferred_element_type=jnp.float32) + b_ref[...]
    slab_ref[0] = slab.astype(slab_ref.dtype)                     # full-width vst


def wrapper_forward(key, value, mask, w_head, b_head, *,
                    compute_dtype=jnp.bfloat16,
                    exp_dtype=None,
                    query_tile=None,
                    vmem_limit_bytes=None):
    """Pallas equivalent of Wrapper.forward -> (head(_out), _out, _out).

    `mask` may be a dense (B, S, S) mask or a key-padding mask (B, S), and may
    be a boolean keep-mask (True = attend) or a *binary* additive float mask
    (0 = keep, -1e9 = drop).  It is shipped to the kernel as int8 keep/drop.
    `compute_dtype` selects MXU input precision (bf16 fast path / f32 exact
    path); accumulation is always f32.  `exp_dtype=jnp.bfloat16` enables the
    bf16 EUP exponent on v6e/v7x (keep None on v5e).
    """
    key = jnp.asarray(key)
    value = jnp.asarray(value)
    mask = jnp.asarray(mask)
    w_head = jnp.asarray(w_head)
    b_head = jnp.asarray(b_head).reshape(-1)

    B, S, D = key.shape
    H = w_head.shape[1]
    scale = 1.0 / math.sqrt(D)

    use_bf16 = jnp.dtype(compute_dtype) == jnp.dtype(jnp.bfloat16)
    approx_recip = bool(use_bf16)
    in_dtype = jnp.bfloat16 if use_bf16 else jnp.float32

    # ---- mask: ship keep/drop as int8 (smallest possible HBM stream) ----
    if mask.dtype == jnp.bool_:
        keep = mask
    else:
        keep = mask > -1.0  # binary additive convention: 0 keep, -1e9 drop
    keep = keep.astype(jnp.int8)
    if keep.ndim == 2:                                 # key-padding mask (B, S)
        keep = keep.reshape(B, 1, S)
        mask_block = (1, 1, S)
        mask_map = lambda b, q: (b, 0, 0)
    else:                                              # dense mask (B, S, S)
        mask_block = None                              # set once TQ is known
        mask_map = lambda b, q: (b, q, 0)

    # ---- K/V stay UNPADDED in HBM (block last dim == full array dim D) ----
    key_in = key.astype(in_dtype)
    val_in = value.astype(in_dtype)

    # ---- merged lane-dense output slab: [ _out | head(_out) | 0-pad ] ----
    Cp = _round_up(D + H, 128)
    w_aug = jnp.zeros((D, Cp), jnp.float32)
    w_aug = w_aug.at[:, :D].set(jnp.eye(D, dtype=jnp.float32))
    w_aug = w_aug.at[:, D:D + H].set(w_head.astype(jnp.float32))
    b_aug = jnp.zeros((1, Cp), jnp.float32).at[:, D:D + H].set(
        b_head.astype(jnp.float32)[None, :])

    # ---- per-generation VMEM budget / query-tile size ----
    if vmem_limit_bytes is None:
        vmem_limit_bytes = _vmem_limit_bytes()
    if query_tile is None:
        TQ = _choose_tq(S, D, Cp, jnp.dtype(in_dtype).itemsize, vmem_limit_bytes)
    else:
        assert S % query_tile == 0 and (query_tile == S or query_tile % 8 == 0)
        TQ = query_tile
    if mask_block is None:
        mask_block = (1, TQ, S)

    kernel = partial(_wrapper_kernel, scale=scale,
                     compute_dtype=jnp.dtype(compute_dtype),
                     exp_dtype=None if exp_dtype is None else jnp.dtype(exp_dtype),
                     approx_recip=approx_recip)

    slab = pl.pallas_call(
        kernel,
        out_shape=jax.ShapeDtypeStruct((B, S, Cp), jnp.float32),
        grid_spec=pltpu.PrefetchScalarGridSpec(
            num_scalar_prefetch=0,
            grid=(B, S // TQ),
            in_specs=[
                pl.BlockSpec((1, TQ, D), lambda b, q: (b, q, 0)),   # key tile
                pl.BlockSpec((1, S, D), lambda b, q: (b, 0, 0)),    # value (resident)
                pl.BlockSpec(mask_block, mask_map),                 # int8 keep mask
                pl.BlockSpec((D, Cp), lambda b, q: (0, 0)),         # [I | W_head | 0]
                pl.BlockSpec((1, Cp), lambda b, q: (0, 0)),         # [0 | b_head | 0]
            ],
            out_specs=pl.BlockSpec((1, TQ, Cp), lambda b, q: (b, q, 0)),
        ),
        compiler_params=pltpu.CompilerParams(
            # Both axes independent -> shardable across v7x's two TensorCores.
            dimension_semantics=("parallel", "parallel"),
            vmem_limit_bytes=int(vmem_limit_bytes),
        ),
    )(key_in, val_in, keep, w_aug, b_aug)

    out = slab[..., :D]
    head_out = slab[..., D:D + H]
    # Wrapper.forward returns (self.head(_out), _out, _out)
    return head_out, out, out


def _reference(key, value, keep, w_head, b_head):
    D = key.shape[-1]
    if keep.ndim == 2:
        keep = keep[:, None, :]
    add_mask = jnp.where(keep, 0.0, _NEG_INF).astype(jnp.float32)
    s = jnp.einsum("bqd,bkd->bqk", key, value) / math.sqrt(D) + add_mask
    att = jax.nn.softmax(s, axis=-1)
    out = jnp.einsum("bqk,bkd->bqd", att, value)
    head = out @ w_head + b_head
    return head, out


if __name__ == "__main__":
    root = jax.random.PRNGKey(0)
    k_key, k_val, k_mask, k_w, k_b = jax.random.split(root, 5)

    def make_inputs(B, S, D, H, mask_rank=3):
        key = jax.random.normal(k_key, (B, S, D), dtype=jnp.float32)
        value = jax.random.normal(k_val, (B, S, D), dtype=jnp.float32)
        shape = (B, S, S) if mask_rank == 3 else (B, S)
        keep = jax.random.bernoulli(k_mask, 0.9, shape)          # bool keep-mask
        bound = 1.0 / math.sqrt(D)
        w = jax.random.uniform(k_w, (D, H), minval=-bound, maxval=bound,
                               dtype=jnp.float32)
        b = jax.random.uniform(k_b, (1, H), minval=-bound, maxval=bound,
                               dtype=jnp.float32)
        return key, value, keep, w, b

    # --- Case 1: f32 MXU path, dense (B,S,S) mask, forced q-tiling (grid 2x4). ---
    key, value, keep, w, b = make_inputs(2, 1024, 32, 16)
    h_k, o1, o2 = wrapper_forward(key, value, keep, w, b,
                                  compute_dtype=jnp.float32, query_tile=256)
    jax.block_until_ready((h_k, o1, o2))
    h_r, o_r = _reference(key, value, keep, w, b)
    assert jnp.allclose(h_k, h_r, atol=1e-3, rtol=1e-3)
    assert jnp.allclose(o1, o_r, atol=1e-3, rtol=1e-3)
    assert jnp.allclose(o2, o_r, atol=1e-3, rtol=1e-3)

    # --- Case 2: fast path (bf16 MXU inputs, f32 acc, EUP rcp), auto tile size. ---
    h_k, o1, _ = wrapper_forward(key, value, keep, w, b,
                                 compute_dtype=jnp.bfloat16)
    jax.block_until_ready((h_k, o1))
    assert jnp.allclose(h_k, h_r, atol=1e-2, rtol=1e-2)
    assert jnp.allclose(o1, o_r, atol=1e-2, rtol=1e-2)

    # --- Case 3: key-padding mask (B,S) -> tiny mask DMA stream. ---
    key, value, keep, w, b = make_inputs(2, 256, 32, 16, mask_rank=2)
    h_k, o1, _ = wrapper_forward(key, value, keep, w, b,
                                 compute_dtype=jnp.float32)
    jax.block_until_ready((h_k, o1))
    h_r, o_r = _reference(key, value, keep, w, b)
    assert jnp.allclose(h_k, h_r, atol=1e-3, rtol=1e-3)
    assert jnp.allclose(o1, o_r, atol=1e-3, rtol=1e-3)

    # --- Case 4: tiny-S fallback (single query tile). ---
    key, value, keep, w, b = make_inputs(2, 64, 32, 16)
    h_k, o1, _ = wrapper_forward(key, value, keep, w, b,
                                 compute_dtype=jnp.float32)
    jax.block_until_ready((h_k, o1))
    h_r, o_r = _reference(key, value, keep, w, b)
    assert jnp.allclose(h_k, h_r, atol=1e-3, rtol=1e-3)
    assert jnp.allclose(o1, o_r, atol=1e-3, rtol=1e-3)

    print("KERNEL_OK")
</pallas_src>

<mosaic_0001>
module attributes {stable_mosaic.version = 11 : i64} {
  func.func @_wrapper_kernel(%arg0: i32, %arg1: i32, %arg2: memref<1x256x32xf32, #tpu.memory_space<vmem>>, %arg3: memref<1x1024x32xf32, #tpu.memory_space<vmem>>, %arg4: memref<1x256x1024xi8, #tpu.memory_space<vmem>>, %arg5: memref<32x128xf32, #tpu.memory_space<vmem>>, %arg6: memref<1x128xf32, #tpu.memory_space<vmem>>, %arg7: memref<1x256x128xf32, #tpu.memory_space<vmem>>) attributes {dimension_semantics = [#tpu.dimension_semantics<parallel>, #tpu.dimension_semantics<parallel>], iteration_bounds = array<i64: 2, 4>, scalar_prefetch = 0 : i64, scratch_operands = 0 : i64, tpu.core_type = #tpu.core_type<tc>, window_params = [{transform_indices = @transform_0, window_bounds = array<i64: 1, 256, 32>}, {transform_indices = @transform_1, window_bounds = array<i64: 1, 1024, 32>}, {transform_indices = @transform_2, window_bounds = array<i64: 1, 256, 1024>}, {pipeline_mode = #tpu.pipeline_mode<synchronous>, transform_indices = @transform_3, window_bounds = array<i64: 32, 128>}, {pipeline_mode = #tpu.pipeline_mode<synchronous>, transform_indices = @transform_4, window_bounds = array<i64: 1, 128>}, {transform_indices = @transform_5, window_bounds = array<i64: 1, 256, 128>}]} {
    %c0 = arith.constant 0 : index
    %c0_0 = arith.constant 0 : index
    %c0_1 = arith.constant 0 : index
    %0 = vector.load %arg2[%c0, %c0_0, %c0_1] : memref<1x256x32xf32, #tpu.memory_space<vmem>>, vector<1x256x32xf32>
    %1 = vector.shape_cast %0 : vector<1x256x32xf32> to vector<256x32xf32>
    %cst = arith.constant 0.176776692 : f32
    %2 = vector.broadcast %cst : f32 to vector<256x32xf32>
    %3 = arith.mulf %1, %2 : vector<256x32xf32>
    %c0_2 = arith.constant 0 : index
    %c0_3 = arith.constant 0 : index
    %c0_4 = arith.constant 0 : index
    %4 = vector.load %arg3[%c0_2, %c0_3, %c0_4] : memref<1x1024x32xf32, #tpu.memory_space<vmem>>, vector<1x1024x32xf32>
    %5 = vector.shape_cast %4 : vector<1x1024x32xf32> to vector<1024x32xf32>
    %c0_5 = arith.constant 0 : index
    %c0_6 = arith.constant 0 : index
    %c0_7 = arith.constant 0 : index
    %6 = vector.load %arg4[%c0_5, %c0_6, %c0_7] : memref<1x256x1024xi8, #tpu.memory_space<vmem>>, vector<1x256x1024xi8>
    %7 = vector.shape_cast %6 : vector<1x256x1024xi8> to vector<256x1024xi8>
    %cst_8 = arith.constant dense<0.000000e+00> : vector<256x1024xf32>
    %8 = tpu.matmul %3, %5, %cst_8 {dimension_numbers = #tpu.dot_dimension_numbers<[1], [1], [0], [0], [0, 0, 1, 0], [], []>} : vector<256x32xf32>, vector<1024x32xf32>, vector<256x1024xf32> -> vector<256x1024xf32>
    %c0_i8 = arith.constant 0 : i8
    %9 = vector.broadcast %c0_i8 : i8 to vector<256x1024xi8>
    %10 = arith.cmpi ne, %7, %9 : vector<256x1024xi8>
    %cst_9 = arith.constant -1.000000e+09 : f32
    %11 = vector.broadcast %cst_9 : f32 to vector<256x1024xf32>
    %12 = arith.select %10, %8, %11 : vector<256x1024xi1>, vector<256x1024xf32>
    %cst_10 = arith.constant dense<0xFF800000> : vector<256xf32>
    %13 = vector.multi_reduction <maximumf>, %12, %cst_10 [1] : vector<256x1024xf32> to vector<256xf32>
    %14 = vector.shape_cast %13 : vector<256xf32> to vector<256x1xf32>
    %15 = vector.broadcast %14 : vector<256x1xf32> to vector<256x1024xf32>
    %16 = arith.subf %12, %15 : vector<256x1024xf32>
    %17 = math.exp %16 : vector<256x1024xf32>
    %cst_11 = arith.constant dense<0.000000e+00> : vector<256xf32>
    %18 = vector.multi_reduction <add>, %17, %cst_11 [1] : vector<256x1024xf32> to vector<256xf32>
    %19 = vector.shape_cast %18 : vector<256xf32> to vector<256x1xf32>
    %cst_12 = arith.constant dense<0.000000e+00> : vector<256x32xf32>
    %20 = tpu.matmul %17, %5, %cst_12 {dimension_numbers = #tpu.dot_dimension_numbers<[1], [0], [0], [1], [0, 0, 1, 1], [], []>} : vector<256x1024xf32>, vector<1024x32xf32>, vector<256x32xf32> -> vector<256x32xf32>
    %21 = tpu.reciprocal %19 : vector<256x1xf32> -> vector<256x1xf32>
    %22 = vector.broadcast %21 : vector<256x1xf32> to vector<256x32xf32>
    %23 = arith.mulf %20, %22 : vector<256x32xf32>
    %c0_13 = arith.constant 0 : index
    %c0_14 = arith.constant 0 : index
    %24 = vector.load %arg5[%c0_13, %c0_14] : memref<32x128xf32, #tpu.memory_space<vmem>>, vector<32x128xf32>
    %cst_15 = arith.constant dense<0.000000e+00> : vector<256x128xf32>
    %25 = tpu.matmul %23, %24, %cst_15 {dimension_numbers = #tpu.dot_dimension_numbers<[1], [0], [0], [1], [0, 0, 1, 1], [], []>} : vector<256x32xf32>, vector<32x128xf32>, vector<256x128xf32> -> vector<256x128xf32>
    %c0_16 = arith.constant 0 : index
    %c0_17 = arith.constant 0 : index
    %26 = vector.load %arg6[%c0_16, %c0_17] : memref<1x128xf32, #tpu.memory_space<vmem>>, vector<1x128xf32>
    %27 = vector.broadcast %26 : vector<1x128xf32> to vector<256x128xf32>
    %28 = arith.addf %25, %27 : vector<256x128xf32>
    %c0_18 = arith.constant 0 : index
    %c0_19 = arith.constant 0 : index
    %c0_20 = arith.constant 0 : index
    %29 = vector.load %arg7[%c0_18, %c0_19, %c0_20] : memref<1x256x128xf32, #tpu.memory_space<vmem>>, vector<1x256x128xf32>
    %30 = vector.shape_cast %29 : vector<1x256x128xf32> to vector<256x128xf32>
    %31 = vector.shape_cast %28 : vector<256x128xf32> to vector<1x256x128xf32>
    tpu.vector_store %arg7[%c0_18, %c0_19, %c0_20], %31 {strides = array<i32>} : memref<1x256x128xf32, #tpu.memory_space<vmem>>, vector<1x256x128xf32>,
    return
  }
  func.func @transform_0(%arg0: i32, %arg1: i32) -> (i32, i32, i32) {
    %c0_i32 = arith.constant 0 : i32
    %c0_i32_0 = arith.constant 0 : i32
    return %arg0, %arg1, %c0_i32 : i32, i32, i32
  }
  func.func @transform_1(%arg0: i32, %arg1: i32) -> (i32, i32, i32) {
    %c0_i32 = arith.constant 0 : i32
    %c0_i32_0 = arith.constant 0 : i32
    %c0_i32_1 = arith.constant 0 : i32
    return %arg0, %c0_i32, %c0_i32_0 : i32, i32, i32
  }
  func.func @transform_2(%arg0: i32, %arg1: i32) -> (i32, i32, i32) {
    %c0_i32 = arith.constant 0 : i32
    %c0_i32_0 = arith.constant 0 : i32
    return %arg0, %arg1, %c0_i32 : i32, i32, i32
  }
  func.func @transform_3(%arg0: i32, %arg1: i32) -> (i32, i32) {
    %c0_i32 = arith.constant 0 : i32
    %c0_i32_0 = arith.constant 0 : i32
    %c0_i32_1 = arith.constant 0 : i32
    return %c0_i32, %c0_i32_0 : i32, i32
  }
  func.func @transform_4(%arg0: i32, %arg1: i32) -> (i32, i32) {
    %c0_i32 = arith.constant 0 : i32
    %c0_i32_0 = arith.constant 0 : i32
    %c0_i32_1 = arith.constant 0 : i32
    return %c0_i32, %c0_i32_0 : i32, i32
  }
  func.func @transform_5(%arg0: i32, %arg1: i32) -> (i32, i32, i32) {
    %c0_i32 = arith.constant 0 : i32
    %c0_i32_0 = arith.constant 0 : i32
    return %arg0, %arg1, %c0_i32 : i32, i32, i32
  }
}

</mosaic_0001>

<bundles_post_ra>
// kernel: tpu_custom_call.1
= control target key start
LH: loop header
LB: loop body
LE: loop exit
PB: predicated region body
PF: predicated region fallthrough
CT: control target
= control target key end

     0   :  { %10 = vsyncpa [#allocation3], 0  ;;  %s16276_s0 = inlined_call_operand.vmem [shape: f32[2,1024,32], index: 0, kind: input, shape index: {}]   ;;  %s16277_s1 = inlined_call_operand.vmem [shape: f32[2,1024,32], index: 1, kind: input, shape index: {}]   ;;  %s16278_s2 = inlined_call_operand.vmem [shape: s8[2,1024,1024], index: 2, kind: input, shape index: {}]   ;;  %s16279_s3 = inlined_call_operand.vmem [shape: f32[32,128], index: 3, kind: input, shape index: {}]   ;;  %s16280_s4 = inlined_call_operand.vmem [shape: f32[1,128], index: 4, kind: input, shape index: {}]   ;;  %s16281_s5 = inlined_call_operand.hbm [shape: f32[2,1024,128], index: 5, kind: output, shape index: {}]  }
   0x1   :  { %12 = vsyncpa [#allocation3 + $0x1], 0  ;;  %s8516_s18 = smov 0   ;;  %s8518_s19 = smov 0  }
   0x2   :  { %s8520_s20 = smov 0   ;;  %s8522_s21 = smov 0  }
   0x3   :  { %s8524_s22 = smov 0   ;;  %s8526_s23 = smov 0  }
   0x4   :  { %s8528_s24 = smov 0   ;;  %s8530_s25 = smov 0  }
   0x5 LB: > { %s6355_s26 = sadd.s32 4294967295, %s8479_s25   ;;  %s6356_s27 = sadd.s32 4294967294, %s8479_s25   ;;  %s8479_s25 = sphi %s8530_s25, %s18_s25   ;;  %s8475_s24 = sphi %s8528_s24, %s19203_s24   ;;  %s8471_s23 = sphi %s8526_s23, %s19202_s23   ;;  %s8467_s22 = sphi %s8524_s22, %s19201_s22   ;;  %s8463_s21 = sphi %s8522_s21, %s19200_s21   ;;  %s8459_s20 = sphi %s8520_s20, %s19199_s20   ;;  %s8455_s19 = sphi %s8518_s19, %s19198_s19   ;;  %s8451_s18 = sphi %s8516_s18, %s19197_s18  }
   0x6   : > { %s27_s28 = sadd.s32 1, %s8471_s23  ;;  %s30_s29 = sadd.s32 1, %s8475_s24 }
   0x7   : > { %p28_p0 = scmp.ge.s32.totalorder %s27_s28, 4  ;;  %p173_p1 = scmp.ne.s32.totalorder %s8459_s20, %s8455_s19 }
   0x8   : > { %p174_p2 = scmp.eq.s32.totalorder %s6355_s26, 7  ;;  %p179_p5 = scmp.ne.s32.totalorder %s8455_s19, %s8451_s18 }
   0x9   : > { %s19205_s28 = smov (%p28_p0, %s27_s28), 0  ;;  %s19207_s29 = smov (!%p28_p0, %s30_s29), %s8475_s24 }
   0xa   : > { %s159_s30 = ssub.s32 %s8471_s23, %s19205_s28  ;;  %p8567_p3 = por %p174_p2, %p173_p1 }
   0xb   : > { %p32_p4 = scmp.ge.s32.totalorder %s19207_s29, 2  ;;  %p180_p6 = scmp.eq.s32.totalorder %s6356_s27, 7 }
   0xc   : > { %p6359_p7 = scmp.ge.s32.totalorder %s8479_s25, 1  ;;  %p239_p9 = scmp.lt.s32.totalorder %s8479_s25, 9 }
   0xd   : > { %s19209_s29 = smov (%p32_p4, %s19207_s29), 0  ;;  %p8576_p8 = por %p180_p6, %p179_p5 }
   0xe   : > { %s158_s8 = ssub.s32 %s8475_s24, %s19209_s29  ;;  %s163_s9 = sadd.s32 1, %s8459_s20 }
   0xf   : > { %s160_s10 = sor.u32 %s159_s30, %s158_s8  ;;  %p240_p10 = pnand %p6359_p7, %p239_p9 }
  0x10   : > { %p161_p11 = scmp.eq.s32.totalorder %s160_s10, 0 }
  0x11   : > { %243 = sbr.rel (%p240_p10) target bundleno = 1773 (0x6ed), region = 40 }
  0x12   : > { %s8585_s11 = scalar_select %p161_p11, %s8459_s20, %s163_s9  }
  0x18   : > { %p287_p12 = scmp.lt.s32.totalorder %s8467_s22, 1  ;;  %s8589_s12 = sshll.u32 %s8463_s21, 5  ;;  %vm16628_vm0 = vcmask 261120  }
  0x19   : > { %p289_p13 = scmp.lt.s32.totalorder %s8589_s12, 127  ;;  %vm8605_vm1 = vmpackc.low %vm16628_vm0, %vm16628_vm0  ;;  %s6661_s9 = sshll.u32 %s8467_s22, 7 }
  0x1a   : > { %s8593_s13 = scalar_select %p287_p12, %s8467_s22, 1 }
  0x1b   : > { %s290_s14 = scalar_select %p289_p13, %s8589_s12, 127 }
  0x1c   : > { %s6665_s15 = sshll.u32 %s8593_s13, 10  ;;  %s6362_s16 = sshll.u32 %s8593_s13, 7 }
  0x1d   : > { %s8601_s27 = scalar_lea.vmem %s16277_s1, %s6665_s15  ;;  %s292_s30 = sadd.s32 %s6362_s16, %s290_s14 }
  0x1e   : > { %v395_v1 = vld [vmem:[%s8601_s27 + $0x80] sm:$0xff]  ;;  %v396_v2 = vld [vmem:[%s8601_s27 + $0x88] sm:$0xff]  ;;  %v397_v6 = vld [vmem:[%s8601_s27 + $0x90] sm:$0xff]  ;;  %s6363_s8 = sshll.u32 %s292_s30, 3  ;;  %s6366_s15 = sshll.u32 %s8463_s21, 3 }
  0x1f   : > { %v379_v3 = vld [vmem:[%s8601_s27] sm:$0xff]  ;;  %v8612_v4 = vpack.c.bf16 %v396_v2, %v395_v1  ;;  %v380_v5 = vld [vmem:[%s8601_s27 + $0x8] sm:$0xff]  ;;  %v398_v7 = vld [vmem:[%s8601_s27 + $0x98] sm:$0xff]  ;;  %s8637_s14 = scalar_lea.vmem %s16276_s0, %s6363_s8  ;;  %p304_p0 = scmp.lt.s32.totalorder %s6366_s15, 31 }
  0x20   : > { %v8617_v8 = vpack.c.bf16 %v380_v5, %v379_v3  ;;  %v8619_v9 = vpack.c.bf16 %v398_v7, %v397_v6  ;;  %v381_v10 = vld [vmem:[%s8601_s27 + $0x10] sm:$0xff]  ;;  %v382_v11 = vld [vmem:[%s8601_s27 + $0x18] sm:$0xff]  ;;  %v399_v12 = vld [vmem:[%s8601_s27 + $0xa0] sm:$0xff]  ;;  %s6368_s16 = sshll.u32 %s8593_s13, 8  ;;  %s6237_s10 = sadd.s32 %s6661_s9, %s8589_s12 }
  0x21   : > { %16972 = vst [vmem:[#allocation5_spill] sm:$0xff] %v8612_v4  ;;  %7144 = vmatprep.subr.msk.bf16.mxu1 %vm8605_vm1, %v8612_v4  ;;  %v400_v13 = vld [vmem:[%s8601_s27 + $0xa8] sm:$0xff]  ;;  %v8639_v14 = vpack.c.bf16 %v382_v11, %v381_v10  ;;  %v315_v16 = vld [vmem:[%s8637_s14] sm:$0xff]  ;;  %v401_v20 = vld [vmem:[%s8601_s27 + $0xb0] sm:$0xff]  ;;  %s19211_s15 = smov (!%p304_p0, %s6366_s15), 31 }
  0x22   : > { %16973 = vst [vmem:[#allocation6_spill] sm:$0xff] %v8617_v8  ;;  %16974 = vst [vmem:[#allocation7_spill] sm:$0xff] %v8619_v9  ;;  %7147 = vmatpush3.bf16.xpose.msk.msra.mxu1 %vm8605_vm1, %v8617_v8  ;;  %v8641_v15 = vpack.c.bf16 %v400_v13, %v399_v12  ;;  %v8644_v17 = vmul.f32 0.17677669, %v315_v16  ;;  %v383_v18 = vld [vmem:[%s8601_s27 + $0x20] sm:$0xff]  ;;  %v384_v19 = vld [vmem:[%s8601_s27 + $0x28] sm:$0xff] }
  0x23   : > { %7150 = vmatprep.subr.msk.bf16.mxu1 %vm8605_vm1, %v8619_v9  ;;  %16975 = vst [vmem:[#allocation8_spill] sm:$0xff] %v8639_v14  ;;  %v402_v21 = vld [vmem:[%s8601_s27 + $0xb8] sm:$0xff]  ;;  %v8660_v22 = vpack.c.bf16 %v384_v19, %v383_v18  ;;  %v385_v24 = vld [vmem:[%s8601_s27 + $0x30] sm:$0xff]  ;;  %v403_v26 = vld [vmem:[%s8601_s27 + $0xc0] sm:$0xff]  ;;  %s6367_s21 = sshll.u32 %s19211_s15, 3 }
  0x24   : > { %16976 = vst [vmem:[#allocation9_spill] sm:$0xff] %v8641_v15  ;;  %6698 = vmatprep.mubr.msk.f32.mxu1 %vm16628_vm0, %v8644_v17  ;;  %6890 = vmatprep.mubr.msk.f32.mxu0 %vm16628_vm0, %v8644_v17  ;;  %v8662_v23 = vpack.c.bf16 %v402_v21, %v401_v20  ;;  %v386_v25 = vld [vmem:[%s8601_s27 + $0x38] sm:$0xff]  ;;  %v404_v27 = vld [vmem:[%s8601_s27 + $0xc8] sm:$0xff]  ;;  %v459_v30 = vld [vmem:[%s8601_s27 + $0x280] sm:$0xff]  ;;  %s308_s17 = sadd.s32 %s6368_s16, %s6367_s21 }
  0x25   : > { %16977 = vst [vmem:[#allocation10_spill] sm:$0xff] %v8660_v22  ;;  %v8674_v28 = vpack.c.bf16 %v386_v25, %v385_v24  ;;  %v8676_v29 = vpack.c.bf16 %v404_v27, %v403_v26  ;;  %v460_v31 = vld [vmem:[%s8601_s27 + $0x288] sm:$0xff]  ;;  %v443_v32 = vld [vmem:[%s8601_s27 + $0x200] sm:$0xff]  ;;  %v461_v36 = vld [vmem:[%s8601_s27 + $0x290] sm:$0xff]  ;;  %s6369_s13 = sshll.u32 %s308_s17, 3 }
  0x26   : > { %16978 = vst [vmem:[#allocation11_spill] sm:$0xff] %v8662_v23  ;;  %v444_v33 = vld [vmem:[%s8601_s27 + $0x208] sm:$0xff]  ;;  %v8685_v34 = vpack.c.bf16 %v460_v31, %v459_v30  ;;  %v387_v37 = vld [vmem:[%s8601_s27 + $0x40] sm:$0xff]  ;;  %v462_v39 = vld [vmem:[%s8601_s27 + $0x298] sm:$0xff]  ;;  %s9470_s8 = scalar_lea.vmem %s16278_s2, %s6369_s13  ;;  %s283_s13 = sand.u32 1, %s8455_s19  }
  0x27   : > { %16979 = vst [vmem:[#allocation12_spill] sm:$0xff] %v8674_v28  ;;  %16980 = vst [vmem:[#allocation13_spill] sm:$0xff] %v8676_v29  ;;  %v8687_v35 = vpack.c.bf16 %v444_v33, %v443_v32  ;;  %v388_v38 = vld [vmem:[%s8601_s27 + $0x48] sm:$0xff]  ;;  %v405_v40 = vld [vmem:[%s8601_s27 + $0xd0] sm:$0xff]  ;;  %v8701_v42 = vpack.c.bf16 %v462_v39, %v461_v36  ;;  %s6360_s26 = sshll.u32 %s283_s13, 8  ;;  %s16224_s16 = scalar_lea.sflag [#allocation3], %s283_s13 }
  0x28   : > { %16981 = vst [vmem:[#allocation14_spill] sm:$0xff] %v8685_v34  ;;  %v406_v41 = vld [vmem:[%s8601_s27 + $0xd8] sm:$0xff]  ;;  %7240 = vmatprep.subr.msk.bf16.mxu0 %vm8605_vm1, %v8685_v34  ;;  %v8706_v43 = vpack.c.bf16 %v388_v38, %v387_v37  ;;  %v445_v44 = vld [vmem:[%s8601_s27 + $0x210] sm:$0xff]  ;;  %v463_v47 = vld [vmem:[%s8601_s27 + $0x2a0] sm:$0xff] }
  0x29   : > { %16982 = vst [vmem:[#allocation15_spill] sm:$0xff] %v8687_v35  ;;  %16983 = vst [vmem:[#allocation16_spill] sm:$0xff] %v8701_v42  ;;  %7243 = vmatpush3.bf16.xpose.msk.msra.mxu0 %vm8605_vm1, %v8687_v35  ;;  %v446_v45 = vld [vmem:[%s8601_s27 + $0x218] sm:$0xff]  ;;  %v8713_v46 = vpack.c.bf16 %v406_v41, %v405_v40  ;;  %v464_v48 = vld [vmem:[%s8601_s27 + $0x2a8] sm:$0xff] }
  0x2a   : > { %7153 = vmatpush3.bf16.xpose.msk.msra.mxu1 %vm8605_vm1, %v8639_v14  ;;  %16984 = vst [vmem:[#allocation17_spill] sm:$0xff] %v8706_v43  ;;  %7246 = vmatprep.subr.msk.bf16.mxu0 %vm8605_vm1, %v8701_v42  ;;  %v8717_v49 = vpack.c.bf16 %v446_v45, %v445_v44  ;;  %v8722_v50 = vpack.c.bf16 %v464_v48, %v463_v47  ;;  %v389_v51 = vld [vmem:[%s8601_s27 + $0x50] sm:$0xff]  ;;  %v390_v52 = vld [vmem:[%s8601_s27 + $0x58] sm:$0xff]  ;;  %v407_v53 = vld [vmem:[%s8601_s27 + $0xe0] sm:$0xff] }
  0x2b   : > { %7156 = vmatprep.subr.msk.bf16.mxu1 %vm8605_vm1, %v8641_v15  ;;  %16985 = vst [vmem:[#allocation18_spill] sm:$0xff] %v8713_v46  ;;  %v408_v54 = vld [vmem:[%s8601_s27 + $0xe8] sm:$0xff]  ;;  %v8734_v55 = vpack.c.bf16 %v390_v52, %v389_v51  ;;  %v447_v56 = vld [vmem:[%s8601_s27 + $0x220] sm:$0xff]  ;;  %v465_v59 = vld [vmem:[%s8601_s27 + $0x2b0] sm:$0xff] }
  0x2c   : > { %16986 = vst [vmem:[#allocation19_spill] sm:$0xff] %v8717_v49  ;;  %16987 = vst [vmem:[#allocation20_spill] sm:$0xff] %v8722_v50  ;;  %v448_v57 = vld [vmem:[%s8601_s27 + $0x228] sm:$0xff]  ;;  %v8741_v58 = vpack.c.bf16 %v408_v54, %v407_v53  ;;  %v466_v60 = vld [vmem:[%s8601_s27 + $0x2b8] sm:$0xff] }
  0x2d   : > { %16988 = vst [vmem:[#allocation21_spill] sm:$0xff] %v8734_v55  ;;  %v8745_v61 = vpack.c.bf16 %v448_v57, %v447_v56  ;;  %v8750_v62 = vpack.c.bf16 %v466_v60, %v465_v59  ;;  %v391_v63 = vld [vmem:[%s8601_s27 + $0x60] sm:$0xff]  ;;  %v392_v1 = vld [vmem:[%s8601_s27 + $0x68] sm:$0xff]  ;;  %v409_v2 = vld [vmem:[%s8601_s27 + $0xf0] sm:$0xff] }
  0x2e   : > { %16989 = vst [vmem:[#allocation22_spill] sm:$0xff] %v8741_v58  ;;  %v410_v3 = vld [vmem:[%s8601_s27 + $0xf8] sm:$0xff]  ;;  %v8762_v5 = vpack.c.bf16 %v392_v1, %v391_v63  ;;  %v449_v6 = vld [vmem:[%s8601_s27 + $0x230] sm:$0xff]  ;;  %v467_v11 = vld [vmem:[%s8601_s27 + $0x2c0] sm:$0xff] }
  0x2f   : > { %16990 = vst [vmem:[#allocation23_spill] sm:$0xff] %v8745_v61  ;;  %16991 = vst [vmem:[#allocation24_spill] sm:$0xff] %v8750_v62  ;;  %v450_v7 = vld [vmem:[%s8601_s27 + $0x238] sm:$0xff]  ;;  %v8769_v10 = vpack.c.bf16 %v410_v3, %v409_v2  ;;  %v468_v12 = vld [vmem:[%s8601_s27 + $0x2c8] sm:$0xff] }
  0x30   : > { %16992 = vst [vmem:[#allocation25_spill] sm:$0xff] %v8762_v5  ;;  %v8773_v13 = vpack.c.bf16 %v450_v7, %v449_v6  ;;  %v8778_v16 = vpack.c.bf16 %v468_v12, %v467_v11  ;;  %v393_v18 = vld [vmem:[%s8601_s27 + $0x70] sm:$0xff]  ;;  %v394_v19 = vld [vmem:[%s8601_s27 + $0x78] sm:$0xff]  ;;  %v427_v20 = vld [vmem:[%s8601_s27 + $0x180] sm:$0xff] }
  0x31   : > { %7249 = vmatpush3.bf16.xpose.msk.msra.mxu0 %vm8605_vm1, %v8717_v49  ;;  %16993 = vst [vmem:[#allocation26_spill] sm:$0xff] %v8769_v10  ;;  %v428_v21 = vld [vmem:[%s8601_s27 + $0x188] sm:$0xff]  ;;  %v8790_v24 = vpack.c.bf16 %v394_v19, %v393_v18  ;;  %v451_v25 = vld [vmem:[%s8601_s27 + $0x240] sm:$0xff]  ;;  %v469_v30 = vld [vmem:[%s8601_s27 + $0x2d0] sm:$0xff] }
  0x32   : > { %7159 = vmatpush3.bf16.xpose.msk.msra.mxu1 %vm8605_vm1, %v8660_v22  ;;  %7252 = vmatprep.subr.msk.bf16.mxu0 %vm8605_vm1, %v8722_v50  ;;  %16994 = vst [vmem:[#allocation27_spill] sm:$0xff] %v8773_v13  ;;  %16995 = vst [vmem:[#allocation28_spill] sm:$0xff] %v8778_v16  ;;  %v452_v26 = vld [vmem:[%s8601_s27 + $0x248] sm:$0xff]  ;;  %v8797_v27 = vpack.c.bf16 %v428_v21, %v427_v20  ;;  %v470_v31 = vld [vmem:[%s8601_s27 + $0x2d8] sm:$0xff] }
  0x33   : > { %7162 = vmatprep.subr.msk.bf16.mxu1 %vm8605_vm1, %v8662_v23  ;;  %16996 = vst [vmem:[#allocation29_spill] sm:$0xff] %v8790_v24  ;;  %v8801_v32 = vpack.c.bf16 %v452_v26, %v451_v25  ;;  %v8806_v33 = vpack.c.bf16 %v470_v31, %v469_v30  ;;  %v411_v36 = vld [vmem:[%s8601_s27 + $0x100] sm:$0xff]  ;;  %v412_v37 = vld [vmem:[%s8601_s27 + $0x108] sm:$0xff]  ;;  %v429_v39 = vld [vmem:[%s8601_s27 + $0x190] sm:$0xff] }
  0x34   : > { %16997 = vst [vmem:[#allocation30_spill] sm:$0xff] %v8797_v27  ;;  %v316_v38 = vld [vmem:[%s8637_s14 + $0x8] sm:$0xff]  ;;  %v430_v40 = vld [vmem:[%s8601_s27 + $0x198] sm:$0xff]  ;;  %v8819_v41 = vpack.c.bf16 %v412_v37, %v411_v36  ;;  %v453_v45 = vld [vmem:[%s8601_s27 + $0x250] sm:$0xff] }
  0x35   : > { %16998 = vst [vmem:[#allocation31_spill] sm:$0xff] %v8801_v32  ;;  %16999 = vst [vmem:[#allocation32_spill] sm:$0xff] %v8806_v33  ;;  %v8821_v44 = vmul.f32 0.17677669, %v316_v38  ;;  %v454_v47 = vld [vmem:[%s8601_s27 + $0x258] sm:$0xff]  ;;  %v317_v48 = vld [vmem:[%s8637_s14 + $0x10] sm:$0xff]  ;;  %v8829_v51 = vpack.c.bf16 %v430_v40, %v429_v39 }
  0x36   : > { %17000 = vst [vmem:[#allocation33_spill] sm:$0xff] %v8819_v41  ;;  %v471_v52 = vld [vmem:[%s8601_s27 + $0x2e0] sm:$0xff]  ;;  %v472_v53 = vld [vmem:[%s8601_s27 + $0x2e8] sm:$0xff]  ;;  %v8835_v54 = vpack.c.bf16 %v454_v47, %v453_v45  ;;  %v8842_v56 = vmul.f32 0.17677669, %v317_v48  ;;  %v318_v59 = vld [vmem:[%s8637_s14 + $0x18] sm:$0xff] }
  0x37   : > { %17001 = vst [vmem:[#allocation34_spill] sm:$0xff] %v8829_v51  ;;  %v8844_v57 = vpack.c.bf16 %v472_v53, %v471_v52  ;;  %v413_v60 = vld [vmem:[%s8601_s27 + $0x110] sm:$0xff]  ;;  %v414_v63 = vld [vmem:[%s8601_s27 + $0x118] sm:$0xff]  ;;  %v431_v1 = vld [vmem:[%s8601_s27 + $0x1a0] sm:$0xff]  ;;  %v8861_v3 = vmul.f32 0.17677669, %v318_v59 }
  0x38   : > { %17002 = vst [vmem:[#allocation35_spill] sm:$0xff] %v8835_v54  ;;  %v432_v2 = vld [vmem:[%s8601_s27 + $0x1a8] sm:$0xff]  ;;  %v8863_v6 = vpack.c.bf16 %v414_v63, %v413_v60  ;;  %v455_v7 = vld [vmem:[%s8601_s27 + $0x260] sm:$0xff]  ;;  %v473_v19 = vld [vmem:[%s8601_s27 + $0x2f0] sm:$0xff] }
  0x39   : > { %7255 = vmatpush3.bf16.xpose.msk.msra.mxu0 %vm8605_vm1, %v8745_v61  ;;  %17003 = vst [vmem:[#allocation36_spill] sm:$0xff] %v8844_v57  ;;  %v456_v11 = vld [vmem:[%s8601_s27 + $0x268] sm:$0xff]  ;;  %v319_v12 = vld [vmem:[%s8637_s14 + $0x20] sm:$0xff]  ;;  %v8871_v18 = vpack.c.bf16 %v432_v2, %v431_v1  ;;  %v474_v20 = vld [vmem:[%s8601_s27 + $0x2f8] sm:$0xff] }
  0x3a   : > { %7165 = vmatpush3.bf16.xpose.msk.msra.mxu1 %vm8605_vm1, %v8674_v28  ;;  %7258 = vmatprep.subr.msk.bf16.mxu0 %vm8605_vm1, %v8750_v62  ;;  %17004 = vst [vmem:[#allocation37_spill] sm:$0xff] %v8863_v6  ;;  %v8877_v21 = vpack.c.bf16 %v456_v11, %v455_v7  ;;  %v8881_v25 = vmul.f32 0.17677669, %v319_v12  ;;  %v8886_v26 = vpack.c.bf16 %v474_v20, %v473_v19  ;;  %v320_v30 = vld [vmem:[%s8637_s14 + $0x28] sm:$0xff]  ;;  %v415_v31 = vld [vmem:[%s8601_s27 + $0x120] sm:$0xff]  ;;  %v433_v37 = vld [vmem:[%s8601_s27 + $0x1b0] sm:$0xff] }
  0x3b   : > { %7168 = vmatprep.subr.msk.bf16.mxu1 %vm8605_vm1, %v8676_v29  ;;  %17005 = vst [vmem:[#allocation38_spill] sm:$0xff] %v8871_v18  ;;  %v416_v36 = vld [vmem:[%s8601_s27 + $0x128] sm:$0xff]  ;;  %v434_v38 = vld [vmem:[%s8601_s27 + $0x1b8] sm:$0xff]  ;;  %v8903_v39 = vmul.f32 0.17677669, %v320_v30  ;;  %v457_v45 = vld [vmem:[%s8601_s27 + $0x270] sm:$0xff] }
  0x3c   : > { %17006 = vst [vmem:[#allocation39_spill] sm:$0xff] %v8877_v21  ;;  %17007 = vst [vmem:[#allocation40_spill] sm:$0xff] %v8886_v26  ;;  %v8905_v40 = vpack.c.bf16 %v416_v36, %v415_v31  ;;  %v458_v47 = vld [vmem:[%s8601_s27 + $0x278] sm:$0xff]  ;;  %v321_v48 = vld [vmem:[%s8637_s14 + $0x30] sm:$0xff]  ;;  %v8913_v52 = vpack.c.bf16 %v434_v38, %v433_v37 }
  0x3d   : > { %v8917_v53 = vpack.c.bf16 %v458_v47, %v457_v45  ;;  %v8921_v59 = vmul.f32 0.17677669, %v321_v48  ;;  %v322_v60 = vld [vmem:[%s8637_s14 + $0x38] sm:$0xff]  ;;  %v417_v63 = vld [vmem:[%s8601_s27 + $0x130] sm:$0xff]  ;;  %v435_v2 = vld [vmem:[%s8601_s27 + $0x1c0] sm:$0xff] }
  0x3e   : > { %17008 = vst [vmem:[#allocation41_spill] sm:$0xff] %v8905_v40  ;;  %17009 = vst [vmem:[#allocation42_spill] sm:$0xff] %v8913_v52  ;;  %v418_v1 = vld [vmem:[%s8601_s27 + $0x138] sm:$0xff]  ;;  %v436_v7 = vld [vmem:[%s8601_s27 + $0x1c8] sm:$0xff]  ;;  %v8941_v11 = vmul.f32 0.17677669, %v322_v60 }
  0x3f   : > { %17010 = vst [vmem:[#allocation43_spill] sm:$0xff] %v8917_v53  ;;  %v8943_v12 = vpack.c.bf16 %v418_v1, %v417_v63  ;;  %v323_v19 = vld [vmem:[%s8637_s14 + $0x40] sm:$0xff]  ;;  %v8946_v20 = vpack.c.bf16 %v436_v7, %v435_v2  ;;  %v324_v31 = vld [vmem:[%s8637_s14 + $0x48] sm:$0xff]  ;;  %v437_v38 = vld [vmem:[%s8601_s27 + $0x1d0] sm:$0xff] }
  0x40   : > { %v8952_v30 = vmul.f32 0.17677669, %v323_v19  ;;  %v419_v36 = vld [vmem:[%s8601_s27 + $0x140] sm:$0xff]  ;;  %v420_v37 = vld [vmem:[%s8601_s27 + $0x148] sm:$0xff]  ;;  %v438_v45 = vld [vmem:[%s8601_s27 + $0x1d8] sm:$0xff] }
  0x41   : > { %7261 = vmatpush3.bf16.xpose.msk.msra.mxu0 %vm8605_vm1, %v8773_v13  ;;  %17011 = vst [vmem:[#allocation44_spill] sm:$0xff] %v8943_v12  ;;  %17012 = vst [vmem:[#allocation45_spill] sm:$0xff] %v8946_v20  ;;  %v8973_v47 = vmul.f32 0.17677669, %v324_v31  ;;  %v8975_v48 = vpack.c.bf16 %v420_v37, %v419_v36  ;;  %v325_v60 = vld [vmem:[%s8637_s14 + $0x50] sm:$0xff]  ;;  %v8978_v63 = vpack.c.bf16 %v438_v45, %v437_v38  ;;  %v326_v2 = vld [vmem:[%s8637_s14 + $0x58] sm:$0xff] }
  0x42   : > { %7171 = vmatpush3.bf16.xpose.msk.msra.mxu1 %vm8605_vm1, %v8706_v43  ;;  %7264 = vmatprep.subr.msk.bf16.mxu0 %vm8605_vm1, %v8778_v16  ;;  %v8988_v1 = vmul.f32 0.17677669, %v325_v60  ;;  %v421_v7 = vld [vmem:[%s8601_s27 + $0x150] sm:$0xff]  ;;  %v422_v19 = vld [vmem:[%s8601_s27 + $0x158] sm:$0xff]  ;;  %v439_v31 = vld [vmem:[%s8601_s27 + $0x1e0] sm:$0xff] }
  0x43   : > { %7174 = vmatprep.subr.msk.bf16.mxu1 %vm8605_vm1, %v8713_v46  ;;  %17013 = vst [vmem:[#allocation46_spill] sm:$0xff] %v8975_v48  ;;  %17014 = vst [vmem:[#allocation47_spill] sm:$0xff] %v8978_v63  ;;  %v440_v36 = vld [vmem:[%s8601_s27 + $0x1e8] sm:$0xff]  ;;  %v9009_v37 = vmul.f32 0.17677669, %v326_v2  ;;  %v9011_v38 = vpack.c.bf16 %v422_v19, %v421_v7  ;;  %v327_v45 = vld [vmem:[%s8637_s14 + $0x60] sm:$0xff] }
  0x44   : > { %v9014_v60 = vpack.c.bf16 %v440_v36, %v439_v31  ;;  %v9024_v2 = vmul.f32 0.17677669, %v327_v45  ;;  %v328_v7 = vld [vmem:[%s8637_s14 + $0x68] sm:$0xff]  ;;  %v423_v19 = vld [vmem:[%s8601_s27 + $0x160] sm:$0xff]  ;;  %v441_v36 = vld [vmem:[%s8601_s27 + $0x1f0] sm:$0xff] }
  0x45   : > { %17015 = vst [vmem:[#allocation48_spill] sm:$0xff] %v9011_v38  ;;  %v424_v31 = vld [vmem:[%s8601_s27 + $0x168] sm:$0xff]  ;;  %v9045_v45 = vmul.f32 0.17677669, %v328_v7  ;;  %v331_v42 = vld [vmem:[%s8637_s14 + $0x80] sm:$0xff]  ;;  %v341_v49 = vld [vmem:[%s8637_s14 + $0xd0] sm:$0xff] }
  0x46   : > { %17016 = vst [vmem:[#allocation49_spill] sm:$0xff] %v9014_v60  ;;  %v492_v62 = vld [vmem:[%s8601_s27 + $0x388] sm:$0xff]  ;;  %v339_v13 = vld [vmem:[%s8637_s14 + $0xc0] sm:$0xff]  ;;  %v342_v35 = vld [vmem:[%s8637_s14 + $0xd8] sm:$0xff] }
  0x47   : > { %v340_v61 = vld [vmem:[%s8637_s14 + $0xc8] sm:$0xff]  ;;  %v525_v8 = vld [vmem:[%s9470_s8 + $0x90] sm:$0xff] }
  0x48   : > { %vm2098_vm14 = vnez %v525_v8 }
  0x49   : > { %7267 = vmatpush3.bf16.xpose.msk.msra.mxu0 %vm8605_vm1, %v8801_v32  ;;  %v338_v32 = vld [vmem:[%s8637_s14 + $0xb8] sm:$0xff] }
  0x4a   : > { %7177 = vmatpush3.bf16.xpose.msk.msra.mxu1 %vm8605_vm1, %v8734_v55  ;;  %7270 = vmatprep.subr.msk.bf16.mxu0 %vm8605_vm1, %v8806_v33  ;;  %v329_v33 = vld [vmem:[%s8637_s14 + $0x70] sm:$0xff] }
  0x4b   : > { %7180 = vmatprep.subr.msk.bf16.mxu1 %vm8605_vm1, %v8741_v58  ;;  %v9060_v7 = vmul.f32 0.17677669, %v329_v33 }
  0x51   : > { %7273 = vmatpush3.bf16.xpose.msk.msra.mxu0 %vm8605_vm1, %v8835_v54  ;;  %v337_v54 = vld [vmem:[%s8637_s14 + $0xb0] sm:$0xff] }
  0x52   : > { %7183 = vmatpush3.bf16.xpose.msk.msra.mxu1 %vm8605_vm1, %v8762_v5  ;;  %7276 = vmatprep.subr.msk.bf16.mxu0 %vm8605_vm1, %v8844_v57  ;;  %v9047_v57 = vpack.c.bf16 %v424_v31, %v423_v19  ;;  %v425_v19 = vld [vmem:[%s8601_s27 + $0x170] sm:$0xff]  ;;  %v426_v31 = vld [vmem:[%s8601_s27 + $0x178] sm:$0xff] }
  0x53   : > { %7186 = vmatprep.subr.msk.bf16.mxu1 %vm8605_vm1, %v8769_v10  ;;  %v9083_v50 = vpack.c.bf16 %v426_v31, %v425_v19  ;;  %v333_v19 = vld [vmem:[%s8637_s14 + $0x90] sm:$0xff]  ;;  %v518_v5 = vld [vmem:[%s9470_s8 + $0x58] sm:$0xff] }
  0x54   : > { %17017 = vst [vmem:[#allocation50_spill] sm:$0xff] %v9047_v57  ;;  %v9124_v31 = vmul.f32 0.17677669, %v333_v19  ;;  %vm2091_vm9 = vnez %v518_v5 }
  0x55   : > { %17019 = vst [vmem:[#allocation52_spill] sm:$0xff] %v9083_v50 }
  0x56   : > { %17023 = vst [vmem:[#allocation56_spill] sm:$0xff] %v9124_v31 }
  0x59   : > { %7279 = vmatpush3.bf16.xpose.msk.msra.mxu0 %vm8605_vm1, %v8877_v21  ;;  %v336_v21 = vld [vmem:[%s8637_s14 + $0xa8] sm:$0xff] }
  0x5a   : > { %7189 = vmatpush3.bf16.xpose.msk.msra.mxu1 %vm8605_vm1, %v8790_v24  ;;  %7282 = vmatprep.subr.msk.bf16.mxu0 %vm8605_vm1, %v8886_v26  ;;  %v442_v26 = vld [vmem:[%s8601_s27 + $0x1f8] sm:$0xff]  ;;  %v516_v24 = vld [vmem:[%s9470_s8 + $0x48] sm:$0xff] }
  0x5b   : > { %7192 = vmatprep.subr.msk.bf16.mxu1 %vm8605_vm1, %v8797_v27  ;;  %v9050_v16 = vpack.c.bf16 %v442_v26, %v441_v36  ;;  %v330_v26 = vld [vmem:[%s8637_s14 + $0x78] sm:$0xff]  ;;  %v491_v36 = vld [vmem:[%s8601_s27 + $0x380] sm:$0xff]  ;;  %vm2089_vm7 = vnez %v516_v24 }
  0x5c   : > { %v9081_v33 = vmul.f32 0.17677669, %v330_v26  ;;  %v9086_v34 = vpack.c.bf16 %v492_v62, %v491_v36  ;;  %v9096_v26 = vmul.f32 0.17677669, %v331_v42  ;;  %v332_v62 = vld [vmem:[%s8637_s14 + $0x88] sm:$0xff]  ;;  %v334_v36 = vld [vmem:[%s8637_s14 + $0x98] sm:$0xff] }
  0x5d   : > { %17018 = vst [vmem:[#allocation51_spill] sm:$0xff] %v9050_v16  ;;  %v9113_v42 = vmul.f32 0.17677669, %v332_v62  ;;  %v9135_v62 = vmul.f32 0.17677669, %v334_v36 }
  0x5e   : > { %17020 = vst [vmem:[#allocation53_spill] sm:$0xff] %v9086_v34  ;;  %17021 = vst [vmem:[#allocation54_spill] sm:$0xff] %v9096_v26  ;;  %v9157_v36 = vmul.f32 0.17677669, %v336_v21  ;;  %v9179_v21 = vmul.f32 0.17677669, %v338_v32 }
  0x5f   : > { %17022 = vst [vmem:[#allocation55_spill] sm:$0xff] %v9113_v42  ;;  %17024 = vst [vmem:[#allocation57_spill] sm:$0xff] %v9135_v62  ;;  %v9201_v32 = vmul.f32 0.17677669, %v340_v61  ;;  %v9223_v61 = vmul.f32 0.17677669, %v342_v35 }
  0x60   : > { %17026 = vst [vmem:[#allocation59_spill] sm:$0xff] %v9157_v36  ;;  %17028 = vst [vmem:[#allocation61_spill] sm:$0xff] %v9179_v21 }
  0x61   : > { %6699 = vmatmul.mubr.msk.f32.vlgmr.msra.gmra.mrb[0].mxu1 %vm16628_vm0, %v8644_v17  ;;  %7285 = vmatpush3.bf16.xpose.msk.msra.mxu0 %vm8605_vm1, %v8917_v53  ;;  %v335_v53 = vld [vmem:[%s8637_s14 + $0xa0] sm:$0xff]  ;;  %17030 = vst [vmem:[#allocation63_spill] sm:$0xff] %v9201_v32  ;;  %17032 = vst [vmem:[#allocation65_spill] sm:$0xff] %v9223_v61 }
  0x62   : > { %7195 = vmatpush3.bf16.xpose.msk.msra.mxu1 %vm8605_vm1, %v8819_v41  ;;  %6700 = vmatprep.mubr.msk.f32.mxu1 %vm16628_vm0, %v8821_v44  ;;  %v9146_v19 = vmul.f32 0.17677669, %v335_v53  ;;  %v9168_v53 = vmul.f32 0.17677669, %v337_v54  ;;  %v9190_v54 = vmul.f32 0.17677669, %v339_v13 }
  0x63   : > { %7198 = vmatprep.subr.msk.bf16.mxu1 %vm8605_vm1, %v8829_v51  ;;  %v9212_v13 = vmul.f32 0.17677669, %v341_v49 }
  0x64   : > { %17025 = vst [vmem:[#allocation58_spill] sm:$0xff] %v9146_v19  ;;  %17027 = vst [vmem:[#allocation60_spill] sm:$0xff] %v9168_v53 }
  0x65   : > { %6701 = vmatmul.mubr.msk.f32.gmra.mrb[2].mxu1 %vm16628_vm0, %v8821_v44  ;;  %17029 = vst [vmem:[#allocation62_spill] sm:$0xff] %v9190_v54  ;;  %17031 = vst [vmem:[#allocation64_spill] sm:$0xff] %v9212_v13 }
  0x66   : > { %6702 = vmatprep.mubr.msk.f32.mxu1 %vm16628_vm0, %v8842_v56 }
  0x68   : > { %6891 = vmatmul.mubr.msk.f32.vlgmr.msra.gmra.mrb[0].mxu0 %vm16628_vm0, %v8644_v17 }
  0x69   : > { %6703 = vmatmul.mubr.msk.f32.gmra.mrb[4].mxu1 %vm16628_vm0, %v8842_v56  ;;  %6892 = vmatprep.mubr.msk.f32.mxu0 %vm16628_vm0, %v8821_v44 }
  0x6a   : > { %6704 = vmatprep.mubr.msk.f32.mxu1 %vm16628_vm0, %v8861_v3  ;;  %7201 = vmatpush3.bf16.xpose.msk.msra.mxu1 %vm8605_vm1, %v8863_v6 }
  0x6b   : > { %7204 = vmatprep.subr.msk.bf16.mxu1 %vm8605_vm1, %v8871_v18  ;;  %v493_v18 = vld [vmem:[%s8601_s27 + $0x390] sm:$0xff] }
  0x6c   : > { %6893 = vmatmul.mubr.msk.f32.gmra.mrb[2].mxu0 %vm16628_vm0, %v8821_v44 }
  0x6d   : > { %6705 = vmatmul.mubr.msk.f32.gmra.mrb[6].mxu1 %vm16628_vm0, %v8861_v3  ;;  %6894 = vmatprep.mubr.msk.f32.mxu0 %vm16628_vm0, %v8842_v56 }
  0x6e   : > { %6706 = vmatprep.mubr.msk.f32.mxu1 %vm16628_vm0, %v8881_v25 }
  0x70   : > { %6895 = vmatmul.mubr.msk.f32.gmra.mrb[4].mxu0 %vm16628_vm0, %v8842_v56 }
  0x71   : > { %6707 = vmatmul.mubr.msk.f32.gmra.mrb[8].mxu1 %vm16628_vm0, %v8881_v25  ;;  %6896 = vmatprep.mubr.msk.f32.mxu0 %vm16628_vm0, %v8861_v3 }
  0x72   : > { %6708 = vmatprep.mubr.msk.f32.mxu1 %vm16628_vm0, %v8903_v39  ;;  %7207 = vmatpush3.bf16.xpose.msk.msra.mxu1 %vm8605_vm1, %v8905_v40 }
  0x73   : > { %7210 = vmatprep.subr.msk.bf16.mxu1 %vm8605_vm1, %v8913_v52  ;;  %v476_v52 = vld [vmem:[%s8601_s27 + $0x308] sm:$0xff] }
  0x74   : > { %6897 = vmatmul.mubr.msk.f32.gmra.mrb[6].mxu0 %vm16628_vm0, %v8861_v3 }
  0x75   : > { %6709 = vmatmul.mubr.msk.f32.gmra.mrb[10].mxu1 %vm16628_vm0, %v8903_v39  ;;  %6898 = vmatprep.mubr.msk.f32.mxu0 %vm16628_vm0, %v8881_v25 }
  0x76   : > { %6710 = vmatprep.mubr.msk.f32.mxu1 %vm16628_vm0, %v8921_v59 }
  0x78   : > { %6899 = vmatmul.mubr.msk.f32.gmra.mrb[8].mxu0 %vm16628_vm0, %v8881_v25 }
  0x79   : > { %6711 = vmatmul.mubr.msk.f32.gmra.mrb[12].mxu1 %vm16628_vm0, %v8921_v59  ;;  %6900 = vmatprep.mubr.msk.f32.mxu0 %vm16628_vm0, %v8903_v39 }
  0x7a   : > { %6712 = vmatprep.mubr.msk.f32.mxu1 %vm16628_vm0, %v8941_v11  ;;  %7213 = vmatpush3.bf16.xpose.msk.msra.mxu1 %vm8605_vm1, %v8943_v12 }
  0x7b   : > { %7216 = vmatprep.subr.msk.bf16.mxu1 %vm8605_vm1, %v8946_v20 }
  0x7c   : > { %6901 = vmatmul.mubr.msk.f32.gmra.mrb[10].mxu0 %vm16628_vm0, %v8903_v39 }
  0x7d   : > { %6713 = vmatmul.mubr.msk.f32.gmra.mrb[14].mxu1 %vm16628_vm0, %v8941_v11  ;;  %6902 = vmatprep.mubr.msk.f32.mxu0 %vm16628_vm0, %v8921_v59 }
  0x7e   : > { %6714 = vmatprep.mubr.msk.f32.mxu1 %vm16628_vm0, %v8952_v30 }
  0x80   : > { %6903 = vmatmul.mubr.msk.f32.gmra.mrb[12].mxu0 %vm16628_vm0, %v8921_v59 }
  0x81   : > { %6715 = vmatmul.mubr.msk.f32.gmra.mrb[16].mxu1 %vm16628_vm0, %v8952_v30  ;;  %6904 = vmatprep.mubr.msk.f32.mxu0 %vm16628_vm0, %v8941_v11 }
  0x82   : > { %6716 = vmatprep.mubr.msk.f32.mxu1 %vm16628_vm0, %v8973_v47  ;;  %7219 = vmatpush3.bf16.xpose.msk.msra.mxu1 %vm8605_vm1, %v8975_v48 }
  0x83   : > { %7222 = vmatprep.subr.msk.bf16.mxu1 %vm8605_vm1, %v8978_v63  ;;  %v345_v63 = vld [vmem:[%s8637_s14 + $0xf0] sm:$0xff] }
  0x84   : > { %6905 = vmatmul.mubr.msk.f32.gmra.mrb[14].mxu0 %vm16628_vm0, %v8941_v11 }
  0x85   : > { %6717 = vmatmul.mubr.msk.f32.gmra.mrb[18].mxu1 %vm16628_vm0, %v8973_v47  ;;  %6906 = vmatprep.mubr.msk.f32.mxu0 %vm16628_vm0, %v8952_v30 }
  0x86   : > { %6718 = vmatprep.mubr.msk.f32.mxu1 %vm16628_vm0, %v8988_v1 }
  0x88   : > { %6907 = vmatmul.mubr.msk.f32.gmra.mrb[16].mxu0 %vm16628_vm0, %v8952_v30 }
  0x89   : > { %6719 = vmatmul.mubr.msk.f32.gmra.mrb[20].mxu1 %vm16628_vm0, %v8988_v1  ;;  %6908 = vmatprep.mubr.msk.f32.mxu0 %vm16628_vm0, %v8973_v47 }
  0x8a   : > { %6720 = vmatprep.mubr.msk.f32.mxu1 %vm16628_vm0, %v9009_v37  ;;  %7225 = vmatpush3.bf16.xpose.msk.msra.mxu1 %vm8605_vm1, %v9011_v38 }
  0x8b   : > { %7228 = vmatprep.subr.msk.bf16.mxu1 %vm8605_vm1, %v9014_v60  ;;  %v344_v60 = vld [vmem:[%s8637_s14 + $0xe8] sm:$0xff] }
  0x8c   : > { %6909 = vmatmul.mubr.msk.f32.gmra.mrb[18].mxu0 %vm16628_vm0, %v8973_v47  ;;  %v9245_v35 = vmul.f32 0.17677669, %v344_v60  ;;  %v346_v60 = vld [vmem:[%s8637_s14 + $0xf8] sm:$0xff] }
  0x8d   : > { %6721 = vmatmul.mubr.msk.f32.gmra.mrb[22].mxu1 %vm16628_vm0, %v9009_v37  ;;  %6910 = vmatprep.mubr.msk.f32.mxu0 %vm16628_vm0, %v8988_v1  ;;  %v9267_v20 = vmul.f32 0.17677669, %v346_v60  ;;  %v494_v60 = vld [vmem:[%s8601_s27 + $0x398] sm:$0xff] }
  0x8e   : > { %6722 = vmatprep.mubr.msk.f32.mxu1 %vm16628_vm0, %v9024_v2  ;;  %17034 = vst [vmem:[#allocation67_spill] sm:$0xff] %v9245_v35  ;;  %v9291_v27 = vpack.c.bf16 %v494_v60, %v493_v18  ;;  %v477_v18 = vld [vmem:[%s8601_s27 + $0x310] sm:$0xff]  ;;  %v496_v60 = vld [vmem:[%s8601_s27 + $0x3a8] sm:$0xff] }
  0x8f   : > { %17036 = vst [vmem:[#allocation69_spill] sm:$0xff] %v9267_v20 }
  0x90   : > { %6911 = vmatmul.mubr.msk.f32.gmra.mrb[20].mxu0 %vm16628_vm0, %v8988_v1  ;;  %17038 = vst [vmem:[#allocation71_spill] sm:$0xff] %v9291_v27 }
  0x91   : > { %6723 = vmatmul.mubr.msk.f32.gmra.mrb[24].mxu1 %vm16628_vm0, %v9024_v2  ;;  %6912 = vmatprep.mubr.msk.f32.mxu0 %vm16628_vm0, %v9009_v37 }
  0x92   : > { %6724 = vmatprep.mubr.msk.f32.mxu1 %vm16628_vm0, %v9045_v45  ;;  %7231 = vmatpush3.bf16.xpose.msk.msra.mxu1 %vm8605_vm1, %v9047_v57 }
  0x93   : > { %7234 = vmatprep.subr.msk.bf16.mxu1 %vm8605_vm1, %v9050_v16  ;;  %v343_v16 = vld [vmem:[%s8637_s14 + $0xe0] sm:$0xff]  ;;  %s6662_s14 = sshll.u32 %s6237_s10, 7 }
  0x94   : > { %6913 = vmatmul.mubr.msk.f32.gmra.mrb[22].mxu0 %vm16628_vm0, %v9009_v37  ;;  %v9234_v49 = vmul.f32 0.17677669, %v343_v16  ;;  %v9256_v16 = vmul.f32 0.17677669, %v345_v63  ;;  %v475_v63 = vld [vmem:[%s8601_s27 + $0x300] sm:$0xff]  ;;  %s16213_s12 = scalar_lea.hbm %s16281_s5, %s6662_s14 }
  0x95   : > { %6725 = vmatmul.mubr.msk.f32.gmra.mrb[26].mxu1 %vm16628_vm0, %v9045_v45  ;;  %6914 = vmatprep.mubr.msk.f32.mxu0 %vm16628_vm0, %v9024_v2  ;;  %v9289_v51 = vpack.c.bf16 %v476_v52, %v475_v63  ;;  %v478_v52 = vld [vmem:[%s8601_s27 + $0x318] sm:$0xff]  ;;  %v495_v63 = vld [vmem:[%s8601_s27 + $0x3a0] sm:$0xff] }
  0x96   : > { %6726 = vmatprep.mubr.msk.f32.mxu1 %vm16628_vm0, %v9060_v7  ;;  %17033 = vst [vmem:[#allocation66_spill] sm:$0xff] %v9234_v49  ;;  %17035 = vst [vmem:[#allocation68_spill] sm:$0xff] %v9256_v16  ;;  %v9321_v57 = vpack.c.bf16 %v496_v60, %v495_v63  ;;  %v497_v63 = vld [vmem:[%s8601_s27 + $0x3b0] sm:$0xff]  ;;  %v498_v60 = vld [vmem:[%s8601_s27 + $0x3b8] sm:$0xff] }
  0x97   : > { %17037 = vst [vmem:[#allocation70_spill] sm:$0xff] %v9289_v51  ;;  %v9351_v48 = vpack.c.bf16 %v498_v60, %v497_v63  ;;  %v499_v63 = vld [vmem:[%s8601_s27 + $0x3c0] sm:$0xff]  ;;  %v500_v60 = vld [vmem:[%s8601_s27 + $0x3c8] sm:$0xff] }
  0x98   : > { %6915 = vmatmul.mubr.msk.f32.gmra.mrb[24].mxu0 %vm16628_vm0, %v9024_v2  ;;  %17040 = vst [vmem:[#allocation73_spill] sm:$0xff] %v9321_v57  ;;  %v9381_v40 = vpack.c.bf16 %v500_v60, %v499_v63  ;;  %v501_v63 = vld [vmem:[%s8601_s27 + $0x3d0] sm:$0xff]  ;;  %v502_v60 = vld [vmem:[%s8601_s27 + $0x3d8] sm:$0xff] }
  0x99   : > { %6727 = vmatmul.mubr.msk.f32.gmra.mrb[28].mxu1 %vm16628_vm0, %v9060_v7  ;;  %6916 = vmatprep.mubr.msk.f32.mxu0 %vm16628_vm0, %v9045_v45  ;;  %17042 = vst [vmem:[#allocation75_spill] sm:$0xff] %v9351_v48  ;;  %v9405_v41 = vpack.c.bf16 %v502_v60, %v501_v63  ;;  %v503_v63 = vld [vmem:[%s8601_s27 + $0x3e0] sm:$0xff]  ;;  %v504_v60 = vld [vmem:[%s8601_s27 + $0x3e8] sm:$0xff] }
  0x9a   : > { %6728 = vmatprep.mubr.msk.f32.mxu1 %vm16628_vm0, %v9081_v33  ;;  %7237 = vmatpush3.bf16.xpose.msk.msra.mxu1 %vm8605_vm1, %v9083_v50  ;;  %v9319_v50 = vpack.c.bf16 %v478_v52, %v477_v18  ;;  %v479_v18 = vld [vmem:[%s8601_s27 + $0x320] sm:$0xff]  ;;  %v480_v52 = vld [vmem:[%s8601_s27 + $0x328] sm:$0xff]  ;;  %17044 = vst [vmem:[#allocation77_spill] sm:$0xff] %v9381_v40  ;;  %v9428_v58 = vpack.c.bf16 %v504_v60, %v503_v63  ;;  %v506_v63 = vld [vmem:[%s8601_s27 + $0x3f8] sm:$0xff] }
  0x9b   : > { %7288 = vmatprep.subr.msk.bf16.mxu1 %vm8605_vm1, %v9086_v34  ;;  %v9349_v38 = vpack.c.bf16 %v480_v52, %v479_v18  ;;  %v481_v18 = vld [vmem:[%s8601_s27 + $0x330] sm:$0xff]  ;;  %v482_v52 = vld [vmem:[%s8601_s27 + $0x338] sm:$0xff]  ;;  %17046 = vst [vmem:[#allocation79_spill] sm:$0xff] %v9405_v41 }
  0x9c   : > { %6917 = vmatmul.mubr.msk.f32.gmra.mrb[26].mxu0 %vm16628_vm0, %v9045_v45  ;;  %17039 = vst [vmem:[#allocation72_spill] sm:$0xff] %v9319_v50  ;;  %v9379_v12 = vpack.c.bf16 %v482_v52, %v481_v18  ;;  %v483_v18 = vld [vmem:[%s8601_s27 + $0x340] sm:$0xff]  ;;  %v484_v52 = vld [vmem:[%s8601_s27 + $0x348] sm:$0xff]  ;;  %17048 = vst [vmem:[#allocation81_spill] sm:$0xff] %v9428_v58 }
  0x9d   : > { %6729 = vmatmul.mubr.msk.f32.gmra.mrb[30].mxu1 %vm16628_vm0, %v9081_v33  ;;  %6918 = vmatprep.mubr.msk.f32.mxu0 %vm16628_vm0, %v9060_v7  ;;  %17041 = vst [vmem:[#allocation74_spill] sm:$0xff] %v9349_v38  ;;  %v9403_v6 = vpack.c.bf16 %v484_v52, %v483_v18  ;;  %v485_v18 = vld [vmem:[%s8601_s27 + $0x350] sm:$0xff]  ;;  %v486_v52 = vld [vmem:[%s8601_s27 + $0x358] sm:$0xff] }
  0x9e   : > { %6730 = vmatprep.mubr.msk.f32.mxu1 %vm16628_vm0, %v9096_v26  ;;  %17043 = vst [vmem:[#allocation76_spill] sm:$0xff] %v9379_v12  ;;  %v9426_v10 = vpack.c.bf16 %v486_v52, %v485_v18  ;;  %v488_v18 = vld [vmem:[%s8601_s27 + $0x368] sm:$0xff]  ;;  %v505_v52 = vld [vmem:[%s8601_s27 + $0x3f0] sm:$0xff] }
  0x9f   : > { %17045 = vst [vmem:[#allocation78_spill] sm:$0xff] %v9403_v6  ;;  %v9451_v46 = vpack.c.bf16 %v506_v63, %v505_v52  ;;  %v507_v63 = vld [vmem:[%s9470_s8] sm:$0xff] }
  0xa0   : > { %6919 = vmatmul.mubr.msk.f32.gmra.mrb[28].mxu0 %vm16628_vm0, %v9060_v7  ;;  %17047 = vst [vmem:[#allocation80_spill] sm:$0xff] %v9426_v10  ;;  %vm2080_vm2 = vnez %v507_v63 }
  0xa1   : > { %6731 = vmatmul.mubr.msk.f32.gmra.mrb[32].mxu1 %vm16628_vm0, %v9096_v26  ;;  %6920 = vmatprep.mubr.msk.f32.mxu0 %vm16628_vm0, %v9081_v33  ;;  %17050 = vst [vmem:[#allocation83_spill] sm:$0xff] %v9451_v46 }
  0xa2   : > { %6732 = vmatprep.mubr.msk.f32.mxu1 %vm16628_vm0, %v9113_v42 }
  0xa4   : > { %6921 = vmatmul.mubr.msk.f32.gmra.mrb[30].mxu0 %vm16628_vm0, %v9081_v33 }
  0xa5   : > { %6733 = vmatmul.mubr.msk.f32.gmra.mrb[34].mxu1 %vm16628_vm0, %v9113_v42  ;;  %6922 = vmatprep.mubr.msk.f32.mxu0 %vm16628_vm0, %v9096_v26 }
  0xa6   : > { %6734 = vmatprep.mubr.msk.f32.mxu1 %vm16628_vm0, %v9124_v31 }
  0xa8   : > { %6923 = vmatmul.mubr.msk.f32.gmra.mrb[32].mxu0 %vm16628_vm0, %v9096_v26 }
  0xa9   : > { %6735 = vmatmul.mubr.msk.f32.gmra.mrb[36].mxu1 %vm16628_vm0, %v9124_v31  ;;  %6924 = vmatprep.mubr.msk.f32.mxu0 %vm16628_vm0, %v9113_v42 }
  0xaa   : > { %6736 = vmatprep.mubr.msk.f32.mxu1 %vm16628_vm0, %v9135_v62 }
  0xac   : > { %6925 = vmatmul.mubr.msk.f32.gmra.mrb[34].mxu0 %vm16628_vm0, %v9113_v42 }
  0xad   : > { %6737 = vmatmul.mubr.msk.f32.gmra.mrb[38].mxu1 %vm16628_vm0, %v9135_v62  ;;  %6926 = vmatprep.mubr.msk.f32.mxu0 %vm16628_vm0, %v9124_v31 }
  0xae   : > { %6738 = vmatprep.mubr.msk.f32.mxu1 %vm16628_vm0, %v9146_v19 }
  0xb0   : > { %6927 = vmatmul.mubr.msk.f32.gmra.mrb[36].mxu0 %vm16628_vm0, %v9124_v31 }
  0xb1   : > { %6739 = vmatmul.mubr.msk.f32.gmra.mrb[40].mxu1 %vm16628_vm0, %v9146_v19  ;;  %6928 = vmatprep.mubr.msk.f32.mxu0 %vm16628_vm0, %v9135_v62 }
  0xb2   : > { %6740 = vmatprep.mubr.msk.f32.mxu1 %vm16628_vm0, %v9157_v36 }
  0xb4   : > { %6929 = vmatmul.mubr.msk.f32.gmra.mrb[38].mxu0 %vm16628_vm0, %v9135_v62 }
  0xb5   : > { %6741 = vmatmul.mubr.msk.f32.gmra.mrb[42].mxu1 %vm16628_vm0, %v9157_v36  ;;  %6930 = vmatprep.mubr.msk.f32.mxu0 %vm16628_vm0, %v9146_v19 }
  0xb6   : > { %6742 = vmatprep.mubr.msk.f32.mxu1 %vm16628_vm0, %v9168_v53 }
  0xb8   : > { %6931 = vmatmul.mubr.msk.f32.gmra.mrb[40].mxu0 %vm16628_vm0, %v9146_v19 }
  0xb9   : > { %6743 = vmatmul.mubr.msk.f32.gmra.mrb[44].mxu1 %vm16628_vm0, %v9168_v53  ;;  %6932 = vmatprep.mubr.msk.f32.mxu0 %vm16628_vm0, %v9157_v36 }
  0xba   : > { %6744 = vmatprep.mubr.msk.f32.mxu1 %vm16628_vm0, %v9179_v21 }
  0xbc   : > { %6933 = vmatmul.mubr.msk.f32.gmra.mrb[42].mxu0 %vm16628_vm0, %v9157_v36 }
  0xbd   : > { %6745 = vmatmul.mubr.msk.f32.gmra.mrb[46].mxu1 %vm16628_vm0, %v9179_v21  ;;  %6934 = vmatprep.mubr.msk.f32.mxu0 %vm16628_vm0, %v9168_v53 }
  0xbe   : > { %6746 = vmatprep.mubr.msk.f32.mxu1 %vm16628_vm0, %v9190_v54 }
  0xc0   : > { %6935 = vmatmul.mubr.msk.f32.gmra.mrb[44].mxu0 %vm16628_vm0, %v9168_v53 }
  0xc1   : > { %6747 = vmatmul.mubr.msk.f32.gmra.mrb[48].mxu1 %vm16628_vm0, %v9190_v54  ;;  %6936 = vmatprep.mubr.msk.f32.mxu0 %vm16628_vm0, %v9179_v21 }
  0xc2   : > { %6748 = vmatprep.mubr.msk.f32.mxu1 %vm16628_vm0, %v9201_v32 }
  0xc4   : > { %6937 = vmatmul.mubr.msk.f32.gmra.mrb[46].mxu0 %vm16628_vm0, %v9179_v21 }
  0xc5   : > { %6749 = vmatmul.mubr.msk.f32.gmra.mrb[50].mxu1 %vm16628_vm0, %v9201_v32  ;;  %6938 = vmatprep.mubr.msk.f32.mxu0 %vm16628_vm0, %v9190_v54 }
  0xc6   : > { %6750 = vmatprep.mubr.msk.f32.mxu1 %vm16628_vm0, %v9212_v13 }
  0xc8   : > { %6939 = vmatmul.mubr.msk.f32.gmra.mrb[48].mxu0 %vm16628_vm0, %v9190_v54 }
  0xc9   : > { %6751 = vmatmul.mubr.msk.f32.gmra.mrb[52].mxu1 %vm16628_vm0, %v9212_v13  ;;  %6940 = vmatprep.mubr.msk.f32.mxu0 %vm16628_vm0, %v9201_v32 }
  0xca   : > { %6752 = vmatprep.mubr.msk.f32.mxu1 %vm16628_vm0, %v9223_v61 }
  0xcc   : > { %6941 = vmatmul.mubr.msk.f32.gmra.mrb[50].mxu0 %vm16628_vm0, %v9201_v32 }
  0xcd   : > { %6753 = vmatmul.mubr.msk.f32.gmra.mrb[54].mxu1 %vm16628_vm0, %v9223_v61  ;;  %6942 = vmatprep.mubr.msk.f32.mxu0 %vm16628_vm0, %v9212_v13 }
  0xce   : > { %6754 = vmatprep.mubr.msk.f32.mxu1 %vm16628_vm0, %v9234_v49 }
  0xd0   : > { %6943 = vmatmul.mubr.msk.f32.gmra.mrb[52].mxu0 %vm16628_vm0, %v9212_v13 }
  0xd1   : > { %6755 = vmatmul.mubr.msk.f32.gmra.mrb[56].mxu1 %vm16628_vm0, %v9234_v49  ;;  %6944 = vmatprep.mubr.msk.f32.mxu0 %vm16628_vm0, %v9223_v61 }
  0xd2   : > { %6756 = vmatprep.mubr.msk.f32.mxu1 %vm16628_vm0, %v9245_v35 }
  0xd4   : > { %6945 = vmatmul.mubr.msk.f32.gmra.mrb[54].mxu0 %vm16628_vm0, %v9223_v61 }
  0xd5   : > { %6757 = vmatmul.mubr.msk.f32.gmra.mrb[58].mxu1 %vm16628_vm0, %v9245_v35  ;;  %6946 = vmatprep.mubr.msk.f32.mxu0 %vm16628_vm0, %v9234_v49 }
  0xd6   : > { %6758 = vmatprep.mubr.msk.f32.mxu1 %vm16628_vm0, %v9256_v16 }
  0xd8   : > { %6947 = vmatmul.mubr.msk.f32.gmra.mrb[56].mxu0 %vm16628_vm0, %v9234_v49 }
  0xd9   : > { %6759 = vmatmul.mubr.msk.f32.gmra.mrb[60].mxu1 %vm16628_vm0, %v9256_v16  ;;  %6948 = vmatprep.mubr.msk.f32.mxu0 %vm16628_vm0, %v9245_v35 }
  0xda   : > { %6760 = vmatprep.mubr.msk.f32.mxu1 %vm16628_vm0, %v9267_v20 }
  0xdc   : > { %6949 = vmatmul.mubr.msk.f32.gmra.mrb[58].mxu0 %vm16628_vm0, %v9245_v35 }
  0xdd   : > { %6761 = vmatmul.mubr.msk.f32.gmra.mrb[62].mxu1 %vm16628_vm0, %v9267_v20  ;;  %6950 = vmatprep.mubr.msk.f32.mxu0 %vm16628_vm0, %v9256_v16 }
  0xde   : > { %6794 = vmatprep.mubr.msk.f32.mxu1 %vm16628_vm0, %v8644_v17 }
  0xe0   : > { %6951 = vmatmul.mubr.msk.f32.gmra.mrb[60].mxu0 %vm16628_vm0, %v9256_v16 }
  0xe1   : > { %6795 = vmatmul.mubr.msk.f32.vlgmr.msra.gmra.mrb[64].mxu1 %vm16628_vm0, %v8644_v17  ;;  %6952 = vmatprep.mubr.msk.f32.mxu0 %vm16628_vm0, %v9267_v20 }
  0xe2   : > { %7291 = vmatpush3.bf16.xpose.msk.msra.mxu1 %vm8605_vm1, %v9289_v51  ;;  %6796 = vmatprep.mubr.msk.f32.mxu1 %vm16628_vm0, %v8821_v44 }
  0xe3   : > { %7294 = vmatprep.subr.msk.bf16.mxu1 %vm8605_vm1, %v9291_v27 }
  0xe4   : > { %6953 = vmatmul.mubr.msk.f32.gmra.mrb[62].mxu0 %vm16628_vm0, %v9267_v20 }
  0xe5   : > { %6797 = vmatmul.mubr.msk.f32.gmra.mrb[66].mxu1 %vm16628_vm0, %v8821_v44 }
  0xe6   : > { %6798 = vmatprep.mubr.msk.f32.mxu1 %vm16628_vm0, %v8842_v56 }
  0xe9   : > { %6799 = vmatmul.mubr.msk.f32.gmra.mrb[68].mxu1 %vm16628_vm0, %v8842_v56 }
  0xea   : > { %6800 = vmatprep.mubr.msk.f32.mxu1 %vm16628_vm0, %v8861_v3  ;;  %7297 = vmatpush3.bf16.xpose.msk.msra.mxu1 %vm8605_vm1, %v9319_v50 }
  0xeb   : > { %7300 = vmatprep.subr.msk.bf16.mxu1 %vm8605_vm1, %v9321_v57 }
  0xed   : > { %6801 = vmatmul.mubr.msk.f32.gmra.mrb[70].mxu1 %vm16628_vm0, %v8861_v3 }
  0xee   : > { %6802 = vmatprep.mubr.msk.f32.mxu1 %vm16628_vm0, %v8881_v25 }
  0xf1   : > { %6803 = vmatmul.mubr.msk.f32.gmra.mrb[72].mxu1 %vm16628_vm0, %v8881_v25 }
  0xf2   : > { %6804 = vmatprep.mubr.msk.f32.mxu1 %vm16628_vm0, %v8903_v39  ;;  %7303 = vmatpush3.bf16.xpose.msk.msra.mxu1 %vm8605_vm1, %v9349_v38 }
  0xf3   : > { %7306 = vmatprep.subr.msk.bf16.mxu1 %vm8605_vm1, %v9351_v48 }
  0xf5   : > { %6805 = vmatmul.mubr.msk.f32.gmra.mrb[74].mxu1 %vm16628_vm0, %v8903_v39 }
  0xf6   : > { %6806 = vmatprep.mubr.msk.f32.mxu1 %vm16628_vm0, %v8921_v59 }
  0xf9   : > { %6807 = vmatmul.mubr.msk.f32.gmra.mrb[76].mxu1 %vm16628_vm0, %v8921_v59 }
  0xfa   : > { %6808 = vmatprep.mubr.msk.f32.mxu1 %vm16628_vm0, %v8941_v11  ;;  %7309 = vmatpush3.bf16.xpose.msk.msra.mxu1 %vm8605_vm1, %v9379_v12 }
  0xfb   : > { %7312 = vmatprep.subr.msk.bf16.mxu1 %vm8605_vm1, %v9381_v40  ;;  %v510_v40 = vld [vmem:[%s9470_s8 + $0x18] sm:$0xff] }
  0xfc   : > { %vm2083_vm5 = vnez %v510_v40 }
  0xfd   : > { %6809 = vmatmul.mubr.msk.f32.gmra.mrb[78].mxu1 %vm16628_vm0, %v8941_v11 }
  0xfe   : > { %6810 = vmatprep.mubr.msk.f32.mxu1 %vm16628_vm0, %v8952_v30 }
 0x101   : > { %6811 = vmatmul.mubr.msk.f32.gmra.mrb[80].mxu1 %vm16628_vm0, %v8952_v30 }
 0x102   : > { %6812 = vmatprep.mubr.msk.f32.mxu1 %vm16628_vm0, %v8973_v47  ;;  %7315 = vmatpush3.bf16.xpose.msk.msra.mxu1 %vm8605_vm1, %v9403_v6 }
 0x103   : > { %7318 = vmatprep.subr.msk.bf16.mxu1 %vm8605_vm1, %v9405_v41  ;;  %v487_v41 = vld [vmem:[%s8601_s27 + $0x360] sm:$0xff] }
 0x104   : > { %v9449_v60 = vpack.c.bf16 %v488_v18, %v487_v41  ;;  %v489_v41 = vld [vmem:[%s8601_s27 + $0x370] sm:$0xff]  ;;  %v490_v18 = vld [vmem:[%s8601_s27 + $0x378] sm:$0xff]  ;;  %s16148_s27 = scalar_lea.vmem [#allocation2], %s6360_s26  ;;  %s8483_s26 = smov [#allocation2]  }
 0x105   : > { %6813 = vmatmul.mubr.msk.f32.gmra.mrb[82].mxu1 %vm16628_vm0, %v8973_v47  ;;  %v9474_v52 = vpack.c.bf16 %v490_v18, %v489_v41  ;;  %v16334_v41 = vmov 0   ;;  %s6240_s22 = sshll.u32 %s16148_s27, 4  ;;  %s8389_s30 = sshll.u32 %s8483_s26, 4  ;;  %s16217_s22 = int_to_ptr.vmem [resolvable:$true] %s6240_s22  ;;  %s8390_s30 = int_to_ptr.vmem [resolvable:$false] %s8389_s30 }
 0x106   : > { %6814 = vmatprep.mubr.msk.f32.mxu1 %vm16628_vm0, %v8988_v1  ;;  %17049 = vst [vmem:[#allocation82_spill] sm:$0xff] %v9449_v60  ;;  %v2144_v18 = vsel %vm2080_vm2, 16843009, %v16334_v41  ;;  %v2147_v0 = vsel %vm2083_vm5, 16843009, %v16334_v41  ;;  %s8385_s17 = scalar_lea.vmem %s16217_s22, 4096  ;;  %p8392_p5 = scmp.lt.s32.totalorder %s16217_s22, %s8390_s30 }
 0x107   : > { %17051 = vst [vmem:[#allocation84_spill] sm:$0xff] %v9474_v52  ;;  %v2211_v63 = vunpack.c.0.s8 %v2147_v0  ;;  %v2216_v23 = vunpack.c.1.s8 %v2144_v18  ;;  %v2219_v27 = vunpack.c.1.s8 %v2147_v0  ;;  %v2224_v6 = vunpack.c.2.s8 %v2144_v18  ;;  %p8386_p1 = scmp.ne.s32.totalorder %s16217_s22, %s8385_s17 }
 0x109   : > { %6815 = vmatmul.mubr.msk.f32.gmra.mrb[84].mxu1 %vm16628_vm0, %v8988_v1  ;;  %p8387_p2 = pnand %p8386_p1, %p8567_p3 }
 0x10a   : > { %6816 = vmatprep.mubr.msk.f32.mxu1 %vm16628_vm0, %v9009_v37  ;;  %7321 = vmatpush3.bf16.xpose.msk.msra.mxu1 %vm8605_vm1, %v9426_v10 }
 0x10b   : > { %7324 = vmatprep.subr.msk.bf16.mxu1 %vm8605_vm1, %v9428_v58  ;;  %v509_v58 = vld [vmem:[%s9470_s8 + $0x10] sm:$0xff]  ;;  %p8388_p4 = pneg %p8387_p2 }
 0x10c   : > { %vm2082_vm4 = vnez %v509_v58 }
 0x10d   : > { %6817 = vmatmul.mubr.msk.f32.gmra.mrb[86].mxu1 %vm16628_vm0, %v9009_v37  ;;  %v2146_v48 = vsel %vm2082_vm4, 16843009, %v16334_v41 }
 0x10e   : > { %6818 = vmatprep.mubr.msk.f32.mxu1 %vm16628_vm0, %v9024_v2  ;;  %v2210_v40 = vunpack.c.0.s8 %v2146_v48  ;;  %v2218_v15 = vunpack.c.1.s8 %v2146_v48  ;;  %v2226_v12 = vunpack.c.2.s8 %v2146_v48 }
 0x110   : > { %v2465_v9 = vpack.c.b16 %v2211_v63, %v2210_v40  ;;  %v2471_v4 = vpack.c.b16 %v2219_v27, %v2218_v15  ;;  %v2227_v15 = vunpack.c.2.s8 %v2147_v0 }
 0x111   : > { %6819 = vmatmul.mubr.msk.f32.gmra.mrb[88].mxu1 %vm16628_vm0, %v9024_v2 }
 0x112   : > { %6820 = vmatprep.mubr.msk.f32.mxu1 %vm16628_vm0, %v9045_v45  ;;  %7327 = vmatpush3.bf16.xpose.msk.msra.mxu1 %vm8605_vm1, %v9449_v60  ;;  %v517_v60 = vld [vmem:[%s9470_s8 + $0x50] sm:$0xff] }
 0x113   : > { %7330 = vmatprep.subr.msk.bf16.mxu1 %vm8605_vm1, %v9451_v46  ;;  %v508_v46 = vld [vmem:[%s9470_s8 + $0x8] sm:$0xff]  ;;  %vm2090_vm8 = vnez %v517_v60 }
 0x114   : > { %vm2081_vm3 = vnez %v508_v46  ;;  %v2208_v46 = vunpack.c.0.s8 %v2144_v18 }
 0x115   : > { %6821 = vmatmul.mubr.msk.f32.gmra.mrb[90].mxu1 %vm16628_vm0, %v9045_v45  ;;  %v2145_v29 = vsel %vm2081_vm3, 16843009, %v16334_v41 }
 0x116   : > { %6822 = vmatprep.mubr.msk.f32.mxu1 %vm16628_vm0, %v9060_v7  ;;  %v2209_v58 = vunpack.c.0.s8 %v2145_v29  ;;  %v2217_v57 = vunpack.c.1.s8 %v2145_v29  ;;  %v2225_v43 = vunpack.c.2.s8 %v2145_v29  ;;  %v2233_v27 = vunpack.c.3.s8 %v2145_v29 }
 0x118   : > { %v2464_v41 = vpack.c.b16 %v2209_v58, %v2208_v46  ;;  %v2470_v34 = vpack.c.b16 %v2217_v57, %v2216_v23  ;;  %v2232_v23 = vunpack.c.3.s8 %v2144_v18  ;;  %v2234_v57 = vunpack.c.3.s8 %v2146_v48 }
 0x119   : > { %6823 = vmatmul.mubr.msk.f32.gmra.mrb[92].mxu1 %vm16628_vm0, %v9060_v7  ;;  %v2235_v46 = vunpack.c.3.s8 %v2147_v0  ;;  %v2476_v29 = vpack.c.b16 %v2225_v43, %v2224_v6  ;;  %v2477_v48 = vpack.c.b16 %v2227_v15, %v2226_v12 }
 0x11a   : > { %6824 = vmatprep.mubr.msk.f32.mxu1 %vm16628_vm0, %v9081_v33  ;;  %7333 = vmatpush3.bf16.xpose.msk.msra.mxu1 %vm8605_vm1, %v9474_v52  ;;  %v515_v52 = vld [vmem:[%s9470_s8 + $0x40] sm:$0xff]  ;;  %v2466_v10 = vpack.c.b8 %v2465_v9, %v2464_v41  ;;  %v2472_v55 = vpack.c.b8 %v2471_v4, %v2470_v34  ;;  %v17052_v9 = vmov 0   ;;  %v2482_v60 = vpack.c.b16 %v2233_v27, %v2232_v23  ;;  %v524_v27 = vld [vmem:[%s9470_s8 + $0x88] sm:$0xff] }
 0x11b   : > { %vm2088_vm6 = vnez %v515_v52  ;;  %v2153_v34 = vsel %vm2089_vm7, 16843009, %v17052_v9  ;;  %v2154_v52 = vsel %vm2090_vm8, 16843009, %v17052_v9  ;;  %v2155_v41 = vsel %vm2091_vm9, 16843009, %v17052_v9 }
 0x11c   : > { %v2152_v4 = vsel %vm2088_vm6, 16843009, %v17052_v9  ;;  %vm9521_vm10 = vnez %v2466_v10  ;;  %vm9525_vm11 = vnez %v2472_v55  ;;  %v2483_v18 = vpack.c.b16 %v2235_v46, %v2234_v57  ;;  %v523_v23 = vld [vmem:[%s9470_s8 + $0x80] sm:$0xff] }
 0x11d   : > { %6825 = vmatmul.mubr.msk.f32.gmra.mrb[94].mxu1 %vm16628_vm0, %v9081_v33  ;;  %v2240_v0 = vunpack.c.0.s8 %v2152_v4  ;;  %v2241_v58 = vunpack.c.0.s8 %v2153_v34  ;;  %v2242_v40 = vunpack.c.0.s8 %v2154_v52  ;;  %v2243_v10 = vunpack.c.0.s8 %v2155_v41 }
 0x11e   : > { %6826 = vmatprep.mubr.msk.f32.mxu1 %vm16628_vm0, %v9096_v26  ;;  %v2248_v28 = vunpack.c.1.s8 %v2152_v4  ;;  %v2249_v55 = vunpack.c.1.s8 %v2153_v34  ;;  %v2250_v38 = vunpack.c.1.s8 %v2154_v52  ;;  %v2251_v22 = vunpack.c.1.s8 %v2155_v41 }
 0x11f   : > { %v2256_v43 = vunpack.c.2.s8 %v2152_v4  ;;  %v2257_v6 = vunpack.c.2.s8 %v2153_v34  ;;  %v2258_v12 = vunpack.c.2.s8 %v2154_v52  ;;  %v2259_v15 = vunpack.c.2.s8 %v2155_v41 }
 0x120   : > { %v2264_v57 = vunpack.c.3.s8 %v2152_v4  ;;  %v2265_v46 = vunpack.c.3.s8 %v2153_v34  ;;  %v2266_v14 = vunpack.c.3.s8 %v2154_v52  ;;  %v2267_v51 = vunpack.c.3.s8 %v2155_v41 }
 0x121   : > { %6827 = vmatmul.mubr.msk.f32.gmra.mrb[96].mxu1 %vm16628_vm0, %v9096_v26  ;;  %v2488_v4 = vpack.c.b16 %v2241_v58, %v2240_v0  ;;  %v2489_v34 = vpack.c.b16 %v2243_v10, %v2242_v40  ;;  %vm2096_vm12 = vnez %v523_v23  ;;  %vm2097_vm13 = vnez %v524_v27 }
 0x122   : > { %6828 = vmatprep.mubr.msk.f32.mxu1 %vm16628_vm0, %v9113_v42  ;;  %v2494_v41 = vpack.c.b16 %v2249_v55, %v2248_v28  ;;  %v2495_v5 = vpack.c.b16 %v2251_v22, %v2250_v38  ;;  %v2500_v24 = vpack.c.b16 %v2257_v6, %v2256_v43  ;;  %v9564_v58 = vsel %vm2096_vm12, 16843009, %v17052_v9  ;;  %v531_v6 = vld [vmem:[%s9470_s8 + $0xc0] sm:$0xff] }
 0x123   : > { %v9567_v22 = vsel %vm2097_vm13, 16843009, %v17052_v9  ;;  %v2490_v55 = vpack.c.b8 %v2489_v34, %v2488_v4  ;;  %v2272_v23 = vunpack.c.0.s8 %v9564_v58  ;;  %v2280_v4 = vunpack.c.1.s8 %v9564_v58 }
 0x124   : > { %v2496_v43 = vpack.c.b8 %v2495_v5, %v2494_v41  ;;  %v2273_v27 = vunpack.c.0.s8 %v9567_v22  ;;  %v2281_v34 = vunpack.c.1.s8 %v9567_v22  ;;  %vm2104_vm3 = vnez %v531_v6 }
 0x125   : > { %6829 = vmatmul.mubr.msk.f32.gmra.mrb[98].mxu1 %vm16628_vm0, %v9113_v42  ;;  %v2484_v42 = vpack.c.b8 %v2483_v18, %v2482_v60  ;;  %v2507_v60 = vpack.c.b16 %v2267_v51, %v2266_v14  ;;  %v9574_v14 = vsel %vm2098_vm14, 16843009, %v17052_v9  ;;  %vm9621_vm7 = vnez %v2490_v55 }
 0x126   : > { %6830 = vmatprep.mubr.msk.f32.mxu1 %vm16628_vm0, %v9124_v31  ;;  %v2282_v5 = vunpack.c.1.s8 %v9574_v14  ;;  %vm9627_vm8 = vnez %v2496_v43  ;;  %v2518_v0 = vpack.c.b16 %v2281_v34, %v2280_v4  ;;  %v2296_v4 = vunpack.c.3.s8 %v9564_v58 }
 0x127   : > { %vm9587_vm2 = vnez %v2484_v42  ;;  %v2274_v42 = vunpack.c.0.s8 %v9574_v14  ;;  %v2297_v34 = vunpack.c.3.s8 %v9567_v22 }
 0x129   : > { %6831 = vmatmul.mubr.msk.f32.gmra.mrb[100].mxu1 %vm16628_vm0, %v9124_v31  ;;  %v2478_v31 = vpack.c.b8 %v2477_v48, %v2476_v29  ;;  %v2501_v29 = vpack.c.b16 %v2259_v15, %v2258_v12  ;;  %v2506_v48 = vpack.c.b16 %v2265_v46, %v2264_v57  ;;  %v532_v12 = vld [vmem:[%s9470_s8 + $0xc8] sm:$0xff]  ;;  %v533_v57 = vld [vmem:[%s9470_s8 + $0xd0] sm:$0xff]  ;;  %v534_v46 = vld [vmem:[%s9470_s8 + $0xd8] sm:$0xff] }
 0x12a   : > { %6832 = vmatprep.mubr.msk.f32.mxu1 %vm16628_vm0, %v9135_v62  ;;  %vm2105_vm4 = vnez %v532_v12  ;;  %vm2106_vm5 = vnez %v533_v57  ;;  %vm2107_vm6 = vnez %v534_v46  ;;  %v2512_v57 = vpack.c.b16 %v2273_v27, %v2272_v23 }
 0x12b   : > { %vm9579_vm1 = vnez %v2478_v31  ;;  %v2502_v31 = vpack.c.b8 %v2501_v29, %v2500_v24  ;;  %v2508_v15 = vpack.c.b8 %v2507_v60, %v2506_v48  ;;  %v9615_v48 = vsel %vm9587_vm2, 16843009, %v17052_v9 }
 0x12c   : > { %v9610_v29 = vsel %vm9579_vm1, 16843009, %v17052_v9  ;;  %17067 = vst [vmem:[#allocation91_spill] sm:$0xff] %v9615_v48  ;;  %v9640_v46 = vsel %vm2104_vm3, 16843009, %v17052_v9  ;;  %v2289_v23 = vunpack.c.2.s8 %v9567_v22  ;;  %v2290_v27 = vunpack.c.2.s8 %v9574_v14 }
 0x12d   : > { %6833 = vmatmul.mubr.msk.f32.gmra.mrb[102].mxu1 %vm16628_vm0, %v9135_v62  ;;  %v9546_v62 = vsel %vm9521_vm10, 16843009, %v17052_v9  ;;  %17066 = vst [vmem:[#allocation90_spill] sm:$0xff] %v9610_v29  ;;  %vm9631_vm9 = vnez %v2502_v31  ;;  %vm9635_vm10 = vnez %v2508_v15  ;;  %v9643_v8 = vsel %vm2105_vm4, 16843009, %v17052_v9 }
 0x12e   : > { %6834 = vmatprep.mubr.msk.f32.mxu1 %vm16628_vm0, %v9146_v19  ;;  %17057 = vst [vmem:[#allocation85_spill] sm:$0xff] %v9546_v62  ;;  %v9648_v31 = vsel %vm2106_vm5, 16843009, %v17052_v9  ;;  %v9651_v15 = vsel %vm2107_vm6, 16843009, %v17052_v9 }
 0x12f   : > { %v9697_v6 = vsel %vm9635_vm10, 16843009, %v17052_v9 }
 0x130   : > { %17084 = vst [vmem:[#allocation100_spill] sm:$0xff] %v9697_v6 }
 0x131   : > { %6835 = vmatmul.mubr.msk.f32.gmra.mrb[104].mxu1 %vm16628_vm0, %v9146_v19  ;;  %v526_v19 = vld [vmem:[%s9470_s8 + $0x98] sm:$0xff] }
 0x132   : > { %6836 = vmatprep.mubr.msk.f32.mxu1 %vm16628_vm0, %v9157_v36  ;;  %vm2099_vm15 = vnez %v526_v19 }
 0x133   : > { %v9577_v51 = vsel %vm2099_vm15, 16843009, %v17052_v9 }
 0x134   : > { %v9531_v63 = vpop.f32.mrb[0].mxu1  ;;  %v2275_v28 = vunpack.c.0.s8 %v9577_v51  ;;  %v2283_v24 = vunpack.c.1.s8 %v9577_v51 }
 0x135   : > { %v9533_v50 = vpop.f32.mrb[1].mxu1  ;;  %6837 = vmatmul.mubr.msk.f32.gmra.mrb[106].mxu1 %vm16628_vm0, %v9157_v36  ;;  %v9551_v36 = vsel %vm9525_vm11, 16843009, %v17052_v9 }
 0x136   : > { %6838 = vmatprep.mubr.msk.f32.mxu1 %vm16628_vm0, %v9168_v53  ;;  %v2513_v55 = vpack.c.b16 %v2275_v28, %v2274_v42  ;;  %v2519_v18 = vpack.c.b16 %v2283_v24, %v2282_v5  ;;  %v2288_v28 = vunpack.c.2.s8 %v9564_v58  ;;  %v2291_v42 = vunpack.c.2.s8 %v9577_v51 }
 0x137   : > { %v2298_v5 = vunpack.c.3.s8 %v9574_v14  ;;  %v2299_v24 = vunpack.c.3.s8 %v9577_v51  ;;  %v9676_v58 = vsel %vm9621_vm7, 16843009, %v17052_v9  ;;  %v9683_v14 = vsel %vm9627_vm8, 16843009, %v17052_v9 }
 0x138   : > { %v9553_v26 = vpop.f32.mrb[2].mxu1  ;;  %17079 = vst [vmem:[#allocation95_spill] sm:$0xff] %v9676_v58  ;;  %17081 = vst [vmem:[#allocation97_spill] sm:$0xff] %v9683_v14  ;;  %v2524_v19 = vpack.c.b16 %v2289_v23, %v2288_v28  ;;  %v2314_v28 = vunpack.c.1.s8 %v9648_v31 }
 0x139   : > { %v9555_v52 = vpop.f32.mrb[3].mxu1  ;;  %6839 = vmatmul.mubr.msk.f32.gmra.mrb[108].mxu1 %vm16628_vm0, %v9168_v53  ;;  %v2306_v53 = vunpack.c.0.s8 %v9648_v31 }
 0x13a   : > { %17058 = vst [vmem:[#allocation86_spill] sm:$0xff] %v9555_v52  ;;  %6840 = vmatprep.mubr.msk.f32.mxu1 %vm16628_vm0, %v9179_v21 }
 0x13c   : > { %v9571_v38 = vpop.f32.mrb[4].mxu1 }
 0x13d   : > { %17059 = vst [vmem:[#allocation87_spill] sm:$0xff] %v9571_v38  ;;  %v9583_v40 = vpop.f32.mrb[5].mxu1  ;;  %6841 = vmatmul.mubr.msk.f32.gmra.mrb[110].mxu1 %vm16628_vm0, %v9179_v21  ;;  %v2305_v21 = vunpack.c.0.s8 %v9643_v8 }
 0x13e   : > { %17062 = vst [vmem:[#allocation88_spill] sm:$0xff] %v9583_v40  ;;  %6842 = vmatprep.mubr.msk.f32.mxu1 %vm16628_vm0, %v9190_v54  ;;  %v2531_v40 = vpack.c.b16 %v2299_v24, %v2298_v5  ;;  %v2312_v5 = vunpack.c.1.s8 %v9640_v46  ;;  %v541_v24 = vld [vmem:[%s9470_s8 + $0x110] sm:$0xff] }
 0x13f   : > { %vm2114_vm15 = vnez %v541_v24 }
 0x140   : > { %v9603_v41 = vpop.f32.mrb[6].mxu1 }
 0x141   : > { %17065 = vst [vmem:[#allocation89_spill] sm:$0xff] %v9603_v41  ;;  %v9617_v60 = vpop.f32.mrb[7].mxu1  ;;  %6843 = vmatmul.mubr.msk.f32.gmra.mrb[112].mxu1 %vm16628_vm0, %v9190_v54  ;;  %v2530_v41 = vpack.c.b16 %v2297_v34, %v2296_v4 }
 0x142   : > { %17068 = vst [vmem:[#allocation92_spill] sm:$0xff] %v9617_v60  ;;  %6844 = vmatprep.mubr.msk.f32.mxu1 %vm16628_vm0, %v9201_v32  ;;  %v9692_v60 = vsel %vm9631_vm9, 16843009, %v17052_v9 }
 0x143   : > { %17083 = vst [vmem:[#allocation99_spill] sm:$0xff] %v9692_v60  ;;  %v2532_v34 = vpack.c.b8 %v2531_v40, %v2530_v41 }
 0x144   : > { %v9645_v43 = vpop.f32.mrb[8].mxu1 }
 0x145   : > { %17077 = vst [vmem:[#allocation93_spill] sm:$0xff] %v9645_v43  ;;  %v9653_v54 = vpop.f32.mrb[9].mxu1  ;;  %6845 = vmatmul.mubr.msk.f32.gmra.mrb[114].mxu1 %vm16628_vm0, %v9201_v32  ;;  %v2304_v32 = vunpack.c.0.s8 %v9640_v46  ;;  %v2514_v43 = vpack.c.b8 %v2513_v55, %v2512_v57  ;;  %vm9765_vm3 = vnez %v2532_v34 }
 0x146   : > { %17078 = vst [vmem:[#allocation94_spill] sm:$0xff] %v9653_v54  ;;  %6846 = vmatprep.mubr.msk.f32.mxu1 %vm16628_vm0, %v9212_v13  ;;  %v2307_v54 = vunpack.c.0.s8 %v9651_v15 }
 0x147   : > { %v2536_v38 = vpack.c.b16 %v2305_v21, %v2304_v32  ;;  %vm9716_vm11 = vnez %v2514_v43  ;;  %v540_v32 = vld [vmem:[%s9470_s8 + $0x108] sm:$0xff]  ;;  %v2313_v43 = vunpack.c.1.s8 %v9643_v8 }
 0x148   : > { %v9678_v22 = vpop.f32.mrb[10].mxu1  ;;  %v2537_v52 = vpack.c.b16 %v2307_v54, %v2306_v53  ;;  %v539_v54 = vld [vmem:[%s9470_s8 + $0x100] sm:$0xff]  ;;  %vm2113_vm14 = vnez %v540_v32  ;;  %v9752_v12 = vsel %vm9716_vm11, 16843009, %v17052_v9 }
 0x149   : > { %17080 = vst [vmem:[#allocation96_spill] sm:$0xff] %v9678_v22  ;;  %v9685_v51 = vpop.f32.mrb[11].mxu1  ;;  %6847 = vmatmul.mubr.msk.f32.gmra.mrb[116].mxu1 %vm16628_vm0, %v9212_v13  ;;  %v2520_v22 = vpack.c.b8 %v2519_v18, %v2518_v0  ;;  %v2315_v0 = vunpack.c.1.s8 %v9651_v15  ;;  %v9734_v18 = vpop.f32.mrb[0].mxu0  ;;  %vm2112_vm13 = vnez %v539_v54  ;;  %17095 = vst [vmem:[#allocation107_spill] sm:$0xff] %v9752_v12  ;;  %v9769_v24 = vpack.c.b16 %v2313_v43, %v2312_v5 }
 0x14a   : > { %17082 = vst [vmem:[#allocation98_spill] sm:$0xff] %v9685_v51  ;;  %6848 = vmatprep.mubr.msk.f32.mxu1 %vm16628_vm0, %v9223_v61  ;;  %v2525_v51 = vpack.c.b16 %v2291_v42, %v2290_v27  ;;  %v542_v27 = vld [vmem:[%s9470_s8 + $0x118] sm:$0xff]  ;;  %v2538_v53 = vpack.c.b8 %v2537_v52, %v2536_v38  ;;  %17091 = vst [vmem:[#allocation103_spill] sm:$0xff] %v9734_v18  ;;  %v9740_v40 = vpop.f32.mrb[1].mxu0  ;;  %v2322_v52 = vunpack.c.2.s8 %v9648_v31  ;;  %v2323_v38 = vunpack.c.2.s8 %v9651_v15  ;;  %v547_v18 = vld [vmem:[%s9470_s8 + $0x140] sm:$0xff] }
 0x14b   : > { %vm9724_vm12 = vnez %v2520_v22  ;;  %v2320_v22 = vunpack.c.2.s8 %v9640_v46  ;;  %17093 = vst [vmem:[#allocation105_spill] sm:$0xff] %v9740_v40  ;;  %vm2115_vm1 = vnez %v542_v27  ;;  %v9773_v21 = vsel %vm2112_vm13, 16843009, %v17052_v9  ;;  %v9779_v42 = vpop.f32.mrb[2].mxu0 }
 0x14c   : > { %v9707_v55 = vpop.f32.mrb[12].mxu1  ;;  %v2526_v4 = vpack.c.b8 %v2525_v51, %v2524_v19  ;;  %v2321_v51 = vunpack.c.2.s8 %v9643_v8  ;;  %v9759_v10 = vsel %vm9724_vm12, 16843009, %v17052_v9  ;;  %v9777_v19 = vsel %vm2113_vm14, 16843009, %v17052_v9  ;;  %17101 = vst [vmem:[#allocation109_spill] sm:$0xff] %v9779_v42 }
 0x14d   : > { %17085 = vst [vmem:[#allocation101_spill] sm:$0xff] %v9707_v55  ;;  %v9710_v23 = vpop.f32.mrb[13].mxu1  ;;  %6849 = vmatmul.mubr.msk.f32.gmra.mrb[118].mxu1 %vm16628_vm0, %v9223_v61  ;;  %17096 = vst [vmem:[#allocation108_spill] sm:$0xff] %v9759_v10  ;;  %vm9783_vm4 = vnez %v2538_v53  ;;  %v9787_v34 = vpack.c.b16 %v2315_v0, %v2314_v28  ;;  %v9790_v5 = vsel %vm2114_vm15, 16843009, %v17052_v9  ;;  %v9795_v43 = vpop.f32.mrb[3].mxu0  ;;  %v9803_v53 = vpack.c.b16 %v2323_v38, %v2322_v52 }
 0x14e   : > { %17086 = vst [vmem:[#allocation102_spill] sm:$0xff] %v9710_v23  ;;  %6850 = vmatprep.mubr.msk.f32.mxu1 %vm16628_vm0, %v9234_v49  ;;  %vm9761_vm2 = vnez %v2526_v4  ;;  %v9793_v54 = vsel %vm2115_vm1, 16843009, %v17052_v9  ;;  %17105 = vst [vmem:[#allocation111_spill] sm:$0xff] %v9795_v43  ;;  %v9801_v61 = vpack.c.b16 %v2321_v51, %v2320_v22  ;;  %v2328_v0 = vunpack.c.3.s8 %v9640_v46  ;;  %v9817_v52 = vpop.f32.mrb[4].mxu0  ;;  %v548_v23 = vld [vmem:[%s9470_s8 + $0x148] sm:$0xff] }
 0x14f   : > { %v2329_v28 = vunpack.c.3.s8 %v9643_v8  ;;  %v2331_v43 = vunpack.c.3.s8 %v9651_v15  ;;  %v2337_v42 = vunpack.c.0.s8 %v9777_v19  ;;  %v2338_v22 = vunpack.c.0.s8 %v9790_v5  ;;  %17107 = vst [vmem:[#allocation113_spill] sm:$0xff] %v9817_v52 }
 0x150   : > { %v9736_v57 = vpop.f32.mrb[14].mxu1  ;;  %v2339_v51 = vunpack.c.0.s8 %v9793_v54  ;;  %v2344_v46 = vunpack.c.1.s8 %v9773_v21  ;;  %v2345_v8 = vunpack.c.1.s8 %v9777_v19  ;;  %v9829_v15 = vsel %vm9765_vm3, 16843009, %v17052_v9 }
 0x151   : > { %17092 = vst [vmem:[#allocation104_spill] sm:$0xff] %v9736_v57  ;;  %v9742_v41 = vpop.f32.mrb[15].mxu1  ;;  %6851 = vmatmul.mubr.msk.f32.gmra.mrb[120].mxu1 %vm16628_vm0, %v9234_v49  ;;  %17110 = vst [vmem:[#allocation116_spill] sm:$0xff] %v9829_v15  ;;  %v2347_v40 = vunpack.c.1.s8 %v9793_v54  ;;  %v9845_v27 = vsel %vm9783_vm4, 16843009, %v17052_v9  ;;  %v2550_v13 = vpack.c.b8 %v9803_v53, %v9801_v61  ;;  %v9855_v52 = vpack.c.b16 %v2329_v28, %v2328_v0 }
 0x152   : > { %17094 = vst [vmem:[#allocation106_spill] sm:$0xff] %v9742_v41  ;;  %6852 = vmatprep.mubr.msk.f32.mxu1 %vm16628_vm0, %v9245_v35  ;;  %v9833_v41 = vpop.f32.mrb[5].mxu0  ;;  %17113 = vst [vmem:[#allocation119_spill] sm:$0xff] %v9845_v27  ;;  %v9863_v55 = vpack.c.b16 %v2339_v51, %v2338_v22  ;;  %v9865_v12 = vpack.c.b16 %v2345_v8, %v2344_v46  ;;  %v2352_v6 = vunpack.c.2.s8 %v9773_v21  ;;  %v2353_v61 = vunpack.c.2.s8 %v9777_v19 }
 0x153   : > { %17111 = vst [vmem:[#allocation117_spill] sm:$0xff] %v9833_v41  ;;  %v9868_v60 = vpop.f32.mrb[6].mxu0  ;;  %vm2120_vm5 = vnez %v547_v18  ;;  %vm2121_vm6 = vnez %v548_v23  ;;  %v2362_v53 = vunpack.c.3.s8 %v9790_v5  ;;  %v2363_v0 = vunpack.c.3.s8 %v9793_v54 }
 0x154   : > { %v9781_v4 = vpop.f32.mrb[16].mxu1  ;;  %v9891_v51 = vsel %vm2120_vm5, 16843009, %v17052_v9  ;;  %vm9918_vm10 = vnez %v2550_v13  ;;  %v2572_v22 = vpack.c.b16 %v2353_v61, %v2352_v6 }
 0x155   : > { %17102 = vst [vmem:[#allocation110_spill] sm:$0xff] %v9781_v4  ;;  %v9797_v32 = vpop.f32.mrb[17].mxu1  ;;  %6853 = vmatmul.mubr.msk.f32.gmra.mrb[122].mxu1 %vm16628_vm0, %v9245_v35  ;;  %v2330_v4 = vunpack.c.3.s8 %v9648_v31  ;;  %v9824_v31 = vsel %vm9761_vm2, 16843009, %v17052_v9  ;;  %v2346_v35 = vunpack.c.1.s8 %v9790_v5  ;;  %v2376_v6 = vunpack.c.1.s8 %v9891_v51 }
 0x156   : > { %17106 = vst [vmem:[#allocation112_spill] sm:$0xff] %v9797_v32  ;;  %6854 = vmatprep.mubr.msk.f32.mxu1 %vm16628_vm0, %v9256_v16  ;;  %v2336_v32 = vunpack.c.0.s8 %v9773_v21  ;;  %17109 = vst [vmem:[#allocation115_spill] sm:$0xff] %v9824_v31 }
 0x157   : > { %v9857_v41 = vpack.c.b16 %v2331_v43, %v2330_v4  ;;  %v9873_v4 = vpop.f32.mrb[7].mxu0 }
 0x158   : > { %v9819_v38 = vpop.f32.mrb[18].mxu1  ;;  %v9861_v49 = vpack.c.b16 %v2337_v42, %v2336_v32  ;;  %17115 = vst [vmem:[#allocation121_spill] sm:$0xff] %v9873_v4  ;;  %v2354_v42 = vunpack.c.2.s8 %v9790_v5  ;;  %v2355_v32 = vunpack.c.2.s8 %v9793_v54 }
 0x159   : > { %17108 = vst [vmem:[#allocation114_spill] sm:$0xff] %v9819_v38  ;;  %v9838_v57 = vpop.f32.mrb[19].mxu1  ;;  %6855 = vmatmul.mubr.msk.f32.gmra.mrb[124].mxu1 %vm16628_vm0, %v9256_v16  ;;  %v2544_v38 = vpack.c.b8 %v9787_v34, %v9769_v24  ;;  %v549_v16 = vld [vmem:[%s9470_s8 + $0x150] sm:$0xff]  ;;  %v2567_v34 = vpack.c.b16 %v2347_v40, %v2346_v35  ;;  %v2360_v35 = vunpack.c.3.s8 %v9773_v21  ;;  %v2361_v40 = vunpack.c.3.s8 %v9777_v19 }
 0x15a   : > { %17112 = vst [vmem:[#allocation118_spill] sm:$0xff] %v9838_v57  ;;  %6856 = vmatprep.mubr.msk.f32.mxu1 %vm16628_vm0, %v9267_v20  ;;  %v550_v57 = vld [vmem:[%s9470_s8 + $0x158] sm:$0xff]  ;;  %vm2122_vm7 = vnez %v549_v16  ;;  %v9895_v16 = vsel %vm2121_vm6, 16843009, %v17052_v9  ;;  %v2562_v19 = vpack.c.b8 %v9863_v55, %v9861_v49 }
 0x15b   : > { %vm2123_vm8 = vnez %v550_v57  ;;  %v9897_v57 = vpop.f32.mrb[8].mxu0  ;;  %vm9902_vm9 = vnez %v2544_v38  ;;  %v9907_v54 = vsel %vm2122_vm7, 16843009, %v17052_v9  ;;  %v2556_v38 = vpack.c.b8 %v9857_v41, %v9855_v52 }
 0x15c   : > { %v9870_v24 = vpop.f32.mrb[20].mxu1  ;;  %17117 = vst [vmem:[#allocation123_spill] sm:$0xff] %v9897_v57  ;;  %v9910_v18 = vsel %vm2123_vm8, 16843009, %v17052_v9  ;;  %v9912_v46 = vpop.f32.mrb[9].mxu0  ;;  %v2568_v28 = vpack.c.b8 %v2567_v34, %v9865_v12  ;;  %v2369_v13 = vunpack.c.0.s8 %v9895_v16  ;;  %v2377_v49 = vunpack.c.1.s8 %v9895_v16 }
 0x15d   : > { %17114 = vst [vmem:[#allocation120_spill] sm:$0xff] %v9870_v24  ;;  %v9875_v43 = vpop.f32.mrb[21].mxu1  ;;  %6857 = vmatmul.mubr.msk.f32.gmra.mrb[126].mxu1 %vm16628_vm0, %v9267_v20  ;;  %17121 = vst [vmem:[#allocation125_spill] sm:$0xff] %v9912_v46  ;;  %v2573_v20 = vpack.c.b16 %v2355_v32, %v2354_v42  ;;  %v2579_v46 = vpack.c.b16 %v2363_v0, %v2362_v53  ;;  %v2371_v41 = vunpack.c.0.s8 %v9910_v18  ;;  %v9933_v52 = vpop.f32.mrb[10].mxu0  ;;  %v2378_v12 = vunpack.c.1.s8 %v9907_v54 }
 0x15e   : > { %17116 = vst [vmem:[#allocation122_spill] sm:$0xff] %v9875_v43  ;;  %6986 = vmatprep.mubr.msk.f32.mxu1 %vm16628_vm0, %v8644_v17  ;;  %17125 = vst [vmem:[#allocation127_spill] sm:$0xff] %v9933_v52  ;;  %v2379_v34 = vunpack.c.1.s8 %v9910_v18  ;;  %v9941_v61 = vpop.f32.mrb[11].mxu0  ;;  %v9953_v53 = vsel %vm9902_vm9, 16843009, %v17052_v9  ;;  %vm9963_vm11 = vnez %v2556_v38  ;;  %vm9967_vm12 = vnez %v2562_v19 }
 0x15f   : > { %17127 = vst [vmem:[#allocation129_spill] sm:$0xff] %v9941_v61  ;;  %17129 = vst [vmem:[#allocation131_spill] sm:$0xff] %v9953_v53  ;;  %v9961_v32 = vsel %vm9918_vm10, 16843009, %v17052_v9  ;;  %vm9971_vm13 = vnez %v2568_v28  ;;  %v2386_v42 = vunpack.c.2.s8 %v9907_v54 }
 0x160   : > { %v9900_v21 = vpop.f32.mrb[22].mxu1  ;;  %17130 = vst [vmem:[#allocation132_spill] sm:$0xff] %v9961_v32 }
 0x161   : > { %17118 = vst [vmem:[#allocation124_spill] sm:$0xff] %v9900_v21  ;;  %v9914_v23 = vpop.f32.mrb[23].mxu1  ;;  %6987 = vmatmul.mubr.msk.f32.vlgmr.msra.gmra.mrb[128].mxu1 %vm16628_vm0, %v8644_v17  ;;  %v2368_v17 = vunpack.c.0.s8 %v9891_v51  ;;  %v2370_v21 = vunpack.c.0.s8 %v9907_v54 }
 0x162   : > { %17122 = vst [vmem:[#allocation126_spill] sm:$0xff] %v9914_v23  ;;  %6988 = vmatprep.mubr.msk.f32.mxu1 %vm16628_vm0, %v8821_v44  ;;  %v2578_v23 = vpack.c.b16 %v2361_v40, %v2360_v35  ;;  %v2387_v35 = vunpack.c.2.s8 %v9910_v18 }
 0x163   : > { %v2584_v0 = vpack.c.b16 %v2369_v13, %v2368_v17  ;;  %v2585_v61 = vpack.c.b16 %v2371_v41, %v2370_v21  ;;  %v2384_v41 = vunpack.c.2.s8 %v9891_v51  ;;  %v557_v17 = vld [vmem:[%s9470_s8 + $0x190] sm:$0xff]  ;;  %v558_v21 = vld [vmem:[%s9470_s8 + $0x198] sm:$0xff]  ;;  %v2395_v13 = vunpack.c.3.s8 %v9910_v18 }
 0x164   : > { %v9935_v55 = vpop.f32.mrb[24].mxu1  ;;  %vm2130_vm3 = vnez %v557_v17  ;;  %vm2131_vm4 = vnez %v558_v21  ;;  %v2393_v17 = vunpack.c.3.s8 %v9895_v16 }
 0x165   : > { %17126 = vst [vmem:[#allocation128_spill] sm:$0xff] %v9935_v55  ;;  %v9946_v40 = vpop.f32.mrb[25].mxu1  ;;  %6989 = vmatmul.mubr.msk.f32.gmra.mrb[130].mxu1 %vm16628_vm0, %v8821_v44  ;;  %v2574_v44 = vpack.c.b8 %v2573_v20, %v2572_v22  ;;  %v2580_v55 = vpack.c.b8 %v2579_v46, %v2578_v23  ;;  %v2590_v20 = vpack.c.b16 %v2377_v49, %v2376_v6  ;;  %v9992_v46 = vsel %vm9963_vm11, 16843009, %v17052_v9  ;;  %v555_v6 = vld [vmem:[%s9470_s8 + $0x180] sm:$0xff]  ;;  %v556_v49 = vld [vmem:[%s9470_s8 + $0x188] sm:$0xff] }
 0x166   : > { %17128 = vst [vmem:[#allocation130_spill] sm:$0xff] %v9946_v40  ;;  %6990 = vmatprep.mubr.msk.f32.mxu1 %vm16628_vm0, %v8842_v56  ;;  %v9975_v40 = vpop.f32.mrb[12].mxu0  ;;  %v2591_v22 = vpack.c.b16 %v2379_v34, %v2378_v12  ;;  %17141 = vst [vmem:[#allocation137_spill] sm:$0xff] %v9992_v46  ;;  %v9999_v23 = vsel %vm9967_vm12, 16843009, %v17052_v9  ;;  %v2586_v12 = vpack.c.b8 %v2585_v61, %v2584_v0  ;;  %v2385_v34 = vunpack.c.2.s8 %v9895_v16 }
 0x167   : > { %17137 = vst [vmem:[#allocation133_spill] sm:$0xff] %v9975_v40  ;;  %v9980_v19 = vpop.f32.mrb[13].mxu0  ;;  %17142 = vst [vmem:[#allocation138_spill] sm:$0xff] %v9999_v23  ;;  %vm10006_vm14 = vnez %v2574_v44  ;;  %vm2694_vm15 = vnez %v2580_v55  ;;  %vm2128_vm1 = vnez %v555_v6  ;;  %vm2129_vm2 = vnez %v556_v49 }
 0x168   : > { %v9977_v8 = vpop.f32.mrb[26].mxu1  ;;  %17139 = vst [vmem:[#allocation135_spill] sm:$0xff] %v9980_v19  ;;  %v10018_v5 = vpop.f32.mrb[14].mxu0  ;;  %v10038_v55 = vsel %vm10006_vm14, 16843009, %v17052_v9  ;;  %vm10043_vm5 = vnez %v2586_v12  ;;  %v10049_v6 = vpack.c.b16 %v2387_v35, %v2386_v42  ;;  %v2392_v42 = vunpack.c.3.s8 %v9891_v51 }
 0x169   : > { %17138 = vst [vmem:[#allocation134_spill] sm:$0xff] %v9977_v8  ;;  %v9982_v52 = vpop.f32.mrb[27].mxu1  ;;  %6991 = vmatmul.mubr.msk.f32.gmra.mrb[132].mxu1 %vm16628_vm0, %v8842_v56  ;;  %v10004_v56 = vsel %vm9971_vm13, 16843009, %v17052_v9  ;;  %17146 = vst [vmem:[#allocation140_spill] sm:$0xff] %v10018_v5  ;;  %v10024_v19 = vpop.f32.mrb[15].mxu0  ;;  %v2394_v44 = vunpack.c.3.s8 %v9907_v54 }
 0x16a   : > { %17140 = vst [vmem:[#allocation136_spill] sm:$0xff] %v9982_v52  ;;  %6992 = vmatprep.mubr.msk.f32.mxu1 %vm16628_vm0, %v8861_v3  ;;  %17143 = vst [vmem:[#allocation139_spill] sm:$0xff] %v10004_v56  ;;  %v2592_v52 = vpack.c.b8 %v2591_v22, %v2590_v20  ;;  %v10047_v22 = vpack.c.b16 %v2385_v34, %v2384_v41  ;;  %v10051_v49 = vpop.f32.mrb[16].mxu0  ;;  %v10057_v40 = vsel %vm2128_vm1, 16843009, %v17052_v9  ;;  %v564_v20 = vld [vmem:[%s9470_s8 + $0x1c8] sm:$0xff] }
 0x16b   : > { %17148 = vst [vmem:[#allocation142_spill] sm:$0xff] %v10024_v19  ;;  %17150 = vst [vmem:[#allocation144_spill] sm:$0xff] %v10038_v55  ;;  %v10060_v0 = vsel %vm2129_vm2, 16843009, %v17052_v9  ;;  %v10062_v12 = vpop.f32.mrb[17].mxu0  ;;  %v2400_v51 = vunpack.c.0.s8 %v10057_v40  ;;  %v565_v5 = vld [vmem:[%s9470_s8 + $0x1d0] sm:$0xff]  ;;  %v2408_v18 = vunpack.c.1.s8 %v10057_v40  ;;  %vm2137_vm8 = vnez %v564_v20 }
 0x16c   : > { %v10020_v28 = vpop.f32.mrb[28].mxu1  ;;  %17153 = vst [vmem:[#allocation145_spill] sm:$0xff] %v10051_v49  ;;  %vm2698_vm6 = vnez %v2592_v52  ;;  %17155 = vst [vmem:[#allocation147_spill] sm:$0xff] %v10062_v12  ;;  %v10072_v52 = vsel %vm2130_vm3, 16843009, %v17052_v9  ;;  %v563_v12 = vld [vmem:[%s9470_s8 + $0x1c0] sm:$0xff]  ;;  %v2401_v16 = vunpack.c.0.s8 %v10060_v0  ;;  %vm2138_vm9 = vnez %v565_v5 }
 0x16d   : > { %17147 = vst [vmem:[#allocation141_spill] sm:$0xff] %v10020_v28  ;;  %v10026_v61 = vpop.f32.mrb[29].mxu1  ;;  %6993 = vmatmul.mubr.msk.f32.gmra.mrb[134].mxu1 %vm16628_vm0, %v8861_v3  ;;  %v10041_v3 = vsel %vm2694_vm15, 16843009, %v17052_v9  ;;  %v2195_v35 = vsel %vm2131_vm4, 16843009, %v17052_v9  ;;  %v2417_v28 = vunpack.c.2.s8 %v10060_v0  ;;  %vm2136_vm7 = vnez %v563_v12 }
 0x16e   : > { %17149 = vst [vmem:[#allocation143_spill] sm:$0xff] %v10026_v61  ;;  %6994 = vmatprep.mubr.msk.f32.mxu1 %vm16628_vm0, %v8881_v25  ;;  %v10087_v34 = vsel %vm2698_vm6, 16843009, %v17052_v9  ;;  %v10095_v49 = vpop.f32.mrb[18].mxu0  ;;  %v2403_v19 = vunpack.c.0.s8 %v2195_v35  ;;  %v566_v55 = vld [vmem:[%s9470_s8 + $0x1d8] sm:$0xff]  ;;  %v2411_v56 = vunpack.c.1.s8 %v2195_v35  ;;  %v2416_v61 = vunpack.c.2.s8 %v10057_v40 }
 0x16f   : > { %17158 = vst [vmem:[#allocation150_spill] sm:$0xff] %v10087_v34  ;;  %17159 = vst [vmem:[#allocation151_spill] sm:$0xff] %v10095_v49  ;;  %v10104_v21 = vpop.f32.mrb[19].mxu0  ;;  %v2409_v49 = vunpack.c.1.s8 %v10060_v0  ;;  %vm2139_vm10 = vnez %v566_v55  ;;  %v2424_v8 = vunpack.c.3.s8 %v10057_v40  ;;  %v2425_v46 = vunpack.c.3.s8 %v10060_v0 }
 0x170   : > { %v10053_v38 = vpop.f32.mrb[30].mxu1  ;;  %17161 = vst [vmem:[#allocation153_spill] sm:$0xff] %v10104_v21  ;;  %v2418_v21 = vunpack.c.2.s8 %v10072_v52  ;;  %v2426_v32 = vunpack.c.3.s8 %v10072_v52  ;;  %v2427_v57 = vunpack.c.3.s8 %v2195_v35  ;;  %v10131_v53 = vpack.c.b16 %v2393_v17, %v2392_v42 }
 0x171   : > { %17154 = vst [vmem:[#allocation146_spill] sm:$0xff] %v10053_v38  ;;  %v10064_v41 = vpop.f32.mrb[31].mxu1  ;;  %6995 = vmatmul.mubr.msk.f32.gmra.mrb[136].mxu1 %vm16628_vm0, %v8881_v25  ;;  %v10082_v25 = vsel %vm10043_vm5, 16843009, %v17052_v9  ;;  %v2402_v38 = vunpack.c.0.s8 %v10072_v52  ;;  %v10133_v24 = vpack.c.b16 %v2395_v13, %v2394_v44  ;;  %v10141_v40 = vsel %vm2137_vm8, 16843009, %v17052_v9 }
 0x172   : > { %17156 = vst [vmem:[#allocation148_spill] sm:$0xff] %v10064_v41  ;;  %6996 = vmatprep.mubr.msk.f32.mxu1 %vm16628_vm0, %v8903_v39  ;;  %17157 = vst [vmem:[#allocation149_spill] sm:$0xff] %v10082_v25  ;;  %v10145_v0 = vpack.c.b16 %v2401_v16, %v2400_v51  ;;  %v10155_v44 = vsel %vm2139_vm10, 16843009, %v17052_v9  ;;  %v10157_v13 = vpack.c.b16 %v2409_v49, %v2408_v18  ;;  %v2433_v20 = vunpack.c.0.s8 %v10141_v40 }
 0x173   : > { %v10161_v42 = vpack.c.b16 %v2417_v28, %v2416_v61  ;;  %v10171_v5 = vpack.c.b16 %v2427_v57, %v2426_v32  ;;  %v2435_v61 = vunpack.c.0.s8 %v10155_v44  ;;  %v2441_v57 = vunpack.c.1.s8 %v10141_v40 }
 0x174   : > { %v10097_v41 = vpop.f32.mrb[32].mxu1  ;;  %v2604_v16 = vpack.c.b8 %v10133_v24, %v10131_v53  ;;  %v2443_v18 = vunpack.c.1.s8 %v10155_v44  ;;  %v512_v53 = vld [vmem:[%s9470_s8 + $0x28] sm:$0xff]  ;;  %v17220_v51 = vunpack.c.1.s8 %v9551_v36 }
 0x175   : > { %17160 = vst [vmem:[#allocation152_spill] sm:$0xff] %v10097_v41  ;;  %v10106_v54 = vpop.f32.mrb[33].mxu1  ;;  %6997 = vmatmul.mubr.msk.f32.gmra.mrb[138].mxu1 %vm16628_vm0, %v8903_v39  ;;  %v2410_v41 = vunpack.c.1.s8 %v10072_v52  ;;  %v10118_v39 = vpop.f32.mrb[20].mxu0  ;;  %v10147_v52 = vpack.c.b16 %v2403_v19, %v2402_v38  ;;  %v10169_v19 = vpack.c.b16 %v2425_v46, %v2424_v8  ;;  %v511_v46 = vld [vmem:[%s9470_s8 + $0x20] sm:$0xff]  ;;  %vm2085_vm13 = vnez %v512_v53 }
 0x176   : > { %17162 = vst [vmem:[#allocation154_spill] sm:$0xff] %v10106_v54  ;;  %6998 = vmatprep.mubr.msk.f32.mxu1 %vm16628_vm0, %v8921_v59  ;;  %v2419_v54 = vunpack.c.2.s8 %v2195_v35  ;;  %17163 = vst [vmem:[#allocation155_spill] sm:$0xff] %v10118_v39  ;;  %v10125_v43 = vpop.f32.mrb[21].mxu0  ;;  %v10137_v39 = vsel %vm2136_vm7, 16843009, %v17052_v9  ;;  %vm2084_vm12 = vnez %v511_v46  ;;  %vm10255_vm1 = vnez %v2604_v16 }
 0x177   : > { %v10159_v12 = vpack.c.b16 %v2411_v56, %v2410_v41  ;;  %v10165_v17 = vpop.f32.mrb[22].mxu0  ;;  %v2432_v55 = vunpack.c.0.s8 %v10137_v39  ;;  %v2440_v8 = vunpack.c.1.s8 %v10137_v39  ;;  %v2610_v41 = vpack.c.b8 %v10147_v52, %v10145_v0 }
 0x178   : > { %v10120_v23 = vpop.f32.mrb[34].mxu1  ;;  %v10163_v35 = vpack.c.b16 %v2419_v54, %v2418_v21  ;;  %17164 = vst [vmem:[#allocation156_spill] sm:$0xff] %v10165_v17  ;;  %v10175_v49 = vpop.f32.mrb[23].mxu0  ;;  %v17166_v21 = vpack.c.b8 %v10049_v6, %v10047_v22  ;;  %v2628_v24 = vpack.c.b8 %v10171_v5, %v10169_v19  ;;  %v2451_v19 = vunpack.c.2.s8 %v10155_v44 }
 0x179   : > { %v10127_v4 = vpop.f32.mrb[35].mxu1  ;;  %6999 = vmatmul.mubr.msk.f32.gmra.mrb[140].mxu1 %vm16628_vm0, %v8921_v59  ;;  %v10151_v59 = vsel %vm2138_vm9, 16843009, %v17052_v9  ;;  %17165 = vst [vmem:[#allocation157_spill] sm:$0xff] %v10175_v49  ;;  %v10203_v32 = vpop.f32.mrb[24].mxu0  ;;  %v2616_v22 = vpack.c.b8 %v10159_v12, %v10157_v13  ;;  %v514_v49 = vld [vmem:[%s9470_s8 + $0x38] sm:$0xff]  ;;  %v10224_v0 = vpack.c.b16 %v2433_v20, %v2432_v55  ;;  %v10228_v13 = vpack.c.b16 %v2441_v57, %v2440_v8 }
 0x17a   : > { %7000 = vmatprep.mubr.msk.f32.mxu1 %vm16628_vm0, %v8941_v11  ;;  %v2434_v28 = vunpack.c.0.s8 %v10151_v59  ;;  %vm10194_vm11 = vnez %v17166_v21  ;;  %v2442_v54 = vunpack.c.1.s8 %v10151_v59  ;;  %17169 = vst [vmem:[#allocation158_spill] sm:$0xff] %v10203_v32  ;;  %v2622_v6 = vpack.c.b8 %v10163_v35, %v10161_v42  ;;  %v513_v21 = vld [vmem:[%s9470_s8 + $0x30] sm:$0xff]  ;;  %v10218_v17 = vpop.f32.mrb[25].mxu0 }
 0x17b   : > { %17170 = vst [vmem:[#allocation159_spill] sm:$0xff] %v10218_v17  ;;  %v2448_v12 = vunpack.c.2.s8 %v10137_v39  ;;  %v2449_v42 = vunpack.c.2.s8 %v10141_v40  ;;  %v2450_v35 = vunpack.c.2.s8 %v10151_v59  ;;  %vm2086_vm14 = vnez %v513_v21 }
 0x17c   : > { %v10167_v38 = vpop.f32.mrb[36].mxu1  ;;  %v10226_v52 = vpack.c.b16 %v2435_v61, %v2434_v28  ;;  %v2639_v5 = vpack.c.b16 %v2443_v18, %v2442_v54  ;;  %vm2087_vm15 = vnez %v514_v49  ;;  %v2456_v20 = vunpack.c.3.s8 %v10137_v39 }
 0x17d   : > { %v10177_v56 = vpop.f32.mrb[37].mxu1  ;;  %7001 = vmatmul.mubr.msk.f32.gmra.mrb[142].mxu1 %vm16628_vm0, %v8941_v11  ;;  %v2457_v28 = vunpack.c.3.s8 %v10141_v40  ;;  %v2458_v61 = vunpack.c.3.s8 %v10151_v59  ;;  %v2459_v8 = vunpack.c.3.s8 %v10155_v44  ;;  %v10253_v54 = vsel %vm10194_vm11, 16843009, %v17052_v9 }
 0x17e   : > { %7002 = vmatprep.mubr.msk.f32.mxu1 %vm16628_vm0, %v8952_v30  ;;  %17175 = vst [vmem:[#allocation164_spill] sm:$0xff] %v10253_v54  ;;  %vm10259_vm2 = vnez %v2610_v41  ;;  %v10265_v59 = vsel %vm2084_vm12, 16843009, %v17052_v9  ;;  %vm10269_vm3 = vnez %v2616_v22  ;;  %v10275_v44 = vsel %vm2085_vm13, 16843009, %v17052_v9 }
 0x17f   : > { %v10279_v41 = vsel %vm2086_vm14, 16843009, %v17052_v9  ;;  %v10283_v46 = vsel %vm2087_vm15, 16843009, %v17052_v9  ;;  %vm10285_vm4 = vnez %v2622_v6  ;;  %vm10289_vm5 = vnez %v2628_v24 }
 0x180   : > { %v10205_v11 = vpop.f32.mrb[38].mxu1  ;;  %v2644_v18 = vpack.c.b16 %v2449_v42, %v2448_v12  ;;  %v2645_v22 = vpack.c.b16 %v2451_v19, %v2450_v35  ;;  %v2634_v21 = vpack.c.b8 %v10226_v52, %v10224_v0  ;;  %v2640_v49 = vpack.c.b8 %v2639_v5, %v10228_v13 }
 0x181   : > { %v10220_v32 = vpop.f32.mrb[39].mxu1  ;;  %7003 = vmatmul.mubr.msk.f32.gmra.mrb[144].mxu1 %vm16628_vm0, %v8952_v30  ;;  %v10236_v30 = vpop.f32.mrb[26].mxu0  ;;  %v2651_v6 = vpack.c.b16 %v2459_v8, %v2458_v61  ;;  %v2212_v24 = vunpack.c.0.s8 %v10265_v59  ;;  %v2213_v12 = vunpack.c.0.s8 %v10275_v44  ;;  %v2214_v42 = vunpack.c.0.s8 %v10279_v41 }
 0x182   : > { %7004 = vmatprep.mubr.msk.f32.mxu1 %vm16628_vm0, %v8973_v47  ;;  %17171 = vst [vmem:[#allocation160_spill] sm:$0xff] %v10236_v30  ;;  %v10244_v57 = vpop.f32.mrb[27].mxu0  ;;  %v2650_v30 = vpack.c.b16 %v2457_v28, %v2456_v20  ;;  %v2215_v35 = vunpack.c.0.s8 %v10283_v46  ;;  %v17189_v0 = vunpack.c.0.s8 %v9546_v62  ;;  %v2220_v13 = vunpack.c.1.s8 %v10265_v59 }
 0x183   : > { %17173 = vst [vmem:[#allocation162_spill] sm:$0xff] %v10244_v57  ;;  %v10293_v53 = vpop.f32.mrb[28].mxu0  ;;  %v2222_v19 = vunpack.c.1.s8 %v10279_v41  ;;  %v2223_v5 = vunpack.c.1.s8 %v10283_v46  ;;  %v10326_v28 = vsel %vm10255_vm1, 16843009, %v17052_v9  ;;  %v10331_v61 = vsel %vm10259_vm2, 16843009, %v17052_v9 }
 0x184   : > { %v10238_v55 = vpop.f32.mrb[40].mxu1  ;;  %17186 = vst [vmem:[#allocation165_spill] sm:$0xff] %v10293_v53  ;;  %vm10312_vm6 = vcmp.ne.s32.totalorder %v17189_v0, 0  ;;  %17192 = vst [vmem:[#allocation168_spill] sm:$0xff] %v10326_v28  ;;  %v2646_v8 = vpack.c.b8 %v2645_v22, %v2644_v18  ;;  %v10340_v20 = vsel %vm10269_vm3, 16843009, %v17052_v9  ;;  %vm10358_vm7 = vnez %v2634_v21 }
 0x185   : > { %17172 = vst [vmem:[#allocation161_spill] sm:$0xff] %v10238_v55  ;;  %v10246_v17 = vpop.f32.mrb[41].mxu1  ;;  %7005 = vmatmul.mubr.msk.f32.gmra.mrb[146].mxu1 %vm16628_vm0, %v8973_v47  ;;  %17193 = vst [vmem:[#allocation169_spill] sm:$0xff] %v10331_v61  ;;  %v10345_v39 = vsel %vm10285_vm4, 16843009, %v17052_v9  ;;  %vm10362_vm8 = vnez %v2640_v49  ;;  %v2652_v22 = vpack.c.b8 %v2651_v6, %v2650_v30  ;;  %v2474_v16 = vpack.c.b16 %v2223_v5, %v2222_v19 }
 0x186   : > { %17174 = vst [vmem:[#allocation163_spill] sm:$0xff] %v10246_v17  ;;  %7006 = vmatprep.mubr.msk.f32.mxu1 %vm16628_vm0, %v8988_v1  ;;  %v10300_v17 = vpop.f32.mrb[29].mxu0  ;;  %17195 = vst [vmem:[#allocation171_spill] sm:$0xff] %v10340_v20  ;;  %v10356_v18 = vsel %vm10289_vm5, 16843009, %v17052_v9  ;;  %vm2716_vm10 = vnez %v2646_v8  ;;  %v17217_v47 = vunpack.c.0.s8 %v9551_v36  ;;  %vm10422_vm13 = vcmp.ne.s32.totalorder %v17220_v51, 0 }
 0x187   : > { %17187 = vst [vmem:[#allocation166_spill] sm:$0xff] %v10300_v17  ;;  %17196 = vst [vmem:[#allocation172_spill] sm:$0xff] %v10345_v39  ;;  %v10347_v40 = vpop.f32.mrb[30].mxu0  ;;  %v2468_v17 = vpack.c.b16 %v2215_v35, %v2214_v42  ;;  %v10398_v5 = vsel %vm10358_vm7, 16843009, %v17052_v9  ;;  %vm10410_vm11 = vnez %v2652_v22  ;;  %v2228_v22 = vunpack.c.2.s8 %v10265_v59 }
 0x188   : > { %v10295_v57 = vpop.f32.mrb[42].mxu1  ;;  %17197 = vst [vmem:[#allocation173_spill] sm:$0xff] %v10347_v40  ;;  %17199 = vst [vmem:[#allocation175_spill] sm:$0xff] %v10356_v18  ;;  %v10366_v53 = vpop.f32.mrb[31].mxu0  ;;  %v10403_v8 = vsel %vm10362_vm8, 16843009, %v17052_v9  ;;  %v17224_v30 = vunpack.c.0.s8 %v9610_v29 }
 0x189   : > { %v10302_v55 = vpop.f32.mrb[43].mxu1  ;;  %7007 = vmatmul.mubr.msk.f32.gmra.mrb[148].mxu1 %vm16628_vm0, %v8988_v1  ;;  %v2221_v1 = vunpack.c.1.s8 %v10275_v44  ;;  %17204 = vst [vmem:[#allocation176_spill] sm:$0xff] %v10366_v53  ;;  %v10379_v6 = vpop.f32.mrb[32].mxu0  ;;  %17212 = vst [vmem:[#allocation181_spill] sm:$0xff] %v10398_v5  ;;  %vm10416_vm12 = vcmp.ne.s32.totalorder %v17217_v47, 0  ;;  %v2239_v5 = vunpack.c.3.s8 %v10283_v46 }
 0x18a   : > { %17188 = vst [vmem:[#allocation167_spill] sm:$0xff] %v10302_v55  ;;  %7008 = vmatprep.mubr.msk.f32.mxu1 %vm16628_vm0, %v9009_v37  ;;  %17208 = vst [vmem:[#allocation177_spill] sm:$0xff] %v10379_v6  ;;  %v10387_v35 = vpop.f32.mrb[33].mxu0  ;;  %vm10436_vm14 = vcmp.ne.s32.totalorder %v17224_v30, 0  ;;  %v521_v30 = vld [vmem:[%s9470_s8 + $0x70] sm:$0xff] }
 0x18b   : > { %v2473_v40 = vpack.c.b16 %v2221_v1, %v2220_v13  ;;  %17210 = vst [vmem:[#allocation179_spill] sm:$0xff] %v10387_v35  ;;  %17213 = vst [vmem:[#allocation182_spill] sm:$0xff] %v10403_v8  ;;  %v10432_v47 = vpop.f32.mrb[34].mxu0  ;;  %v2237_v8 = vunpack.c.3.s8 %v10275_v44 }
 0x18c   : > { %v10333_v0 = vpop.f32.mrb[44].mxu1  ;;  %17223 = vst [vmem:[#allocation184_spill] sm:$0xff] %v10432_v47  ;;  %v10454_v20 = vpop.f32.mrb[35].mxu0  ;;  %v17353_v47 = vunpack.c.1.s8 %v9759_v10 }
 0x18d   : > { %17194 = vst [vmem:[#allocation170_spill] sm:$0xff] %v10333_v0  ;;  %v10349_v55 = vpop.f32.mrb[45].mxu1  ;;  %7009 = vmatmul.mubr.msk.f32.gmra.mrb[150].mxu1 %vm16628_vm0, %v9009_v37  ;;  %v2467_v37 = vpack.c.b16 %v2213_v12, %v2212_v24  ;;  %v2475_v42 = vpack.c.b8 %v2474_v16, %v2473_v40  ;;  %v2229_v24 = vunpack.c.2.s8 %v10275_v44  ;;  %v2231_v40 = vunpack.c.2.s8 %v10283_v46  ;;  %v520_v16 = vld [vmem:[%s9470_s8 + $0x68] sm:$0xff]  ;;  %17231 = vst [vmem:[#allocation186_spill] sm:$0xff] %v10454_v20 }
 0x18e   : > { %17198 = vst [vmem:[#allocation174_spill] sm:$0xff] %v10349_v55  ;;  %7010 = vmatprep.mubr.msk.f32.mxu1 %vm16628_vm0, %v9024_v2  ;;  %v17205_v55 = vunpack.c.1.s8 %v9546_v62  ;;  %v17227_v0 = vunpack.c.1.s8 %v9610_v29  ;;  %vm2093_vm4 = vnez %v520_v16  ;;  %v2236_v20 = vunpack.c.3.s8 %v10265_v59  ;;  %v17382_v29 = vld [vmem:[#allocation112_spill] sm:$0xff] }
 0x18f   : > { %v2469_v19 = vpack.c.b8 %v2468_v17, %v2467_v37  ;;  %v2230_v17 = vunpack.c.2.s8 %v10279_v41  ;;  %v519_v37 = vld [vmem:[%s9470_s8 + $0x60] sm:$0xff]  ;;  %vm10478_vm2 = vnez %v2475_v42  ;;  %v2479_v1 = vpack.c.b16 %v2229_v24, %v2228_v22  ;;  %v10500_v24 = vpop.f32.mrb[36].mxu0 }
 0x190   : > { %vm10372_vm9 = vcmp.ne.s32.totalorder %v17205_v55, 0  ;;  %v10381_v53 = vpop.f32.mrb[46].mxu1  ;;  %vm10442_vm15 = vcmp.ne.s32.totalorder %v17227_v0, 0  ;;  %v10459_v0 = vsel %vm10312_vm6, %v9531_v63, -1e+09  ;;  %vm2092_vm3 = vnez %v519_v37  ;;  %17246 = vst [vmem:[#allocation191_spill] sm:$0xff] %v10500_v24 }
 0x191   : > { %17209 = vst [vmem:[#allocation178_spill] sm:$0xff] %v10381_v53  ;;  %v10389_v13 = vpop.f32.mrb[47].mxu1  ;;  %7011 = vmatmul.mubr.msk.f32.gmra.mrb[152].mxu1 %vm16628_vm0, %v9024_v2  ;;  %v10408_v2 = vsel %vm2716_vm10, 16843009, %v17052_v9  ;;  %v522_v53 = vld [vmem:[%s9470_s8 + $0x78] sm:$0xff]  ;;  %17232 = vst [vmem:[#allocation187_spill] sm:$0xff] %v10459_v0  ;;  %vm10474_vm1 = vnez %v2469_v19  ;;  %v2480_v39 = vpack.c.b16 %v2231_v40, %v2230_v17  ;;  %vm2094_vm6 = vnez %v521_v30 }
 0x192   : > { %17211 = vst [vmem:[#allocation180_spill] sm:$0xff] %v10389_v13  ;;  %7012 = vmatprep.mubr.msk.f32.mxu1 %vm16628_vm0, %v9045_v45  ;;  %17214 = vst [vmem:[#allocation183_spill] sm:$0xff] %v10408_v2  ;;  %v10470_v13 = vsel %vm10410_vm11, 16843009, %v17052_v9  ;;  %vm2095_vm7 = vnez %v522_v53  ;;  %v17242_v19 = vunpack.c.1.s8 %v9615_v48  ;;  %v10510_v59 = vsel %vm2092_vm3, 16843009, %v17052_v9 }
 0x193   : > { %17234 = vst [vmem:[#allocation189_spill] sm:$0xff] %v10470_v13  ;;  %v10514_v44 = vsel %vm2093_vm4, 16843009, %v17052_v9  ;;  %v10521_v46 = vsel %vm10372_vm9, %v9533_v50, -1e+09  ;;  %v2481_v53 = vpack.c.b8 %v2480_v39, %v2479_v1  ;;  %v2244_v24 = vunpack.c.0.s8 %v10510_v59 }
 0x194   : > { %v10446_v35 = vpop.f32.mrb[48].mxu1  ;;  %vm10490_vm8 = vcmp.ne.s32.totalorder %v17242_v19, 0  ;;  %17249 = vst [vmem:[#allocation194_spill] sm:$0xff] %v10521_v46  ;;  %v10528_v37 = vsel %vm2094_vm6, 16843009, %v17052_v9  ;;  %v17250_v19 = vunpack.c.0.s8 %v9676_v58  ;;  %v2245_v13 = vunpack.c.0.s8 %v10514_v44 }
 0x195   : > { %17230 = vst [vmem:[#allocation185_spill] sm:$0xff] %v10446_v35  ;;  %v10461_v61 = vpop.f32.mrb[49].mxu1  ;;  %7013 = vmatmul.mubr.msk.f32.gmra.mrb[154].mxu1 %vm16628_vm0, %v9045_v45  ;;  %v17239_v45 = vunpack.c.0.s8 %v9615_v48  ;;  %v10532_v16 = vsel %vm2095_vm7, 16843009, %v17052_v9  ;;  %v10544_v21 = vsel %vm10474_vm1, 16843009, %v17052_v9  ;;  %v17261_v39 = vunpack.c.0.s8 %v9683_v14 }
 0x196   : > { %17233 = vst [vmem:[#allocation188_spill] sm:$0xff] %v10461_v61  ;;  %7014 = vmatprep.mubr.msk.f32.mxu1 %vm16628_vm0, %v9060_v7  ;;  %vm10536_vm10 = vcmp.ne.s32.totalorder %v17250_v19, 0  ;;  %17253 = vst [vmem:[#allocation195_spill] sm:$0xff] %v10544_v21  ;;  %v10549_v30 = vsel %vm10478_vm2, 16843009, %v17052_v9  ;;  %v17256_v19 = vunpack.c.1.s8 %v9676_v58  ;;  %v2789_v12 = vunpack.c.1.s8 %v10544_v21  ;;  %v17289_v61 = vld [vmem:[#allocation89_spill] sm:$0xff] }
 0x197   : > { %vm10484_vm5 = vcmp.ne.s32.totalorder %v17239_v45, 0  ;;  %v2238_v45 = vunpack.c.3.s8 %v10279_v41  ;;  %v10516_v41 = vpop.f32.mrb[37].mxu0  ;;  %17254 = vst [vmem:[#allocation196_spill] sm:$0xff] %v10549_v30  ;;  %vm10567_vm11 = vcmp.ne.s32.totalorder %v17261_v39, 0  ;;  %v2247_v39 = vunpack.c.0.s8 %v10532_v16 }
 0x198   : > { %v10494_v42 = vpop.f32.mrb[50].mxu1  ;;  %17248 = vst [vmem:[#allocation193_spill] sm:$0xff] %v10516_v41  ;;  %vm10555_vm9 = vcmp.ne.s32.totalorder %v17256_v19, 0  ;;  %v2485_v41 = vpack.c.b16 %v2237_v8, %v2236_v20  ;;  %v17264_v19 = vunpack.c.1.s8 %v9683_v14  ;;  %v2788_v8 = vunpack.c.0.s8 %v10544_v21  ;;  %v17360_v14 = vld [vmem:[#allocation106_spill] sm:$0xff] }
 0x199   : > { %17245 = vst [vmem:[#allocation190_spill] sm:$0xff] %v10494_v42  ;;  %v10502_v22 = vpop.f32.mrb[51].mxu1  ;;  %7015 = vmatmul.mubr.msk.f32.gmra.mrb[156].mxu1 %vm16628_vm0, %v9060_v7  ;;  %v10551_v7 = vpop.f32.mrb[38].mxu0  ;;  %v2486_v63 = vpack.c.b16 %v2239_v5, %v2238_v45  ;;  %v2246_v45 = vunpack.c.0.s8 %v10528_v37  ;;  %v17272_v5 = vld [vmem:[#allocation87_spill] sm:$0xff]  ;;  %v2252_v0 = vunpack.c.1.s8 %v10510_v59  ;;  %v2253_v42 = vunpack.c.1.s8 %v10514_v44 }
 0x19a   : > { %17247 = vst [vmem:[#allocation192_spill] sm:$0xff] %v10502_v22  ;;  %7016 = vmatprep.mubr.msk.f32.mxu1 %vm16628_vm0, %v9081_v33  ;;  %17255 = vst [vmem:[#allocation197_spill] sm:$0xff] %v10551_v7  ;;  %v10563_v52 = vpop.f32.mrb[39].mxu0  ;;  %vm10573_vm1 = vcmp.ne.s32.totalorder %v17264_v19, 0  ;;  %v10588_v19 = vsel %vm10416_vm12, %v9553_v26, -1e+09 }
 0x19b   : > { %17260 = vst [vmem:[#allocation199_spill] sm:$0xff] %v10563_v52  ;;  %17268 = vst [vmem:[#allocation201_spill] sm:$0xff] %v10588_v19  ;;  %v17269_v52 = vld [vmem:[#allocation86_spill] sm:$0xff]  ;;  %v10603_v62 = vsel %vm10436_vm14, %v17272_v5, -1e+09  ;;  %v17274_v26 = vld [vmem:[#allocation88_spill] sm:$0xff]  ;;  %vm10628_vm14 = vnez %v2481_v53  ;;  %v2487_v21 = vpack.c.b8 %v2486_v63, %v2485_v41  ;;  %v2255_v53 = vunpack.c.1.s8 %v10532_v16 }
 0x19c   : > { %v10559_v50 = vpop.f32.mrb[52].mxu1  ;;  %v10608_v55 = vsel %vm10442_vm15, %v17274_v26, -1e+09  ;;  %v10612_v2 = vpop.f32.mrb[40].mxu0  ;;  %v17277_v22 = vld [vmem:[#allocation99_spill] sm:$0xff]  ;;  %vm10664_vm2 = vcmp.ne.s32.totalorder %v2788_v8, 0 }
 0x19d   : > { %17259 = vst [vmem:[#allocation198_spill] sm:$0xff] %v10559_v50  ;;  %v10577_v20 = vpop.f32.mrb[53].mxu1  ;;  %7017 = vmatmul.mubr.msk.f32.gmra.mrb[158].mxu1 %vm16628_vm0, %v9081_v33  ;;  %v17271_v50 = vld [vmem:[#allocation54_spill] sm:$0xff]  ;;  %17275 = vst [vmem:[#allocation87_spill] sm:$0xff] %v10608_v55  ;;  %v17278_v33 = vunpack.c.0.s8 %v17277_v22  ;;  %v17281_v51 = vunpack.c.1.s8 %v17277_v22  ;;  %v10672_v35 = vsel %vm10628_vm14, 16843009, %v17052_v9  ;;  %v2497_v55 = vpack.c.b16 %v2253_v42, %v2252_v0 }
 0x19e   : > { %17267 = vst [vmem:[#allocation200_spill] sm:$0xff] %v10577_v20  ;;  %v10593_v20 = vsel %vm10422_vm13, %v17269_v52, -1e+09  ;;  %7018 = vmatprep.mubr.msk.f32.mxu1 %vm16628_vm0, %v17271_v50  ;;  %17273 = vst [vmem:[#allocation54_spill] sm:$0xff] %v10603_v62  ;;  %v2796_v52 = vunpack.c.0.s8 %v10549_v30  ;;  %vm10684_vm4 = vcmp.ne.s32.totalorder %v2789_v12, 0  ;;  %v17319_v42 = vld [vmem:[#allocation94_spill] sm:$0xff]  ;;  %v2271_v22 = vunpack.c.3.s8 %v10532_v16 }
 0x19f   : > { %17270 = vst [vmem:[#allocation86_spill] sm:$0xff] %v10593_v20  ;;  %17276 = vst [vmem:[#allocation88_spill] sm:$0xff] %v10612_v2  ;;  %vm10616_vm12 = vcmp.ne.s32.totalorder %v17278_v33, 0  ;;  %vm10622_vm13 = vcmp.ne.s32.totalorder %v17281_v51, 0  ;;  %v2491_v2 = vpack.c.b16 %v2245_v13, %v2244_v24  ;;  %v10633_v33 = vpop.f32.mrb[41].mxu0  ;;  %v2492_v51 = vpack.c.b16 %v2247_v39, %v2246_v45  ;;  %v17291_v24 = vld [vmem:[#allocation100_spill] sm:$0xff] }
 0x1a0   : > { %v10626_v49 = vpop.f32.mrb[54].mxu1  ;;  %17287 = vst [vmem:[#allocation203_spill] sm:$0xff] %v10633_v33  ;;  %v10645_v13 = vsel %vm10484_vm5, %v17289_v61, -1e+09  ;;  %v17292_v41 = vunpack.c.0.s8 %v17291_v24  ;;  %v17295_v33 = vld [vmem:[#allocation55_spill] sm:$0xff]  ;;  %v17302_v39 = vunpack.c.1.s8 %v17291_v24  ;;  %vm10692_vm5 = vnez %v2487_v21  ;;  %v17312_v21 = vld [vmem:[#allocation93_spill] sm:$0xff] }
 0x1a1   : > { %17284 = vst [vmem:[#allocation202_spill] sm:$0xff] %v10626_v49  ;;  %v10635_v18 = vpop.f32.mrb[55].mxu1  ;;  %7019 = vmatmul.mubr.msk.f32.gmra.mrb[160].mxu1 %vm16628_vm0, %v17271_v50  ;;  %v2254_v49 = vunpack.c.1.s8 %v10528_v37  ;;  %17290 = vst [vmem:[#allocation89_spill] sm:$0xff] %v10645_v13  ;;  %v10674_v50 = vpop.f32.mrb[42].mxu0  ;;  %vm10702_vm6 = vcmp.ne.s32.totalorder %v2796_v52, 0  ;;  %v2493_v26 = vpack.c.b8 %v2492_v51, %v2491_v2  ;;  %v17318_v52 = vld [vmem:[#allocation56_spill] sm:$0xff]  ;;  %v2804_v2 = vunpack.c.0.s8 %v10672_v35 }
 0x1a2   : > { %17288 = vst [vmem:[#allocation204_spill] sm:$0xff] %v10635_v18  ;;  %vm10649_vm15 = vcmp.ne.s32.totalorder %v17292_v41, 0  ;;  %7020 = vmatprep.mubr.msk.f32.mxu1 %vm16628_vm0, %v17295_v33  ;;  %v17296_v18 = vld [vmem:[#allocation92_spill] sm:$0xff]  ;;  %v2797_v41 = vunpack.c.1.s8 %v10549_v30  ;;  %17301 = vst [vmem:[#allocation205_spill] sm:$0xff] %v10674_v50  ;;  %vm10678_vm3 = vcmp.ne.s32.totalorder %v17302_v39, 0  ;;  %v10696_v39 = vpop.f32.mrb[43].mxu0  ;;  %v2260_v50 = vunpack.c.2.s8 %v10510_v59 }
 0x1a3   : > { %v10662_v61 = vsel %vm10490_vm8, %v17296_v18, -1e+09  ;;  %17300 = vst [vmem:[#allocation92_spill] sm:$0xff] %v10672_v35  ;;  %17309 = vst [vmem:[#allocation206_spill] sm:$0xff] %v10696_v39  ;;  %v2498_v30 = vpack.c.b16 %v2255_v53, %v2254_v49  ;;  %v10710_v62 = vsel %vm10536_vm10, %v17312_v21, -1e+09  ;;  %v2805_v53 = vunpack.c.1.s8 %v10672_v35 }
 0x1a4   : > { %17297 = vst [vmem:[#allocation55_spill] sm:$0xff] %v10662_v61  ;;  %v10682_v18 = vpop.f32.mrb[56].mxu1  ;;  %17313 = vst [vmem:[#allocation93_spill] sm:$0xff] %v10710_v62  ;;  %v17314_v39 = vld [vmem:[#allocation107_spill] sm:$0xff]  ;;  %v10727_v40 = vsel %vm10555_vm9, %v17319_v42, -1e+09  ;;  %v2261_v35 = vunpack.c.2.s8 %v10514_v44  ;;  %vm10768_vm9 = vnez %v2493_v26  ;;  %v2269_v62 = vunpack.c.3.s8 %v10514_v44 }
 0x1a5   : > { %v10698_v20 = vpop.f32.mrb[57].mxu1  ;;  %7021 = vmatmul.mubr.msk.f32.gmra.mrb[162].mxu1 %vm16628_vm0, %v17295_v33  ;;  %v17315_v19 = vunpack.c.0.s8 %v17314_v39  ;;  %17320 = vst [vmem:[#allocation56_spill] sm:$0xff] %v10727_v40  ;;  %vm10735_vm10 = vcmp.ne.s32.totalorder %v2797_v41, 0  ;;  %v10743_v21 = vsel %vm10692_vm5, 16843009, %v17052_v9  ;;  %v10746_v42 = vpop.f32.mrb[44].mxu0  ;;  %v2499_v7 = vpack.c.b8 %v2498_v30, %v2497_v55 }
 0x1a6   : > { %7022 = vmatprep.mubr.msk.f32.mxu1 %vm16628_vm0, %v17318_v52  ;;  %17326 = vst [vmem:[#allocation94_spill] sm:$0xff] %v10743_v21  ;;  %17327 = vst [vmem:[#allocation207_spill] sm:$0xff] %v10746_v42  ;;  %v17328_v33 = vld [vmem:[#allocation96_spill] sm:$0xff]  ;;  %v17330_v41 = vld [vmem:[#allocation98_spill] sm:$0xff]  ;;  %v10762_v61 = vpop.f32.mrb[45].mxu0  ;;  %v2812_v13 = vunpack.c.0.s8 %v10743_v21  ;;  %v2813_v58 = vunpack.c.1.s8 %v10743_v21  ;;  %v2503_v46 = vpack.c.b16 %v2261_v35, %v2260_v50  ;;  %vm10861_vm14 = vcmp.ne.s32.totalorder %v2805_v53, 0 }
 0x1a7   : > { %vm10714_vm7 = vcmp.ne.s32.totalorder %v17315_v19, 0  ;;  %v17321_v19 = vunpack.c.1.s8 %v17314_v39  ;;  %v10756_v0 = vsel %vm10573_vm1, %v17330_v41, -1e+09  ;;  %17332 = vst [vmem:[#allocation208_spill] sm:$0xff] %v10762_v61  ;;  %v2263_v41 = vunpack.c.2.s8 %v10532_v16  ;;  %v17336_v42 = vld [vmem:[#allocation57_spill] sm:$0xff]  ;;  %v17339_v55 = vld [vmem:[#allocation102_spill] sm:$0xff] }
 0x1a8   : > { %17331 = vst [vmem:[#allocation98_spill] sm:$0xff] %v10756_v0  ;;  %v10758_v8 = vpop.f32.mrb[58].mxu1  ;;  %v10789_v48 = vsel %vm10622_vm13, %v17339_v55, -1e+09  ;;  %vm10797_vm1 = vcmp.ne.s32.totalorder %v2804_v2, 0  ;;  %v10804_v5 = vpop.f32.mrb[46].mxu0  ;;  %vm10837_vm13 = vnez %v2499_v7 }
 0x1a9   : > { %vm10731_vm8 = vcmp.ne.s32.totalorder %v17321_v19, 0  ;;  %v10751_v19 = vsel %vm10567_vm11, %v17328_v33, -1e+09  ;;  %v10764_v17 = vpop.f32.mrb[59].mxu1  ;;  %7023 = vmatmul.mubr.msk.f32.gmra.mrb[164].mxu1 %vm16628_vm0, %v17318_v52  ;;  %v2262_v33 = vunpack.c.2.s8 %v10528_v37  ;;  %v17337_v52 = vld [vmem:[#allocation101_spill] sm:$0xff]  ;;  %17346 = vst [vmem:[#allocation102_spill] sm:$0xff] %v10804_v5 }
 0x1aa   : > { %17329 = vst [vmem:[#allocation96_spill] sm:$0xff] %v10751_v19  ;;  %17333 = vst [vmem:[#allocation209_spill] sm:$0xff] %v10764_v17  ;;  %7024 = vmatprep.mubr.msk.f32.mxu1 %vm16628_vm0, %v17336_v42  ;;  %v10784_v30 = vsel %vm10616_vm12, %v17337_v52, -1e+09  ;;  %v17341_v17 = vunpack.c.0.s8 %v9759_v10  ;;  %v17347_v26 = vld [vmem:[#allocation103_spill] sm:$0xff]  ;;  %v10820_v52 = vpop.f32.mrb[47].mxu0 }
 0x1ab   : > { %17338 = vst [vmem:[#allocation57_spill] sm:$0xff] %v10784_v30  ;;  %17340 = vst [vmem:[#allocation101_spill] sm:$0xff] %v10789_v48  ;;  %v10816_v2 = vsel %vm10768_vm9, 16843009, %v17052_v9  ;;  %v17351_v5 = vld [vmem:[#allocation104_spill] sm:$0xff]  ;;  %vm10829_vm12 = vcmp.ne.s32.totalorder %v17353_v47, 0  ;;  %v2504_v63 = vpack.c.b16 %v2263_v41, %v2262_v33  ;;  %v2268_v47 = vunpack.c.3.s8 %v10510_v59 }
 0x1ac   : > { %vm10793_vm11 = vcmp.ne.s32.totalorder %v17341_v17, 0  ;;  %v10806_v55 = vpop.f32.mrb[60].mxu1  ;;  %v10811_v17 = vsel %vm10664_vm2, %v17347_v26, -1e+09  ;;  %17349 = vst [vmem:[#allocation210_spill] sm:$0xff] %v10816_v2  ;;  %17350 = vst [vmem:[#allocation211_spill] sm:$0xff] %v10820_v52  ;;  %v2821_v16 = vunpack.c.1.s8 %v10816_v2 }
 0x1ad   : > { %17348 = vst [vmem:[#allocation103_spill] sm:$0xff] %v10811_v17  ;;  %v10825_v19 = vsel %vm10649_vm15, %v17351_v5, -1e+09  ;;  %v10833_v1 = vpop.f32.mrb[61].mxu1  ;;  %7025 = vmatmul.mubr.msk.f32.gmra.mrb[166].mxu1 %vm16628_vm0, %v17336_v42  ;;  %v527_v52 = vld [vmem:[%s9470_s8 + $0xa0] sm:$0xff]  ;;  %v528_v5 = vld [vmem:[%s9470_s8 + $0xa8] sm:$0xff]  ;;  %v2270_v17 = vunpack.c.3.s8 %v10528_v37  ;;  %v2820_v37 = vunpack.c.0.s8 %v10816_v2 }
 0x1ae   : > { %17352 = vst [vmem:[#allocation104_spill] sm:$0xff] %v10825_v19  ;;  %17356 = vst [vmem:[#allocation212_spill] sm:$0xff] %v10833_v1  ;;  %v17359_v40 = vld [vmem:[#allocation58_spill] sm:$0xff]  ;;  %v529_v42 = vld [vmem:[%s9470_s8 + $0xb0] sm:$0xff]  ;;  %v10854_v35 = vsel %vm10678_vm3, %v17360_v14, -1e+09  ;;  %vm2100_vm2 = vnez %v527_v52  ;;  %vm2101_vm3 = vnez %v528_v5 }
 0x1af   : > { %7026 = vmatprep.mubr.msk.f32.mxu1 %vm16628_vm0, %v17359_v40  ;;  %v530_v7 = vld [vmem:[%s9470_s8 + $0xb8] sm:$0xff]  ;;  %17361 = vst [vmem:[#allocation58_spill] sm:$0xff] %v10854_v35  ;;  %v17362_v50 = vld [vmem:[#allocation105_spill] sm:$0xff]  ;;  %vm10865_vm15 = vcmp.ne.s32.totalorder %v2812_v13, 0  ;;  %v10871_v45 = vpop.f32.mrb[48].mxu0  ;;  %vm10902_vm5 = vcmp.ne.s32.totalorder %v2813_v58, 0 }
 0x1b0   : > { %v10859_v33 = vsel %vm10684_vm4, %v17362_v50, -1e+09  ;;  %17368 = vst [vmem:[#allocation105_spill] sm:$0xff] %v10871_v45  ;;  %v10873_v14 = vpop.f32.mrb[62].mxu1  ;;  %v17370_v41 = vld [vmem:[#allocation109_spill] sm:$0xff]  ;;  %v10885_v53 = vpop.f32.mrb[49].mxu0  ;;  %v17376_v45 = vunpack.c.0.s8 %v9824_v31  ;;  %vm2103_vm9 = vnez %v530_v7 }
 0x1b1   : > { %17363 = vst [vmem:[#allocation106_spill] sm:$0xff] %v10859_v33  ;;  %17369 = vst [vmem:[#allocation213_spill] sm:$0xff] %v10873_v14  ;;  %v10878_v6 = vsel %vm10702_vm6, %v17370_v41, -1e+09  ;;  %v10883_v13 = vsel %vm10837_vm13, 16843009, %v17052_v9  ;;  %7027 = vmatmul.mubr.msk.f32.gmra.mrb[168].mxu1 %vm16628_vm0, %v17359_v40  ;;  %vm2102_vm6 = vnez %v529_v42 }
 0x1b2   : > { %17371 = vst [vmem:[#allocation109_spill] sm:$0xff] %v10878_v6  ;;  %17372 = vst [vmem:[#allocation214_spill] sm:$0xff] %v10883_v13  ;;  %v17374_v50 = vld [vmem:[#allocation110_spill] sm:$0xff]  ;;  %vm10894_vm4 = vcmp.ne.s32.totalorder %v17376_v45, 0  ;;  %v10898_v41 = vpop.f32.mrb[63].mxu1  ;;  %v17384_v45 = vunpack.c.1.s8 %v9824_v31  ;;  %v17387_v33 = vld [vmem:[#allocation59_spill] sm:$0xff] }
 0x1b3   : > { %17373 = vst [vmem:[#allocation215_spill] sm:$0xff] %v10885_v53  ;;  %v10890_v2 = vsel %vm10714_vm7, %v17374_v50, -1e+09  ;;  %17379 = vst [vmem:[#allocation216_spill] sm:$0xff] %v10898_v41  ;;  %v2505_v53 = vpack.c.b8 %v2504_v63, %v2503_v46  ;;  %v10909_v50 = vsel %vm10731_vm8, %v17382_v29, -1e+09  ;;  %7028 = vmatprep.mubr.msk.f32.mxu1 %vm16628_vm0, %v17387_v33  ;;  %v2509_v46 = vpack.c.b16 %v2269_v62, %v2268_v47 }
 0x1b4   : > { %17375 = vst [vmem:[#allocation110_spill] sm:$0xff] %v10890_v2  ;;  %17383 = vst [vmem:[#allocation112_spill] sm:$0xff] %v10909_v50  ;;  %vm10913_vm7 = vcmp.ne.s32.totalorder %v17384_v45, 0  ;;  %v17388_v58 = vld [vmem:[#allocation111_spill] sm:$0xff]  ;;  %v2510_v63 = vpack.c.b16 %v2271_v22, %v2270_v17  ;;  %v2828_v29 = vunpack.c.0.s8 %v10883_v13  ;;  %v10929_v45 = vsel %vm2100_vm2, 16843009, %v17052_v9 }
 0x1b5   : > { %v10922_v40 = vsel %vm10735_vm10, %v17388_v58, -1e+09  ;;  %v10933_v41 = vsel %vm2101_vm3, 16843009, %v17052_v9  ;;  %v10935_v14 = vpop.f32.mrb[50].mxu0  ;;  %v10937_v51 = vpop.f32.mrb[64].mxu1  ;;  %v17393_v47 = vunpack.c.0.s8 %v9829_v15  ;;  %7029 = vmatmul.mubr.msk.f32.gmra.mrb[170].mxu1 %vm16628_vm0, %v17387_v33  ;;  %v2829_v22 = vunpack.c.1.s8 %v10883_v13 }
 0x1b6   : > { %17389 = vst [vmem:[#allocation59_spill] sm:$0xff] %v10922_v40  ;;  %17390 = vst [vmem:[#allocation111_spill] sm:$0xff] %v10935_v14  ;;  %v10944_v17 = vsel %vm2102_vm6, 16843009, %v17052_v9  ;;  %v10948_v52 = vsel %vm2103_vm9, 16843009, %v17052_v9  ;;  %vm10971_vm2 = vnez %v2505_v53  ;;  %v2511_v62 = vpack.c.b8 %v2510_v63, %v2509_v46 }
 0x1b7   : > { %17391 = vst [vmem:[#allocation217_spill] sm:$0xff] %v10937_v51  ;;  %v10950_v5 = vpop.f32.mrb[51].mxu0  ;;  %vm10954_vm8 = vcmp.ne.s32.totalorder %v17393_v47, 0  ;;  %v10958_v49 = vpop.f32.mrb[65].mxu1  ;;  %vm10962_vm10 = vcmp.ne.s32.totalorder %v2820_v37, 0  ;;  %vm10966_vm13 = vcmp.ne.s32.totalorder %v2821_v16, 0  ;;  %v17405_v37 = vunpack.c.1.s8 %v9829_v15 }
 0x1b8   : > { %17392 = vst [vmem:[#allocation218_spill] sm:$0xff] %v10950_v5  ;;  %17396 = vst [vmem:[#allocation219_spill] sm:$0xff] %v10958_v49  ;;  %v17403_v5 = vld [vmem:[#allocation114_spill] sm:$0xff]  ;;  %v17408_v14 = vld [vmem:[#allocation60_spill] sm:$0xff]  ;;  %vm10995_vm6 = vcmp.ne.s32.totalorder %v2828_v29, 0  ;;  %v2276_v61 = vunpack.c.0.s8 %v10929_v45  ;;  %v2279_v2 = vunpack.c.0.s8 %v10948_v52  ;;  %v11003_v35 = vpop.f32.mrb[52].mxu0  ;;  %v17416_v46 = vunpack.c.0.s8 %v9845_v27 }
 0x1b9   : > { %v10980_v33 = vsel %vm10793_vm11, %v17403_v5, -1e+09  ;;  %vm10984_vm3 = vcmp.ne.s32.totalorder %v17405_v37, 0  ;;  %7030 = vmatprep.mubr.msk.f32.mxu1 %vm16628_vm0, %v17408_v14  ;;  %v17409_v53 = vld [vmem:[#allocation113_spill] sm:$0xff]  ;;  %v2277_v5 = vunpack.c.0.s8 %v10933_v41  ;;  %v2278_v37 = vunpack.c.0.s8 %v10944_v17  ;;  %v17414_v19 = vld [vmem:[#allocation118_spill] sm:$0xff]  ;;  %v11022_v48 = vpop.f32.mrb[66].mxu1 }
 0x1ba   : > { %17404 = vst [vmem:[#allocation114_spill] sm:$0xff] %v10980_v33  ;;  %v10993_v13 = vsel %vm10797_vm1, %v17409_v53, -1e+09  ;;  %17413 = vst [vmem:[#allocation113_spill] sm:$0xff] %v11003_v35  ;;  %v11008_v21 = vsel %vm10829_vm12, %v17414_v19, -1e+09  ;;  %v17419_v29 = vunpack.c.1.s8 %v9845_v27  ;;  %7031 = vmatmul.mubr.msk.f32.gmra.mrb[172].mxu1 %vm16628_vm0, %v17408_v14  ;;  %v2286_v40 = vunpack.c.1.s8 %v10944_v17 }
 0x1bb   : > { %17410 = vst [vmem:[#allocation60_spill] sm:$0xff] %v10993_v13  ;;  %17415 = vst [vmem:[#allocation118_spill] sm:$0xff] %v11008_v21  ;;  %vm11012_vm11 = vcmp.ne.s32.totalorder %v17416_v46, 0  ;;  %v11027_v26 = vsel %vm10971_vm2, 16843009, %v17052_v9  ;;  %v11031_v35 = vpop.f32.mrb[53].mxu0  ;;  %v2285_v13 = vunpack.c.1.s8 %v10933_v41  ;;  %v2287_v47 = vunpack.c.1.s8 %v10948_v52 }
 0x1bc   : > { %vm11018_vm1 = vcmp.ne.s32.totalorder %v17419_v29, 0  ;;  %17422 = vst [vmem:[#allocation220_spill] sm:$0xff] %v11022_v48  ;;  %17423 = vst [vmem:[#allocation221_spill] sm:$0xff] %v11027_v26  ;;  %v11033_v30 = vpop.f32.mrb[67].mxu1  ;;  %v2284_v29 = vunpack.c.1.s8 %v10929_v45  ;;  %v17426_v48 = vld [vmem:[#allocation61_spill] sm:$0xff]  ;;  %vm11053_vm12 = vcmp.ne.s32.totalorder %v2829_v22, 0  ;;  %vm11057_vm9 = vnez %v2511_v62 }
 0x1bd   : > { %17424 = vst [vmem:[#allocation222_spill] sm:$0xff] %v11031_v35  ;;  %17425 = vst [vmem:[#allocation223_spill] sm:$0xff] %v11033_v30  ;;  %7032 = vmatprep.mubr.msk.f32.mxu1 %vm16628_vm0, %v17426_v48  ;;  %v17427_v19 = vld [vmem:[#allocation117_spill] sm:$0xff]  ;;  %v11051_v14 = vsel %vm10865_vm15, %v9868_v60, -1e+09  ;;  %v2836_v30 = vunpack.c.0.s8 %v11027_v26  ;;  %v2837_v49 = vunpack.c.1.s8 %v11027_v26  ;;  %v2515_v59 = vpack.c.b16 %v2277_v5, %v2276_v61  ;;  %v17435_v44 = vld [vmem:[#allocation120_spill] sm:$0xff] }
 0x1be   : > { %v11046_v46 = vsel %vm10861_vm14, %v17427_v19, -1e+09  ;;  %17429 = vst [vmem:[#allocation117_spill] sm:$0xff] %v11051_v14  ;;  %v2516_v19 = vpack.c.b16 %v2279_v2, %v2278_v37  ;;  %v11070_v22 = vsel %vm10894_vm4, %v17435_v44, -1e+09  ;;  %v17437_v62 = vld [vmem:[#allocation131_spill] sm:$0xff]  ;;  %7033 = vmatmul.mubr.msk.f32.gmra.mrb[174].mxu1 %vm16628_vm0, %v17426_v48  ;;  %v2522_v60 = vpack.c.b16 %v2287_v47, %v2286_v40 }
 0x1bf   : > { %17428 = vst [vmem:[#allocation61_spill] sm:$0xff] %v11046_v46  ;;  %v11063_v46 = vpop.f32.mrb[54].mxu0  ;;  %17436 = vst [vmem:[#allocation120_spill] sm:$0xff] %v11070_v22  ;;  %v17438_v14 = vunpack.c.0.s8 %v17437_v62  ;;  %v11078_v51 = vpop.f32.mrb[68].mxu1  ;;  %v17441_v61 = vld [vmem:[#allocation121_spill] sm:$0xff]  ;;  %v17444_v12 = vld [vmem:[#allocation122_spill] sm:$0xff]  ;;  %v2293_v6 = vunpack.c.2.s8 %v10933_v41  ;;  %v17448_v48 = vunpack.c.1.s8 %v17437_v62  ;;  %v2301_v63 = vunpack.c.3.s8 %v10933_v41 }
 0x1c0   : > { %17434 = vst [vmem:[#allocation224_spill] sm:$0xff] %v11063_v46  ;;  %v11083_v2 = vsel %vm10902_vm5, %v17441_v61, -1e+09  ;;  %v11086_v37 = vpop.f32.mrb[55].mxu0  ;;  %v11091_v44 = vsel %vm10913_vm7, %v17444_v12, -1e+09  ;;  %v2521_v61 = vpack.c.b16 %v2285_v13, %v2284_v29  ;;  %v2294_v12 = vunpack.c.2.s8 %v10944_v17 }
 0x1c1   : > { %vm11074_vm14 = vcmp.ne.s32.totalorder %v17438_v14, 0  ;;  %17442 = vst [vmem:[#allocation121_spill] sm:$0xff] %v11083_v2  ;;  %17443 = vst [vmem:[#allocation225_spill] sm:$0xff] %v11086_v37  ;;  %v11093_v14 = vpop.f32.mrb[69].mxu1  ;;  %v11100_v0 = vsel %vm11057_vm9, 16843009, %v17052_v9  ;;  %v2292_v37 = vunpack.c.2.s8 %v10929_v45  ;;  %v2295_v46 = vunpack.c.2.s8 %v10948_v52 }
 0x1c2   : > { %17445 = vst [vmem:[#allocation122_spill] sm:$0xff] %v11091_v44  ;;  %17446 = vst [vmem:[#allocation226_spill] sm:$0xff] %v11100_v0  ;;  %v17447_v5 = vld [vmem:[#allocation62_spill] sm:$0xff]  ;;  %vm11110_vm15 = vcmp.ne.s32.totalorder %v17448_v48, 0  ;;  %v17451_v24 = vld [vmem:[#allocation123_spill] sm:$0xff]  ;;  %vm11119_vm4 = vcmp.ne.s32.totalorder %v2836_v30, 0  ;;  %v2517_v47 = vpack.c.b8 %v2516_v19, %v2515_v59  ;;  %v2844_v16 = vunpack.c.0.s8 %v11100_v0 }
 0x1c3   : > { %7034 = vmatprep.mubr.msk.f32.mxu1 %vm16628_vm0, %v17447_v5  ;;  %v11117_v13 = vsel %vm10962_vm10, %v17451_v24, -1e+09  ;;  %vm11123_vm5 = vcmp.ne.s32.totalorder %v2837_v49, 0  ;;  %v11127_v21 = vpop.f32.mrb[56].mxu0  ;;  %v17458_v33 = vld [vmem:[#allocation124_spill] sm:$0xff]  ;;  %v11136_v24 = vpop.f32.mrb[70].mxu1  ;;  %v2523_v22 = vpack.c.b8 %v2522_v60, %v2521_v61  ;;  %v2303_v53 = vunpack.c.3.s8 %v10948_v52 }
 0x1c4   : > { %17452 = vst [vmem:[#allocation62_spill] sm:$0xff] %v11117_v13  ;;  %17457 = vst [vmem:[#allocation123_spill] sm:$0xff] %v11127_v21  ;;  %v11134_v42 = vsel %vm10954_vm8, %v17458_v33, -1e+09  ;;  %v17461_v30 = vld [vmem:[#allocation125_spill] sm:$0xff]  ;;  %v11144_v59 = vpop.f32.mrb[57].mxu0  ;;  %7035 = vmatmul.mubr.msk.f32.gmra.mrb[176].mxu1 %vm16628_vm0, %v17447_v5  ;;  %v2528_v5 = vpack.c.b16 %v2295_v46, %v2294_v12  ;;  %vm11187_vm10 = vnez %v2517_v47  ;;  %v2300_v46 = vunpack.c.3.s8 %v10929_v45 }
 0x1c5   : > { %17459 = vst [vmem:[#allocation124_spill] sm:$0xff] %v11134_v42  ;;  %17460 = vst [vmem:[#allocation227_spill] sm:$0xff] %v11136_v24  ;;  %v11141_v49 = vsel %vm10966_vm13, %v17461_v30, -1e+09  ;;  %v17464_v19 = vld [vmem:[#allocation126_spill] sm:$0xff]  ;;  %v17466_v21 = vld [vmem:[#allocation132_spill] sm:$0xff] }
 0x1c6   : > { %17462 = vst [vmem:[#allocation125_spill] sm:$0xff] %v11141_v49  ;;  %17463 = vst [vmem:[#allocation228_spill] sm:$0xff] %v11144_v59  ;;  %v11149_v48 = vsel %vm10984_vm3, %v17464_v19, -1e+09  ;;  %v17467_v58 = vunpack.c.0.s8 %v17466_v21  ;;  %v17470_v44 = vunpack.c.1.s8 %v17466_v21  ;;  %v11163_v30 = vpop.f32.mrb[71].mxu1  ;;  %v2845_v19 = vunpack.c.1.s8 %v11100_v0  ;;  %v17474_v13 = vld [vmem:[#allocation63_spill] sm:$0xff] }
 0x1c7   : > { %17465 = vst [vmem:[#allocation126_spill] sm:$0xff] %v11149_v48  ;;  %17473 = vst [vmem:[#allocation229_spill] sm:$0xff] %v11163_v30  ;;  %7036 = vmatprep.mubr.msk.f32.mxu1 %vm16628_vm0, %v17474_v13  ;;  %v17475_v59 = vld [vmem:[#allocation127_spill] sm:$0xff]  ;;  %v2527_v49 = vpack.c.b16 %v2293_v6, %v2292_v37  ;;  %v17477_v2 = vld [vmem:[#allocation128_spill] sm:$0xff]  ;;  %v11194_v60 = vpop.f32.mrb[72].mxu1  ;;  %vm11228_vm3 = vcmp.ne.s32.totalorder %v2844_v16, 0  ;;  %v2533_v1 = vpack.c.b16 %v2301_v63, %v2300_v46 }
 0x1c8   : > { %vm11153_vm7 = vcmp.ne.s32.totalorder %v17467_v58, 0  ;;  %vm11159_vm8 = vcmp.ne.s32.totalorder %v17470_v44, 0  ;;  %v11175_v44 = vsel %vm10995_vm6, %v17475_v59, -1e+09  ;;  %v11180_v0 = vsel %vm11012_vm11, %v17477_v2, -1e+09  ;;  %7037 = vmatmul.mubr.msk.f32.gmra.mrb[178].mxu1 %vm16628_vm0, %v17474_v13 }
 0x1c9   : > { %17476 = vst [vmem:[#allocation63_spill] sm:$0xff] %v11175_v44  ;;  %17478 = vst [vmem:[#allocation127_spill] sm:$0xff] %v11180_v0  ;;  %v17479_v58 = vld [vmem:[#allocation130_spill] sm:$0xff]  ;;  %v11192_v59 = vpop.f32.mrb[58].mxu0  ;;  %v2302_v2 = vunpack.c.3.s8 %v10944_v17  ;;  %v535_v37 = vld [vmem:[%s9470_s8 + $0xe0] sm:$0xff]  ;;  %v11219_v17 = vpop.f32.mrb[73].mxu1  ;;  %vm11246_vm11 = vnez %v2523_v22  ;;  %v2529_v16 = vpack.c.b8 %v2528_v5, %v2527_v49 }
 0x1ca   : > { %v11185_v10 = vsel %vm11018_vm1, %v17479_v58, -1e+09  ;;  %17483 = vst [vmem:[#allocation130_spill] sm:$0xff] %v11192_v59  ;;  %17484 = vst [vmem:[#allocation230_spill] sm:$0xff] %v11194_v60  ;;  %v536_v61 = vld [vmem:[%s9470_s8 + $0xe8] sm:$0xff]  ;;  %v537_v6 = vld [vmem:[%s9470_s8 + $0xf0] sm:$0xff]  ;;  %vm2108_vm1 = vnez %v535_v37 }
 0x1cb   : > { %17480 = vst [vmem:[#allocation128_spill] sm:$0xff] %v11185_v10  ;;  %v11203_v12 = vpop.f32.mrb[59].mxu0  ;;  %v17486_v58 = vld [vmem:[#allocation137_spill] sm:$0xff]  ;;  %17493 = vst [vmem:[#allocation232_spill] sm:$0xff] %v11219_v17  ;;  %vm11232_vm6 = vcmp.ne.s32.totalorder %v2845_v19, 0  ;;  %v17500_v42 = vld [vmem:[#allocation64_spill] sm:$0xff]  ;;  %v2534_v5 = vpack.c.b16 %v2303_v53, %v2302_v2 }
 0x1cc   : > { %17485 = vst [vmem:[#allocation231_spill] sm:$0xff] %v11203_v12  ;;  %v17487_v50 = vunpack.c.0.s8 %v17486_v58  ;;  %v17490_v41 = vunpack.c.1.s8 %v17486_v58  ;;  %v17494_v52 = vld [vmem:[#allocation129_spill] sm:$0xff]  ;;  %7038 = vmatprep.mubr.msk.f32.mxu1 %vm16628_vm0, %v17500_v42  ;;  %v11244_v35 = vsel %vm11187_vm10, 16843009, %v17052_v9  ;;  %v17504_v19 = vld [vmem:[#allocation134_spill] sm:$0xff]  ;;  %v11260_v39 = vpop.f32.mrb[60].mxu0  ;;  %v17567_v12 = vunpack.c.0.s8 %v10041_v3 }
 0x1cd   : > { %v11226_v47 = vsel %vm11053_vm12, %v17494_v52, -1e+09  ;;  %17501 = vst [vmem:[#allocation64_spill] sm:$0xff] %v11244_v35  ;;  %v11253_v52 = vsel %vm11074_vm14, %v17504_v19, -1e+09  ;;  %vm2109_vm12 = vnez %v536_v61  ;;  %17508 = vst [vmem:[#allocation233_spill] sm:$0xff] %v11260_v39  ;;  %vm2110_vm14 = vnez %v537_v6  ;;  %7039 = vmatmul.mubr.msk.f32.gmra.mrb[180].mxu1 %vm16628_vm0, %v17500_v42 }
 0x1ce   : > { %vm11209_vm13 = vcmp.ne.s32.totalorder %v17487_v50, 0  ;;  %vm11215_vm2 = vcmp.ne.s32.totalorder %v17490_v41, 0  ;;  %17495 = vst [vmem:[#allocation129_spill] sm:$0xff] %v11226_v47  ;;  %v538_v41 = vld [vmem:[%s9470_s8 + $0xf8] sm:$0xff]  ;;  %17505 = vst [vmem:[#allocation134_spill] sm:$0xff] %v11253_v52  ;;  %v17506_v47 = vld [vmem:[#allocation133_spill] sm:$0xff]  ;;  %v2852_v39 = vunpack.c.0.s8 %v11244_v35  ;;  %v2535_v44 = vpack.c.b8 %v2534_v5, %v2533_v1 }
 0x1cf   : > { %v11258_v48 = vsel %vm11119_vm4, %v17506_v47, -1e+09  ;;  %v17509_v10 = vld [vmem:[#allocation138_spill] sm:$0xff]  ;;  %v11268_v49 = vpop.f32.mrb[74].mxu1  ;;  %vm2111_vm10 = vnez %v538_v41  ;;  %v11270_v19 = vpop.f32.mrb[61].mxu0  ;;  %v17516_v47 = vld [vmem:[#allocation135_spill] sm:$0xff] }
 0x1d0   : > { %17507 = vst [vmem:[#allocation133_spill] sm:$0xff] %v11258_v48  ;;  %v17510_v22 = vunpack.c.0.s8 %v17509_v10  ;;  %17513 = vst [vmem:[#allocation234_spill] sm:$0xff] %v11268_v49  ;;  %v11272_v40 = vpop.f32.mrb[75].mxu1  ;;  %v2853_v48 = vunpack.c.1.s8 %v11244_v35  ;;  %v11286_v46 = vsel %vm11246_vm11, 16843009, %v17052_v9  ;;  %v17519_v63 = vld [vmem:[#allocation136_spill] sm:$0xff]  ;;  %v17521_v42 = vunpack.c.1.s8 %v17509_v10 }
 0x1d1   : > { %17514 = vst [vmem:[#allocation235_spill] sm:$0xff] %v11270_v19  ;;  %17515 = vst [vmem:[#allocation236_spill] sm:$0xff] %v11272_v40  ;;  %v11291_v2 = vsel %vm11110_vm15, %v17519_v63, -1e+09  ;;  %v17524_v53 = vld [vmem:[#allocation65_spill] sm:$0xff]  ;;  %v11323_v35 = vpop.f32.mrb[62].mxu0  ;;  %v2860_v6 = vunpack.c.0.s8 %v11286_v46  ;;  %v2861_v1 = vunpack.c.1.s8 %v11286_v46 }
 0x1d2   : > { %vm11264_vm9 = vcmp.ne.s32.totalorder %v17510_v22, 0  ;;  %v11279_v22 = vsel %vm11123_vm5, %v17516_v47, -1e+09  ;;  %17518 = vst [vmem:[#allocation237_spill] sm:$0xff] %v11286_v46  ;;  %17520 = vst [vmem:[#allocation136_spill] sm:$0xff] %v11291_v2  ;;  %vm11295_vm4 = vcmp.ne.s32.totalorder %v17521_v42, 0  ;;  %7040 = vmatprep.mubr.msk.f32.mxu1 %vm16628_vm0, %v17524_v53  ;;  %vm11301_vm5 = vnez %v2529_v16 }
 0x1d3   : > { %17517 = vst [vmem:[#allocation135_spill] sm:$0xff] %v11279_v22  ;;  %v11307_v13 = vsel %vm2108_vm1, 16843009, %v17052_v9  ;;  %v11311_v26 = vsel %vm2109_vm12, 16843009, %v17052_v9  ;;  %17527 = vst [vmem:[#allocation65_spill] sm:$0xff] %v11323_v35  ;;  %7041 = vmatmul.mubr.msk.f32.gmra.mrb[182].mxu1 %vm16628_vm0, %v17524_v53 }
 0x1d4   : > { %v11317_v19 = vsel %vm2110_vm14, 16843009, %v17052_v9  ;;  %v11321_v16 = vsel %vm2111_vm10, 16843009, %v17052_v9  ;;  %v17528_v37 = vld [vmem:[#allocation141_spill] sm:$0xff]  ;;  %v17530_v22 = vld [vmem:[#allocation143_spill] sm:$0xff]  ;;  %v2309_v53 = vunpack.c.0.s8 %v11311_v26 }
 0x1d5   : > { %v11328_v61 = vsel %vm11153_vm7, %v17528_v37, -1e+09  ;;  %v11333_v63 = vsel %vm11159_vm8, %v17530_v22, -1e+09  ;;  %v11335_v42 = vpop.f32.mrb[76].mxu1  ;;  %v11338_v41 = vpop.f32.mrb[63].mxu0  ;;  %v2311_v46 = vunpack.c.0.s8 %v11321_v16  ;;  %v2318_v0 = vunpack.c.1.s8 %v11317_v19 }
 0x1d6   : > { %17529 = vst [vmem:[#allocation141_spill] sm:$0xff] %v11328_v61  ;;  %17531 = vst [vmem:[#allocation143_spill] sm:$0xff] %v11333_v63  ;;  %v17534_v31 = vld [vmem:[#allocation139_spill] sm:$0xff]  ;;  %v11346_v33 = vpop.f32.mrb[77].mxu1  ;;  %vm11350_vm7 = vcmp.ne.s32.totalorder %v2852_v39, 0  ;;  %vm11354_vm8 = vcmp.ne.s32.totalorder %v2853_v48, 0  ;;  %v2308_v48 = vunpack.c.0.s8 %v11307_v13  ;;  %v17605_v37 = vunpack.c.1.s8 %v10082_v25 }
 0x1d7   : > { %17532 = vst [vmem:[#allocation238_spill] sm:$0xff] %v11335_v42  ;;  %17533 = vst [vmem:[#allocation239_spill] sm:$0xff] %v11338_v41  ;;  %v17535_v40 = vunpack.c.0.s8 %v17534_v31  ;;  %v11362_v5 = vsel %vm11301_vm5, 16843009, %v17052_v9  ;;  %v17547_v39 = vld [vmem:[#allocation66_spill] sm:$0xff]  ;;  %v2310_v41 = vunpack.c.0.s8 %v11317_v19  ;;  %v17552_v49 = vld [vmem:[#allocation140_spill] sm:$0xff]  ;;  %v2334_v42 = vunpack.c.3.s8 %v11317_v19 }
 0x1d8   : > { %17538 = vst [vmem:[#allocation139_spill] sm:$0xff] %v11346_v33  ;;  %17543 = vst [vmem:[#allocation240_spill] sm:$0xff] %v11362_v5  ;;  %7042 = vmatprep.mubr.msk.f32.mxu1 %vm16628_vm0, %v17547_v39  ;;  %v17548_v33 = vld [vmem:[#allocation144_spill] sm:$0xff]  ;;  %v11389_v60 = vsel %vm11228_vm3, %v17552_v49, -1e+09  ;;  %v17554_v30 = vld [vmem:[#allocation142_spill] sm:$0xff]  ;;  %v2869_v7 = vunpack.c.1.s8 %v11362_v5 }
 0x1d9   : > { %vm11342_vm15 = vcmp.ne.s32.totalorder %v17535_v40, 0  ;;  %v17544_v40 = vunpack.c.1.s8 %v17534_v31  ;;  %v17549_v17 = vunpack.c.0.s8 %v17548_v33  ;;  %17553 = vst [vmem:[#allocation66_spill] sm:$0xff] %v11389_v60  ;;  %v11394_v24 = vsel %vm11232_vm6, %v17554_v30, -1e+09  ;;  %v17556_v47 = vld [vmem:[#allocation146_spill] sm:$0xff]  ;;  %v17558_v63 = vld [vmem:[#allocation148_spill] sm:$0xff]  ;;  %7043 = vmatmul.mubr.msk.f32.gmra.mrb[184].mxu1 %vm16628_vm0, %v17547_v39 }
 0x1da   : > { %17555 = vst [vmem:[#allocation144_spill] sm:$0xff] %v11394_v24  ;;  %v17560_v61 = vunpack.c.1.s8 %v17548_v33  ;;  %v11412_v49 = vpop.f32.mrb[78].mxu1  ;;  %vm11414_vm3 = vcmp.ne.s32.totalorder %v2860_v6, 0  ;;  %vm11418_vm6 = vnez %v2535_v44  ;;  %v17574_v44 = vld [vmem:[#allocation145_spill] sm:$0xff]  ;;  %v17578_v24 = vld [vmem:[#allocation67_spill] sm:$0xff]  ;;  %vm11452_vm14 = vcmp.ne.s32.totalorder %v2861_v1, 0 }
 0x1db   : > { %vm11366_vm11 = vcmp.ne.s32.totalorder %v17544_v40, 0  ;;  %vm11382_vm1 = vcmp.ne.s32.totalorder %v17549_v17, 0  ;;  %v11399_v40 = vsel %vm11209_vm13, %v17556_v47, -1e+09  ;;  %v11404_v17 = vsel %vm11215_vm2, %v17558_v63, -1e+09  ;;  %7044 = vmatprep.mubr.msk.f32.mxu1 %vm16628_vm0, %v17578_v24 }
 0x1dc   : > { %17557 = vst [vmem:[#allocation140_spill] sm:$0xff] %v11399_v40  ;;  %17559 = vst [vmem:[#allocation142_spill] sm:$0xff] %v11404_v17  ;;  %vm11408_vm12 = vcmp.ne.s32.totalorder %v17560_v61, 0  ;;  %vm11424_vm13 = vcmp.ne.s32.totalorder %v17567_v12, 0  ;;  %v17570_v63 = vunpack.c.1.s8 %v10041_v3  ;;  %v11434_v6 = vpop.f32.mrb[79].mxu1  ;;  %v17576_v12 = vld [vmem:[#allocation147_spill] sm:$0xff]  ;;  %v2539_v39 = vpack.c.b16 %v2309_v53, %v2308_v48 }
 0x1dd   : > { %17573 = vst [vmem:[#allocation146_spill] sm:$0xff] %v11434_v6  ;;  %v11441_v47 = vsel %vm11350_vm7, %v17574_v44, -1e+09  ;;  %v11446_v2 = vsel %vm11354_vm8, %v17576_v12, -1e+09  ;;  %v2540_v44 = vpack.c.b16 %v2311_v46, %v2310_v41  ;;  %v17581_v12 = vld [vmem:[#allocation152_spill] sm:$0xff]  ;;  %v2316_v46 = vunpack.c.1.s8 %v11307_v13  ;;  %7045 = vmatmul.mubr.msk.f32.gmra.mrb[186].mxu1 %vm16628_vm0, %v17578_v24 }
 0x1de   : > { %vm11430_vm2 = vcmp.ne.s32.totalorder %v17570_v63, 0  ;;  %17575 = vst [vmem:[#allocation148_spill] sm:$0xff] %v11441_v47  ;;  %17577 = vst [vmem:[#allocation145_spill] sm:$0xff] %v11446_v2  ;;  %v2868_v63 = vunpack.c.0.s8 %v11362_v5  ;;  %v11462_v2 = vsel %vm11264_vm9, %v17581_v12, -1e+09  ;;  %v17583_v52 = vld [vmem:[#allocation151_spill] sm:$0xff]  ;;  %v2317_v41 = vunpack.c.1.s8 %v11311_v26 }
 0x1df   : > { %17582 = vst [vmem:[#allocation147_spill] sm:$0xff] %v11462_v2  ;;  %v11467_v47 = vsel %vm11414_vm3, %v17583_v52, -1e+09  ;;  %v11472_v1 = vsel %vm11418_vm6, 16843009, %v17052_v9  ;;  %v11474_v48 = vpop.f32.mrb[80].mxu1  ;;  %v2319_v53 = vunpack.c.1.s8 %v11321_v16  ;;  %v2324_v17 = vunpack.c.2.s8 %v11307_v13 }
 0x1e0   : > { %17584 = vst [vmem:[#allocation67_spill] sm:$0xff] %v11467_v47  ;;  %17585 = vst [vmem:[#allocation152_spill] sm:$0xff] %v11472_v1  ;;  %v17587_v12 = vld [vmem:[#allocation154_spill] sm:$0xff]  ;;  %v11485_v30 = vpop.f32.mrb[81].mxu1  ;;  %v17590_v59 = vld [vmem:[#allocation153_spill] sm:$0xff]  ;;  %vm11494_vm9 = vcmp.ne.s32.totalorder %v2868_v63, 0  ;;  %v2876_v24 = vunpack.c.0.s8 %v11472_v1  ;;  %v2877_v60 = vunpack.c.1.s8 %v11472_v1  ;;  %v17597_v63 = vunpack.c.0.s8 %v10082_v25 }
 0x1e1   : > { %17586 = vst [vmem:[#allocation151_spill] sm:$0xff] %v11474_v48  ;;  %v11483_v52 = vsel %vm11295_vm4, %v17587_v12, -1e+09  ;;  %17589 = vst [vmem:[#allocation241_spill] sm:$0xff] %v11485_v30  ;;  %v11492_v22 = vsel %vm11452_vm14, %v17590_v59, -1e+09  ;;  %v2541_v12 = vpack.c.b8 %v2540_v44, %v2539_v39  ;;  %v2327_v47 = vunpack.c.2.s8 %v11321_v16 }
 0x1e2   : > { %17588 = vst [vmem:[#allocation154_spill] sm:$0xff] %v11483_v52  ;;  %17591 = vst [vmem:[#allocation153_spill] sm:$0xff] %v11492_v22  ;;  %v17594_v40 = vld [vmem:[#allocation68_spill] sm:$0xff]  ;;  %vm11501_vm10 = vcmp.ne.s32.totalorder %v2869_v7, 0  ;;  %vm11509_vm4 = vcmp.ne.s32.totalorder %v17597_v63, 0  ;;  %v2325_v22 = vunpack.c.2.s8 %v11311_v26  ;;  %v2326_v7 = vunpack.c.2.s8 %v11317_v19  ;;  %v11524_v44 = vpop.f32.mrb[82].mxu1 }
 0x1e3   : > { %7046 = vmatprep.mubr.msk.f32.mxu1 %vm16628_vm0, %v17594_v40  ;;  %v11522_v39 = vsel %vm11342_vm15, %v10120_v23, -1e+09  ;;  %v2545_v63 = vpack.c.b16 %v2317_v41, %v2316_v46  ;;  %v2546_v1 = vpack.c.b16 %v2319_v53, %v2318_v0  ;;  %v543_v15 = vld [vmem:[%s9470_s8 + $0x120] sm:$0xff]  ;;  %v11530_v48 = vsel %vm11366_vm11, %v10127_v4, -1e+09  ;;  %v11532_v6 = vpop.f32.mrb[83].mxu1 }
 0x1e4   : > { %17600 = vst [vmem:[#allocation68_spill] sm:$0xff] %v11522_v39  ;;  %17601 = vst [vmem:[#allocation242_spill] sm:$0xff] %v11530_v48  ;;  %7047 = vmatmul.mubr.msk.f32.gmra.mrb[188].mxu1 %vm16628_vm0, %v17594_v40  ;;  %v17602_v30 = vld [vmem:[#allocation155_spill] sm:$0xff]  ;;  %v544_v41 = vld [vmem:[%s9470_s8 + $0x128] sm:$0xff]  ;;  %v11547_v4 = vsel %vm11382_vm1, %v10167_v38, -1e+09  ;;  %v17608_v5 = vunpack.c.0.s8 %v10087_v34  ;;  %vm11587_vm1 = vnez %v2541_v12  ;;  %v2551_v29 = vpack.c.b16 %v2325_v22, %v2324_v17 }
 0x1e5   : > { %v11539_v23 = vsel %vm11494_vm9, %v17602_v30, -1e+09  ;;  %17604 = vst [vmem:[#allocation243_spill] sm:$0xff] %v11547_v4  ;;  %vm11551_vm5 = vcmp.ne.s32.totalorder %v17605_v37, 0  ;;  %v17611_v53 = vld [vmem:[#allocation69_spill] sm:$0xff]  ;;  %vm11568_vm7 = vcmp.ne.s32.totalorder %v2876_v24, 0  ;;  %v2552_v24 = vpack.c.b16 %v2327_v47, %v2326_v7 }
 0x1e6   : > { %17603 = vst [vmem:[#allocation155_spill] sm:$0xff] %v11539_v23  ;;  %vm11557_vm15 = vcmp.ne.s32.totalorder %v17608_v5, 0  ;;  %7048 = vmatprep.mubr.msk.f32.mxu1 %vm16628_vm0, %v17611_v53  ;;  %v11566_v38 = vsel %vm11501_vm10, %v10125_v43, -1e+09  ;;  %vm11572_vm8 = vcmp.ne.s32.totalorder %v2877_v60, 0  ;;  %v17618_v5 = vunpack.c.1.s8 %v10087_v34  ;;  %v545_v60 = vld [vmem:[%s9470_s8 + $0x130] sm:$0xff] }
 0x1e7   : > { %17612 = vst [vmem:[#allocation69_spill] sm:$0xff] %v11566_v38  ;;  %v11579_v37 = vsel %vm11408_vm12, %v10177_v56, -1e+09  ;;  %v546_v35 = vld [vmem:[%s9470_s8 + $0x138] sm:$0xff]  ;;  %v11598_v56 = vsel %vm11424_vm13, %v10205_v11, -1e+09  ;;  %vm2116_vm12 = vnez %v543_v15  ;;  %vm2117_vm3 = vnez %v544_v41 }
 0x1e8   : > { %17617 = vst [vmem:[#allocation244_spill] sm:$0xff] %v11579_v37  ;;  %vm11583_vm11 = vcmp.ne.s32.totalorder %v17618_v5, 0  ;;  %17623 = vst [vmem:[#allocation245_spill] sm:$0xff] %v11598_v56  ;;  %v11603_v50 = vsel %vm11430_vm2, %v10220_v32, -1e+09  ;;  %v11605_v12 = vpop.f32.mrb[84].mxu1  ;;  %v2547_v5 = vpack.c.b8 %v2546_v1, %v2545_v63  ;;  %7049 = vmatmul.mubr.msk.f32.gmra.mrb[190].mxu1 %vm16628_vm0, %v17611_v53  ;;  %v17629_v32 = vunpack.c.0.s8 %v10253_v54 }
 0x1e9   : > { %17624 = vst [vmem:[#allocation246_spill] sm:$0xff] %v11603_v50  ;;  %v11607_v17 = vpop.f32.mrb[85].mxu1  ;;  %v17625_v47 = vld [vmem:[#allocation156_spill] sm:$0xff]  ;;  %v17627_v11 = vld [vmem:[#allocation157_spill] sm:$0xff]  ;;  %v17632_v1 = vunpack.c.1.s8 %v10253_v54  ;;  %v11636_v63 = vsel %vm11587_vm1, 16843009, %v17052_v9  ;;  %v2332_v15 = vunpack.c.3.s8 %v11307_v13  ;;  %vm2118_vm2 = vnez %v545_v60 }
 0x1ea   : > { %v11614_v22 = vsel %vm11568_vm7, %v17625_v47, -1e+09  ;;  %v11619_v45 = vsel %vm11572_vm8, %v17627_v11, -1e+09  ;;  %vm11623_vm6 = vcmp.ne.s32.totalorder %v17629_v32, 0  ;;  %17635 = vst [vmem:[#allocation247_spill] sm:$0xff] %v11636_v63  ;;  %vm2119_vm14 = vnez %v546_v35 }
 0x1eb   : > { %17626 = vst [vmem:[#allocation156_spill] sm:$0xff] %v11614_v22  ;;  %17628 = vst [vmem:[#allocation157_spill] sm:$0xff] %v11619_v45  ;;  %vm11629_vm13 = vcmp.ne.s32.totalorder %v17632_v1, 0  ;;  %v2553_v41 = vpack.c.b8 %v2552_v24, %v2551_v29  ;;  %v2333_v53 = vunpack.c.3.s8 %v11311_v26  ;;  %v2335_v30 = vunpack.c.3.s8 %v11321_v16  ;;  %v11644_v11 = vpop.f32.mrb[86].mxu1  ;;  %v17638_v60 = vld [vmem:[#allocation161_spill] sm:$0xff]  ;;  %v17650_v4 = vld [vmem:[#allocation163_spill] sm:$0xff] }
 0x1ec   : > { %17636 = vst [vmem:[#allocation248_spill] sm:$0xff] %v11644_v11  ;;  %vm2683_vm9 = vnez %v2547_v5  ;;  %v11647_v43 = vsel %vm2116_vm12, 16843009, %v17052_v9  ;;  %v11650_v13 = vsel %vm2117_vm3, 16843009, %v17052_v9  ;;  %v11652_v35 = vpop.f32.mrb[87].mxu1  ;;  %v2884_v32 = vunpack.c.0.s8 %v11636_v63 }
 0x1ed   : > { %17637 = vst [vmem:[#allocation249_spill] sm:$0xff] %v11652_v35  ;;  %v11657_v16 = vsel %vm2118_vm2, 16843009, %v17052_v9  ;;  %v11660_v29 = vsel %vm2119_vm14, 16843009, %v17052_v9  ;;  %v17640_v47 = vunpack.c.0.s8 %v10326_v28  ;;  %v17643_v19 = vunpack.c.1.s8 %v10326_v28  ;;  %v11690_v50 = vpop.f32.mrb[88].mxu1 }
 0x1ee   : > { %v11667_v5 = vsel %vm11509_vm4, %v17638_v60, -1e+09  ;;  %v11684_v59 = vsel %vm2683_vm9, 16843009, %v17052_v9  ;;  %vm11686_vm4 = vnez %v2553_v41  ;;  %v2557_v24 = vpack.c.b16 %v2333_v53, %v2332_v15  ;;  %17649 = vst [vmem:[#allocation251_spill] sm:$0xff] %v11690_v50  ;;  %v17653_v41 = vld [vmem:[#allocation169_spill] sm:$0xff] }
 0x1ef   : > { %17639 = vst [vmem:[#allocation161_spill] sm:$0xff] %v11667_v5  ;;  %vm11673_vm10 = vcmp.ne.s32.totalorder %v17640_v47, 0  ;;  %vm11679_vm7 = vcmp.ne.s32.totalorder %v17643_v19, 0  ;;  %17646 = vst [vmem:[#allocation250_spill] sm:$0xff] %v11684_v59  ;;  %v2558_v1 = vpack.c.b16 %v2335_v30, %v2334_v42  ;;  %v2340_v47 = vunpack.c.0.s8 %v11647_v43  ;;  %v11712_v30 = vpop.f32.mrb[89].mxu1  ;;  %v17658_v40 = vld [vmem:[#allocation167_spill] sm:$0xff] }
 0x1f0   : > { %v2341_v56 = vunpack.c.0.s8 %v11650_v13  ;;  %v2342_v19 = vunpack.c.0.s8 %v11657_v16  ;;  %v2343_v37 = vunpack.c.0.s8 %v11660_v29  ;;  %v11699_v48 = vsel %vm11551_vm5, %v17650_v4, -1e+09  ;;  %17657 = vst [vmem:[#allocation253_spill] sm:$0xff] %v11712_v30  ;;  %v17664_v2 = vld [vmem:[#allocation171_spill] sm:$0xff]  ;;  %v17671_v35 = vld [vmem:[#allocation170_spill] sm:$0xff]  ;;  %v17700_v26 = vld [vmem:[#allocation185_spill] sm:$0xff] }
 0x1f1   : > { %17651 = vst [vmem:[#allocation163_spill] sm:$0xff] %v11699_v48  ;;  %v11704_v15 = vsel %vm11557_vm15, %v10295_v57, -1e+09  ;;  %v17654_v53 = vunpack.c.0.s8 %v17653_v41  ;;  %v2885_v39 = vunpack.c.1.s8 %v11636_v63  ;;  %v11719_v4 = vsel %vm11583_vm11, %v17658_v40, -1e+09  ;;  %v17673_v11 = vld [vmem:[#allocation174_spill] sm:$0xff] }
 0x1f2   : > { %17652 = vst [vmem:[#allocation252_spill] sm:$0xff] %v11704_v15  ;;  %17659 = vst [vmem:[#allocation167_spill] sm:$0xff] %v11719_v4  ;;  %v17660_v57 = vunpack.c.1.s8 %v17653_v41  ;;  %v2893_v45 = vunpack.c.1.s8 %v11684_v59  ;;  %v11732_v63 = vsel %vm11686_vm4, 16843009, %v17052_v9  ;;  %v17665_v30 = vunpack.c.0.s8 %v17664_v2  ;;  %v17686_v4 = vld [vmem:[#allocation160_spill] sm:$0xff]  ;;  %v17691_v60 = vld [vmem:[#allocation178_spill] sm:$0xff] }
 0x1f3   : > { %vm11708_vm8 = vcmp.ne.s32.totalorder %v17654_v53, 0  ;;  %v2892_v53 = vunpack.c.0.s8 %v11684_v59  ;;  %17663 = vst [vmem:[#allocation254_spill] sm:$0xff] %v11732_v63  ;;  %v2348_v40 = vunpack.c.1.s8 %v11647_v43  ;;  %v2350_v22 = vunpack.c.1.s8 %v11657_v16  ;;  %v11744_v59 = vpop.f32.mrb[90].mxu1  ;;  %v17707_v42 = vld [vmem:[#allocation172_spill] sm:$0xff] }
 0x1f4   : > { %vm11723_vm5 = vcmp.ne.s32.totalorder %v17660_v57, 0  ;;  %vm11736_vm15 = vcmp.ne.s32.totalorder %v17665_v30, 0  ;;  %v2349_v57 = vunpack.c.1.s8 %v11650_v13  ;;  %v2351_v50 = vunpack.c.1.s8 %v11660_v29  ;;  %17668 = vst [vmem:[#allocation255_spill] sm:$0xff] %v11744_v59  ;;  %v554_v0 = vld [vmem:[%s9470_s8 + $0x178] sm:$0xff] }
 0x1f5   : > { %vm11746_vm11 = vcmp.ne.s32.totalorder %v2884_v32, 0  ;;  %v2559_v21 = vpack.c.b8 %v2558_v1, %v2557_v24  ;;  %v2563_v38 = vpack.c.b16 %v2341_v56, %v2340_v47  ;;  %v2564_v30 = vpack.c.b16 %v2343_v37, %v2342_v19  ;;  %v11762_v32 = vpop.f32.mrb[91].mxu1  ;;  %v17681_v1 = vld [vmem:[#allocation158_spill] sm:$0xff]  ;;  %v17683_v19 = vld [vmem:[#allocation159_spill] sm:$0xff]  ;;  %v17731_v56 = vld [vmem:[#allocation181_spill] sm:$0xff] }
 0x1f6   : > { %v11755_v23 = vsel %vm11623_vm6, %v17671_v35, -1e+09  ;;  %v11760_v27 = vsel %vm11629_vm13, %v17673_v11, -1e+09  ;;  %17675 = vst [vmem:[#allocation256_spill] sm:$0xff] %v11762_v32  ;;  %vm3141_vm1 = vcmp.ne.s32.totalorder %v2885_v39, 0  ;;  %v2900_v37 = vunpack.c.0.s8 %v11732_v63 }
 0x1f7   : > { %17672 = vst [vmem:[#allocation170_spill] sm:$0xff] %v11755_v23  ;;  %17674 = vst [vmem:[#allocation174_spill] sm:$0xff] %v11760_v27  ;;  %vm3148_vm12 = vcmp.ne.s32.totalorder %v2892_v53, 0  ;;  %vm11764_vm3 = vcmp.ne.s32.totalorder %v2893_v45, 0  ;;  %v2901_v24 = vunpack.c.1.s8 %v11732_v63  ;;  %v17678_v35 = vunpack.c.1.s8 %v17664_v2  ;;  %v11787_v62 = vpop.f32.mrb[92].mxu1  ;;  %v17705_v39 = vld [vmem:[#allocation188_spill] sm:$0xff] }
 0x1f8   : > { %v2569_v11 = vpack.c.b16 %v2349_v57, %v2348_v40  ;;  %v2570_v45 = vpack.c.b16 %v2351_v50, %v2350_v22  ;;  %v11782_v47 = vsel %vm11746_vm11, %v17681_v1, -1e+09  ;;  %v11785_v53 = vsel %vm3141_vm1, %v17683_v19, -1e+09  ;;  %17685 = vst [vmem:[#allocation257_spill] sm:$0xff] %v11787_v62  ;;  %v11794_v40 = vpop.f32.mrb[93].mxu1 }
 0x1f9   : > { %vm11774_vm6 = vcmp.ne.s32.totalorder %v17678_v35, 0  ;;  %17682 = vst [vmem:[#allocation158_spill] sm:$0xff] %v11782_v47  ;;  %17684 = vst [vmem:[#allocation159_spill] sm:$0xff] %v11785_v53  ;;  %vm2687_vm13 = vnez %v2559_v21  ;;  %v2565_v61 = vpack.c.b8 %v2564_v30, %v2563_v38  ;;  %v11792_v15 = vsel %vm3148_vm12, %v17686_v4, -1e+09  ;;  %v17689_v50 = vld [vmem:[#allocation162_spill] sm:$0xff] }
 0x1fa   : > { %17687 = vst [vmem:[#allocation160_spill] sm:$0xff] %v11792_v15  ;;  %17688 = vst [vmem:[#allocation258_spill] sm:$0xff] %v11794_v40  ;;  %v11799_v22 = vsel %vm11764_vm3, %v17689_v50, -1e+09  ;;  %v11805_v21 = vsel %vm11673_vm10, %v17691_v60, -1e+09  ;;  %v2571_v52 = vpack.c.b8 %v2570_v45, %v2569_v11  ;;  %v2356_v19 = vunpack.c.2.s8 %v11647_v43 }
 0x1fb   : > { %17690 = vst [vmem:[#allocation162_spill] sm:$0xff] %v11799_v22  ;;  %17692 = vst [vmem:[#allocation178_spill] sm:$0xff] %v11805_v21  ;;  %v17693_v38 = vld [vmem:[#allocation180_spill] sm:$0xff]  ;;  %vm11812_vm2 = vcmp.ne.s32.totalorder %v2900_v37, 0  ;;  %vm11816_vm14 = vcmp.ne.s32.totalorder %v2901_v24, 0  ;;  %v2357_v50 = vunpack.c.2.s8 %v11650_v13  ;;  %v11830_v60 = vpop.f32.mrb[94].mxu1  ;;  %vm11832_vm9 = vnez %v2565_v61 }
 0x1fc   : > { %v11810_v4 = vsel %vm11679_vm7, %v17693_v38, -1e+09  ;;  %v11821_v1 = vsel %vm2687_vm13, 16843009, %v17052_v9  ;;  %v11828_v37 = vsel %vm11708_vm8, %v17700_v26, -1e+09  ;;  %v2358_v38 = vunpack.c.2.s8 %v11657_v16 }
 0x1fd   : > { %17694 = vst [vmem:[#allocation180_spill] sm:$0xff] %v11810_v4  ;;  %17699 = vst [vmem:[#allocation259_spill] sm:$0xff] %v11821_v1  ;;  %v2359_v11 = vunpack.c.2.s8 %v11660_v29  ;;  %v551_v45 = vld [vmem:[%s9470_s8 + $0x160] sm:$0xff]  ;;  %v552_v35 = vld [vmem:[%s9470_s8 + $0x168] sm:$0xff]  ;;  %v11844_v27 = vsel %vm11723_vm5, %v17705_v39, -1e+09  ;;  %v17708_v26 = vunpack.c.0.s8 %v17707_v42  ;;  %v2908_v46 = vunpack.c.0.s8 %v11821_v1 }
 0x1fe   : > { %17701 = vst [vmem:[#allocation185_spill] sm:$0xff] %v11828_v37  ;;  %17702 = vst [vmem:[#allocation260_spill] sm:$0xff] %v11830_v60  ;;  %v553_v57 = vld [vmem:[%s9470_s8 + $0x170] sm:$0xff]  ;;  %v17711_v61 = vld [vmem:[#allocation165_spill] sm:$0xff]  ;;  %v11857_v5 = vpop.f32.mrb[95].mxu1  ;;  %vm11891_vm8 = vnez %v2571_v52  ;;  %vm2124_vm5 = vnez %v551_v45  ;;  %vm2125_vm1 = vnez %v552_v35  ;;  %vm2127_vm3 = vnez %v554_v0 }
 0x1ff   : > { %17706 = vst [vmem:[#allocation188_spill] sm:$0xff] %v11844_v27  ;;  %vm11848_vm10 = vcmp.ne.s32.totalorder %v17708_v26, 0  ;;  %v11855_v48 = vsel %vm11812_vm2, %v17711_v61, -1e+09  ;;  %17713 = vst [vmem:[#allocation261_spill] sm:$0xff] %v11857_v5  ;;  %v17714_v39 = vld [vmem:[#allocation190_spill] sm:$0xff]  ;;  %v17716_v26 = vunpack.c.1.s8 %v17707_v42  ;;  %v2576_v52 = vpack.c.b16 %v2359_v11, %v2358_v38 }
 0x200   : > { %17712 = vst [vmem:[#allocation165_spill] sm:$0xff] %v11855_v48  ;;  %v11865_v22 = vsel %vm11736_vm15, %v17714_v39, -1e+09  ;;  %v17719_v30 = vld [vmem:[#allocation175_spill] sm:$0xff]  ;;  %v17723_v63 = vld [vmem:[#allocation166_spill] sm:$0xff]  ;;  %v2909_v39 = vunpack.c.1.s8 %v11821_v1  ;;  %v11907_v24 = vpop.f32.mrb[96].mxu1  ;;  %vm2126_vm12 = vnez %v553_v57  ;;  %v2364_v40 = vunpack.c.3.s8 %v11647_v43 }
 0x201   : > { %17715 = vst [vmem:[#allocation190_spill] sm:$0xff] %v11865_v22  ;;  %vm11869_vm7 = vcmp.ne.s32.totalorder %v17716_v26, 0  ;;  %v17720_v61 = vunpack.c.0.s8 %v17719_v30  ;;  %v11882_v60 = vsel %vm11816_vm14, %v17723_v63, -1e+09  ;;  %v11889_v26 = vsel %vm11832_vm9, 16843009, %v17052_v9 }
 0x202   : > { %17724 = vst [vmem:[#allocation175_spill] sm:$0xff] %v11882_v60  ;;  %17725 = vst [vmem:[#allocation166_spill] sm:$0xff] %v11889_v26  ;;  %v17728_v10 = vunpack.c.1.s8 %v17719_v30  ;;  %v17732_v60 = vunpack.c.0.s8 %v17731_v56  ;;  %v2366_v15 = vunpack.c.3.s8 %v11657_v16  ;;  %v17740_v57 = vld [vmem:[#allocation192_spill] sm:$0xff]  ;;  %v11931_v11 = vsel %vm11891_vm8, 16843009, %v17052_v9  ;;  %v17743_v0 = vld [vmem:[#allocation182_spill] sm:$0xff] }
 0x203   : > { %vm11875_vm4 = vcmp.ne.s32.totalorder %v17720_v61, 0  ;;  %v2575_v61 = vpack.c.b16 %v2357_v50, %v2356_v19  ;;  %17735 = vst [vmem:[#allocation262_spill] sm:$0xff] %v11907_v24  ;;  %v17736_v19 = vunpack.c.1.s8 %v17731_v56  ;;  %v2367_v24 = vunpack.c.3.s8 %v11660_v29  ;;  %17742 = vst [vmem:[#allocation264_spill] sm:$0xff] %v11931_v11  ;;  %v17756_v47 = vld [vmem:[#allocation183_spill] sm:$0xff]  ;;  %v17771_v56 = vld [vmem:[#allocation198_spill] sm:$0xff] }
 0x204   : > { %vm11897_vm15 = vcmp.ne.s32.totalorder %v17728_v10, 0  ;;  %vm11903_vm11 = vcmp.ne.s32.totalorder %v17732_v60, 0  ;;  %v11915_v10 = vpop.f32.mrb[97].mxu1  ;;  %v2365_v60 = vunpack.c.3.s8 %v11650_v13  ;;  %v11926_v38 = vsel %vm11774_vm6, %v17740_v57, -1e+09  ;;  %v17780_v59 = vld [vmem:[#allocation200_spill] sm:$0xff] }
 0x205   : > { %vm11911_vm13 = vcmp.ne.s32.totalorder %v17736_v19, 0  ;;  %17739 = vst [vmem:[#allocation263_spill] sm:$0xff] %v11915_v10  ;;  %17741 = vst [vmem:[#allocation192_spill] sm:$0xff] %v11926_v38  ;;  %v11935_v43 = vsel %vm2124_vm5, 16843009, %v17052_v9  ;;  %v17744_v5 = vunpack.c.0.s8 %v17743_v0  ;;  %vm11954_vm2 = vcmp.ne.s32.totalorder %v2908_v46, 0 }
 0x206   : > { %v11940_v16 = vsel %vm2125_vm1, 16843009, %v17052_v9  ;;  %v11943_v29 = vsel %vm2126_vm12, 16843009, %v17052_v9  ;;  %v11946_v7 = vsel %vm2127_vm3, 16843009, %v17052_v9  ;;  %v2916_v35 = vunpack.c.0.s8 %v11889_v26 }
 0x207   : > { %vm11950_vm6 = vcmp.ne.s32.totalorder %v17744_v5, 0  ;;  %vm11958_vm14 = vcmp.ne.s32.totalorder %v2909_v39, 0  ;;  %v11962_v13 = vpop.f32.mrb[98].mxu1  ;;  %v2917_v27 = vunpack.c.1.s8 %v11889_v26  ;;  %v17752_v37 = vunpack.c.1.s8 %v17743_v0  ;;  %v17760_v26 = vld [vmem:[#allocation85_spill] sm:$0xff]  ;;  %v17801_v1 = vld [vmem:[#allocation179_spill] sm:$0xff]  ;;  %v17844_v22 = vld [vmem:[#allocation194_spill] sm:$0xff] }
 0x208   : > { %17751 = vst [vmem:[#allocation265_spill] sm:$0xff] %v11962_v13  ;;  %v11972_v46 = vpop.f32.mrb[99].mxu1  ;;  %v2924_v4 = vunpack.c.0.s8 %v11931_v11  ;;  %v2577_v39 = vpack.c.b8 %v2576_v52, %v2575_v61  ;;  %v2581_v21 = vpack.c.b16 %v2365_v60, %v2364_v40  ;;  %v2582_v10 = vpack.c.b16 %v2367_v24, %v2366_v15  ;;  %v17769_v60 = vld [vmem:[#allocation176_spill] sm:$0xff]  ;;  %v17823_v5 = vld [vmem:[#allocation217_spill] sm:$0xff]  ;;  %v17831_v13 = vld [vmem:[#allocation91_spill] sm:$0xff] }
 0x209   : > { %vm11968_vm9 = vcmp.ne.s32.totalorder %v17752_v37, 0  ;;  %17755 = vst [vmem:[#allocation266_spill] sm:$0xff] %v11972_v46  ;;  %v17757_v58 = vunpack.c.0.s8 %v17756_v47  ;;  %v17761_v62 = vunpack.c.2.s8 %v17760_v26  ;;  %v2372_v0 = vunpack.c.0.s8 %v11935_v43  ;;  %v12025_v57 = vpop.f32.mrb[100].mxu1  ;;  %v18099_v42 = vld [vmem:[#allocation155_spill] sm:$0xff]  ;;  %v18100_v2 = vld [vmem:[#allocation249_spill] sm:$0xff] }
 0x20a   : > { %v2373_v46 = vunpack.c.0.s8 %v11940_v16  ;;  %v2374_v61 = vunpack.c.0.s8 %v11943_v29  ;;  %v2375_v15 = vunpack.c.0.s8 %v11946_v7  ;;  %v17764_v40 = vunpack.c.1.s8 %v17756_v47  ;;  %17779 = vst [vmem:[#allocation198_spill] sm:$0xff] %v12025_v57  ;;  %v12051_v53 = vpop.f32.mrb[101].mxu1  ;;  %v17793_v57 = vld [vmem:[#allocation204_spill] sm:$0xff] }
 0x20b   : > { %vm11977_vm8 = vcmp.ne.s32.totalorder %v17757_v58, 0  ;;  %vm11983_vm5 = vcmp.ne.s32.totalorder %v17761_v62, 0  ;;  %v17767_v62 = vld [vmem:[#allocation173_spill] sm:$0xff]  ;;  %v12007_v32 = vsel %vm11958_vm14, %v17769_v60, -1e+09  ;;  %vm12021_vm3 = vcmp.ne.s32.totalorder %v2916_v35, 0 }
 0x20c   : > { %vm11995_vm1 = vcmp.ne.s32.totalorder %v17764_v40, 0  ;;  %v12002_v52 = vsel %vm11954_vm2, %v17767_v62, -1e+09  ;;  %17770 = vst [vmem:[#allocation173_spill] sm:$0xff] %v12007_v32  ;;  %v12013_v58 = vsel %vm11848_vm10, %v17771_v56, -1e+09  ;;  %v2925_v60 = vunpack.c.1.s8 %v11931_v11 }
 0x20d   : > { %17768 = vst [vmem:[#allocation85_spill] sm:$0xff] %v12002_v52  ;;  %17772 = vst [vmem:[#allocation176_spill] sm:$0xff] %v12013_v58  ;;  %v17773_v40 = vld [vmem:[#allocation189_spill] sm:$0xff]  ;;  %v12032_v23 = vsel %vm11869_vm7, %v17780_v59, -1e+09  ;;  %v17782_v56 = vld [vmem:[#allocation202_spill] sm:$0xff]  ;;  %v17787_v62 = vunpack.c.3.s8 %v17760_v26  ;;  %vm2693_vm7 = vnez %v2577_v39  ;;  %v2583_v59 = vpack.c.b8 %v2582_v10, %v2581_v21 }
 0x20e   : > { %v17774_v38 = vunpack.c.0.s8 %v17773_v40  ;;  %17781 = vst [vmem:[#allocation200_spill] sm:$0xff] %v12032_v23  ;;  %v17784_v35 = vunpack.c.1.s8 %v17773_v40  ;;  %v17790_v48 = vunpack.c.2.s8 %v9551_v36  ;;  %vm3173_vm14 = vcmp.ne.s32.totalorder %v2917_v27, 0  ;;  %v17796_v21 = vld [vmem:[#allocation177_spill] sm:$0xff] }
 0x20f   : > { %vm12047_vm2 = vcmp.ne.s32.totalorder %v17787_v62, 0  ;;  %vm3180_vm0 = vcmp.ne.s32.totalorder %v2924_v4, 0  ;;  %v2588_v40 = vpack.c.b16 %v2375_v15, %v2374_v61  ;;  %v12062_v26 = vsel %vm11897_vm15, %v17793_v57, -1e+09  ;;  %v17803_v61 = vld [vmem:[#allocation184_spill] sm:$0xff]  ;;  %v17858_v11 = vld [vmem:[#allocation193_spill] sm:$0xff] }
 0x210   : > { %vm12017_vm12 = vcmp.ne.s32.totalorder %v17774_v38, 0  ;;  %v12037_v38 = vsel %vm11875_vm4, %v17782_v56, -1e+09  ;;  %vm12041_vm10 = vcmp.ne.s32.totalorder %v17784_v35, 0  ;;  %vm12055_vm4 = vcmp.ne.s32.totalorder %v17790_v48, 0  ;;  %17794 = vst [vmem:[#allocation204_spill] sm:$0xff] %v12062_v26 }
 0x211   : > { %17783 = vst [vmem:[#allocation202_spill] sm:$0xff] %v12037_v38  ;;  %v2587_v35 = vpack.c.b16 %v2373_v46, %v2372_v0  ;;  %v12067_v39 = vsel %vm11903_vm11, %v10682_v18, -1e+09  ;;  %v12072_v10 = vsel %vm12021_vm3, %v17796_v21, -1e+09  ;;  %vm3181_vm15 = vcmp.ne.s32.totalorder %v2925_v60, 0 }
 0x212   : > { %17795 = vst [vmem:[#allocation267_spill] sm:$0xff] %v12067_v39  ;;  %17797 = vst [vmem:[#allocation177_spill] sm:$0xff] %v12072_v10  ;;  %v12080_v63 = vsel %vm11911_vm13, %v10698_v20, -1e+09  ;;  %v12082_v0 = vpop.f32.mrb[102].mxu1  ;;  %vm12095_vm11 = vnez %v2583_v59  ;;  %v2380_v20 = vunpack.c.1.s8 %v11935_v43  ;;  %v17808_v50 = vunpack.c.3.s8 %v9551_v36  ;;  %v17811_v60 = vld [vmem:[#allocation90_spill] sm:$0xff] }
 0x213   : > { %17798 = vst [vmem:[#allocation268_spill] sm:$0xff] %v12080_v63  ;;  %17799 = vst [vmem:[#allocation269_spill] sm:$0xff] %v12082_v0  ;;  %v12085_v18 = vsel %vm2693_vm7, 16843009, %v17052_v9  ;;  %v12088_v46 = vsel %vm3173_vm14, %v17801_v1, -1e+09  ;;  %v17812_v48 = vunpack.c.2.s8 %v17811_v60  ;;  %v2589_v1 = vpack.c.b8 %v2588_v40, %v2587_v35 }
 0x214   : > { %17800 = vst [vmem:[#allocation270_spill] sm:$0xff] %v12085_v18  ;;  %17802 = vst [vmem:[#allocation179_spill] sm:$0xff] %v12088_v46  ;;  %v12091_v15 = vsel %vm3180_vm0, %v17803_v61, -1e+09  ;;  %v12093_v45 = vpop.f32.mrb[103].mxu1  ;;  %vm12102_vm13 = vcmp.ne.s32.totalorder %v17808_v50, 0  ;;  %v2381_v59 = vunpack.c.1.s8 %v11940_v16  ;;  %v2382_v61 = vunpack.c.1.s8 %v11943_v29 }
 0x215   : > { %17804 = vst [vmem:[#allocation184_spill] sm:$0xff] %v12091_v15  ;;  %17805 = vst [vmem:[#allocation271_spill] sm:$0xff] %v12093_v45  ;;  %vm12108_vm3 = vcmp.ne.s32.totalorder %v17812_v48, 0  ;;  %v2383_v4 = vunpack.c.1.s8 %v11946_v7  ;;  %v12118_v36 = vsel %vm11950_vm6, %v10758_v8, -1e+09  ;;  %v17816_v50 = vld [vmem:[#allocation186_spill] sm:$0xff]  ;;  %v2932_v48 = vunpack.c.0.s8 %v12085_v18 }
 0x216   : > { %17815 = vst [vmem:[#allocation90_spill] sm:$0xff] %v12118_v36  ;;  %v12121_v27 = vsel %vm3181_vm15, %v17816_v50, -1e+09  ;;  %v2933_v23 = vunpack.c.1.s8 %v12085_v18  ;;  %v17818_v35 = vld [vmem:[#allocation209_spill] sm:$0xff]  ;;  %v12133_v19 = vpop.f32.mrb[104].mxu1  ;;  %v17825_v45 = vunpack.c.3.s8 %v17811_v60  ;;  %v17829_v50 = vld [vmem:[#allocation212_spill] sm:$0xff]  ;;  %v17832_v63 = vunpack.c.2.s8 %v17831_v13 }
 0x217   : > { %17817 = vst [vmem:[#allocation186_spill] sm:$0xff] %v12121_v27  ;;  %v12130_v58 = vsel %vm11968_vm9, %v17818_v35, -1e+09  ;;  %17820 = vst [vmem:[#allocation272_spill] sm:$0xff] %v12133_v19  ;;  %v12138_v8 = vsel %vm12095_vm11, 16843009, %v17052_v9  ;;  %vm2697_vm9 = vnez %v2589_v1  ;;  %v2594_v60 = vpack.c.b16 %v2383_v4, %v2382_v61 }
 0x218   : > { %17819 = vst [vmem:[#allocation209_spill] sm:$0xff] %v12130_v58  ;;  %17821 = vst [vmem:[#allocation273_spill] sm:$0xff] %v12138_v8  ;;  %v12145_v40 = vsel %vm11977_vm8, %v10806_v55, -1e+09  ;;  %v12150_v35 = vsel %vm11983_vm5, %v17823_v5, -1e+09  ;;  %v2388_v21 = vunpack.c.2.s8 %v11935_v43 }
 0x219   : > { %17822 = vst [vmem:[#allocation274_spill] sm:$0xff] %v12145_v40  ;;  %17824 = vst [vmem:[#allocation217_spill] sm:$0xff] %v12150_v35  ;;  %vm12154_vm0 = vcmp.ne.s32.totalorder %v17825_v45, 0  ;;  %v12159_v38 = vpop.f32.mrb[105].mxu1  ;;  %v12164_v55 = vsel %vm11995_vm1, %v17829_v50, -1e+09  ;;  %v2593_v45 = vpack.c.b16 %v2381_v59, %v2380_v20  ;;  %v2391_v40 = vunpack.c.2.s8 %v11946_v7 }
 0x21a   : > { %17828 = vst [vmem:[#allocation275_spill] sm:$0xff] %v12159_v38  ;;  %17830 = vst [vmem:[#allocation212_spill] sm:$0xff] %v12164_v55  ;;  %vm12168_vm6 = vcmp.ne.s32.totalorder %v17832_v63, 0  ;;  %v17835_v5 = vld [vmem:[#allocation213_spill] sm:$0xff]  ;;  %vm12177_vm8 = vcmp.ne.s32.totalorder %v2932_v48, 0  ;;  %vm12181_vm5 = vcmp.ne.s32.totalorder %v2933_v23, 0  ;;  %v2940_v63 = vunpack.c.0.s8 %v12138_v8 }
 0x21b   : > { %v12175_v57 = vsel %vm12017_vm12, %v17835_v5, -1e+09  ;;  %v17841_v50 = vld [vmem:[#allocation216_spill] sm:$0xff]  ;;  %v17843_v4 = vld [vmem:[#allocation187_spill] sm:$0xff]  ;;  %v2941_v23 = vunpack.c.1.s8 %v12138_v8  ;;  %v12201_v5 = vpop.f32.mrb[106].mxu1  ;;  %v2595_v56 = vpack.c.b8 %v2594_v60, %v2593_v45  ;;  %v17862_v60 = vld [vmem:[#allocation201_spill] sm:$0xff]  ;;  %v2390_v55 = vunpack.c.2.s8 %v11943_v29 }
 0x21c   : > { %17836 = vst [vmem:[#allocation91_spill] sm:$0xff] %v12175_v57  ;;  %v12189_v20 = vsel %vm12041_vm10, %v17841_v50, -1e+09  ;;  %v17845_v1 = vmax.f32 %v17843_v4, %v17844_v22  ;;  %v17846_v61 = vld [vmem:[#allocation219_spill] sm:$0xff]  ;;  %v17849_v38 = vld [vmem:[#allocation220_spill] sm:$0xff]  ;;  %v17853_v50 = vunpack.c.3.s8 %v17831_v13  ;;  %vm12238_vm12 = vcmp.ne.s32.totalorder %v2940_v63, 0 }
 0x21d   : > { %17842 = vst [vmem:[#allocation213_spill] sm:$0xff] %v12189_v20  ;;  %v12198_v48 = vsel %vm12047_vm2, %v17846_v61, -1e+09  ;;  %17848 = vst [vmem:[#allocation219_spill] sm:$0xff] %v12201_v5  ;;  %v12206_v47 = vsel %vm12055_vm4, %v17849_v38, -1e+09  ;;  %vm12286_vm14 = vnez %v2595_v56 }
 0x21e   : > { %v3553_v59 = vmax.f32 %v17845_v1, %v12150_v35  ;;  %17847 = vst [vmem:[#allocation216_spill] sm:$0xff] %v12198_v48  ;;  %17850 = vst [vmem:[#allocation220_spill] sm:$0xff] %v12206_v47  ;;  %v12211_v1 = vsel %vm2697_vm9, 16843009, %v17052_v9  ;;  %v12213_v35 = vpop.f32.mrb[107].mxu1  ;;  %vm12224_vm1 = vcmp.ne.s32.totalorder %v17853_v50, 0 }
 0x21f   : > { %17851 = vst [vmem:[#allocation276_spill] sm:$0xff] %v12211_v1  ;;  %17852 = vst [vmem:[#allocation277_spill] sm:$0xff] %v12213_v35  ;;  %v17856_v4 = vld [vmem:[#allocation191_spill] sm:$0xff]  ;;  %v12236_v61 = vsel %vm12181_vm5, %v17858_v11, -1e+09  ;;  %v17863_v50 = vld [vmem:[#allocation86_spill] sm:$0xff]  ;;  %v2949_v62 = vunpack.c.1.s8 %v12211_v1 }
 0x220   : > { %v12231_v35 = vsel %vm12177_vm8, %v17856_v4, -1e+09  ;;  %17859 = vst [vmem:[#allocation193_spill] sm:$0xff] %v12236_v61  ;;  %v3554_v13 = vmax.f32 %v3553_v59, %v12198_v48  ;;  %v17864_v38 = vmax.f32 %v17862_v60, %v17863_v50  ;;  %vm12247_vm10 = vcmp.ne.s32.totalorder %v2941_v23, 0  ;;  %v12252_v24 = vpop.f32.mrb[108].mxu1  ;;  %v17868_v11 = vld [vmem:[#allocation223_spill] sm:$0xff] }
 0x221   : > { %17857 = vst [vmem:[#allocation191_spill] sm:$0xff] %v12231_v35  ;;  %v2948_v4 = vunpack.c.0.s8 %v12211_v1  ;;  %17867 = vst [vmem:[#allocation278_spill] sm:$0xff] %v12252_v24  ;;  %v12257_v63 = vsel %vm12102_vm13, %v17868_v11, -1e+09  ;;  %v12262_v59 = vsel %vm12108_vm3, %v11078_v51, -1e+09 }
 0x222   : > { %v3562_v22 = vmax.f32 %v17864_v38, %v12206_v47  ;;  %17869 = vst [vmem:[#allocation223_spill] sm:$0xff] %v12257_v63  ;;  %17870 = vst [vmem:[#allocation279_spill] sm:$0xff] %v12262_v59  ;;  %v17871_v50 = vld [vmem:[#allocation95_spill] sm:$0xff]  ;;  %v17875_v47 = vld [vmem:[#allocation97_spill] sm:$0xff]  ;;  %v12277_v11 = vpop.f32.mrb[109].mxu1  ;;  %vm12341_vm3 = vcmp.ne.s32.totalorder %v2949_v62, 0 }
 0x223   : > { %v17872_v38 = vunpack.c.2.s8 %v17871_v50  ;;  %v17876_v60 = vunpack.c.2.s8 %v17875_v47  ;;  %17879 = vst [vmem:[#allocation95_spill] sm:$0xff] %v12277_v11  ;;  %v17880_v51 = vld [vmem:[#allocation99_spill] sm:$0xff]  ;;  %v17886_v58 = vld [vmem:[#allocation197_spill] sm:$0xff]  ;;  %v12312_v45 = vsel %vm12154_vm0, %v11093_v14, -1e+09  ;;  %vm12314_vm15 = vcmp.ne.s32.totalorder %v2948_v4, 0 }
 0x224   : > { %v17881_v20 = vunpack.c.2.s8 %v17880_v51  ;;  %v12296_v36 = vsel %vm12238_vm12, %v17886_v58, -1e+09  ;;  %v17888_v11 = vld [vmem:[#allocation199_spill] sm:$0xff]  ;;  %v3563_v61 = vmax.f32 %v3562_v22, %v12257_v63  ;;  %17891 = vst [vmem:[#allocation197_spill] sm:$0xff] %v12312_v45  ;;  %v12318_v39 = vpop.f32.mrb[110].mxu1  ;;  %v17900_v14 = vunpack.c.3.s8 %v17871_v50  ;;  %v18051_v26 = vld [vmem:[#allocation74_spill] sm:$0xff] }
 0x225   : > { %vm12266_vm2 = vcmp.ne.s32.totalorder %v17872_v38, 0  ;;  %vm12272_vm7 = vcmp.ne.s32.totalorder %v17876_v60, 0  ;;  %v2389_v60 = vunpack.c.2.s8 %v11940_v16  ;;  %17887 = vst [vmem:[#allocation97_spill] sm:$0xff] %v12296_v36  ;;  %v17890_v24 = vld [vmem:[#allocation103_spill] sm:$0xff]  ;;  %17894 = vst [vmem:[#allocation199_spill] sm:$0xff] %v12318_v39  ;;  %v17903_v4 = vunpack.c.3.s8 %v17875_v47  ;;  %v12350_v50 = vpop.f32.mrb[111].mxu1 }
 0x226   : > { %vm12282_vm4 = vcmp.ne.s32.totalorder %v17881_v20, 0  ;;  %v12301_v20 = vsel %vm12247_vm10, %v17888_v11, -1e+09  ;;  %v12306_v8 = vmax.f32 %v3554_v13, %v17890_v24  ;;  %v17895_v11 = vld [vmem:[#allocation54_spill] sm:$0xff]  ;;  %v17896_v56 = vld [vmem:[#allocation87_spill] sm:$0xff]  ;;  %vm12331_vm11 = vcmp.ne.s32.totalorder %v17900_v14, 0 }
 0x227   : > { %17889 = vst [vmem:[#allocation99_spill] sm:$0xff] %v12301_v20  ;;  %v17897_v1 = vmax.f32 %v17895_v11, %v17896_v56  ;;  %v17898_v13 = vld [vmem:[#allocation227_spill] sm:$0xff]  ;;  %vm12337_vm13 = vcmp.ne.s32.totalorder %v17903_v4, 0  ;;  %v12348_v37 = vsel %vm12286_vm14, 16843009, %v17052_v9  ;;  %17909 = vst [vmem:[#allocation281_spill] sm:$0xff] %v12350_v50  ;;  %v2600_v14 = vpack.c.b16 %v2391_v40, %v2390_v55 }
 0x228   : > { %v12327_v22 = vsel %vm12168_vm6, %v17898_v13, -1e+09  ;;  %17908 = vst [vmem:[#allocation280_spill] sm:$0xff] %v12348_v37  ;;  %v2599_v13 = vpack.c.b16 %v2389_v60, %v2388_v21  ;;  %v2396_v47 = vunpack.c.3.s8 %v11935_v43  ;;  %v2397_v4 = vunpack.c.3.s8 %v11940_v16  ;;  %v559_v55 = vld [vmem:[%s9470_s8 + $0x1a0] sm:$0xff]  ;;  %v17913_v60 = vld [vmem:[#allocation106_spill] sm:$0xff]  ;;  %v17919_v38 = vld [vmem:[#allocation88_spill] sm:$0xff] }
 0x229   : > { %v3571_v20 = vmax.f32 %v17897_v1, %v12262_v59  ;;  %17899 = vst [vmem:[#allocation227_spill] sm:$0xff] %v12327_v22  ;;  %v17910_v62 = vunpack.c.3.s8 %v17880_v51  ;;  %v2398_v21 = vunpack.c.3.s8 %v11943_v29  ;;  %v2399_v40 = vunpack.c.3.s8 %v11946_v7  ;;  %v17914_v11 = vld [vmem:[#allocation109_spill] sm:$0xff]  ;;  %v17915_v51 = vld [vmem:[#allocation100_spill] sm:$0xff]  ;;  %v12382_v7 = vpop.f32.mrb[112].mxu1  ;;  %v560_v50 = vld [vmem:[%s9470_s8 + $0x1a8] sm:$0xff] }
 0x22a   : > { %v12368_v16 = vmax.f32 %v3563_v61, %v17914_v11  ;;  %v12379_v56 = vsel %vm12314_vm15, %v17919_v38, -1e+09  ;;  %v2956_v29 = vunpack.c.0.s8 %v12348_v37  ;;  %17921 = vst [vmem:[#allocation88_spill] sm:$0xff] %v12382_v7  ;;  %v561_v43 = vld [vmem:[%s9470_s8 + $0x1b0] sm:$0xff]  ;;  %v562_v39 = vld [vmem:[%s9470_s8 + $0x1b8] sm:$0xff]  ;;  %v17922_v11 = vld [vmem:[#allocation89_spill] sm:$0xff]  ;;  %v2957_v38 = vunpack.c.1.s8 %v12348_v37 }
 0x22b   : > { %vm12356_vm0 = vcmp.ne.s32.totalorder %v17910_v62, 0  ;;  %v17916_v62 = vunpack.c.2.s8 %v17915_v51  ;;  %17920 = vst [vmem:[#allocation100_spill] sm:$0xff] %v12379_v56  ;;  %v3572_v61 = vmax.f32 %v3571_v20, %v12312_v45  ;;  %v17925_v19 = vld [vmem:[#allocation203_spill] sm:$0xff]  ;;  %v12398_v56 = vpop.f32.mrb[113].mxu1  ;;  %v17928_v7 = vld [vmem:[#allocation229_spill] sm:$0xff]  ;;  %v2601_v20 = vpack.c.b8 %v2600_v14, %v2599_v13  ;;  %v17938_v14 = vld [vmem:[#allocation230_spill] sm:$0xff] }
 0x22c   : > { %v12395_v58 = vsel %vm12341_vm3, %v17925_v19, -1e+09  ;;  %17927 = vst [vmem:[#allocation282_spill] sm:$0xff] %v12398_v56  ;;  %v12403_v54 = vsel %vm12224_vm1, %v17928_v7, -1e+09  ;;  %v2605_v45 = vpack.c.b16 %v2397_v4, %v2396_v47  ;;  %vm2132_vm9 = vnez %v559_v55  ;;  %v17933_v19 = vld [vmem:[#allocation107_spill] sm:$0xff] }
 0x22d   : > { %vm12372_vm6 = vcmp.ne.s32.totalorder %v17916_v62, 0  ;;  %v17923_v62 = vld [vmem:[#allocation55_spill] sm:$0xff]  ;;  %17926 = vst [vmem:[#allocation203_spill] sm:$0xff] %v12395_v58  ;;  %17929 = vst [vmem:[#allocation229_spill] sm:$0xff] %v12403_v54  ;;  %v17934_v1 = vunpack.c.2.s8 %v17933_v19  ;;  %vm2133_vm12 = vnez %v560_v50  ;;  %vm2134_vm10 = vnez %v561_v43  ;;  %v17940_v4 = vld [vmem:[#allocation234_spill] sm:$0xff]  ;;  %v12433_v50 = vpop.f32.mrb[114].mxu1 }
 0x22e   : > { %v17924_v36 = vmax.f32 %v17922_v11, %v17923_v62  ;;  %v17930_v62 = vunpack.c.3.s8 %v17915_v51  ;;  %v2606_v11 = vpack.c.b16 %v2399_v40, %v2398_v21  ;;  %vm2135_vm1 = vnez %v562_v39  ;;  %v17937_v18 = vld [vmem:[#allocation59_spill] sm:$0xff]  ;;  %17944 = vst [vmem:[#allocation234_spill] sm:$0xff] %v12433_v50  ;;  %v17945_v39 = vld [vmem:[#allocation60_spill] sm:$0xff]  ;;  %v17946_v40 = vld [vmem:[#allocation238_spill] sm:$0xff] }
 0x22f   : > { %vm12413_vm5 = vcmp.ne.s32.totalorder %v17934_v1, 0  ;;  %v12422_v47 = vsel %vm12266_vm2, %v17938_v14, -1e+09  ;;  %v12427_v55 = vsel %vm12272_vm7, %v17940_v4, -1e+09  ;;  %vm12429_vm14 = vcmp.ne.s32.totalorder %v2956_v29, 0 }
 0x230   : > { %v3580_v5 = vmax.f32 %v17924_v36, %v12327_v22  ;;  %vm12407_vm8 = vcmp.ne.s32.totalorder %v17930_v62, 0  ;;  %17939 = vst [vmem:[#allocation107_spill] sm:$0xff] %v12422_v47  ;;  %17941 = vst [vmem:[#allocation230_spill] sm:$0xff] %v12427_v55  ;;  %v12436_v21 = vmax.f32 %v3572_v61, %v17945_v39  ;;  %v12441_v23 = vsel %vm12282_vm4, %v17946_v40, -1e+09  ;;  %v12450_v29 = vpop.f32.mrb[115].mxu1 }
 0x231   : > { %17947 = vst [vmem:[#allocation238_spill] sm:$0xff] %v12441_v23  ;;  %vm12443_vm2 = vcmp.ne.s32.totalorder %v2957_v38, 0  ;;  %v12448_v48 = vsel %vm2132_vm9, 16843009, %v17052_v9  ;;  %17950 = vst [vmem:[#allocation283_spill] sm:$0xff] %v12450_v29  ;;  %v17951_v7 = vld [vmem:[#allocation108_spill] sm:$0xff]  ;;  %vm12473_vm4 = vnez %v2601_v20  ;;  %v2607_v61 = vpack.c.b8 %v2606_v11, %v2605_v45 }
 0x232   : > { %v17952_v62 = vunpack.c.2.s8 %v17951_v7  ;;  %v12460_v57 = vsel %vm2133_vm12, 16843009, %v17052_v9  ;;  %v12463_v38 = vsel %vm2134_vm10, 16843009, %v17052_v9  ;;  %v12466_v14 = vsel %vm2135_vm1, 16843009, %v17052_v9 }
 0x233   : > { %v3581_v4 = vmax.f32 %v3580_v5, %v12403_v54  ;;  %v17955_v40 = vld [vmem:[#allocation93_spill] sm:$0xff]  ;;  %v17956_v13 = vld [vmem:[#allocation56_spill] sm:$0xff]  ;;  %v17963_v37 = vld [vmem:[#allocation98_spill] sm:$0xff]  ;;  %v17970_v11 = vunpack.c.3.s8 %v17933_v19  ;;  %v2407_v63 = vunpack.c.0.s8 %v12466_v14  ;;  %vm12549_vm3 = vnez %v2607_v61 }
 0x234   : > { %vm12454_vm7 = vcmp.ne.s32.totalorder %v17952_v62, 0  ;;  %v17957_v62 = vmax.f32 %v17955_v40, %v17956_v13  ;;  %v17960_v50 = vld [vmem:[#allocation232_spill] sm:$0xff]  ;;  %v17967_v20 = vld [vmem:[#allocation57_spill] sm:$0xff]  ;;  %v17976_v19 = vld [vmem:[#allocation139_spill] sm:$0xff]  ;;  %v16689_v61 = vmov 0.0|0.0   ;;  %v2413_v22 = vunpack.c.1.s8 %v12460_v57 }
 0x235   : > { %v12480_v56 = vsel %vm12331_vm11, %v17960_v50, -1e+09  ;;  %v17962_v58 = vld [vmem:[#allocation96_spill] sm:$0xff]  ;;  %vm12497_vm15 = vcmp.ne.s32.totalorder %v17970_v11, 0  ;;  %v12501_v50 = vpop.f32.mrb[116].mxu1  ;;  %v17993_v59 = vld [vmem:[#allocation117_spill] sm:$0xff]  ;;  %7334 = vmatprep.subr.bf16.mxu0 %v16689_v61  ;;  %7534 = vmatprep.subr.bf16.mxu1 %v16689_v61 }
 0x236   : > { %v3589_v39 = vmax.f32 %v17957_v62, %v12422_v47  ;;  %17961 = vst [vmem:[#allocation108_spill] sm:$0xff] %v12480_v56  ;;  %v17964_v28 = vmax.f32 %v17962_v58, %v17963_v37  ;;  %v17965_v54 = vld [vmem:[#allocation236_spill] sm:$0xff]  ;;  %v17968_v62 = vld [vmem:[#allocation101_spill] sm:$0xff]  ;;  %v12507_v37 = vpop.f32.mrb[117].mxu1  ;;  %v12514_v11 = vsel %vm12356_vm0, %v17976_v19, -1e+09  ;;  %v12554_v35 = vmax.f32 %v3581_v4, %v17993_v59 }
 0x237   : > { %v12489_v13 = vsel %vm12337_vm13, %v17965_v54, -1e+09  ;;  %v17969_v47 = vmax.f32 %v17967_v20, %v17968_v62  ;;  %17973 = vst [vmem:[#allocation236_spill] sm:$0xff] %v12501_v50  ;;  %v2406_v54 = vunpack.c.0.s8 %v12463_v38  ;;  %17974 = vst [vmem:[#allocation284_spill] sm:$0xff] %v12507_v37  ;;  %v17975_v62 = vld [vmem:[#allocation61_spill] sm:$0xff]  ;;  %v17981_v58 = vld [vmem:[#allocation115_spill] sm:$0xff] }
 0x238   : > { %v3598_v5 = vmax.f32 %v17964_v28, %v12427_v55  ;;  %17966 = vst [vmem:[#allocation232_spill] sm:$0xff] %v12489_v13  ;;  %v2404_v28 = vunpack.c.0.s8 %v12448_v48  ;;  %v2405_v55 = vunpack.c.0.s8 %v12460_v57  ;;  %17977 = vst [vmem:[#allocation139_spill] sm:$0xff] %v12514_v11  ;;  %v17982_v40 = vunpack.c.2.s8 %v17981_v58  ;;  %v12558_v27 = vpop.f32.mrb[118].mxu1  ;;  %v17996_v4 = vld [vmem:[#allocation104_spill] sm:$0xff]  ;;  %v18008_v36 = vld [vmem:[#allocation70_spill] sm:$0xff] }
 0x239   : > { %v3607_v45 = vmax.f32 %v17969_v47, %v12441_v23  ;;  %v17978_v23 = vunpack.c.3.s8 %v17951_v7  ;;  %v12531_v47 = vsel %vm12473_vm4, 16843009, %v17052_v9  ;;  %v17987_v7 = vld [vmem:[#allocation205_spill] sm:$0xff]  ;;  %17994 = vst [vmem:[#allocation286_spill] sm:$0xff] %v12558_v27  ;;  %7550 = vmatpush1.bf16.msra.mxu1 %v18008_v36  ;;  %v18010_v59 = vld [vmem:[#allocation62_spill] sm:$0xff] }
 0x23a   : > { %vm12524_vm13 = vcmp.ne.s32.totalorder %v17982_v40, 0  ;;  %17985 = vst [vmem:[#allocation115_spill] sm:$0xff] %v12531_v47  ;;  %v12542_v19 = vsel %vm12429_vm14, %v17987_v7, -1e+09  ;;  %v17989_v40 = vld [vmem:[#allocation206_spill] sm:$0xff]  ;;  %v3599_v24 = vmax.f32 %v3598_v5, %v12489_v13  ;;  %v2964_v7 = vunpack.c.0.s8 %v12531_v47  ;;  %7535 = vmatprep.subr.bf16.mxu1 %v16689_v61 }
 0x23b   : > { %vm12518_vm11 = vcmp.ne.s32.totalorder %v17978_v23, 0  ;;  %v12537_v23 = vsel %vm12372_vm6, %v11412_v49, -1e+09  ;;  %17988 = vst [vmem:[#allocation205_spill] sm:$0xff] %v12542_v19  ;;  %v12547_v37 = vsel %vm12443_vm2, %v17989_v40, -1e+09  ;;  %v3590_v49 = vmax.f32 %v3589_v39, %v12480_v56 }
 0x23c   : > { %17986 = vst [vmem:[#allocation285_spill] sm:$0xff] %v12537_v23  ;;  %17990 = vst [vmem:[#allocation206_spill] sm:$0xff] %v12547_v37  ;;  %v3608_v51 = vmax.f32 %v3607_v45, %v12514_v11  ;;  %v2611_v43 = vpack.c.b16 %v2405_v55, %v2404_v28  ;;  %v2612_v40 = vpack.c.b16 %v2407_v63, %v2406_v54  ;;  %v12562_v37 = vpop.f32.mrb[119].mxu1  ;;  %v17997_v39 = vld [vmem:[#allocation58_spill] sm:$0xff]  ;;  %v18001_v11 = vld [vmem:[#allocation151_spill] sm:$0xff]  ;;  %v18003_v28 = vunpack.c.3.s8 %v17981_v58 }
 0x23d   : > { %17995 = vst [vmem:[#allocation287_spill] sm:$0xff] %v12562_v37  ;;  %v17998_v56 = vmax.f32 %v17996_v4, %v17997_v39  ;;  %v17999_v13 = vld [vmem:[#allocation146_spill] sm:$0xff]  ;;  %v12578_v55 = vsel %vm12413_vm5, %v18001_v11, -1e+09  ;;  %v2414_v11 = vunpack.c.1.s8 %v12463_v38  ;;  %v2415_v58 = vunpack.c.1.s8 %v12466_v14  ;;  %v12606_v39 = vpop.f32.mrb[120].mxu1  ;;  %v18020_v19 = vld [vmem:[#allocation116_spill] sm:$0xff] }
 0x23e   : > { %v12573_v45 = vsel %vm12407_vm8, %v17999_v13, -1e+09  ;;  %18002 = vst [vmem:[#allocation151_spill] sm:$0xff] %v12578_v55  ;;  %vm12582_vm0 = vcmp.ne.s32.totalorder %v18003_v28, 0  ;;  %v18007_v63 = vld [vmem:[#allocation6_spill] sm:$0xff]  ;;  %v2412_v13 = vunpack.c.1.s8 %v12448_v48  ;;  %v18009_v28 = vld [vmem:[#allocation121_spill] sm:$0xff] }
 0x23f   : > { %v3616_v5 = vmax.f32 %v17998_v56, %v12537_v23  ;;  %18000 = vst [vmem:[#allocation146_spill] sm:$0xff] %v12573_v45  ;;  %v12589_v56 = vsel %vm12549_vm3, 16843009, %v17052_v9  ;;  %7336 = vmatpush1.bf16.msra.mxu0 %v18007_v63  ;;  %v12602_v23 = vmax.f32 %v3590_v49, %v18010_v59  ;;  %v2965_v63 = vunpack.c.1.s8 %v12531_v47  ;;  %18011 = vst [vmem:[#allocation6_spill] sm:$0xff] %v12606_v39  ;;  %v12618_v49 = vpop.f32.mrb[121].mxu1  ;;  %v18016_v59 = vld [vmem:[#allocation63_spill] sm:$0xff] }
 0x240   : > { %18006 = vst [vmem:[#allocation288_spill] sm:$0xff] %v12589_v56  ;;  %7337 = vmatprep.subr.bf16.mxu0 %v16689_v61  ;;  %v12611_v4 = vsel %vm12454_vm7, %v11524_v44, -1e+09  ;;  %vm12613_vm6 = vcmp.ne.s32.totalorder %v2964_v7, 0  ;;  %v2972_v29 = vunpack.c.0.s8 %v12589_v56  ;;  %v2613_v61 = vpack.c.b8 %v2612_v40, %v2611_v43  ;;  %18015 = vst [vmem:[#allocation290_spill] sm:$0xff] %v12618_v49  ;;  %v18017_v39 = vld [vmem:[#allocation110_spill] sm:$0xff] }
 0x241   : > { %18012 = vst [vmem:[#allocation289_spill] sm:$0xff] %v12611_v4  ;;  %v12621_v27 = vmax.f32 %v3599_v24, %v18016_v59  ;;  %v3617_v36 = vmax.f32 %v3616_v5, %v12573_v45  ;;  %v18018_v47 = vld [vmem:[#allocation112_spill] sm:$0xff]  ;;  %v18021_v7 = vunpack.c.2.s8 %v18020_v19  ;;  %v2973_v43 = vunpack.c.1.s8 %v12589_v56  ;;  %v18026_v24 = vld [vmem:[#allocation133_spill] sm:$0xff]  ;;  %v18047_v20 = vld [vmem:[#allocation66_spill] sm:$0xff] }
 0x242   : > { %v18019_v1 = vmax.f32 %v18017_v39, %v18018_v47  ;;  %v18024_v40 = vld [vmem:[#allocation8_spill] sm:$0xff]  ;;  %v12638_v59 = vmax.f32 %v3608_v51, %v18026_v24  ;;  %v18027_v5 = vld [vmem:[#allocation241_spill] sm:$0xff]  ;;  %vm12653_vm8 = vcmp.ne.s32.totalorder %v2965_v63, 0  ;;  %vm12676_vm12 = vcmp.ne.s32.totalorder %v2972_v29, 0  ;;  %v18050_v29 = vld [vmem:[#allocation10_spill] sm:$0xff] }
 0x243   : > { %vm12630_vm9 = vcmp.ne.s32.totalorder %v18021_v7, 0  ;;  %7339 = vmatpush1.bf16.msra.mxu0 %v18024_v40  ;;  %v18025_v49 = vld [vmem:[#allocation72_spill] sm:$0xff]  ;;  %v12643_v45 = vsel %vm12497_vm15, %v18027_v5, -1e+09  ;;  %v18029_v7 = vmov 0.0|0.0   ;;  %v18030_v47 = vld [vmem:[#allocation125_spill] sm:$0xff]  ;;  %vm12680_vm10 = vnez %v2613_v61 }
 0x244   : > { %v3625_v44 = vmax.f32 %v18019_v1, %v12578_v55  ;;  %7551 = vmatpush1.bf16.msra.mxu1 %v18025_v49  ;;  %18028 = vst [vmem:[#allocation116_spill] sm:$0xff] %v12643_v45  ;;  %v2617_v1 = vpack.c.b16 %v2413_v22, %v2412_v13  ;;  %v2618_v55 = vpack.c.b16 %v2415_v58, %v2414_v11  ;;  %v18031_v40 = vld [vmem:[#allocation114_spill] sm:$0xff]  ;;  %v12658_v13 = vpop.f32.mrb[122].mxu1  ;;  %v12663_v22 = vsel %vm12518_vm11, %v11532_v6, -1e+09  ;;  %v18052_v61 = vld [vmem:[#allocation129_spill] sm:$0xff] }
 0x245   : > { %7340 = vmatprep.subr.bf16.mxu0 %v18029_v7  ;;  %7536 = vmatprep.subr.bf16.mxu1 %v18029_v7  ;;  %v18032_v49 = vld [vmem:[#allocation118_spill] sm:$0xff]  ;;  %18036 = vst [vmem:[#allocation8_spill] sm:$0xff] %v12658_v13  ;;  %18037 = vst [vmem:[#allocation241_spill] sm:$0xff] %v12663_v22  ;;  %v12668_v11 = vsel %vm12524_vm13, %v11605_v12, -1e+09  ;;  %v12684_v6 = vpop.f32.mrb[123].mxu1  ;;  %v12687_v50 = vmax.f32 %v3617_v36, %v18047_v20 }
 0x246   : > { %v18033_v56 = vmax.f32 %v18031_v40, %v18032_v49  ;;  %18038 = vst [vmem:[#allocation291_spill] sm:$0xff] %v12668_v11  ;;  %18046 = vst [vmem:[#allocation292_spill] sm:$0xff] %v12684_v6  ;;  %v3626_v12 = vmax.f32 %v3625_v44, %v12643_v45  ;;  %vm3229_vm1 = vcmp.ne.s32.totalorder %v2973_v43, 0  ;;  %v18054_v36 = vld [vmem:[#allocation208_spill] sm:$0xff]  ;;  %v2619_v45 = vpack.c.b8 %v2618_v55, %v2617_v1  ;;  %v12723_v24 = vpop.f32.mrb[124].mxu1  ;;  %v18069_v54 = vld [vmem:[#allocation195_spill] sm:$0xff] }
 0x247   : > { %7342 = vmatpush1.bf16.msra.mxu0 %v18050_v29  ;;  %v12704_v44 = vsel %vm12653_vm8, %v18054_v36, -1e+09  ;;  %v18056_v43 = vld [vmem:[#allocation120_spill] sm:$0xff]  ;;  %v12721_v55 = vsel %vm12680_vm10, 16843009, %v17052_v9  ;;  %18062 = vst [vmem:[#allocation293_spill] sm:$0xff] %v12723_v24  ;;  %v2791_v5 = vunpack.c.3.s8 %v18069_v54  ;;  %v2420_v24 = vunpack.c.2.s8 %v12448_v48 }
 0x248   : > { %v3634_v51 = vmax.f32 %v18033_v56, %v12611_v4  ;;  %v18039_v56 = vunpack.c.3.s8 %v18020_v19  ;;  %v18048_v19 = vld [vmem:[#allocation207_spill] sm:$0xff]  ;;  %7552 = vmatpush1.bf16.msra.mxu1 %v18051_v26  ;;  %18055 = vst [vmem:[#allocation10_spill] sm:$0xff] %v12704_v44  ;;  %7343 = vmatprep.subr.bf16.mxu0 %v18029_v7  ;;  %v18059_v26 = vld [vmem:[#allocation102_spill] sm:$0xff]  ;;  %v12728_v1 = vsel %vm12582_vm0, %v11607_v17, -1e+09  ;;  %v12735_v63 = vpop.f32.mrb[125].mxu1  ;;  %v2790_v17 = vunpack.c.2.s8 %v18069_v54 }
 0x249   : > { %v18053_v4 = vld [vmem:[#allocation135_spill] sm:$0xff]  ;;  %7537 = vmatprep.subr.bf16.mxu1 %v18029_v7  ;;  %v12716_v49 = vsel %vm12676_vm12, %v18059_v26, -1e+09  ;;  %18061 = vst [vmem:[#allocation102_spill] sm:$0xff] %v12721_v55  ;;  %18063 = vst [vmem:[#allocation294_spill] sm:$0xff] %v12728_v1  ;;  %v18068_v20 = vld [vmem:[#allocation148_spill] sm:$0xff]  ;;  %v2981_v26 = vunpack.c.1.s8 %v12721_v55  ;;  %vm12748_vm14 = vnez %v2619_v45 }
 0x24a   : > { %vm12672_vm5 = vcmp.ne.s32.totalorder %v18039_v56, 0  ;;  %v12693_v56 = vsel %vm12613_vm6, %v18048_v19, -1e+09  ;;  %v3635_v37 = vmax.f32 %v3634_v51, %v12663_v22  ;;  %v18057_v19 = vld [vmem:[#allocation122_spill] sm:$0xff]  ;;  %18060 = vst [vmem:[#allocation208_spill] sm:$0xff] %v12716_v49  ;;  %v18064_v51 = vld [vmem:[#allocation211_spill] sm:$0xff] }
 0x24b   : > { %18049 = vst [vmem:[#allocation207_spill] sm:$0xff] %v12693_v56  ;;  %v18058_v29 = vmax.f32 %v18056_v43, %v18057_v19  ;;  %v12731_v36 = vsel %vm3229_vm1, %v18064_v51, -1e+09  ;;  %18066 = vst [vmem:[#allocation295_spill] sm:$0xff] %v12735_v63  ;;  %v18067_v22 = vld [vmem:[#allocation144_spill] sm:$0xff]  ;;  %v12767_v54 = vpop.f32.mrb[126].mxu1  ;;  %v2428_v63 = vunpack.c.3.s8 %v12448_v48 }
 0x24c   : > { %18065 = vst [vmem:[#allocation211_spill] sm:$0xff] %v12731_v36  ;;  %v18070_v43 = vld [vmem:[#allocation12_spill] sm:$0xff]  ;;  %18079 = vst [vmem:[#allocation195_spill] sm:$0xff] %v12767_v54  ;;  %v12784_v54 = vsel %vm12748_vm14, 16843009, %v17052_v9  ;;  %vm12786_vm7 = vcmp.ne.s32.totalorder %v2790_v17, 0 }
 0x24d   : > { %v3643_v39 = vmax.f32 %v18058_v29, %v12668_v11  ;;  %v12740_v11 = vmax.f32 %v3626_v12, %v18068_v20  ;;  %7345 = vmatpush1.bf16.msra.mxu0 %v18070_v43  ;;  %v18071_v51 = vld [vmem:[#allocation76_spill] sm:$0xff]  ;;  %v2980_v29 = vunpack.c.0.s8 %v12721_v55  ;;  %v18074_v12 = vld [vmem:[#allocation67_spill] sm:$0xff]  ;;  %v18087_v55 = vld [vmem:[#allocation17_spill] sm:$0xff]  ;;  %vm12797_vm15 = vcmp.ne.s32.totalorder %v2981_v26, 0 }
 0x24e   : > { %7553 = vmatpush1.bf16.msra.mxu1 %v18071_v51  ;;  %7346 = vmatprep.subr.bf16.mxu0 %v18029_v7  ;;  %v12756_v19 = vmax.f32 %v3635_v37, %v18074_v12  ;;  %v18075_v51 = vld [vmem:[#allocation119_spill] sm:$0xff]  ;;  %v18080_v6 = vld [vmem:[#allocation248_spill] sm:$0xff]  ;;  %v2421_v37 = vunpack.c.2.s8 %v12460_v57  ;;  %v18083_v12 = vld [vmem:[#allocation145_spill] sm:$0xff]  ;;  %vm12801_vm11 = vcmp.ne.s32.totalorder %v2791_v5, 0 }
 0x24f   : > { %7538 = vmatprep.subr.bf16.mxu1 %v18029_v7  ;;  %v3644_v43 = vmax.f32 %v3643_v39, %v12728_v1  ;;  %v18076_v20 = vunpack.c.2.s8 %v18075_v51  ;;  %v12772_v13 = vsel %vm12630_vm9, %v18080_v6, -1e+09  ;;  %v2422_v39 = vunpack.c.2.s8 %v12463_v38  ;;  %v12777_v1 = vpop.f32.mrb[127].mxu1  ;;  %v18086_v6 = vld [vmem:[#allocation196_spill] sm:$0xff]  ;;  %v18088_v49 = vld [vmem:[#allocation78_spill] sm:$0xff] }
 0x250   : > { %18081 = vst [vmem:[#allocation12_spill] sm:$0xff] %v12772_v13  ;;  %18082 = vst [vmem:[#allocation119_spill] sm:$0xff] %v12777_v1  ;;  %v2798_v36 = vunpack.c.2.s8 %v18086_v6  ;;  %vm12793_vm4 = vcmp.ne.s32.totalorder %v2980_v29, 0  ;;  %v2799_v17 = vunpack.c.3.s8 %v18086_v6  ;;  %v18097_v44 = vld [vmem:[#allocation126_spill] sm:$0xff]  ;;  %v12822_v6 = vsel %vm12672_vm5, %v18100_v2, -1e+09 }
 0x251   : > { %vm12761_vm2 = vcmp.ne.s32.totalorder %v18076_v20, 0  ;;  %v2423_v20 = vunpack.c.2.s8 %v12466_v14  ;;  %7348 = vmatpush1.bf16.msra.mxu0 %v18087_v55  ;;  %v18095_v55 = vld [vmem:[#allocation153_spill] sm:$0xff]  ;;  %v12817_v5 = vmax.f32 %v3644_v43, %v18099_v42  ;;  %18101 = vst [vmem:[#allocation248_spill] sm:$0xff] %v12822_v6  ;;  %v1889_v34 = vpop.f32.mrb[128].mxu1  ;;  %v18102_v0 = vunpack.c.3.s8 %v18075_v51  ;;  %v18105_v29 = vld [vmem:[#allocation131_spill] sm:$0xff] }
 0x252   : > { %7554 = vmatpush1.bf16.msra.mxu1 %v18088_v49  ;;  %7349 = vmatprep.subr.bf16.mxu0 %v18029_v7  ;;  %v18096_v49 = vld [vmem:[#allocation124_spill] sm:$0xff]  ;;  %v18106_v25 = vunpack.c.2.s8 %v18105_v29  ;;  %v2988_v43 = vunpack.c.0.s8 %v12784_v54  ;;  %v2623_v42 = vpack.c.b16 %v2421_v37, %v2420_v24  ;;  %v12839_v2 = vsel %vm12786_vm7, %v1889_v34, -1e+09  ;;  %v1891_v58 = vpop.f32.mrb[129].mxu1 }
 0x253   : > { %7539 = vmatprep.subr.bf16.mxu1 %v18029_v7  ;;  %v18098_v26 = vmax.f32 %v18096_v49, %v18097_v44  ;;  %vm12826_vm13 = vcmp.ne.s32.totalorder %v18102_v0, 0  ;;  %18109 = vst [vmem:[#allocation196_spill] sm:$0xff] %v12839_v2  ;;  %v18110_v0 = vmax.f32 %v12306_v8, %v17913_v60  ;;  %vm12849_vm0 = vcmp.ne.s32.totalorder %v2798_v36, 0  ;;  %v18114_v24 = vld [vmem:[#allocation92_spill] sm:$0xff]  ;;  %v18119_v8 = vld [vmem:[#allocation215_spill] sm:$0xff]  ;;  %v1895_v45 = vpop.f32.mrb[130].mxu1 }
 0x254   : > { %vm12832_vm3 = vcmp.ne.s32.totalorder %v18106_v25, 0  ;;  %v12847_v25 = vsel %vm12801_vm11, %v1891_v58, -1e+09  ;;  %v2806_v37 = vunpack.c.2.s8 %v18114_v24  ;;  %v18116_v34 = vld [vmem:[#allocation80_spill] sm:$0xff]  ;;  %v12864_v40 = vsel %vm12797_vm15, %v18119_v8, -1e+09 }
 0x255   : > { %v12814_v56 = vmax.f32 %v18098_v26, %v12772_v13  ;;  %v2624_v13 = vpack.c.b16 %v2423_v20, %v2422_v39  ;;  %v3557_v51 = vmax.f32 %v18110_v0, %v12839_v2  ;;  %18111 = vst [vmem:[#allocation17_spill] sm:$0xff] %v12847_v25  ;;  %v18115_v39 = vld [vmem:[#allocation21_spill] sm:$0xff]  ;;  %18120 = vst [vmem:[#allocation131_spill] sm:$0xff] %v12864_v40  ;;  %vm12866_vm6 = vcmp.ne.s32.totalorder %v2799_v17, 0 }
 0x256   : > { %7351 = vmatpush1.bf16.msra.mxu0 %v18115_v39  ;;  %7555 = vmatpush1.bf16.msra.mxu1 %v18116_v34  ;;  %v18117_v20 = vld [vmem:[#allocation105_spill] sm:$0xff]  ;;  %v2807_v58 = vunpack.c.3.s8 %v18114_v24  ;;  %v2989_v0 = vunpack.c.1.s8 %v12784_v54  ;;  %v18124_v34 = vunpack.c.3.s8 %v18105_v29  ;;  %vm12886_vm8 = vcmp.ne.s32.totalorder %v2988_v43, 0 }
 0x257   : > { %v12859_v41 = vsel %vm12793_vm4, %v18117_v20, -1e+09  ;;  %7352 = vmatprep.subr.bf16.mxu0 %v18029_v7  ;;  %7540 = vmatprep.subr.bf16.mxu1 %v18029_v7  ;;  %v3653_v1 = vmax.f32 %v12814_v56, %v12822_v6  ;;  %v3558_v20 = vmax.f32 %v3557_v51, %v12847_v25  ;;  %v18123_v17 = vld [vmem:[#allocation69_spill] sm:$0xff]  ;;  %v2625_v56 = vpack.c.b8 %v2624_v13, %v2623_v42  ;;  %v1897_v6 = vpop.f32.mrb[131].mxu1  ;;  %v18130_v51 = vld [vmem:[#allocation132_spill] sm:$0xff]  ;;  %v18138_v13 = vld [vmem:[#allocation94_spill] sm:$0xff] }
 0x258   : > { %18118 = vst [vmem:[#allocation249_spill] sm:$0xff] %v12859_v41  ;;  %vm12882_vm9 = vcmp.ne.s32.totalorder %v18124_v34, 0  ;;  %v12892_v39 = vsel %vm12849_vm0, %v1895_v45, -1e+09  ;;  %v18131_v25 = vunpack.c.2.s8 %v18130_v51  ;;  %v18134_v29 = vmax.f32 %v12368_v16, %v17937_v18  ;;  %v18140_v45 = vld [vmem:[#allocation251_spill] sm:$0xff]  ;;  %v18142_v16 = vld [vmem:[#allocation181_spill] sm:$0xff] }
 0x259   : > { %18129 = vst [vmem:[#allocation92_spill] sm:$0xff] %v12892_v39  ;;  %v12906_v34 = vsel %vm12866_vm6, %v1897_v6, -1e+09  ;;  %3559 = vmax.xlane.f32.xlu0 %v3558_v20  ;;  %vm12908_vm12 = vcmp.ne.s32.totalorder %v2806_v37, 0  ;;  %v2814_v44 = vunpack.c.2.s8 %v18138_v13  ;;  %v12917_v2 = vsel %vm12761_vm2, %v18140_v45, -1e+09 }
 0x25a   : > { %vm12896_vm5 = vcmp.ne.s32.totalorder %v18131_v25, 0  ;;  %v3566_v43 = vmax.f32 %v18134_v29, %v12892_v39  ;;  %18135 = vst [vmem:[#allocation21_spill] sm:$0xff] %v12906_v34  ;;  %v18139_v25 = vld [vmem:[#allocation25_spill] sm:$0xff]  ;;  %18141 = vst [vmem:[#allocation105_spill] sm:$0xff] %v12917_v2  ;;  %vm12920_vm10 = vcmp.ne.s32.totalorder %v2807_v58, 0  ;;  %v2815_v6 = vunpack.c.3.s8 %v18138_v13  ;;  %v18145_v37 = vld [vmem:[#allocation82_spill] sm:$0xff] }
 0x25b   : > { %7354 = vmatpush1.bf16.msra.mxu0 %v18139_v25  ;;  %7556 = vmatpush1.bf16.msra.mxu1 %v18145_v37  ;;  %v18146_v20 = vld [vmem:[#allocation111_spill] sm:$0xff]  ;;  %v2429_v45 = vunpack.c.3.s8 %v12460_v57  ;;  %v1901_v29 = vpop.f32.mrb[132].mxu1  ;;  %vm12936_vm1 = vnez %v2625_v56  ;;  %v2430_v37 = vunpack.c.3.s8 %v12463_v38  ;;  %v2431_v39 = vunpack.c.3.s8 %v12466_v14  ;;  %v18155_v38 = vld [vmem:[#allocation210_spill] sm:$0xff]  ;;  %v18156_v42 = vld [vmem:[#allocation29_spill] sm:$0xff] }
 0x25c   : > { %7355 = vmatprep.subr.bf16.mxu0 %v18029_v7  ;;  %v12930_v25 = vsel %vm12886_vm8, %v18146_v20, -1e+09  ;;  %v3567_v58 = vmax.f32 %v3566_v43, %v12906_v34  ;;  %7541 = vmatprep.subr.bf16.mxu1 %v18029_v7  ;;  %v12944_v49 = vsel %vm12908_vm12, %v1901_v29, -1e+09  ;;  %v1903_v48 = vpop.f32.mrb[133].mxu1  ;;  %v18151_v57 = vmax.f32 %v12436_v21, %v17975_v62  ;;  %v18157_v29 = vld [vmem:[#allocation127_spill] sm:$0xff] }
 0x25d   : > { %18147 = vst [vmem:[#allocation215_spill] sm:$0xff] %v12930_v25  ;;  %18150 = vst [vmem:[#allocation132_spill] sm:$0xff] %v12944_v49  ;;  %v12952_v56 = vsel %vm12920_vm10, %v1903_v48, -1e+09  ;;  %vm12954_vm14 = vcmp.ne.s32.totalorder %v2814_v44, 0  ;;  %v2822_v14 = vunpack.c.2.s8 %v18155_v38  ;;  %v18158_v34 = vld [vmem:[#allocation128_spill] sm:$0xff]  ;;  %v2823_v44 = vunpack.c.3.s8 %v18155_v38 }
 0x25e   : > { %v3575_v43 = vmax.f32 %v18151_v57, %v12944_v49  ;;  %18152 = vst [vmem:[#allocation94_spill] sm:$0xff] %v12952_v56  ;;  %3568 = vmax.xlane.f32.xlu0 %v3567_v58  ;;  %v18159_v18 = vmax.f32 %v18157_v29, %v18158_v34  ;;  %vm12964_vm2 = vcmp.ne.s32.totalorder %v2989_v0, 0  ;;  %vm12968_vm7 = vcmp.ne.s32.totalorder %v2815_v6, 0  ;;  %v18164_v58 = vld [vmem:[#allocation84_spill] sm:$0xff]  ;;  %v18168_v0 = vld [vmem:[#allocation255_spill] sm:$0xff]  ;;  %v18238_v38 = vld [vmem:[#allocation113_spill] sm:$0xff] }
 0x25f   : > { %7357 = vmatpush1.bf16.msra.mxu0 %v18156_v42  ;;  %7557 = vmatpush1.bf16.msra.mxu1 %v18164_v58  ;;  %v18165_v48 = vld [vmem:[#allocation156_spill] sm:$0xff]  ;;  %v18166_v42 = vld [vmem:[#allocation253_spill] sm:$0xff]  ;;  %v12986_v6 = vsel %vm12832_vm3, %v18168_v0, -1e+09  ;;  %v1907_v58 = vpop.f32.mrb[134].mxu1  ;;  %v2630_v26 = vpack.c.b16 %v2431_v39, %v2430_v37  ;;  %vm13013_vm15 = vcmp.ne.s32.totalorder %v2822_v14, 0  ;;  %v18197_v8 = vmax.f32 %v12602_v23, %v18030_v47 }
 0x260   : > { %v3661_v60 = vmax.f32 %v18159_v18, %v12917_v2  ;;  %7358 = vmatprep.subr.bf16.mxu0 %v18029_v7  ;;  %v12976_v57 = vmax.f32 %v3653_v1, %v18165_v48  ;;  %v12981_v18 = vsel %vm12826_vm13, %v18166_v42, -1e+09  ;;  %18169 = vst [vmem:[#allocation251_spill] sm:$0xff] %v12986_v6  ;;  %v18170_v2 = vunpack.c.3.s8 %v18130_v51  ;;  %7542 = vmatprep.subr.bf16.mxu1 %v18029_v7  ;;  %v18178_v39 = vld [vmem:[#allocation214_spill] sm:$0xff]  ;;  %v18181_v20 = vld [vmem:[#allocation136_spill] sm:$0xff]  ;;  %v18202_v13 = vld [vmem:[#allocation7_spill] sm:$0xff] }
 0x261   : > { %18167 = vst [vmem:[#allocation25_spill] sm:$0xff] %v12981_v18  ;;  %v3576_v1 = vmax.f32 %v3575_v43, %v12952_v56  ;;  %v12999_v15 = vsel %vm12936_vm1, 16843009, %v17052_v9  ;;  %v2629_v42 = vpack.c.b16 %v2429_v45, %v2428_v63  ;;  %v13003_v0 = vsel %vm12954_vm14, %v1907_v58, -1e+09  ;;  %v18179_v63 = vld [vmem:[#allocation5_spill] sm:$0xff] }
 0x262   : > { %vm12990_vm4 = vcmp.ne.s32.totalorder %v18170_v2, 0  ;;  %18173 = vst [vmem:[#allocation181_spill] sm:$0xff] %v13003_v0  ;;  %v1909_v2 = vpop.f32.mrb[135].mxu1  ;;  %v18174_v51 = vmax.f32 %v12554_v35, %v18009_v28  ;;  %v2830_v37 = vunpack.c.2.s8 %v18178_v39  ;;  %v18180_v45 = vld [vmem:[#allocation134_spill] sm:$0xff]  ;;  %vm13028_vm11 = vcmp.ne.s32.totalorder %v2823_v44, 0  ;;  %v570_v47 = vld [vmem:[%s9470_s8 + $0x1f8] sm:$0xff] }
 0x263   : > { %v13011_v43 = vsel %vm12968_vm7, %v1909_v2, -1e+09  ;;  %3577 = vmax.xlane.f32.xlu1 %v3576_v1  ;;  %7360 = vmatpush1.bf16.msra.mxu0 %v18179_v63  ;;  %v18182_v58 = vmax.f32 %v18180_v45, %v18181_v20  ;;  %v18183_v35 = vld [vmem:[#allocation218_spill] sm:$0xff]  ;;  %v2831_v14 = vunpack.c.3.s8 %v18178_v39  ;;  %v18187_v2 = vld [vmem:[#allocation53_spill] sm:$0xff]  ;;  %v18188_v63 = vld [vmem:[#allocation256_spill] sm:$0xff]  ;;  %v2996_v21 = vunpack.c.0.s8 %v12999_v15 }
 0x264   : > { %v3584_v48 = vmax.f32 %v18174_v51, %v13003_v0  ;;  %18175 = vst [vmem:[#allocation111_spill] sm:$0xff] %v13011_v43  ;;  %v13026_v36 = vsel %vm12964_vm2, %v18183_v35, -1e+09  ;;  %7361 = vmatprep.subr.bf16.mxu0 %v18029_v7  ;;  %7558 = vmatpush1.bf16.msra.mxu1 %v18187_v2  ;;  %v3662_v51 = vmax.f32 %v3661_v60, %v12981_v18  ;;  %v1913_v35 = vpop.f32.mrb[136].mxu1  ;;  %v18192_v2 = vld [vmem:[#allocation137_spill] sm:$0xff]  ;;  %v2997_v24 = vunpack.c.1.s8 %v12999_v15  ;;  %v18250_v0 = vld [vmem:[#allocation11_spill] sm:$0xff] }
 0x265   : > { %v3670_v34 = vmax.f32 %v18182_v58, %v12986_v6  ;;  %18184 = vst [vmem:[#allocation210_spill] sm:$0xff] %v13026_v36  ;;  %v13039_v58 = vsel %vm12882_vm9, %v18188_v63, -1e+09  ;;  %7543 = vmatprep.subr.bf16.mxu1 %v18029_v7  ;;  %v18190_v6 = vld [vmem:[#allocation257_spill] sm:$0xff]  ;;  %v18193_v20 = vunpack.c.2.s8 %v18192_v2  ;;  %v2631_v63 = vpack.c.b8 %v2630_v26, %v2629_v42  ;;  %v18251_v56 = vld [vmem:[#allocation162_spill] sm:$0xff]  ;;  %v18255_v23 = vld [vmem:[#allocation260_spill] sm:$0xff] }
 0x266   : > { %18189 = vst [vmem:[#allocation29_spill] sm:$0xff] %v13039_v58  ;;  %v3585_v44 = vmax.f32 %v3584_v48, %v13011_v43  ;;  %v13047_v39 = vsel %vm12896_vm5, %v18190_v6, -1e+09  ;;  %v13058_v18 = vsel %vm13013_vm15, %v1913_v35, -1e+09  ;;  %v1915_v48 = vpop.f32.mrb[137].mxu1 }
 0x267   : > { %18191 = vst [vmem:[#allocation253_spill] sm:$0xff] %v13047_v39  ;;  %vm13051_vm13 = vcmp.ne.s32.totalorder %v18193_v20, 0  ;;  %18196 = vst [vmem:[#allocation255_spill] sm:$0xff] %v13058_v18  ;;  %v3593_v6 = vmax.f32 %v18197_v8, %v13058_v18  ;;  %v13066_v45 = vsel %vm13028_vm11, %v1915_v48, -1e+09  ;;  %vm13068_vm3 = vcmp.ne.s32.totalorder %v2830_v37, 0  ;;  %7363 = vmatpush1.bf16.msra.mxu0 %v18202_v13 }
 0x268   : > { %18198 = vst [vmem:[#allocation214_spill] sm:$0xff] %v13066_v45  ;;  %3586 = vmax.xlane.f32.xlu1 %v3585_v44  ;;  %v18201_v42 = vld [vmem:[#allocation221_spill] sm:$0xff]  ;;  %v3671_v43 = vmax.f32 %v3670_v34, %v13039_v58  ;;  %vm13077_vm0 = vcmp.ne.s32.totalorder %v2831_v14, 0  ;;  %7364 = vmatprep.subr.bf16.mxu0 %v18029_v7  ;;  %v18206_v37 = vld [vmem:[#allocation71_spill] sm:$0xff]  ;;  %v18207_v44 = vld [vmem:[#allocation158_spill] sm:$0xff]  ;;  %v18208_v8 = vunpack.c.3.s8 %v18192_v2  ;;  %vm13093_vm9 = vcmp.ne.s32.totalorder %v2996_v21, 0 }
 0x269   : > { %v2838_v26 = vunpack.c.2.s8 %v18201_v42  ;;  %v18203_v35 = vld [vmem:[#allocation157_spill] sm:$0xff]  ;;  %v2839_v1 = vunpack.c.3.s8 %v18201_v42  ;;  %7559 = vmatpush1.bf16.msra.mxu1 %v18206_v37  ;;  %v13085_v48 = vmax.f32 %v3662_v51, %v18207_v44  ;;  %v1919_v42 = vpop.f32.mrb[138].mxu1  ;;  %v3594_v29 = vmax.f32 %v3593_v6, %v13066_v45  ;;  %v18214_v37 = vld [vmem:[#allocation143_spill] sm:$0xff]  ;;  %v18228_v18 = vld [vmem:[#allocation258_spill] sm:$0xff] }
 0x26a   : > { %vm13089_vm6 = vcmp.ne.s32.totalorder %v18208_v8, 0  ;;  %7544 = vmatprep.subr.bf16.mxu1 %v18029_v7  ;;  %v18213_v51 = vld [vmem:[#allocation141_spill] sm:$0xff]  ;;  %vm13106_vm8 = vcmp.ne.s32.totalorder %v2997_v24, 0  ;;  %vm13110_vm5 = vnez %v2631_v63  ;;  %v13116_v14 = vsel %vm13068_vm3, %v1919_v42, -1e+09  ;;  %v1921_v6 = vpop.f32.mrb[139].mxu1 }
 0x26b   : > { %v18215_v58 = vmax.f32 %v18213_v51, %v18214_v37  ;;  %18220 = vst [vmem:[#allocation5_spill] sm:$0xff] %v13116_v14  ;;  %v567_v44 = vld [vmem:[%s9470_s8 + $0x1e0] sm:$0xff]  ;;  %v18221_v37 = vmax.f32 %v12621_v27, %v18052_v61  ;;  %v13125_v24 = vsel %vm13077_vm0, %v1921_v6, -1e+09  ;;  %3595 = vmax.xlane.f32.xlu0 %v3594_v29  ;;  %vm13127_vm12 = vcmp.ne.s32.totalorder %v2838_v26, 0  ;;  %v18227_v51 = vld [vmem:[#allocation160_spill] sm:$0xff] }
 0x26c   : > { %18222 = vst [vmem:[#allocation218_spill] sm:$0xff] %v13125_v24  ;;  %v18226_v42 = vld [vmem:[#allocation9_spill] sm:$0xff]  ;;  %v13134_v45 = vmax.f32 %v3671_v43, %v18227_v51  ;;  %v13139_v27 = vsel %vm12990_vm4, %v18228_v18, -1e+09  ;;  %vm13141_vm10 = vcmp.ne.s32.totalorder %v2839_v1, 0  ;;  %v18234_v6 = vld [vmem:[#allocation138_spill] sm:$0xff]  ;;  %vm2140_vm14 = vnez %v567_v44 }
 0x26d   : > { %v13104_v2 = vmax.f32 %v18215_v58, %v13047_v39  ;;  %v3602_v58 = vmax.f32 %v18221_v37, %v13116_v14  ;;  %v18225_v39 = vld [vmem:[#allocation226_spill] sm:$0xff]  ;;  %7366 = vmatpush1.bf16.msra.mxu0 %v18226_v42  ;;  %18229 = vst [vmem:[#allocation256_spill] sm:$0xff] %v13139_v27  ;;  %v18232_v26 = vld [vmem:[#allocation73_spill] sm:$0xff]  ;;  %v18233_v37 = vld [vmem:[#allocation159_spill] sm:$0xff]  ;;  %v18235_v42 = vunpack.c.2.s8 %v18234_v6  ;;  %v13159_v1 = vsel %vm13093_vm9, %v18238_v38, -1e+09 }
 0x26e   : > { %v2846_v20 = vunpack.c.2.s8 %v18225_v39  ;;  %v2847_v29 = vunpack.c.3.s8 %v18225_v39  ;;  %7367 = vmatprep.subr.bf16.mxu0 %v18029_v7  ;;  %7560 = vmatpush1.bf16.msra.mxu1 %v18232_v26  ;;  %18239 = vst [vmem:[#allocation257_spill] sm:$0xff] %v13159_v1  ;;  %v18240_v39 = vld [vmem:[#allocation222_spill] sm:$0xff]  ;;  %v1925_v26 = vpop.f32.mrb[140].mxu1  ;;  %v18249_v63 = vld [vmem:[#allocation64_spill] sm:$0xff]  ;;  %vm2143_vm3 = vnez %v570_v47  ;;  %v18266_v61 = vld [vmem:[#allocation13_spill] sm:$0xff] }
 0x26f   : > { %vm13152_vm1 = vcmp.ne.s32.totalorder %v18235_v42, 0  ;;  %v13164_v51 = vsel %vm13106_vm8, %v18240_v39, -1e+09  ;;  %v3603_v14 = vmax.f32 %v3602_v58, %v13125_v24  ;;  %7545 = vmatprep.subr.bf16.mxu1 %v18029_v7  ;;  %v13171_v42 = vsel %vm13110_vm5, 16843009, %v17052_v9  ;;  %v18243_v43 = vld [vmem:[#allocation182_spill] sm:$0xff] }
 0x270   : > { %18241 = vst [vmem:[#allocation137_spill] sm:$0xff] %v13164_v51  ;;  %18242 = vst [vmem:[#allocation221_spill] sm:$0xff] %v13171_v42  ;;  %v568_v34 = vld [vmem:[%s9470_s8 + $0x1e8] sm:$0xff]  ;;  %v13177_v38 = vsel %vm13127_vm12, %v1925_v26, -1e+09  ;;  %v1927_v8 = vpop.f32.mrb[141].mxu1  ;;  %v18245_v58 = vmax.f32 %v12638_v59, %v18053_v4  ;;  %v2854_v26 = vunpack.c.2.s8 %v18249_v63  ;;  %v3680_v28 = vmax.f32 %v13104_v2, %v13139_v27 }
 0x271   : > { %18244 = vst [vmem:[#allocation7_spill] sm:$0xff] %v13177_v38  ;;  %v569_v39 = vld [vmem:[%s9470_s8 + $0x1f0] sm:$0xff]  ;;  %v13187_v21 = vsel %vm13141_vm10, %v1927_v8, -1e+09  ;;  %3604 = vmax.xlane.f32.xlu1 %v3603_v14  ;;  %vm13189_vm2 = vcmp.ne.s32.totalorder %v2846_v20, 0  ;;  %7369 = vmatpush1.bf16.msra.mxu0 %v18250_v0  ;;  %vm13199_vm7 = vcmp.ne.s32.totalorder %v2847_v29, 0  ;;  %v2855_v14 = vunpack.c.3.s8 %v18249_v63 }
 0x272   : > { %v3611_v24 = vmax.f32 %v18245_v58, %v13177_v38  ;;  %18246 = vst [vmem:[#allocation226_spill] sm:$0xff] %v13187_v21  ;;  %7370 = vmatprep.subr.bf16.mxu0 %v18029_v7  ;;  %v18254_v20 = vld [vmem:[#allocation75_spill] sm:$0xff]  ;;  %v13209_v0 = vsel %vm13051_vm13, %v18255_v23, -1e+09  ;;  %v18257_v2 = vunpack.c.3.s8 %v18234_v6  ;;  %v3004_v29 = vunpack.c.0.s8 %v13171_v42  ;;  %v1931_v59 = vpop.f32.mrb[142].mxu1  ;;  %v18286_v47 = vld [vmem:[#allocation240_spill] sm:$0xff] }
 0x273   : > { %7561 = vmatpush1.bf16.msra.mxu1 %v18254_v20  ;;  %18256 = vst [vmem:[#allocation9_spill] sm:$0xff] %v13209_v0  ;;  %vm2141_vm15 = vnez %v568_v34  ;;  %v3005_v20 = vunpack.c.1.s8 %v13171_v42  ;;  %vm2142_vm11 = vnez %v569_v39  ;;  %v13223_v60 = vsel %vm13189_vm2, %v1931_v59, -1e+09  ;;  %v1933_v6 = vpop.f32.mrb[143].mxu1  ;;  %v18267_v59 = vld [vmem:[#allocation261_spill] sm:$0xff]  ;;  %s8391_s8 = scalar_lea.vmem %s8390_s30, 8192 }
 0x274   : > { %vm13213_vm4 = vcmp.ne.s32.totalorder %v18257_v2, 0  ;;  %v3612_v63 = vmax.f32 %v3611_v24, %v13187_v21  ;;  %7546 = vmatprep.subr.bf16.mxu1 %v18029_v7  ;;  %18260 = vst [vmem:[#allocation258_spill] sm:$0xff] %v13223_v60  ;;  %v18261_v23 = vmax.f32 %v12687_v50, %v18067_v22  ;;  %v13231_v27 = vsel %vm13199_vm7, %v1933_v6, -1e+09  ;;  %v18265_v21 = vld [vmem:[#allocation237_spill] sm:$0xff]  ;;  %v18272_v6 = vld [vmem:[#allocation140_spill] sm:$0xff]  ;;  %p8393_p6 = scmp.lt.s32.totalorder %s8391_s8, %s8385_s17 }
 0x275   : > { %18262 = vst [vmem:[#allocation138_spill] sm:$0xff] %v13231_v27  ;;  %vm13233_vm13 = vcmp.ne.s32.totalorder %v2854_v26, 0  ;;  %v2862_v38 = vunpack.c.2.s8 %v18265_v21  ;;  %7372 = vmatpush1.bf16.msra.mxu0 %v18266_v61  ;;  %v13242_v4 = vsel %vm13089_vm6, %v18267_v59, -1e+09  ;;  %v13246_v50 = vsel %vm2140_vm14, 16843009, %v17052_v9 }
 0x276   : > { %v3620_v2 = vmax.f32 %v18261_v23, %v13223_v60  ;;  %3613 = vmax.xlane.f32.xlu0 %v3612_v63  ;;  %18268 = vst [vmem:[#allocation113_spill] sm:$0xff] %v13242_v4  ;;  %vm13248_vm0 = vcmp.ne.s32.totalorder %v2855_v14, 0  ;;  %v2863_v26 = vunpack.c.3.s8 %v18265_v21  ;;  %7373 = vmatprep.subr.bf16.mxu0 %v18029_v7  ;;  %v18271_v63 = vld [vmem:[#allocation77_spill] sm:$0xff]  ;;  %v18273_v23 = vld [vmem:[#allocation142_spill] sm:$0xff]  ;;  %v13263_v44 = vsel %vm2141_vm15, 16843009, %v17052_v9  ;;  %p8394_p7 = por %p8393_p6, %p8392_p5 }
 0x277   : > { %7562 = vmatpush1.bf16.msra.mxu1 %v18271_v63  ;;  %v18274_v13 = vmax.f32 %v18272_v6, %v18273_v23  ;;  %v13267_v14 = vsel %vm2142_vm11, 16843009, %v17052_v9  ;;  %v1937_v59 = vpop.f32.mrb[144].mxu1  ;;  %v18275_v63 = vld [vmem:[#allocation165_spill] sm:$0xff]  ;;  %v18276_v23 = vunpack.c.2.s8 %v17534_v31  ;;  %vm13280_vm9 = vcmp.ne.s32.totalorder %v3004_v29, 0  ;;  %v18287_v24 = vld [vmem:[#allocation18_spill] sm:$0xff] }
 0x278   : > { %v3621_v21 = vmax.f32 %v3620_v2, %v13231_v27  ;;  %7547 = vmatprep.subr.bf16.mxu1 %v18029_v7  ;;  %v13272_v60 = vmax.f32 %v3680_v28, %v18275_v63  ;;  %v13286_v39 = vsel %vm2143_vm3, 16843009, %v17052_v9  ;;  %v13290_v2 = vsel %vm13233_vm13, %v1937_v59, -1e+09  ;;  %v1939_v28 = vpop.f32.mrb[145].mxu1  ;;  %v18288_v59 = vld [vmem:[#allocation262_spill] sm:$0xff]  ;;  %p8395_p9 = pnand %p8394_p7, %p8388_p4 }
 0x279   : > { %v13259_v61 = vmax.f32 %v18274_v13, %v13209_v0  ;;  %vm13276_vm6 = vcmp.ne.s32.totalorder %v18276_v23, 0  ;;  %18281 = vst [vmem:[#allocation222_spill] sm:$0xff] %v13290_v2  ;;  %v18282_v23 = vmax.f32 %v12740_v11, %v18083_v12  ;;  %v13298_v29 = vsel %vm13248_vm0, %v1939_v28, -1e+09  ;;  %7375 = vmatpush1.bf16.msra.mxu0 %v18287_v24  ;;  %v1943_v24 = vpop.f32.mrb[146].mxu1  ;;  %v18293_v12 = vld [vmem:[#allocation175_spill] sm:$0xff] }
 0x27a   : > { %18283 = vst [vmem:[#allocation182_spill] sm:$0xff] %v13298_v29  ;;  %3622 = vmax.xlane.f32.xlu1 %v3621_v21  ;;  %vm13300_vm8 = vcmp.ne.s32.totalorder %v2862_v38, 0  ;;  %v2870_v27 = vunpack.c.2.s8 %v18286_v47  ;;  %v13309_v6 = vsel %vm13152_vm1, %v18288_v59, -1e+09  ;;  %v2436_v11 = vunpack.c.0.s8 %v13246_v50  ;;  %7376 = vmatprep.subr.bf16.mxu0 %v18029_v7  ;;  %v18292_v21 = vld [vmem:[#allocation79_spill] sm:$0xff]  ;;  %v1945_v62 = vpop.f32.mrb[147].mxu1 }
 0x27b   : > { %v3629_v63 = vmax.f32 %v18282_v23, %v13290_v2  ;;  %18289 = vst [vmem:[#allocation64_spill] sm:$0xff] %v13309_v6  ;;  %vm13312_vm5 = vcmp.ne.s32.totalorder %v2863_v26, 0  ;;  %v2871_v38 = vunpack.c.3.s8 %v18286_v47  ;;  %7563 = vmatpush1.bf16.msra.mxu1 %v18292_v21  ;;  %v2437_v28 = vunpack.c.0.s8 %v13263_v44  ;;  %v18308_v2 = vld [vmem:[#allocation154_spill] sm:$0xff] }
 0x27c   : > { %v2438_v23 = vunpack.c.0.s8 %v13267_v14  ;;  %v2439_v18 = vunpack.c.0.s8 %v13286_v39  ;;  %7548 = vmatprep.subr.bf16.mxu1 %v18029_v7  ;;  %v3689_v26 = vmax.f32 %v13259_v61, %v13242_v4  ;;  %v18294_v22 = vunpack.c.3.s8 %v17534_v31  ;;  %v18324_v0 = vld [vmem:[#allocation26_spill] sm:$0xff] }
 0x27d   : > { %v3630_v59 = vmax.f32 %v3629_v63, %v13298_v29  ;;  %vm13334_vm10 = vcmp.ne.s32.totalorder %v3005_v20, 0  ;;  %v13340_v63 = vsel %vm13300_vm8, %v1943_v24, -1e+09  ;;  %v18299_v61 = vunpack.c.2.s8 %v17548_v33  ;;  %v18305_v24 = vld [vmem:[#allocation152_spill] sm:$0xff]  ;;  %v18307_v29 = vld [vmem:[#allocation147_spill] sm:$0xff] }
 0x27e   : > { %vm13330_vm12 = vcmp.ne.s32.totalorder %v18294_v22, 0  ;;  %v18302_v31 = vmax.f32 %v12756_v19, %v18095_v55  ;;  %v13354_v20 = vsel %vm13312_vm5, %v1945_v62, -1e+09  ;;  %vm13356_vm14 = vcmp.ne.s32.totalorder %v2870_v27, 0  ;;  %v18310_v19 = vld [vmem:[#allocation263_spill] sm:$0xff] }
 0x27f   : > { %vm13344_vm1 = vcmp.ne.s32.totalorder %v18299_v61, 0  ;;  %3631 = vmax.xlane.f32.xlu0 %v3630_v59  ;;  %v2878_v47 = vunpack.c.2.s8 %v18305_v24  ;;  %v18306_v61 = vld [vmem:[#allocation22_spill] sm:$0xff]  ;;  %v18309_v51 = vmax.f32 %v18307_v29, %v18308_v2  ;;  %v13369_v58 = vsel %vm13213_vm4, %v18310_v19, -1e+09  ;;  %v18314_v59 = vld [vmem:[#allocation81_spill] sm:$0xff] }
 0x280   : > { %v3638_v22 = vmax.f32 %v18302_v31, %v13340_v63  ;;  %7378 = vmatpush1.bf16.msra.mxu0 %v18306_v61  ;;  %18311 = vst [vmem:[#allocation11_spill] sm:$0xff] %v13369_v58  ;;  %vm13371_vm2 = vcmp.ne.s32.totalorder %v2871_v38, 0  ;;  %v2879_v27 = vunpack.c.3.s8 %v18305_v24  ;;  %7564 = vmatpush1.bf16.msra.mxu1 %v18314_v59  ;;  %v2635_v31 = vpack.c.b16 %v2437_v28, %v2436_v11  ;;  %v18323_v59 = vld [vmem:[#allocation247_spill] sm:$0xff] }
 0x281   : > { %v3697_v42 = vmax.f32 %v18309_v51, %v13309_v6  ;;  %7379 = vmatprep.subr.bf16.mxu0 %v18029_v7  ;;  %v2636_v61 = vpack.c.b16 %v2439_v18, %v2438_v23  ;;  %v2444_v55 = vunpack.c.1.s8 %v13246_v50  ;;  %v1949_v51 = vpop.f32.mrb[148].mxu1  ;;  %7549 = vmatprep.subr.bf16.mxu1 %v18029_v7  ;;  %v18315_v8 = vunpack.c.3.s8 %v17548_v33 }
 0x282   : > { %v3639_v6 = vmax.f32 %v3638_v22, %v13354_v20  ;;  %v2445_v24 = vunpack.c.1.s8 %v13263_v44  ;;  %v2446_v19 = vunpack.c.1.s8 %v13267_v14  ;;  %v2447_v11 = vunpack.c.1.s8 %v13286_v39  ;;  %v1951_v23 = vpop.f32.mrb[149].mxu1 }
 0x283   : > { %vm13383_vm7 = vcmp.ne.s32.totalorder %v18315_v8, 0  ;;  %v13392_v28 = vsel %vm13356_vm14, %v1949_v51, -1e+09  ;;  %v18319_v18 = vmax.f32 %v12817_v5, %v18123_v17  ;;  %v13400_v22 = vsel %vm13371_vm2, %v1951_v23, -1e+09  ;;  %v18325_v51 = vld [vmem:[#allocation224_spill] sm:$0xff] }
 0x284   : > { %18318 = vst [vmem:[#allocation260_spill] sm:$0xff] %v13392_v28  ;;  %18320 = vst [vmem:[#allocation237_spill] sm:$0xff] %v13400_v22  ;;  %3640 = vmax.xlane.f32.xlu1 %v3639_v6  ;;  %vm13402_vm4 = vcmp.ne.s32.totalorder %v2878_v47, 0  ;;  %v2886_v2 = vunpack.c.2.s8 %v18323_v59  ;;  %7381 = vmatpush1.bf16.msra.mxu0 %v18324_v0  ;;  %v13411_v29 = vsel %vm13280_vm9, %v18325_v51, -1e+09  ;;  %v18327_v5 = vld [vmem:[#allocation225_spill] sm:$0xff]  ;;  %v2887_v47 = vunpack.c.3.s8 %v18323_v59 }
 0x285   : > { %v3647_v33 = vmax.f32 %v18319_v18, %v13392_v28  ;;  %18326 = vst [vmem:[#allocation13_spill] sm:$0xff] %v13411_v29  ;;  %v13416_v62 = vsel %vm13334_vm10, %v18327_v5, -1e+09  ;;  %vm13418_vm15 = vcmp.ne.s32.totalorder %v2879_v27, 0  ;;  %7382 = vmatprep.subr.bf16.mxu0 %v18029_v7  ;;  %v18331_v23 = vld [vmem:[#allocation83_spill] sm:$0xff]  ;;  %v13426_v18 = vmax.f32 %v3689_v26, %v12002_v52  ;;  %v18332_v0 = vld [vmem:[#allocation265_spill] sm:$0xff] }
 0x286   : > { %18328 = vst [vmem:[#allocation261_spill] sm:$0xff] %v13416_v62  ;;  %7565 = vmatpush1.bf16.msra.mxu1 %v18331_v23  ;;  %v3698_v34 = vmax.f32 %v3697_v42, %v13369_v58  ;;  %v13432_v49 = vsel %vm13276_vm6, %v18332_v0, -1e+09  ;;  %v1955_v27 = vpop.f32.mrb[150].mxu1  ;;  %v18334_v5 = vunpack.c.2.s8 %v10041_v3  ;;  %v2637_v23 = vpack.c.b8 %v2636_v61, %v2635_v31  ;;  %v18342_v61 = vld [vmem:[#allocation242_spill] sm:$0xff] }
 0x287   : > { %18333 = vst [vmem:[#allocation240_spill] sm:$0xff] %v13432_v49  ;;  %v3648_v51 = vmax.f32 %v3647_v33, %v13400_v22  ;;  %v2641_v17 = vpack.c.b16 %v2445_v24, %v2444_v55  ;;  %v2642_v26 = vpack.c.b16 %v2447_v11, %v2446_v19  ;;  %v13443_v42 = vsel %vm13402_vm4, %v1955_v27, -1e+09  ;;  %v1957_v58 = vpop.f32.mrb[151].mxu1  ;;  %v18341_v55 = vld [vmem:[#allocation68_spill] sm:$0xff]  ;;  %v18344_v6 = vld [vmem:[#allocation266_spill] sm:$0xff] }
 0x288   : > { %vm13437_vm11 = vcmp.ne.s32.totalorder %v18334_v5, 0  ;;  %18337 = vst [vmem:[#allocation18_spill] sm:$0xff] %v13443_v42  ;;  %v18338_v13 = vmax.f32 %v12976_v57, %v18203_v35  ;;  %v13451_v33 = vsel %vm13418_vm15, %v1957_v58, -1e+09  ;;  %vm3142_vm3 = vcmp.ne.s32.totalorder %v2886_v2, 0  ;;  %v18340_v5 = vld [vmem:[#allocation250_spill] sm:$0xff] }
 0x289   : > { %18339 = vst [vmem:[#allocation262_spill] sm:$0xff] %v13451_v33  ;;  %3649 = vmax.xlane.f32.xlu0 %v3648_v51  ;;  %v2894_v31 = vunpack.c.2.s8 %v18340_v5  ;;  %v18343_v24 = vmax.f32 %v18341_v55, %v18342_v61  ;;  %vm3143_vm13 = vcmp.ne.s32.totalorder %v2887_v47, 0  ;;  %v2895_v8 = vunpack.c.3.s8 %v18340_v5  ;;  %v1961_v27 = vpop.f32.mrb[152].mxu1  ;;  %v18373_v5 = vld [vmem:[#allocation259_spill] sm:$0xff] }
 0x28a   : > { %v3656_v0 = vmax.f32 %v18338_v13, %v13443_v42  ;;  %v13463_v58 = vmax.f32 %v3698_v34, %v12072_v10  ;;  %v13468_v2 = vsel %vm13330_vm12, %v18344_v6, -1e+09  ;;  %v18346_v13 = vld [vmem:[#allocation198_spill] sm:$0xff]  ;;  %vm13476_vm0 = vnez %v2637_v23  ;;  %v1963_v11 = vpop.f32.mrb[153].mxu1 }
 0x28b   : > { %v3706_v19 = vmax.f32 %v18343_v24, %v13432_v49  ;;  %18345 = vst [vmem:[#allocation152_spill] sm:$0xff] %v13468_v2  ;;  %v13474_v47 = vsel %vm13344_vm1, %v18346_v13, -1e+09  ;;  %v2643_v24 = vpack.c.b8 %v2642_v26, %v2641_v17  ;;  %v13480_v34 = vsel %vm3142_vm3, %v1961_v27, -1e+09  ;;  %v18356_v23 = vld [vmem:[#allocation254_spill] sm:$0xff] }
 0x28c   : > { %v3657_v51 = vmax.f32 %v3656_v0, %v13451_v33  ;;  %18347 = vst [vmem:[#allocation22_spill] sm:$0xff] %v13474_v47  ;;  %18350 = vst [vmem:[#allocation263_spill] sm:$0xff] %v13480_v34  ;;  %v18351_v21 = vunpack.c.3.s8 %v10041_v3  ;;  %v18354_v4 = vmax.f32 %v13085_v48, %v18233_v37  ;;  %v13492_v13 = vsel %vm3143_vm13, %v1963_v11, -1e+09  ;;  %v18357_v27 = vld [vmem:[#allocation183_spill] sm:$0xff]  ;;  %v18374_v37 = vld [vmem:[#allocation184_spill] sm:$0xff] }
 0x28d   : > { %18355 = vst [vmem:[#allocation247_spill] sm:$0xff] %v13492_v13  ;;  %vm3150_vm9 = vcmp.ne.s32.totalorder %v2894_v31, 0  ;;  %v2902_v17 = vunpack.c.2.s8 %v18356_v23  ;;  %v3707_v26 = vmax.f32 %v3706_v19, %v13468_v2  ;;  %vm3151_vm8 = vcmp.ne.s32.totalorder %v2895_v8, 0  ;;  %v1967_v31 = vpop.f32.mrb[154].mxu1  ;;  %v18359_v19 = vld [vmem:[#allocation243_spill] sm:$0xff]  ;;  %v18362_v2 = vld [vmem:[#allocation149_spill] sm:$0xff] }
 0x28e   : > { %vm13484_vm6 = vcmp.ne.s32.totalorder %v18351_v21, 0  ;;  %v3665_v0 = vmax.f32 %v18354_v4, %v13480_v34  ;;  %3658 = vmax.xlane.f32.xlu1 %v3657_v51  ;;  %v2903_v3 = vunpack.c.3.s8 %v18356_v23  ;;  %v13503_v48 = vsel %vm13383_vm7, %v12051_v53, -1e+09  ;;  %v18360_v4 = vld [vmem:[#allocation244_spill] sm:$0xff]  ;;  %v1969_v11 = vpop.f32.mrb[155].mxu1  ;;  %v18436_v34 = vld [vmem:[#allocation161_spill] sm:$0xff] }
 0x28f   : > { %18358 = vst [vmem:[#allocation26_spill] sm:$0xff] %v13503_v48  ;;  %v18361_v57 = vmax.f32 %v18359_v19, %v18360_v4  ;;  %v18363_v23 = vunpack.c.2.s8 %v18362_v2  ;;  %v13520_v53 = vsel %vm13476_vm0, 16843009, %v17052_v9  ;;  %vm13522_vm12 = vnez %v2643_v24  ;;  %v18376_v4 = vld [vmem:[#allocation269_spill] sm:$0xff]  ;;  %v18389_v19 = vld [vmem:[#allocation186_spill] sm:$0xff]  ;;  %v18437_v33 = vld [vmem:[#allocation163_spill] sm:$0xff] }
 0x290   : > { %v3666_v51 = vmax.f32 %v3665_v0, %v13492_v13  ;;  %v13526_v0 = vsel %vm3150_vm9, %v1967_v31, -1e+09  ;;  %v13532_v21 = vsel %vm3151_vm8, %v1969_v11, -1e+09  ;;  %vm13534_vm10 = vcmp.ne.s32.totalorder %v2902_v17, 0  ;;  %v18375_v31 = vld [vmem:[#allocation189_spill] sm:$0xff] }
 0x291   : > { %v3715_v8 = vmax.f32 %v18361_v57, %v13474_v47  ;;  %vm13513_vm5 = vcmp.ne.s32.totalorder %v18363_v23, 0  ;;  %18368 = vst [vmem:[#allocation224_spill] sm:$0xff] %v13526_v0  ;;  %v18369_v57 = vmax.f32 %v13134_v45, %v18251_v56  ;;  %18370 = vst [vmem:[#allocation225_spill] sm:$0xff] %v13532_v21  ;;  %v2910_v24 = vunpack.c.2.s8 %v18373_v5  ;;  %v18388_v56 = vld [vmem:[#allocation166_spill] sm:$0xff] }
 0x292   : > { %3667 = vmax.xlane.f32.xlu0 %v3666_v51  ;;  %v13540_v47 = vmax.f32 %v3707_v26, %v18374_v37  ;;  %vm3159_vm1 = vcmp.ne.s32.totalorder %v2903_v3, 0  ;;  %v2911_v49 = vunpack.c.3.s8 %v18373_v5  ;;  %v13547_v45 = vsel %vm13437_vm11, %v18376_v4, -1e+09  ;;  %v1973_v51 = vpop.f32.mrb[156].mxu1  ;;  %v18381_v5 = vld [vmem:[#allocation150_spill] sm:$0xff] }
 0x293   : > { %v3674_v23 = vmax.f32 %v18369_v57, %v13526_v0  ;;  %18377 = vst [vmem:[#allocation265_spill] sm:$0xff] %v13547_v45  ;;  %v3012_v17 = vunpack.c.0.s8 %v13520_v53  ;;  %v3013_v11 = vunpack.c.1.s8 %v13520_v53  ;;  %v3716_v26 = vmax.f32 %v3715_v8, %v13503_v48 }
 0x294   : > { %v18378_v37 = vunpack.c.3.s8 %v18362_v2  ;;  %v18382_v35 = vunpack.c.2.s8 %v18381_v5  ;;  %v13568_v4 = vsel %vm13522_vm12, 16843009, %v17052_v9  ;;  %v13573_v2 = vsel %vm13534_vm10, %v1973_v51, -1e+09  ;;  %v18390_v51 = vld [vmem:[#allocation245_spill] sm:$0xff] }
 0x295   : > { %v3675_v57 = vmax.f32 %v3674_v23, %v13532_v21  ;;  %v2452_v23 = vunpack.c.2.s8 %v13246_v50  ;;  %18385 = vst [vmem:[#allocation250_spill] sm:$0xff] %v13573_v2  ;;  %v18386_v8 = vmax.f32 %v13272_v60, %v18293_v12  ;;  %vm3166_vm7 = vcmp.ne.s32.totalorder %v2910_v24, 0  ;;  %v18391_v21 = vld [vmem:[#allocation246_spill] sm:$0xff] }
 0x296   : > { %vm13555_vm14 = vcmp.ne.s32.totalorder %v18378_v37, 0  ;;  %vm13561_vm2 = vcmp.ne.s32.totalorder %v18382_v35, 0  ;;  %v1975_v37 = vpop.f32.mrb[157].mxu1  ;;  %v2918_v38 = vunpack.c.2.s8 %v18388_v56  ;;  %v3709_v61 = vmax.f32 %v13540_v47, %v18389_v19 }
 0x297   : > { %v3683_v35 = vmax.f32 %v18386_v8, %v13573_v2  ;;  %v13579_v48 = vsel %vm3159_vm1, %v1975_v37, -1e+09  ;;  %3676 = vmax.xlane.f32.xlu1 %v3675_v57  ;;  %v2453_v55 = vunpack.c.2.s8 %v13263_v44  ;;  %vm3167_vm4 = vcmp.ne.s32.totalorder %v2911_v49, 0  ;;  %v1979_v57 = vpop.f32.mrb[158].mxu1  ;;  %v18397_v8 = vld [vmem:[#allocation191_spill] sm:$0xff] }
 0x298   : > { %18387 = vst [vmem:[#allocation266_spill] sm:$0xff] %v13579_v48  ;;  %v2919_v52 = vunpack.c.3.s8 %v18388_v56  ;;  %v18392_v0 = vmax.f32 %v18390_v51, %v18391_v21  ;;  %vm13590_vm15 = vcmp.ne.s32.totalorder %v3012_v17, 0  ;;  %vm13594_vm11 = vcmp.ne.s32.totalorder %v3013_v11, 0  ;;  %v18398_v56 = vld [vmem:[#allocation271_spill] sm:$0xff] }
 0x299   : > { %v3684_v47 = vmax.f32 %v3683_v35, %v13579_v48  ;;  %v13600_v49 = vmax.f32 %v3716_v26, %v18397_v8  ;;  %v13605_v19 = vsel %vm13484_vm6, %v18398_v56, -1e+09  ;;  %v3020_v11 = vunpack.c.0.s8 %v13568_v4  ;;  %v18404_v35 = vld [vmem:[#allocation164_spill] sm:$0xff]  ;;  %v18413_v51 = vld [vmem:[#allocation123_spill] sm:$0xff] }
 0x29a   : > { %v3724_v60 = vmax.f32 %v18392_v0, %v13547_v45  ;;  %18399 = vst [vmem:[#allocation198_spill] sm:$0xff] %v13605_v19  ;;  %v18400_v0 = vunpack.c.3.s8 %v18381_v5  ;;  %v13614_v12 = vsel %vm3166_vm7, %v1979_v57, -1e+09  ;;  %v1981_v45 = vpop.f32.mrb[159].mxu1  ;;  %v18405_v21 = vunpack.c.2.s8 %v18404_v35  ;;  %v18412_v57 = vld [vmem:[#allocation264_spill] sm:$0xff]  ;;  %v18465_v17 = vld [vmem:[#allocation171_spill] sm:$0xff] }
 0x29b   : > { %18403 = vst [vmem:[#allocation254_spill] sm:$0xff] %v13614_v12  ;;  %v18408_v6 = vmax.f32 %v13426_v18, %v12007_v32  ;;  %v13626_v56 = vsel %vm3167_vm4, %v1981_v45, -1e+09  ;;  %3685 = vmax.xlane.f32.xlu0 %v3684_v47  ;;  %vm13628_vm0 = vcmp.ne.s32.totalorder %v2918_v38, 0  ;;  %v2926_v8 = vunpack.c.2.s8 %v18412_v57  ;;  %v18415_v48 = vld [vmem:[#allocation228_spill] sm:$0xff] }
 0x29c   : > { %vm13609_vm3 = vcmp.ne.s32.totalorder %v18400_v0, 0  ;;  %vm13618_vm13 = vcmp.ne.s32.totalorder %v18405_v21, 0  ;;  %18409 = vst [vmem:[#allocation183_spill] sm:$0xff] %v13626_v56  ;;  %v13636_v21 = vsel %vm13590_vm15, %v18413_v51, -1e+09  ;;  %vm13643_vm6 = vcmp.ne.s32.totalorder %v2919_v52, 0 }
 0x29d   : > { %v3692_v5 = vmax.f32 %v18408_v6, %v13614_v12  ;;  %18414 = vst [vmem:[#allocation149_spill] sm:$0xff] %v13636_v21  ;;  %v13641_v2 = vsel %vm13594_vm11, %v18415_v48, -1e+09  ;;  %v2927_v45 = vunpack.c.3.s8 %v18412_v57  ;;  %v18419_v38 = vld [vmem:[#allocation272_spill] sm:$0xff]  ;;  %v2454_v37 = vunpack.c.2.s8 %v13267_v14  ;;  %v1985_v6 = vpop.f32.mrb[160].mxu1  ;;  %v18435_v0 = vld [vmem:[#allocation270_spill] sm:$0xff] }
 0x29e   : > { %18416 = vst [vmem:[#allocation259_spill] sm:$0xff] %v13641_v2  ;;  %v13651_v47 = vsel %vm13513_vm5, %v18419_v38, -1e+09  ;;  %v2455_v51 = vunpack.c.2.s8 %v13286_v39  ;;  %v3725_v48 = vmax.f32 %v3724_v60, %v13605_v19  ;;  %v18421_v52 = vunpack.c.3.s8 %v18404_v35  ;;  %v18424_v57 = vld [vmem:[#allocation168_spill] sm:$0xff]  ;;  %v1987_v35 = vpop.f32.mrb[161].mxu1 }
 0x29f   : > { %18420 = vst [vmem:[#allocation189_spill] sm:$0xff] %v13651_v47  ;;  %v3693_v24 = vmax.f32 %v3692_v5, %v13626_v56  ;;  %v18425_v12 = vunpack.c.2.s8 %v18424_v57  ;;  %vm13669_vm5 = vcmp.ne.s32.totalorder %v3020_v11, 0  ;;  %v3021_v5 = vunpack.c.1.s8 %v13568_v4  ;;  %v18471_v26 = vld [vmem:[#allocation276_spill] sm:$0xff] }
 0x2a0   : > { %vm13659_vm9 = vcmp.ne.s32.totalorder %v18421_v52, 0  ;;  %v13676_v60 = vsel %vm13628_vm0, %v1985_v6, -1e+09  ;;  %v18430_v52 = vld [vmem:[#allocation169_spill] sm:$0xff]  ;;  %v13690_v13 = vsel %vm13643_vm6, %v1987_v35, -1e+09  ;;  %v2934_v6 = vunpack.c.2.s8 %v18435_v0 }
 0x2a1   : > { %vm13665_vm8 = vcmp.ne.s32.totalorder %v18425_v12, 0  ;;  %v18431_v19 = vunpack.c.2.s8 %v18430_v52  ;;  %v18434_v12 = vmax.f32 %v13463_v58, %v12088_v46  ;;  %3694 = vmax.xlane.f32.xlu1 %v3693_v24  ;;  %vm3182_vm10 = vcmp.ne.s32.totalorder %v2926_v8, 0  ;;  %v18439_v58 = vld [vmem:[#allocation275_spill] sm:$0xff] }
 0x2a2   : > { %v13697_v22 = vpack.c.b16 %v2453_v55, %v2452_v23  ;;  %vm3183_vm1 = vcmp.ne.s32.totalorder %v2927_v45, 0  ;;  %v2935_v28 = vunpack.c.3.s8 %v18435_v0  ;;  %v13703_v18 = vsel %vm13555_vm14, %v18439_v58, -1e+09  ;;  %v18441_v35 = vld [vmem:[#allocation219_spill] sm:$0xff]  ;;  %v18443_v55 = vld [vmem:[#allocation193_spill] sm:$0xff]  ;;  %v18448_v58 = vld [vmem:[#allocation130_spill] sm:$0xff] }
 0x2a3   : > { %vm13680_vm12 = vcmp.ne.s32.totalorder %v18431_v19, 0  ;;  %v3701_v11 = vmax.f32 %v18434_v12, %v13676_v60  ;;  %v18438_v19 = vmax.f32 %v18436_v34, %v18437_v33  ;;  %18440 = vst [vmem:[#allocation269_spill] sm:$0xff] %v13703_v18  ;;  %v13708_v8 = vsel %vm13561_vm2, %v18441_v35, -1e+09  ;;  %v1991_v12 = vpop.f32.mrb[162].mxu1  ;;  %v18444_v45 = vld [vmem:[#allocation97_spill] sm:$0xff] }
 0x2a4   : > { %18442 = vst [vmem:[#allocation150_spill] sm:$0xff] %v13708_v8  ;;  %v13710_v24 = vpack.c.b16 %v2455_v51, %v2454_v37  ;;  %v3718_v23 = vmax.f32 %v13600_v49, %v18443_v55  ;;  %v3726_v0 = vmax.f32 %v3725_v48, %v18444_v45  ;;  %v18445_v46 = vunpack.c.3.s8 %v18424_v57  ;;  %v1993_v51 = vpop.f32.mrb[163].mxu1  ;;  %v18454_v57 = vld [vmem:[#allocation273_spill] sm:$0xff] }
 0x2a5   : > { %v3733_v42 = vmax.f32 %v18438_v19, %v13651_v47  ;;  %v3702_v19 = vmax.f32 %v3701_v11, %v13690_v13  ;;  %v13725_v59 = vsel %vm13669_vm5, %v18448_v58, -1e+09  ;;  %v13727_v37 = vsel %vm3182_vm10, %v1991_v12, -1e+09  ;;  %v18455_v12 = vld [vmem:[#allocation252_spill] sm:$0xff]  ;;  %v18456_v58 = vld [vmem:[#allocation167_spill] sm:$0xff] }
 0x2a6   : > { %vm13718_vm7 = vcmp.ne.s32.totalorder %v18445_v46, 0  ;;  %18449 = vst [vmem:[#allocation166_spill] sm:$0xff] %v13725_v59  ;;  %v18450_v11 = vunpack.c.3.s8 %v18430_v52  ;;  %v3710_v48 = vmax.f32 %v3709_v61, %v13727_v37  ;;  %v13736_v46 = vsel %vm3183_vm1, %v1993_v51, -1e+09 }
 0x2a7   : > { %18453 = vst [vmem:[#allocation271_spill] sm:$0xff] %v13736_v46  ;;  %3703 = vmax.xlane.f32.xlu0 %v3702_v19  ;;  %vm3190_vm2 = vcmp.ne.s32.totalorder %v2934_v6, 0  ;;  %v2942_v35 = vunpack.c.2.s8 %v18454_v57  ;;  %v3734_v38 = vmax.f32 %v3733_v42, %v13703_v18  ;;  %v18457_v45 = vmax.f32 %v18455_v12, %v18456_v58  ;;  %v1997_v6 = vpop.f32.mrb[164].mxu1  ;;  %v18462_v18 = vld [vmem:[#allocation99_spill] sm:$0xff] }
 0x2a8   : > { %vm13731_vm14 = vcmp.ne.s32.totalorder %v18450_v11, 0  ;;  %vm3191_vm4 = vcmp.ne.s32.totalorder %v2935_v28, 0  ;;  %v2943_v52 = vunpack.c.3.s8 %v18454_v57  ;;  %v18458_v11 = vld [vmem:[#allocation277_spill] sm:$0xff]  ;;  %vm13750_vm15 = vcmp.ne.s32.totalorder %v3021_v5, 0  ;;  %v18463_v28 = vld [vmem:[#allocation278_spill] sm:$0xff]  ;;  %v1999_v42 = vpop.f32.mrb[165].mxu1 }
 0x2a9   : > { %v3742_v55 = vmax.f32 %v18457_v45, %v13708_v8  ;;  %v13748_v61 = vsel %vm13609_vm3, %v18458_v11, -1e+09  ;;  %v3711_v51 = vmax.f32 %v3710_v48, %v13736_v46  ;;  %v3727_v45 = vmax.f32 %v3726_v0, %v18462_v18  ;;  %v18476_v46 = vld [vmem:[#allocation95_spill] sm:$0xff] }
 0x2aa   : > { %18459 = vst [vmem:[#allocation164_spill] sm:$0xff] %v13748_v61  ;;  %v13761_v57 = vsel %vm13618_vm13, %v18463_v28, -1e+09  ;;  %v18466_v11 = vunpack.c.2.s8 %v18465_v17  ;;  %v2460_v8 = vunpack.c.3.s8 %v13246_v50  ;;  %v13770_v58 = vsel %vm3190_vm2, %v1997_v6, -1e+09  ;;  %v18472_v28 = vld [vmem:[#allocation100_spill] sm:$0xff] }
 0x2ab   : > { %18464 = vst [vmem:[#allocation264_spill] sm:$0xff] %v13761_v57  ;;  %18469 = vst [vmem:[#allocation123_spill] sm:$0xff] %v13770_v58  ;;  %v3719_v48 = vmax.f32 %v3718_v23, %v13770_v58  ;;  %v13773_v47 = vsel %vm3191_vm4, %v1999_v42, -1e+09  ;;  %3712 = vmax.xlane.f32.xlu1 %v3711_v51  ;;  %vm3198_vm3 = vcmp.ne.s32.totalorder %v2942_v35, 0  ;;  %v2950_v0 = vunpack.c.2.s8 %v18471_v26  ;;  %v18473_v50 = vld [vmem:[#allocation170_spill] sm:$0xff] }
 0x2ac   : > { %vm13765_vm11 = vcmp.ne.s32.totalorder %v18466_v11, 0  ;;  %18470 = vst [vmem:[#allocation228_spill] sm:$0xff] %v13773_v47  ;;  %v3735_v18 = vmax.f32 %v3734_v38, %v18472_v28  ;;  %v3743_v11 = vmax.f32 %v3742_v55, %v13748_v61  ;;  %vm3199_vm13 = vcmp.ne.s32.totalorder %v2943_v52, 0  ;;  %v18474_v6 = vld [vmem:[#allocation174_spill] sm:$0xff]  ;;  %v18478_v35 = vld [vmem:[#allocation199_spill] sm:$0xff]  ;;  %v2003_v38 = vpop.f32.mrb[166].mxu1 }
 0x2ad   : > { %v2951_v12 = vunpack.c.3.s8 %v18471_v26  ;;  %v18475_v33 = vmax.f32 %v18473_v50, %v18474_v6  ;;  %v13786_v23 = vsel %vm13659_vm9, %v18476_v46, -1e+09  ;;  %v13791_v42 = vsel %vm13665_vm8, %v18478_v35, -1e+09  ;;  %v18480_v52 = vld [vmem:[#allocation88_spill] sm:$0xff]  ;;  %v2005_v35 = vpop.f32.mrb[167].mxu1 }
 0x2ae   : > { %18477 = vst [vmem:[#allocation272_spill] sm:$0xff] %v13786_v23  ;;  %18479 = vst [vmem:[#allocation168_spill] sm:$0xff] %v13791_v42  ;;  %v3720_v55 = vmax.f32 %v3719_v48, %v13773_v47  ;;  %v13797_v51 = vsel %vm13680_vm12, %v18480_v52, -1e+09  ;;  %v2461_v32 = vunpack.c.3.s8 %v13263_v44  ;;  %v2462_v10 = vunpack.c.3.s8 %v13267_v14  ;;  %v18485_v61 = vld [vmem:[#allocation172_spill] sm:$0xff]  ;;  %v18490_v44 = vld [vmem:[#allocation203_spill] sm:$0xff] }
 0x2af   : > { %v3751_v34 = vmax.f32 %v18475_v33, %v13761_v57  ;;  %18481 = vst [vmem:[#allocation169_spill] sm:$0xff] %v13797_v51  ;;  %v18482_v33 = vunpack.c.3.s8 %v18465_v17  ;;  %v13807_v46 = vsel %vm3198_vm3, %v2003_v38, -1e+09  ;;  %v18486_v48 = vunpack.c.2.s8 %v18485_v61  ;;  %v18489_v52 = vld [vmem:[#allocation280_spill] sm:$0xff]  ;;  %v18491_v14 = vld [vmem:[#allocation205_spill] sm:$0xff]  ;;  %v18492_v50 = vld [vmem:[#allocation178_spill] sm:$0xff] }
 0x2b0   : > { %v3728_v56 = vmax.f32 %v3727_v45, %v13807_v46  ;;  %v13816_v17 = vsel %vm3199_vm13, %v2005_v35, -1e+09  ;;  %3721 = vmax.xlane.f32.xlu0 %v3720_v55  ;;  %vm3206_vm9 = vcmp.ne.s32.totalorder %v2950_v0, 0  ;;  %v3736_v57 = vmax.f32 %v3735_v18, %v18490_v44  ;;  %v18493_v47 = vld [vmem:[#allocation180_spill] sm:$0xff]  ;;  %v18495_v35 = vld [vmem:[#allocation281_spill] sm:$0xff]  ;;  %v2009_v55 = vpop.f32.mrb[168].mxu1 }
 0x2b1   : > { %vm13801_vm0 = vcmp.ne.s32.totalorder %v18482_v33, 0  ;;  %vm13811_vm6 = vcmp.ne.s32.totalorder %v18486_v48, 0  ;;  %v2958_v33 = vunpack.c.2.s8 %v18489_v52  ;;  %v3744_v38 = vmax.f32 %v3743_v11, %v18491_v14  ;;  %v18497_v11 = vld [vmem:[#allocation185_spill] sm:$0xff]  ;;  %v18500_v44 = vld [vmem:[#allocation282_spill] sm:$0xff] }
 0x2b2   : > { %vm3207_vm8 = vcmp.ne.s32.totalorder %v2951_v12, 0  ;;  %v2959_v6 = vunpack.c.3.s8 %v18489_v52  ;;  %v3752_v48 = vmax.f32 %v3751_v34, %v13786_v23  ;;  %v18494_v58 = vmax.f32 %v18492_v50, %v18493_v47  ;;  %v18498_v12 = vld [vmem:[#allocation188_spill] sm:$0xff] }
 0x2b3   : > { %v13830_v0 = vsel %vm13718_vm7, %v18495_v35, -1e+09  ;;  %v3729_v18 = vmax.f32 %v3728_v56, %v13816_v17  ;;  %v18499_v14 = vmax.f32 %v18497_v11, %v18498_v12  ;;  %v13840_v34 = vsel %vm13731_vm14, %v18500_v44, -1e+09  ;;  %v2011_v56 = vpop.f32.mrb[169].mxu1  ;;  %v18512_v11 = vld [vmem:[#allocation231_spill] sm:$0xff] }
 0x2b4   : > { %v3760_v45 = vmax.f32 %v18494_v58, %v13791_v42  ;;  %18496 = vst [vmem:[#allocation270_spill] sm:$0xff] %v13830_v0  ;;  %18501 = vst [vmem:[#allocation275_spill] sm:$0xff] %v13840_v34  ;;  %v18502_v58 = vunpack.c.2.s8 %v17719_v30  ;;  %v2463_v3 = vunpack.c.3.s8 %v13286_v39  ;;  %v13849_v35 = vsel %vm3206_vm9, %v2009_v55, -1e+09  ;;  %v18511_v55 = vld [vmem:[#allocation206_spill] sm:$0xff]  ;;  %v2015_v50 = vpop.f32.mrb[170].mxu1 }
 0x2b5   : > { %v3769_v52 = vmax.f32 %v18499_v14, %v13797_v51  ;;  %v18505_v42 = vunpack.c.3.s8 %v18485_v61  ;;  %v3737_v49 = vmax.f32 %v3736_v57, %v13849_v35  ;;  %v13858_v44 = vsel %vm3207_vm8, %v2011_v56, -1e+09  ;;  %3730 = vmax.xlane.f32.xlu1 %v3729_v18  ;;  %v18510_v51 = vld [vmem:[#allocation115_spill] sm:$0xff] }
 0x2b6   : > { %vm13844_vm5 = vcmp.ne.s32.totalorder %v18502_v58, 0  ;;  %vm13860_vm10 = vcmp.ne.s32.totalorder %v2958_v33, 0  ;;  %v2966_v39 = vunpack.c.2.s8 %v18510_v51  ;;  %v3745_v12 = vmax.f32 %v3744_v38, %v18511_v55  ;;  %v18514_v57 = vld [vmem:[#allocation207_spill] sm:$0xff]  ;;  %v18515_v33 = vld [vmem:[#allocation234_spill] sm:$0xff] }
 0x2b7   : > { %vm13853_vm12 = vcmp.ne.s32.totalorder %v18505_v42, 0  ;;  %v13869_v61 = vsel %vm13750_vm15, %v18512_v11, -1e+09  ;;  %vm3215_vm1 = vcmp.ne.s32.totalorder %v2959_v6, 0  ;;  %v2967_v42 = vunpack.c.3.s8 %v18510_v51 }
 0x2b8   : > { %18513 = vst [vmem:[#allocation219_spill] sm:$0xff] %v13869_v61  ;;  %v3753_v56 = vmax.f32 %v3752_v48, %v18514_v57  ;;  %v3761_v18 = vmax.f32 %v3760_v45, %v13830_v0  ;;  %v13877_v47 = vsel %vm13765_vm11, %v18515_v33, -1e+09  ;;  %v3738_v38 = vmax.f32 %v3737_v49, %v13858_v44  ;;  %v2017_v49 = vpop.f32.mrb[171].mxu1  ;;  %v18525_v33 = vld [vmem:[#allocation288_spill] sm:$0xff] }
 0x2b9   : > { %18516 = vst [vmem:[#allocation130_spill] sm:$0xff] %v13877_v47  ;;  %v3770_v55 = vmax.f32 %v3769_v52, %v13840_v34  ;;  %v18517_v19 = vunpack.c.3.s8 %v17719_v30  ;;  %v18520_v51 = vunpack.c.2.s8 %v18142_v16  ;;  %v2653_v5 = vpack.c.b16 %v2461_v32, %v2460_v8  ;;  %v18527_v34 = vld [vmem:[#allocation192_spill] sm:$0xff] }
 0x2ba   : > { %v2654_v45 = vpack.c.b16 %v2463_v3, %v2462_v10  ;;  %v13895_v11 = vsel %vm13860_vm10, %v2015_v50, -1e+09  ;;  %v13898_v30 = vsel %vm3215_vm1, %v2017_v49, -1e+09  ;;  %3739 = vmax.xlane.f32.xlu0 %v3738_v38  ;;  %vm3222_vm2 = vcmp.ne.s32.totalorder %v2966_v39, 0  ;;  %v18532_v10 = vld [vmem:[#allocation10_spill] sm:$0xff] }
 0x2bb   : > { %vm13883_vm7 = vcmp.ne.s32.totalorder %v18517_v19, 0  ;;  %vm13889_vm14 = vcmp.ne.s32.totalorder %v18520_v51, 0  ;;  %18523 = vst [vmem:[#allocation273_spill] sm:$0xff] %v13895_v11  ;;  %v3746_v52 = vmax.f32 %v3745_v12, %v13895_v11  ;;  %18524 = vst [vmem:[#allocation277_spill] sm:$0xff] %v13898_v30  ;;  %v2974_v19 = vunpack.c.2.s8 %v18525_v33  ;;  %v18526_v51 = vld [vmem:[#allocation190_spill] sm:$0xff]  ;;  %v18533_v3 = vld [vmem:[#allocation208_spill] sm:$0xff] }
 0x2bc   : > { %v18528_v0 = vmax.f32 %v18526_v51, %v18527_v34  ;;  %v18529_v8 = vpack.c.b8 %v13710_v24, %v13697_v22  ;;  %vm3223_vm15 = vcmp.ne.s32.totalorder %v2967_v42, 0  ;;  %v2975_v32 = vunpack.c.3.s8 %v18525_v33  ;;  %v18534_v39 = vld [vmem:[#allocation283_spill] sm:$0xff]  ;;  %v18536_v24 = vld [vmem:[#allocation236_spill] sm:$0xff] }
 0x2bd   : > { %v3754_v12 = vmax.f32 %v3753_v56, %v18532_v10  ;;  %v3762_v58 = vmax.f32 %v3761_v18, %v18533_v3  ;;  %v13918_v38 = vsel %vm13801_vm0, %v18534_v39, -1e+09  ;;  %v3747_v49 = vmax.f32 %v3746_v52, %v13898_v30 }
 0x2be   : > { %v3778_v57 = vmax.f32 %v18528_v0, %v13877_v47  ;;  %vm13908_vm4 = vnez %v18529_v8  ;;  %18535 = vst [vmem:[#allocation278_spill] sm:$0xff] %v13918_v38  ;;  %v2021_v0 = vpop.f32.mrb[172].mxu1  ;;  %v3771_v22 = vmax.f32 %v3770_v55, %v12859_v41  ;;  %v13925_v42 = vsel %vm13811_vm6, %v18536_v24, -1e+09 }
 0x2bf   : > { %18537 = vst [vmem:[#allocation171_spill] sm:$0xff] %v13925_v42  ;;  %v18538_v33 = vunpack.c.3.s8 %v18142_v16  ;;  %v2655_v18 = vpack.c.b8 %v2654_v45, %v2653_v5  ;;  %v13933_v26 = vsel %vm3222_vm2, %v2021_v0, -1e+09  ;;  %v2023_v8 = vpop.f32.mrb[173].mxu1  ;;  %v18542_v39 = vunpack.c.2.s8 %v18243_v43  ;;  %3748 = vmax.xlane.f32.xlu1 %v3747_v49  ;;  %v18546_v16 = vld [vmem:[#allocation102_spill] sm:$0xff]  ;;  %v18547_v0 = vld [vmem:[#allocation211_spill] sm:$0xff] }
 0x2c0   : > { %18541 = vst [vmem:[#allocation276_spill] sm:$0xff] %v13933_v26  ;;  %v3755_v28 = vmax.f32 %v3754_v12, %v13933_v26  ;;  %v13942_v55 = vsel %vm3223_vm15, %v2023_v8, -1e+09  ;;  %vm3230_vm13 = vcmp.ne.s32.totalorder %v2974_v19, 0  ;;  %v2982_v24 = vunpack.c.2.s8 %v18546_v16  ;;  %v18548_v12 = vld [vmem:[#allocation176_spill] sm:$0xff]  ;;  %v18551_v19 = vld [vmem:[#allocation286_spill] sm:$0xff] }
 0x2c1   : > { %vm13929_vm11 = vcmp.ne.s32.totalorder %v18538_v33, 0  ;;  %vm13937_vm3 = vcmp.ne.s32.totalorder %v18542_v39, 0  ;;  %18545 = vst [vmem:[#allocation95_spill] sm:$0xff] %v13942_v55  ;;  %v3779_v33 = vmax.f32 %v3778_v57, %v13918_v38  ;;  %v13949_v5 = vsel %vm13908_vm4, 16843009, %v17052_v9  ;;  %v18549_v8 = vld [vmem:[#allocation200_spill] sm:$0xff] }
 0x2c2   : > { %vm3231_vm0 = vcmp.ne.s32.totalorder %v2975_v32, 0  ;;  %v2983_v45 = vunpack.c.3.s8 %v18546_v16  ;;  %v3763_v39 = vmax.f32 %v3762_v58, %v18547_v0  ;;  %v18550_v41 = vmax.f32 %v18548_v12, %v18549_v8  ;;  %v2027_v57 = vpop.f32.mrb[174].mxu1  ;;  %v18553_v32 = vld [vmem:[#allocation284_spill] sm:$0xff]  ;;  %v18568_v8 = vld [vmem:[#allocation287_spill] sm:$0xff] }
 0x2c3   : > { %v13960_v3 = vsel %vm13844_vm5, %v18551_v19, -1e+09  ;;  %v3756_v50 = vmax.f32 %v3755_v28, %v13942_v55  ;;  %v3772_v38 = vmax.f32 %v3771_v22, %v12864_v40  ;;  %v13967_v16 = vsel %vm13853_vm12, %v18553_v32, -1e+09  ;;  %v2029_v28 = vpop.f32.mrb[175].mxu1 }
 0x2c4   : > { %v3787_v49 = vmax.f32 %v18550_v41, %v13925_v42  ;;  %18552 = vst [vmem:[#allocation199_spill] sm:$0xff] %v13960_v3  ;;  %18554 = vst [vmem:[#allocation88_spill] sm:$0xff] %v13967_v16  ;;  %v18555_v58 = vunpack.c.3.s8 %v18243_v43  ;;  %vm13975_vm9 = vnez %v2655_v18  ;;  %v13979_v23 = vsel %vm3230_vm13, %v2027_v57, -1e+09  ;;  %v18565_v57 = vld [vmem:[#allocation202_spill] sm:$0xff] }
 0x2c5   : > { %18560 = vst [vmem:[#allocation172_spill] sm:$0xff] %v13979_v23  ;;  %v18561_v22 = vunpack.c.2.s8 %v18357_v27  ;;  %v3764_v14 = vmax.f32 %v3763_v39, %v13979_v23  ;;  %v13988_v43 = vsel %vm3231_vm0, %v2029_v28, -1e+09  ;;  %3757 = vmax.xlane.f32.xlu0 %v3756_v50  ;;  %vm3238_vm5 = vcmp.ne.s32.totalorder %v2982_v24, 0  ;;  %v18570_v24 = vld [vmem:[#allocation6_spill] sm:$0xff]  ;;  %v18723_v23 = vld [vmem:[#allocation124_spill] sm:$0xff] }
 0x2c6   : > { %vm13971_vm6 = vcmp.ne.s32.totalorder %v18555_v58, 0  ;;  %18564 = vst [vmem:[#allocation280_spill] sm:$0xff] %v13988_v43  ;;  %v2990_v18 = vunpack.c.2.s8 %v12784_v54  ;;  %v3780_v32 = vmax.f32 %v3779_v33, %v12930_v25  ;;  %v18566_v58 = vld [vmem:[#allocation204_spill] sm:$0xff]  ;;  %vm3239_vm12 = vcmp.ne.s32.totalorder %v2983_v45, 0  ;;  %v2033_v33 = vpop.f32.mrb[176].mxu1 }
 0x2c7   : > { %vm13983_vm8 = vcmp.ne.s32.totalorder %v18561_v22, 0  ;;  %v18567_v40 = vmax.f32 %v18565_v57, %v18566_v58  ;;  %v2991_v22 = vunpack.c.3.s8 %v12784_v54  ;;  %v3788_v42 = vmax.f32 %v3787_v49, %v13967_v16  ;;  %v2035_v48 = vpop.f32.mrb[177].mxu1  ;;  %v18578_v25 = vld [vmem:[#allocation268_spill] sm:$0xff] }
 0x2c8   : > { %v14001_v39 = vsel %vm13883_vm7, %v18568_v8, -1e+09  ;;  %v14006_v50 = vsel %vm13889_vm14, %v18570_v24, -1e+09  ;;  %v3765_v28 = vmax.f32 %v3764_v14, %v13988_v43  ;;  %v3035_v54 = vunpack.c.3.s8 %v18375_v31 }
 0x2c9   : > { %v3796_v10 = vmax.f32 %v18567_v40, %v13960_v3  ;;  %18569 = vst [vmem:[#allocation281_spill] sm:$0xff] %v14001_v39  ;;  %18571 = vst [vmem:[#allocation282_spill] sm:$0xff] %v14006_v50  ;;  %v18572_v40 = vunpack.c.3.s8 %v18357_v27  ;;  %v14019_v6 = vsel %vm13975_vm9, 16843009, %v17052_v9  ;;  %v14021_v8 = vsel %vm3238_vm5, %v2033_v33, -1e+09 }
 0x2ca   : > { %18575 = vst [vmem:[#allocation115_spill] sm:$0xff] %v14021_v8  ;;  %v3773_v49 = vmax.f32 %v3772_v38, %v14021_v8  ;;  %v14024_v24 = vsel %vm3239_vm12, %v2035_v48, -1e+09  ;;  %3766 = vmax.xlane.f32.xlu1 %v3765_v28  ;;  %vm3246_vm1 = vcmp.ne.s32.totalorder %v2990_v18, 0  ;;  %v2998_v27 = vunpack.c.2.s8 %v12999_v15  ;;  %v18580_v48 = vld [vmem:[#allocation290_spill] sm:$0xff]  ;;  %v2039_v28 = vpop.f32.mrb[178].mxu1 }
 0x2cb   : > { %vm14011_vm10 = vcmp.ne.s32.totalorder %v18572_v40, 0  ;;  %18576 = vst [vmem:[#allocation231_spill] sm:$0xff] %v14024_v24  ;;  %v3797_v14 = vmax.f32 %v3796_v10, %v14001_v39  ;;  %v18577_v40 = vld [vmem:[#allocation267_spill] sm:$0xff]  ;;  %vm3247_vm7 = vcmp.ne.s32.totalorder %v2991_v22, 0  ;;  %v2999_v9 = vunpack.c.3.s8 %v12999_v15  ;;  %v18582_v39 = vld [vmem:[#allocation8_spill] sm:$0xff]  ;;  %v2041_v56 = vpop.f32.mrb[179].mxu1 }
 0x2cc   : > { %v18579_v16 = vmax.f32 %v18577_v40, %v18578_v25  ;;  %v3781_v33 = vmax.f32 %v3780_v32, %v13026_v36  ;;  %v3789_v38 = vmax.f32 %v3788_v42, %v13159_v1  ;;  %v14038_v18 = vsel %vm13929_vm11, %v18580_v48, -1e+09  ;;  %v18592_v1 = vld [vmem:[#allocation137_spill] sm:$0xff]  ;;  %v18593_v36 = vld [vmem:[#allocation90_spill] sm:$0xff]  ;;  %v18626_v22 = vld [vmem:[#allocation235_spill] sm:$0xff] }
 0x2cd   : > { %18581 = vst [vmem:[#allocation234_spill] sm:$0xff] %v14038_v18  ;;  %v3774_v10 = vmax.f32 %v3773_v49, %v14024_v24  ;;  %v14044_v3 = vsel %vm13937_vm3, %v18582_v39, -1e+09  ;;  %v3028_v42 = vunpack.c.0.s8 %v13949_v5  ;;  %v14053_v32 = vsel %vm3246_vm1, %v2039_v28, -1e+09  ;;  %v18615_v15 = vld [vmem:[#allocation233_spill] sm:$0xff] }
 0x2ce   : > { %v3805_v41 = vmax.f32 %v18579_v16, %v14006_v50  ;;  %18583 = vst [vmem:[#allocation288_spill] sm:$0xff] %v14044_v3  ;;  %v18584_v16 = vunpack.c.2.s8 %v18375_v31  ;;  %18587 = vst [vmem:[#allocation283_spill] sm:$0xff] %v14053_v32  ;;  %vm14055_vm2 = vcmp.ne.s32.totalorder %v3035_v54, 0  ;;  %v3782_v49 = vmax.f32 %v3781_v33, %v14053_v32  ;;  %v18591_v31 = vld [vmem:[#allocation221_spill] sm:$0xff] }
 0x2cf   : > { %v14060_v52 = vsel %vm3247_vm7, %v2041_v56, -1e+09  ;;  %3775 = vmax.xlane.f32.xlu0 %v3774_v10  ;;  %vm3254_vm4 = vcmp.ne.s32.totalorder %v2998_v27, 0  ;;  %v3006_v39 = vunpack.c.2.s8 %v18591_v31  ;;  %v3798_v48 = vmax.f32 %v3797_v14, %v13411_v29  ;;  %v18594_v50 = vld [vmem:[#allocation209_spill] sm:$0xff]  ;;  %v18596_v56 = vld [vmem:[#allocation292_spill] sm:$0xff]  ;;  %v2045_v10 = vpop.f32.mrb[180].mxu1 }
 0x2d0   : > { %vm14048_vm14 = vcmp.ne.s32.totalorder %v18584_v16, 0  ;;  %18590 = vst [vmem:[#allocation236_spill] sm:$0xff] %v14060_v52  ;;  %v3806_v16 = vmax.f32 %v3805_v41, %v14038_v18  ;;  %vm3255_vm15 = vcmp.ne.s32.totalorder %v2999_v9, 0  ;;  %v3007_v28 = vunpack.c.3.s8 %v18591_v31  ;;  %v18598_v29 = vld [vmem:[#allocation293_spill] sm:$0xff]  ;;  %v2047_v31 = vpop.f32.mrb[181].mxu1  ;;  %v18605_v18 = vld [vmem:[#allocation212_spill] sm:$0xff] }
 0x2d1   : > { %v3790_v54 = vmax.f32 %v3789_v38, %v18592_v1  ;;  %v18595_v25 = vmax.f32 %v18593_v36, %v18594_v50  ;;  %v14074_v27 = vsel %vm13971_vm6, %v18596_v56, -1e+09  ;;  %v3783_v14 = vmax.f32 %v3782_v49, %v14060_v52 }
 0x2d2   : > { %18597 = vst [vmem:[#allocation102_spill] sm:$0xff] %v14074_v27  ;;  %v14080_v41 = vsel %vm13983_vm8, %v18598_v29, -1e+09  ;;  %vm14082_vm11 = vcmp.ne.s32.totalorder %v3028_v42, 0  ;;  %v3029_v38 = vunpack.c.1.s8 %v13949_v5  ;;  %v14090_v56 = vsel %vm3255_vm15, %v2047_v31, -1e+09 }
 0x2d3   : > { %v3814_v33 = vmax.f32 %v18595_v25, %v14044_v3  ;;  %18599 = vst [vmem:[#allocation286_spill] sm:$0xff] %v14080_v41  ;;  %v14087_v25 = vsel %vm3254_vm4, %v2045_v10, -1e+09  ;;  %18603 = vst [vmem:[#allocation287_spill] sm:$0xff] %v14090_v56  ;;  %3784 = vmax.xlane.f32.xlu1 %v3783_v14  ;;  %vm3262_vm3 = vcmp.ne.s32.totalorder %v3006_v39, 0  ;;  %v3014_v49 = vunpack.c.2.s8 %v13520_v53  ;;  %v18604_v10 = vld [vmem:[#allocation274_spill] sm:$0xff] }
 0x2d4   : > { %18602 = vst [vmem:[#allocation284_spill] sm:$0xff] %v14087_v25  ;;  %v3791_v0 = vmax.f32 %v3790_v54, %v14087_v25  ;;  %v3799_v29 = vmax.f32 %v3798_v48, %v13416_v62  ;;  %v3807_v19 = vmax.f32 %v3806_v16, %v13636_v21  ;;  %vm3263_vm13 = vcmp.ne.s32.totalorder %v3007_v28, 0  ;;  %v18607_v31 = vld [vmem:[#allocation295_spill] sm:$0xff]  ;;  %v2051_v14 = vpop.f32.mrb[182].mxu1 }
 0x2d5   : > { %v3015_v42 = vunpack.c.3.s8 %v13520_v53  ;;  %v3815_v1 = vmax.f32 %v3814_v33, %v14074_v27  ;;  %v18606_v3 = vmax.f32 %v18604_v10, %v18605_v18  ;;  %v14104_v39 = vsel %vm14011_vm10, %v18607_v31, -1e+09  ;;  %v18609_v62 = vld [vmem:[#allocation195_spill] sm:$0xff]  ;;  %v2053_v33 = vpop.f32.mrb[183].mxu1 }
 0x2d6   : > { %18608 = vst [vmem:[#allocation6_spill] sm:$0xff] %v14104_v39  ;;  %v3792_v48 = vmax.f32 %v3791_v0, %v14090_v56  ;;  %v14110_v16 = vsel %vm14048_vm14, %v18609_v62, -1e+09  ;;  %vm14112_vm0 = vcmp.ne.s32.totalorder %v3029_v38, 0  ;;  %v3036_v28 = vunpack.c.0.s8 %v14019_v6  ;;  %v18690_v56 = vld [vmem:[#allocation46_spill] sm:$0xff] }
 0x2d7   : > { %v3823_v54 = vmax.f32 %v18606_v3, %v14080_v41  ;;  %18610 = vst [vmem:[#allocation290_spill] sm:$0xff] %v14110_v16  ;;  %v14117_v3 = vsel %vm3262_vm3, %v2051_v14, -1e+09  ;;  %v14120_v31 = vsel %vm3263_vm13, %v2053_v33, -1e+09  ;;  %vm3270_vm6 = vcmp.ne.s32.totalorder %v3014_v49, 0 }
 0x2d8   : > { %18613 = vst [vmem:[#allocation8_spill] sm:$0xff] %v14117_v3  ;;  %v3800_v45 = vmax.f32 %v3799_v29, %v14117_v3  ;;  %18614 = vst [vmem:[#allocation221_spill] sm:$0xff] %v14120_v31  ;;  %3793 = vmax.xlane.f32.xlu0 %v3792_v48  ;;  %v3022_v0 = vunpack.c.2.s8 %v13568_v4  ;;  %v3808_v62 = vmax.f32 %v3807_v19, %v13641_v2  ;;  %v14127_v38 = vsel %vm14082_vm11, %v18615_v15, -1e+09  ;;  %v18617_v33 = vld [vmem:[#allocation91_spill] sm:$0xff]  ;;  %v18618_v48 = vld [vmem:[#allocation213_spill] sm:$0xff] }
 0x2d9   : > { %18616 = vst [vmem:[#allocation292_spill] sm:$0xff] %v14127_v38  ;;  %vm3271_vm9 = vcmp.ne.s32.totalorder %v3015_v42, 0  ;;  %v3023_v14 = vunpack.c.3.s8 %v13568_v4  ;;  %v3816_v21 = vmax.f32 %v3815_v1, %v13725_v59  ;;  %v3824_v29 = vmax.f32 %v3823_v54, %v14104_v39  ;;  %v2057_v41 = vpop.f32.mrb[184].mxu1  ;;  %v18620_v2 = vld [vmem:[#allocation119_spill] sm:$0xff] }
 0x2da   : > { %v18619_v49 = vmax.f32 %v18617_v33, %v18618_v48  ;;  %v3801_v19 = vmax.f32 %v3800_v45, %v14120_v31  ;;  %v14140_v9 = vsel %vm14055_vm2, %v18620_v2, -1e+09  ;;  %vm14142_vm8 = vcmp.ne.s32.totalorder %v3036_v28, 0  ;;  %v2059_v54 = vpop.f32.mrb[185].mxu1  ;;  %v18689_v31 = vld [vmem:[#allocation21_spill] sm:$0xff] }
 0x2db   : > { %18621 = vst [vmem:[#allocation293_spill] sm:$0xff] %v14140_v9  ;;  %v3037_v1 = vunpack.c.1.s8 %v14019_v6  ;;  %v14147_v4 = vsel %vm3270_vm6, %v2057_v41, -1e+09  ;;  %vm3278_vm5 = vcmp.ne.s32.totalorder %v3022_v0, 0  ;;  %v3030_v45 = vunpack.c.2.s8 %v13949_v5  ;;  %v18628_v0 = vld [vmem:[#allocation65_spill] sm:$0xff] }
 0x2dc   : > { %v3832_v27 = vmax.f32 %v18619_v49, %v14110_v16  ;;  %18624 = vst [vmem:[#allocation295_spill] sm:$0xff] %v14147_v4  ;;  %v3809_v15 = vmax.f32 %v3808_v62, %v14147_v4  ;;  %v14150_v49 = vsel %vm3271_vm9, %v2059_v54, -1e+09  ;;  %3802 = vmax.xlane.f32.xlu1 %v3801_v19  ;;  %v14156_v2 = vsel %vm14112_vm0, %v18626_v22, -1e+09  ;;  %v2063_v54 = vpop.f32.mrb[186].mxu1 }
 0x2dd   : > { %18625 = vst [vmem:[#allocation195_spill] sm:$0xff] %v14150_v49  ;;  %18627 = vst [vmem:[#allocation233_spill] sm:$0xff] %v14156_v2  ;;  %vm3279_vm12 = vcmp.ne.s32.totalorder %v3023_v14, 0  ;;  %v3031_v28 = vunpack.c.3.s8 %v13949_v5  ;;  %v3817_v41 = vmax.f32 %v3816_v21, %v13869_v61  ;;  %v3825_v59 = vmax.f32 %v3824_v29, %v14127_v38  ;;  %v2065_v14 = vpop.f32.mrb[187].mxu1 }
 0x2de   : > { %v3833_v62 = vmax.f32 %v3832_v27, %v14140_v9  ;;  %v3810_v19 = vmax.f32 %v3809_v15, %v14150_v49  ;;  %v14166_v39 = vsel %vm14142_vm8, %v18628_v0, -1e+09  ;;  %vm3293_vm10 = vcmp.ne.s32.totalorder %v3037_v1, 0  ;;  %v2069_v15 = vpop.f32.mrb[188].mxu1 }
 0x2df   : > { %18629 = vst [vmem:[#allocation119_spill] sm:$0xff] %v14166_v39  ;;  %v14168_v53 = vsel %vm3278_vm5, %v2063_v54, -1e+09  ;;  %v14171_v22 = vsel %vm3279_vm12, %v2065_v14, -1e+09  ;;  %vm3286_vm1 = vcmp.ne.s32.totalorder %v3030_v45, 0  ;;  %v3038_v21 = vunpack.c.2.s8 %v14019_v6 }
 0x2e0   : > { %18630 = vst [vmem:[#allocation235_spill] sm:$0xff] %v14168_v53  ;;  %v3818_v5 = vmax.f32 %v3817_v41, %v14168_v53  ;;  %18631 = vst [vmem:[#allocation65_spill] sm:$0xff] %v14171_v22  ;;  %3811 = vmax.xlane.f32.xlu0 %v3810_v19  ;;  %vm3287_vm7 = vcmp.ne.s32.totalorder %v3031_v28, 0  ;;  %v3039_v27 = vunpack.c.3.s8 %v14019_v6  ;;  %v3826_v29 = vmax.f32 %v3825_v59, %v14156_v2  ;;  %v18632_v54 = vld [vmem:[#allocation239_spill] sm:$0xff]  ;;  %v2071_v14 = vpop.f32.mrb[189].mxu1  ;;  %v18674_v53 = vld [vmem:[#allocation41_spill] sm:$0xff] }
 0x2e1   : > { %v3834_v42 = vmax.f32 %v3833_v62, %v14166_v39  ;;  %v14179_v0 = vsel %vm3293_vm10, %v18632_v54, -1e+09  ;;  %v14181_v41 = vsel %vm3286_vm1, %v2069_v15, -1e+09  ;;  %v14184_v19 = vsel %vm3287_vm7, %v2071_v14, -1e+09 }
 0x2e2   : > { %v3819_v1 = vmax.f32 %v3818_v5, %v14171_v22  ;;  %18633 = vst [vmem:[#allocation239_spill] sm:$0xff] %v14179_v0  ;;  %18634 = vst [vmem:[#allocation296_spill] sm:$0xff] %v14181_v41  ;;  %v3827_v45 = vmax.f32 %v3826_v29, %v14181_v41  ;;  %vm3294_vm14 = vcmp.ne.s32.totalorder %v3038_v21, 0  ;;  %vm3295_vm2 = vcmp.ne.s32.totalorder %v3039_v27, 0  ;;  %v2075_v6 = vpop.f32.mrb[190].mxu1  ;;  %v18638_v21 = vld [vmem:[#allocation187_spill] sm:$0xff] }
 0x2e3   : > { %18635 = vst [vmem:[#allocation297_spill] sm:$0xff] %v14184_v19  ;;  %v3835_v59 = vmax.f32 %v3834_v42, %v14179_v0  ;;  %v14188_v62 = vsel %vm3294_vm14, %v2075_v6, -1e+09  ;;  %v2077_v5 = vpop.f32.mrb[191].mxu1  ;;  %v18639_v42 = vld [vmem:[#allocation194_spill] sm:$0xff]  ;;  %v18641_v0 = vld [vmem:[#allocation216_spill] sm:$0xff] }
 0x2e4   : > { %3820 = vmax.xlane.f32.xlu1 %v3819_v1  ;;  %v3828_v28 = vmax.f32 %v3827_v45, %v14184_v19  ;;  %18636 = vst [vmem:[#allocation298_spill] sm:$0xff] %v14188_v62  ;;  %v14191_v15 = vsel %vm3295_vm2, %v2077_v5, -1e+09  ;;  %v18640_v45 = vld [vmem:[#allocation217_spill] sm:$0xff]  ;;  %vm19166_vm4 = vcmask 261120  }
 0x2e5   : > { %v3836_v54 = vmax.f32 %v3835_v59, %v14188_v62  ;;  %18637 = vst [vmem:[#allocation299_spill] sm:$0xff] %v14191_v15  ;;  %v18660_v19 = vld [vmem:[#allocation33_spill] sm:$0xff]  ;;  %vm19167_vm15 = vmmov %vm19166_vm4 }
 0x2e6   : > { %3829 = vmax.xlane.f32.xlu0 %v3828_v28  ;;  %v14194_v14 = vpop.xlane.xlu0 %3559  ;;  %vm19168_vm11 = vmmov %vm19166_vm4 }
 0x2e7   : > { %v3837_v29 = vmax.f32 %v3836_v54, %v14191_v15  ;;  %v3840_v27 = vsub.f32 %v18638_v21, %v14194_v14  ;;  %v3841_v1 = vsub.f32 %v18639_v42, %v14194_v14  ;;  %v3842_v6 = vsub.f32 %v18640_v45, %v14194_v14  ;;  %v18643_v21 = vld [vmem:[#allocation201_spill] sm:$0xff]  ;;  %v18644_v42 = vld [vmem:[#allocation86_spill] sm:$0xff]  ;;  %v18645_v45 = vld [vmem:[#allocation220_spill] sm:$0xff] }
 0x2e8   : > { %v3843_v59 = vsub.f32 %v18641_v0, %v14194_v14  ;;  %vm19169_vm3 = vmmov %vm19166_vm4 }
 0x2e9   : > { %3838 = vmax.xlane.f32.xlu1 %v3837_v29  ;;  %v4096_v5 = vmul.f32 1.442695, %v3840_v27  ;;  %v4098_v39 = vmul.f32 1.442695, %v3841_v1  ;;  %v4100_v28 = vmul.f32 1.442695, %v3842_v6  ;;  %vm19170_vm13 = vmmov %vm19169_vm3 }
 0x2ea   : > { %v4102_v2 = vmul.f32 1.442695, %v3843_v59  ;;  %v18642_v29 = vld [vmem:[#allocation103_spill] sm:$0xff]  ;;  %v18646_v59 = vld [vmem:[#allocation106_spill] sm:$0xff]  ;;  %vm19171_vm0 = vmmov %vm19169_vm3 }
 0x2eb   : > { %v14204_v54 = vpop.xlane.xlu0 %3568  ;;  %v3844_v38 = vsub.f32 %v18642_v29, %v14194_v14  ;;  %7809 = vpow2.f32 %v4096_v5  ;;  %v3845_v29 = vsub.f32 %v18646_v59, %v14194_v14  ;;  %v18651_v59 = vld [vmem:[#allocation89_spill] sm:$0xff]  ;;  %vm19172_vm6 = vmmov %vm19171_vm0 }
 0x2ec   : > { %v3848_v61 = vsub.f32 %v18643_v21, %v14204_v54  ;;  %v3849_v9 = vsub.f32 %v18644_v42, %v14204_v54  ;;  %v3850_v16 = vsub.f32 %v18645_v45, %v14204_v54  ;;  %7811 = vpow2.f32 %v4098_v39  ;;  %v18647_v21 = vld [vmem:[#allocation54_spill] sm:$0xff]  ;;  %v18648_v42 = vld [vmem:[#allocation87_spill] sm:$0xff]  ;;  %vm19173_vm9 = vmmov %vm19171_vm0 }
 0x2ed   : > { %7813 = vpow2.f32 %v4100_v28  ;;  %v4104_v5 = vmul.f32 1.442695, %v3844_v38  ;;  %v18649_v39 = vld [vmem:[#allocation279_spill] sm:$0xff]  ;;  %vm19174_vm8 = vmmov %vm19171_vm0 }
 0x2ee   : > { %v4112_v0 = vmul.f32 1.442695, %v3848_v61  ;;  %v4114_v27 = vmul.f32 1.442695, %v3849_v9  ;;  %v4116_v1 = vmul.f32 1.442695, %v3850_v16  ;;  %7815 = vpow2.f32 %v4102_v2  ;;  %vm19175_vm5 = vmmov %vm19171_vm0 }
 0x2ef   : > { %v18650_v2 = vld [vmem:[#allocation196_spill] sm:$0xff]  ;;  %vm19176_vm12 = vmmov %vm19171_vm0 }
 0x2f0   : > { %v14214_v6 = vpop.xlane.xlu1 %3577  ;;  %7817 = vpow2.f32 %v4112_v0  ;;  %v3846_v38 = vsub.f32 %v18650_v2, %v14194_v14  ;;  %v4106_v0 = vmul.f32 1.442695, %v3845_v29  ;;  %v18654_v29 = vld [vmem:[#allocation17_spill] sm:$0xff]  ;;  %vm19177_vm10 = vmmov %vm19171_vm0 }
 0x2f1   : > { %v3856_v15 = vsub.f32 %v18647_v21, %v14214_v6  ;;  %v3857_v62 = vsub.f32 %v18648_v42, %v14214_v6  ;;  %v3858_v28 = vsub.f32 %v18649_v39, %v14214_v6  ;;  %7819 = vpow2.f32 %v4114_v27  ;;  %v18652_v42 = vld [vmem:[#allocation55_spill] sm:$0xff]  ;;  %vm19178_vm1 = vmmov %vm19171_vm0 }
 0x2f2   : > { %7821 = vpow2.f32 %v4116_v1  ;;  %v18653_v27 = vld [vmem:[#allocation227_spill] sm:$0xff]  ;;  %vm19179_vm7 = vmmov %vm19171_vm0 }
 0x2f3   : > { %v4128_v61 = vmul.f32 1.442695, %v3856_v15  ;;  %v4130_v16 = vmul.f32 1.442695, %v3857_v62  ;;  %v4132_v9 = vmul.f32 1.442695, %v3858_v28  ;;  %7823 = vpow2.f32 %v4104_v5  ;;  %vm19180_vm14 = vmmov %vm19171_vm0 }
 0x2f4   : > { %v3847_v5 = vsub.f32 %v18654_v29, %v14194_v14  ;;  %vm19181_vm2 = vmmov %vm19171_vm0 }
 0x2f5   : > { %v14224_v45 = vpop.xlane.xlu1 %3586  ;;  %7825 = vpow2.f32 %v4128_v61  ;;  %v7810_v62 = vpop.eup %7809  ;;  %v4108_v61 = vmul.f32 1.442695, %v3846_v38 }
 0x2f6   : > { %v3864_v21 = vsub.f32 %v18651_v59, %v14224_v45  ;;  %v3865_v48 = vsub.f32 %v18652_v42, %v14224_v45  ;;  %v3866_v1 = vsub.f32 %v18653_v27, %v14224_v45  ;;  %7827 = vpow2.f32 %v4130_v16  ;;  %v7812_v33 = vpop.eup %7811  ;;  %v18656_v42 = vld [vmem:[#allocation93_spill] sm:$0xff] }
 0x2f7   : > { %7829 = vpow2.f32 %v4132_v9  ;;  %v14238_v59 = vpop.eup %7813  ;;  %4960 = vmatprep.mubr.f32.mxu0 %v7812_v33  ;;  %v18657_v9 = vld [vmem:[#allocation56_spill] sm:$0xff]  ;;  %v4608_v14 = vadd.f32 %v7812_v33, %v7810_v62 }
 0x2f8   : > { %v4144_v15 = vmul.f32 1.442695, %v3864_v21  ;;  %v4146_v39 = vmul.f32 1.442695, %v3865_v48  ;;  %v4148_v28 = vmul.f32 1.442695, %v3866_v1  ;;  %v14234_v2 = vpop.xlane.xlu0 %3595  ;;  %7831 = vpow2.f32 %v4106_v0  ;;  %v14246_v1 = vpop.eup %7815  ;;  %4961 = vmatmul.mubr.f32.vlgmr.msra.gmra.mrb[64].mxu0 %v7810_v62 }
 0x2f9   : > { %18655 = vst [vmem:[#allocation187_spill] sm:$0xff] %v14238_v59  ;;  %v3872_v16 = vsub.f32 %v18656_v42, %v14234_v2  ;;  %v3873_v21 = vsub.f32 %v18657_v9, %v14234_v2  ;;  %v18658_v48 = vld [vmem:[#allocation107_spill] sm:$0xff]  ;;  %18659 = vst [vmem:[#allocation194_spill] sm:$0xff] %v14246_v1  ;;  %7384 = vmatpush1.bf16.msra.mxu0 %v18660_v19  ;;  %v4609_v33 = vadd.f32 %v14238_v59, %v4608_v14  ;;  %v18663_v19 = vld [vmem:[#allocation96_spill] sm:$0xff] }
 0x2fa   : > { %7833 = vpow2.f32 %v4144_v15  ;;  %v3874_v27 = vsub.f32 %v18658_v48, %v14234_v2  ;;  %v14248_v0 = vpop.eup %7817  ;;  %v18661_v9 = vld [vmem:[#allocation223_spill] sm:$0xff]  ;;  %7385 = vmatprep.subr.bf16.mxu0 %v18029_v7  ;;  %v18665_v48 = vld [vmem:[#allocation230_spill] sm:$0xff] }
 0x2fb   : > { %7835 = vpow2.f32 %v4146_v39  ;;  %v4160_v38 = vmul.f32 1.442695, %v3872_v16  ;;  %v4162_v15 = vmul.f32 1.442695, %v3873_v21  ;;  %v14251_v42 = vpop.eup %7819  ;;  %v3851_v41 = vsub.f32 %v18661_v9, %v14204_v54  ;;  %v18664_v16 = vld [vmem:[#allocation98_spill] sm:$0xff] }
 0x2fc   : > { %7837 = vpow2.f32 %v4148_v28  ;;  %v4164_v29 = vmul.f32 1.442695, %v3874_v27  ;;  %v4110_v39 = vmul.f32 1.442695, %v3847_v5  ;;  %v14259_v62 = vpop.eup %7821  ;;  %4965 = vmatprep.mubr.f32.mxu0 %v14251_v42  ;;  %v4610_v5 = vadd.f32 %v14246_v1, %v4609_v33  ;;  %v18668_v33 = vld [vmem:[#allocation109_spill] sm:$0xff] }
 0x2fd   : > { %7839 = vpow2.f32 %v4108_v61  ;;  %18662 = vst [vmem:[#allocation217_spill] sm:$0xff] %v14259_v62  ;;  %v14268_v9 = vpop.eup %7823  ;;  %4966 = vmatmul.mubr.f32.gmra.mrb[66].mxu0 %v14248_v0  ;;  %v4617_v40 = vadd.f32 %v14251_v42, %v14248_v0  ;;  %v18687_v0 = vld [vmem:[#allocation222_spill] sm:$0xff] }
 0x2fe   : > { %v14255_v18 = vpop.xlane.xlu1 %3604  ;;  %7841 = vpow2.f32 %v4160_v38  ;;  %18666 = vst [vmem:[#allocation216_spill] sm:$0xff] %v14268_v9 }
 0x2ff   : > { %v3880_v28 = vsub.f32 %v18663_v19, %v14255_v18  ;;  %v3881_v21 = vsub.f32 %v18664_v16, %v14255_v18  ;;  %v3882_v27 = vsub.f32 %v18665_v48, %v14255_v18  ;;  %7843 = vpow2.f32 %v4162_v15  ;;  %v14272_v61 = vpop.eup %7825  ;;  %v18667_v19 = vld [vmem:[#allocation37_spill] sm:$0xff] }
 0x300   : > { %7845 = vpow2.f32 %v4164_v29  ;;  %7387 = vmatpush1.bf16.msra.mxu0 %v18667_v19  ;;  %v14275_v10 = vpop.eup %7827  ;;  %v4118_v16 = vmul.f32 1.442695, %v3851_v41  ;;  %v4611_v15 = vadd.f32 %v14268_v9, %v4610_v5  ;;  %v3852_v48 = vsub.f32 %v18668_v33, %v14204_v54  ;;  %v18670_v29 = vld [vmem:[#allocation57_spill] sm:$0xff] }
 0x301   : > { %v4176_v14 = vmul.f32 1.442695, %v3880_v28  ;;  %v4178_v38 = vmul.f32 1.442695, %v3881_v21  ;;  %v4180_v59 = vmul.f32 1.442695, %v3882_v27  ;;  %7847 = vpow2.f32 %v4110_v39  ;;  %7388 = vmatprep.subr.bf16.mxu0 %v18029_v7  ;;  %v14283_v1 = vpop.eup %7829  ;;  %4970 = vmatprep.mubr.f32.mxu0 %v14275_v10 }
 0x302   : > { %18669 = vst [vmem:[#allocation103_spill] sm:$0xff] %v14283_v1  ;;  %v18671_v41 = vld [vmem:[#allocation101_spill] sm:$0xff]  ;;  %v18672_v39 = vld [vmem:[#allocation238_spill] sm:$0xff]  ;;  %v14292_v5 = vpop.eup %7831  ;;  %4971 = vmatmul.mubr.f32.gmra.mrb[68].mxu0 %v14272_v61 }
 0x303   : > { %v14277_v22 = vpop.xlane.xlu0 %3613  ;;  %7849 = vpow2.f32 %v4176_v14  ;;  %18673 = vst [vmem:[#allocation201_spill] sm:$0xff] %v14292_v5 }
 0x304   : > { %v3888_v28 = vsub.f32 %v18670_v29, %v14277_v22  ;;  %v3889_v21 = vsub.f32 %v18671_v41, %v14277_v22  ;;  %v3890_v27 = vsub.f32 %v18672_v39, %v14277_v22  ;;  %7851 = vpow2.f32 %v4178_v38  ;;  %v14295_v19 = vpop.eup %7833  ;;  %7390 = vmatpush1.bf16.msra.mxu0 %v18674_v53  ;;  %v18675_v39 = vld [vmem:[#allocation59_spill] sm:$0xff]  ;;  %v18677_v53 = vld [vmem:[#allocation104_spill] sm:$0xff] }
 0x305   : > { %7853 = vpow2.f32 %v4180_v59  ;;  %v14298_v29 = vpop.eup %7835  ;;  %v4612_v41 = vadd.f32 %v14292_v5, %v4611_v15  ;;  %v3853_v36 = vsub.f32 %v18675_v39, %v14204_v54  ;;  %v4120_v38 = vmul.f32 1.442695, %v3852_v48  ;;  %7391 = vmatprep.subr.bf16.mxu0 %v18029_v7  ;;  %v18680_v15 = vld [vmem:[#allocation285_spill] sm:$0xff]  ;;  %v18681_v5 = vld [vmem:[#allocation44_spill] sm:$0xff] }
 0x306   : > { %v4192_v14 = vmul.f32 1.442695, %v3888_v28  ;;  %v4194_v33 = vmul.f32 1.442695, %v3889_v21  ;;  %v4196_v9 = vmul.f32 1.442695, %v3890_v27  ;;  %7855 = vpow2.f32 %v4118_v16  ;;  %v14306_v49 = vpop.eup %7837  ;;  %4975 = vmatprep.mubr.f32.mxu0 %v14298_v29 }
 0x307   : > { %v14300_v50 = vpop.xlane.xlu1 %3622  ;;  %18676 = vst [vmem:[#allocation86_spill] sm:$0xff] %v14306_v49  ;;  %v18678_v28 = vld [vmem:[#allocation58_spill] sm:$0xff]  ;;  %v14313_v27 = vpop.eup %7839  ;;  %4976 = vmatmul.mubr.f32.gmra.mrb[70].mxu0 %v14295_v19 }
 0x308   : > { %7857 = vpow2.f32 %v4192_v14  ;;  %v3896_v59 = vsub.f32 %v18677_v53, %v14300_v50  ;;  %v3897_v21 = vsub.f32 %v18678_v28, %v14300_v50  ;;  %18679 = vst [vmem:[#allocation220_spill] sm:$0xff] %v14313_v27  ;;  %v14316_v16 = vpop.eup %7841  ;;  %v3898_v48 = vsub.f32 %v18680_v15, %v14300_v50  ;;  %7393 = vmatpush1.bf16.msra.mxu0 %v18681_v5  ;;  %v18683_v5 = vld [vmem:[#allocation110_spill] sm:$0xff]  ;;  %v18685_v15 = vld [vmem:[#allocation92_spill] sm:$0xff] }
 0x309   : > { %7859 = vpow2.f32 %v4194_v33  ;;  %v14321_v4 = vpop.eup %7843  ;;  %v4613_v53 = vadd.f32 %v14313_v27, %v4612_v41  ;;  %v4122_v33 = vmul.f32 1.442695, %v3853_v36  ;;  %7394 = vmatprep.subr.bf16.mxu0 %v18029_v7  ;;  %v18688_v27 = vld [vmem:[#allocation182_spill] sm:$0xff] }
 0x30a   : > { %7861 = vpow2.f32 %v4196_v9  ;;  %v4208_v14 = vmul.f32 1.442695, %v3896_v59  ;;  %v4210_v39 = vmul.f32 1.442695, %v3897_v21  ;;  %v14329_v9 = vpop.eup %7845  ;;  %4980 = vmatprep.mubr.f32.mxu0 %v14321_v4  ;;  %v18684_v21 = vld [vmem:[#allocation112_spill] sm:$0xff] }
 0x30b   : > { %7863 = vpow2.f32 %v4120_v38  ;;  %18682 = vst [vmem:[#allocation106_spill] sm:$0xff] %v14329_v9  ;;  %v3854_v38 = vsub.f32 %v18685_v15, %v14204_v54  ;;  %v14338_v36 = vpop.eup %7847  ;;  %4981 = vmatmul.mubr.f32.gmra.mrb[72].mxu0 %v14316_v16 }
 0x30c   : > { %v14324_v28 = vpop.xlane.xlu0 %3631  ;;  %7865 = vpow2.f32 %v4208_v14  ;;  %18686 = vst [vmem:[#allocation54_spill] sm:$0xff] %v14338_v36  ;;  %v4614_v58 = vadd.f32 %v14338_v36, %v4613_v53  ;;  %7396 = vmatpush1.bf16.msra.mxu0 %v18690_v56  ;;  %v18693_v53 = vld [vmem:[#allocation118_spill] sm:$0xff] }
 0x30d   : > { %v3904_v59 = vsub.f32 %v18683_v5, %v14324_v28  ;;  %v3905_v41 = vsub.f32 %v18684_v21, %v14324_v28  ;;  %7867 = vpow2.f32 %v4210_v39  ;;  %v3910_v42 = vsub.f32 %v18687_v0, %v14324_v28  ;;  %v14347_v3 = vpop.eup %7849  ;;  %7397 = vmatprep.subr.bf16.mxu0 %v18029_v7 }
 0x30e   : > { %v3911_v14 = vsub.f32 %v18688_v27, %v14324_v28  ;;  %v3855_v5 = vsub.f32 %v18689_v31, %v14204_v54  ;;  %v4212_v21 = vmul.f32 1.442695, %v3898_v48  ;;  %v14351_v39 = vpop.eup %7851  ;;  %7869 = vpow2.f32 %v4122_v33  ;;  %4615 = vadd.xlane.f32.xlu0 %v4614_v58  ;;  %v18692_v48 = vld [vmem:[#allocation114_spill] sm:$0xff] }
 0x30f   : > { %v4224_v15 = vmul.f32 1.442695, %v3904_v59  ;;  %v4226_v57 = vmul.f32 1.442695, %v3905_v41  ;;  %v4236_v0 = vmul.f32 1.442695, %v3910_v42  ;;  %v4618_v27 = vadd.f32 %v14259_v62, %v4617_v40  ;;  %v14357_v31 = vpop.eup %7853  ;;  %4985 = vmatprep.mubr.f32.mxu0 %v14351_v39 }
 0x310   : > { %18691 = vst [vmem:[#allocation87_spill] sm:$0xff] %v14357_v31  ;;  %v4238_v54 = vmul.f32 1.442695, %v3911_v14  ;;  %v14364_v33 = vpop.eup %7855  ;;  %v18695_v40 = vld [vmem:[#allocation151_spill] sm:$0xff]  ;;  %v4124_v42 = vmul.f32 1.442695, %v3854_v38  ;;  %4986 = vmatmul.mubr.f32.gmra.mrb[74].mxu0 %v14347_v3 }
 0x311   : > { %v14354_v25 = vpop.xlane.xlu1 %3640  ;;  %7871 = vpow2.f32 %v4224_v15  ;;  %18694 = vst [vmem:[#allocation279_spill] sm:$0xff] %v14364_v33  ;;  %v3906_v41 = vsub.f32 %v18695_v40, %v14324_v28  ;;  %v4126_v14 = vmul.f32 1.442695, %v3855_v5  ;;  %v18698_v38 = vld [vmem:[#allocation197_spill] sm:$0xff]  ;;  %v4619_v5 = vadd.f32 %v14364_v33, %v4618_v27 }
 0x312   : > { %v3912_v56 = vsub.f32 %v18692_v48, %v14354_v25  ;;  %v3913_v59 = vsub.f32 %v18693_v53, %v14354_v25  ;;  %7873 = vpow2.f32 %v4226_v57  ;;  %v14369_v58 = vpop.eup %7857  ;;  %v3918_v15 = vsub.f32 %v13340_v63, %v14354_v25  ;;  %v18696_v48 = vld [vmem:[#allocation48_spill] sm:$0xff] }
 0x313   : > { %7875 = vpow2.f32 %v4212_v21  ;;  %7399 = vmatpush1.bf16.msra.mxu0 %v18696_v48  ;;  %v14374_v36 = vpop.eup %7859  ;;  %v3919_v53 = vsub.f32 %v13354_v20, %v14354_v25  ;;  %v3859_v21 = vsub.f32 %v18698_v38, %v14214_v6  ;;  %v18700_v20 = vld [vmem:[#allocation289_spill] sm:$0xff] }
 0x314   : > { %7877 = vpow2.f32 %v4236_v0  ;;  %v4240_v40 = vmul.f32 1.442695, %v3912_v56  ;;  %7400 = vmatprep.subr.bf16.mxu0 %v18029_v7  ;;  %v14379_v57 = vpop.eup %7861  ;;  %v4242_v63 = vmul.f32 1.442695, %v3913_v59  ;;  %4990 = vmatprep.mubr.f32.mxu0 %v14374_v36  ;;  %v4228_v0 = vmul.f32 1.442695, %v3906_v41 }
 0x315   : > { %18697 = vst [vmem:[#allocation196_spill] sm:$0xff] %v14379_v57  ;;  %7879 = vpow2.f32 %v4238_v54  ;;  %v14385_v48 = vpop.eup %7863  ;;  %v3914_v56 = vsub.f32 %v18700_v20, %v14354_v25  ;;  %4991 = vmatmul.mubr.f32.gmra.mrb[76].mxu0 %v14369_v58  ;;  %v4252_v47 = vmul.f32 1.442695, %v3918_v15  ;;  %v18701_v54 = vld [vmem:[#allocation60_spill] sm:$0xff]  ;;  %v18702_v59 = vld [vmem:[#allocation50_spill] sm:$0xff] }
 0x316   : > { %18699 = vst [vmem:[#allocation89_spill] sm:$0xff] %v14385_v48  ;;  %7881 = vpow2.f32 %v4124_v42  ;;  %v14390_v62 = vpop.eup %7865  ;;  %v3860_v38 = vsub.f32 %v18701_v54, %v14214_v6  ;;  %v14394_v27 = vpop.xlane.xlu0 %3649  ;;  %v4254_v41 = vmul.f32 1.442695, %v3919_v53  ;;  %v18703_v42 = vld [vmem:[#allocation61_spill] sm:$0xff]  ;;  %v4134_v12 = vmul.f32 1.442695, %v3859_v21 }
 0x317   : > { %7883 = vpow2.f32 %v4126_v14  ;;  %7402 = vmatpush1.bf16.msra.mxu0 %v18702_v59  ;;  %v14397_v33 = vpop.eup %7867  ;;  %v3861_v20 = vsub.f32 %v18703_v42, %v14214_v6  ;;  %v4620_v14 = vadd.f32 %v14385_v48, %v4619_v5  ;;  %v18704_v15 = vld [vmem:[#allocation132_spill] sm:$0xff]  ;;  %v4244_v59 = vmul.f32 1.442695, %v3914_v56  ;;  %v18707_v5 = vld [vmem:[#allocation122_spill] sm:$0xff] }
 0x318   : > { %7885 = vpow2.f32 %v4240_v40  ;;  %7403 = vmatprep.subr.bf16.mxu0 %v18029_v7  ;;  %v3862_v54 = vsub.f32 %v18704_v15, %v14214_v6  ;;  %4995 = vmatprep.mubr.f32.mxu0 %v14397_v33  ;;  %v14406_v52 = vpop.eup %7869  ;;  %v18706_v53 = vld [vmem:[#allocation120_spill] sm:$0xff]  ;;  %v4136_v21 = vmul.f32 1.442695, %v3860_v38 }
 0x319   : > { %7887 = vpow2.f32 %v4242_v63  ;;  %18705 = vst [vmem:[#allocation55_spill] sm:$0xff] %v14406_v52  ;;  %v3920_v40 = vsub.f32 %v18706_v53, %v14394_v27  ;;  %4996 = vmatmul.mubr.f32.gmra.mrb[78].mxu0 %v14390_v62  ;;  %v3921_v63 = vsub.f32 %v18707_v5, %v14394_v27  ;;  %v18708_v48 = vld [vmem:[#allocation52_spill] sm:$0xff]  ;;  %v4138_v32 = vmul.f32 1.442695, %v3861_v20 }
 0x31a   : > { %7889 = vpow2.f32 %v4228_v0  ;;  %v18709_v0 = vld [vmem:[#allocation94_spill] sm:$0xff]  ;;  %v4621_v34 = vadd.f32 %v14406_v52, %v4620_v14  ;;  %v18711_v38 = vld [vmem:[#allocation260_spill] sm:$0xff]  ;;  %v18713_v14 = vld [vmem:[#allocation229_spill] sm:$0xff] }
 0x31b   : > { %v14411_v42 = vpop.eup %7871  ;;  %7891 = vpow2.f32 %v4252_v47  ;;  %7405 = vmatpush1.bf16.msra.mxu0 %v18708_v48  ;;  %v3863_v56 = vsub.f32 %v18709_v0, %v14214_v6  ;;  %v4140_v47 = vmul.f32 1.442695, %v3862_v54  ;;  %v3926_v5 = vsub.f32 %v18711_v38, %v14394_v27  ;;  %v18714_v52 = vld [vmem:[#allocation30_spill] sm:$0xff] }
 0x31c   : > { %v14416_v15 = vpop.eup %7873  ;;  %7893 = vpow2.f32 %v4254_v41  ;;  %7406 = vmatprep.subr.bf16.mxu0 %v18029_v7  ;;  %v18712_v41 = vld [vmem:[#allocation237_spill] sm:$0xff]  ;;  %v4256_v20 = vmul.f32 1.442695, %v3920_v40  ;;  %v4258_v54 = vmul.f32 1.442695, %v3921_v63  ;;  %v18716_v40 = vld [vmem:[#allocation291_spill] sm:$0xff] }
 0x31d   : > { %v14421_v53 = vpop.eup %7875  ;;  %7895 = vpow2.f32 %v4134_v12  ;;  %5000 = vmatprep.mubr.f32.mxu0 %v14416_v15  ;;  %v3927_v6 = vsub.f32 %v18712_v41, %v14394_v27  ;;  %v3867_v12 = vsub.f32 %v18713_v14, %v14224_v45  ;;  %v4142_v51 = vmul.f32 1.442695, %v3863_v56  ;;  %v18718_v63 = vld [vmem:[#allocation117_spill] sm:$0xff]  ;;  %v14450_v56 = vpop.xlane.xlu1 %3658 }
 0x31e   : > { %18710 = vst [vmem:[#allocation227_spill] sm:$0xff] %v14421_v53  ;;  %v14427_v48 = vpop.eup %7877  ;;  %7897 = vpow2.f32 %v4244_v59  ;;  %5001 = vmatmul.mubr.f32.gmra.mrb[80].mxu0 %v14411_v42  ;;  %v4626_v59 = vadd.f32 %v14275_v10, %v14272_v61  ;;  %v3922_v41 = vsub.f32 %v18716_v40, %v14394_v27  ;;  %v18719_v14 = vld [vmem:[#allocation121_spill] sm:$0xff] }
 0x31f   : > { %v14432_v0 = vpop.eup %7879  ;;  %7899 = vpow2.f32 %v4136_v21  ;;  %7408 = vmatpush1.bf16.msra.mxu0 %v18714_v52  ;;  %v4268_v52 = vmul.f32 1.442695, %v3926_v5  ;;  %v4270_v61 = vmul.f32 1.442695, %v3927_v6  ;;  %v3869_v40 = vsub.f32 %v18719_v14, %v14224_v45  ;;  %v14507_v30 = vpop.xlane.xlu0 %3667 }
 0x320   : > { %v14437_v38 = vpop.eup %7881  ;;  %7901 = vpow2.f32 %v4138_v32  ;;  %5675 = vmatprep.mubr.f32.mxu1 %v14432_v0  ;;  %7409 = vmatprep.subr.bf16.mxu0 %v18029_v7  ;;  %v3868_v32 = vsub.f32 %v18718_v63, %v14224_v45  ;;  %v4150_v43 = vmul.f32 1.442695, %v3867_v12  ;;  %v18721_v63 = vld [vmem:[#allocation34_spill] sm:$0xff]  ;;  %v4260_v6 = vmul.f32 1.442695, %v3922_v41 }
 0x321   : > { %18715 = vst [vmem:[#allocation17_spill] sm:$0xff] %v14437_v38  ;;  %v14445_v24 = vpop.eup %7883  ;;  %v4622_v21 = vadd.f32 %v14437_v38, %v4621_v34  ;;  %7903 = vpow2.f32 %v4140_v47  ;;  %5676 = vmatmul.mubr.f32.vlgmr.msra.gmra.mrb[192].mxu1 %v14427_v48  ;;  %v18720_v47 = vld [vmem:[#allocation181_spill] sm:$0xff]  ;;  %v3928_v14 = vsub.f32 %v18723_v23, %v14450_v56  ;;  %v4154_v41 = vmul.f32 1.442695, %v3869_v40 }
 0x322   : > { %18717 = vst [vmem:[#allocation93_spill] sm:$0xff] %v14445_v24  ;;  %v14453_v10 = vpop.eup %7885  ;;  %7905 = vpow2.f32 %v4256_v20  ;;  %v3870_v5 = vsub.f32 %v18720_v47, %v14224_v45  ;;  %v4627_v20 = vadd.f32 %v14283_v1, %v4626_v59  ;;  %v18725_v59 = vld [vmem:[#allocation111_spill] sm:$0xff] }
 0x323   : > { %v14457_v8 = vpop.eup %7887  ;;  %v4623_v34 = vadd.f32 %v14445_v24, %v4622_v21  ;;  %7907 = vpow2.f32 %v4258_v54  ;;  %7411 = vmatpush1.bf16.msra.mxu0 %v18721_v63  ;;  %v4152_v54 = vmul.f32 1.442695, %v3868_v32  ;;  %v18724_v21 = vld [vmem:[#allocation126_spill] sm:$0xff]  ;;  %v3871_v23 = vsub.f32 %v18725_v59, %v14224_v45 }
 0x324   : > { %v14463_v38 = vpop.eup %7889  ;;  %7909 = vpow2.f32 %v4142_v51  ;;  %5005 = vmatprep.mubr.f32.mxu0 %v14457_v8  ;;  %7412 = vmatprep.subr.bf16.mxu0 %v18029_v7  ;;  %v3929_v47 = vsub.f32 %v18724_v21, %v14450_v56  ;;  %v4156_v24 = vmul.f32 1.442695, %v3870_v5  ;;  %v18728_v32 = vld [vmem:[#allocation38_spill] sm:$0xff]  ;;  %v4272_v40 = vmul.f32 1.442695, %v3928_v14  ;;  %v18732_v5 = vld [vmem:[#allocation108_spill] sm:$0xff] }
 0x325   : > { %18722 = vst [vmem:[#allocation56_spill] sm:$0xff] %v14463_v38  ;;  %v14470_v12 = vpop.eup %7891  ;;  %4624 = vadd.xlane.f32.xlu1 %v4623_v34  ;;  %7911 = vpow2.f32 %v4268_v52  ;;  %5006 = vmatmul.mubr.f32.gmra.mrb[82].mxu0 %v14453_v10  ;;  %v18727_v34 = vld [vmem:[#allocation18_spill] sm:$0xff]  ;;  %v3875_v59 = vsub.f32 %v18732_v5, %v14234_v2  ;;  %v4158_v14 = vmul.f32 1.442695, %v3871_v23  ;;  %v18738_v23 = vld [vmem:[#allocation125_spill] sm:$0xff] }
 0x326   : > { %v14475_v51 = vpop.eup %7893  ;;  %7913 = vpow2.f32 %v4270_v61  ;;  %v3934_v52 = vsub.f32 %v18727_v34, %v14450_v56  ;;  %v18730_v61 = vld [vmem:[#allocation262_spill] sm:$0xff]  ;;  %v4635_v34 = vadd.f32 %v14298_v29, %v14295_v19 }
 0x327   : > { %v14479_v63 = vpop.eup %7895  ;;  %7915 = vpow2.f32 %v4150_v43  ;;  %5680 = vmatprep.mubr.f32.mxu1 %v14475_v51  ;;  %7414 = vmatpush1.bf16.msra.mxu0 %v18728_v32  ;;  %v3935_v45 = vsub.f32 %v18730_v61, %v14450_v56  ;;  %v4274_v32 = vmul.f32 1.442695, %v3929_v47  ;;  %v18734_v61 = vld [vmem:[#allocation12_spill] sm:$0xff]  ;;  %v18736_v5 = vld [vmem:[#allocation62_spill] sm:$0xff] }
 0x328   : > { %18726 = vst [vmem:[#allocation107_spill] sm:$0xff] %v14479_v63  ;;  %v14485_v21 = vpop.eup %7897  ;;  %v4628_v1 = vadd.f32 %v14479_v63, %v4627_v20  ;;  %7917 = vpow2.f32 %v4260_v6  ;;  %5681 = vmatmul.mubr.f32.gmra.mrb[194].mxu1 %v14470_v12  ;;  %7415 = vmatprep.subr.bf16.mxu0 %v18029_v7  ;;  %v3930_v63 = vsub.f32 %v18734_v61, %v14450_v56  ;;  %v4284_v26 = vmul.f32 1.442695, %v3934_v52  ;;  %v18737_v19 = vld [vmem:[#allocation42_spill] sm:$0xff] }
 0x329   : > { %18729 = vst [vmem:[#allocation33_spill] sm:$0xff] %v14485_v21  ;;  %v14492_v43 = vpop.eup %7899  ;;  %7919 = vpow2.f32 %v4152_v54  ;;  %v3876_v54 = vsub.f32 %v18736_v5, %v14234_v2  ;;  %v4286_v47 = vmul.f32 1.442695, %v3935_v45  ;;  %v4166_v52 = vmul.f32 1.442695, %v3875_v59  ;;  %v18739_v5 = vld [vmem:[#allocation255_spill] sm:$0xff] }
 0x32a   : > { %18731 = vst [vmem:[#allocation223_spill] sm:$0xff] %v14492_v43  ;;  %v14498_v20 = vpop.eup %7901  ;;  %v4629_v6 = vadd.f32 %v14492_v43, %v4628_v1  ;;  %7921 = vpow2.f32 %v4154_v41  ;;  %v3877_v41 = vsub.f32 %v18738_v23, %v14234_v2  ;;  %v4636_v61 = vadd.f32 %v14306_v49, %v4635_v34  ;;  %v18743_v59 = vld [vmem:[#allocation214_spill] sm:$0xff] }
 0x32b   : > { %18733 = vst [vmem:[#allocation96_spill] sm:$0xff] %v14498_v20  ;;  %v14503_v55 = vpop.eup %7903  ;;  %7923 = vpow2.f32 %v4156_v24  ;;  %7417 = vmatpush1.bf16.msra.mxu0 %v18737_v19  ;;  %v3878_v19 = vsub.f32 %v18739_v5, %v14234_v2  ;;  %v4276_v45 = vmul.f32 1.442695, %v3930_v63  ;;  %v3879_v34 = vsub.f32 %v18743_v59, %v14234_v2  ;;  %v18744_v5 = vld [vmem:[#allocation128_spill] sm:$0xff] }
 0x32c   : > { %18735 = vst [vmem:[#allocation98_spill] sm:$0xff] %v14503_v55  ;;  %v14510_v29 = vpop.eup %7905  ;;  %v4630_v1 = vadd.f32 %v14498_v20, %v4629_v6  ;;  %7925 = vpow2.f32 %v4272_v40  ;;  %7418 = vmatprep.subr.bf16.mxu0 %v18029_v7  ;;  %v18741_v40 = vld [vmem:[#allocation127_spill] sm:$0xff]  ;;  %v3937_v49 = vsub.f32 %v18744_v5, %v14507_v30 }
 0x32d   : > { %v14516_v24 = vpop.eup %7907  ;;  %7927 = vpow2.f32 %v4274_v32  ;;  %v3936_v23 = vsub.f32 %v18741_v40, %v14507_v30  ;;  %v4168_v32 = vmul.f32 1.442695, %v3876_v54  ;;  %v18746_v40 = vld [vmem:[#allocation45_spill] sm:$0xff]  ;;  %v4172_v2 = vmul.f32 1.442695, %v3878_v19  ;;  %v18749_v54 = vld [vmem:[#allocation263_spill] sm:$0xff] }
 0x32e   : > { %v14521_v43 = vpop.eup %7909  ;;  %v4631_v6 = vadd.f32 %v14503_v55, %v4630_v1  ;;  %7929 = vpow2.f32 %v4158_v14  ;;  %5010 = vmatprep.mubr.f32.mxu0 %v14516_v24  ;;  %v4170_v14 = vmul.f32 1.442695, %v3877_v41  ;;  %v3942_v59 = vsub.f32 %v18749_v54, %v14507_v30  ;;  %v18751_v41 = vld [vmem:[#allocation247_spill] sm:$0xff] }
 0x32f   : > { %18740 = vst [vmem:[#allocation230_spill] sm:$0xff] %v14521_v43  ;;  %v14527_v20 = vpop.eup %7911  ;;  %7931 = vpow2.f32 %v4284_v26  ;;  %5011 = vmatmul.mubr.f32.gmra.mrb[84].mxu0 %v14510_v29  ;;  %v18748_v26 = vld [vmem:[#allocation232_spill] sm:$0xff]  ;;  %v4174_v19 = vmul.f32 1.442695, %v3879_v34  ;;  %v4290_v54 = vmul.f32 1.442695, %v3937_v49 }
 0x330   : > { %18742 = vst [vmem:[#allocation37_spill] sm:$0xff] %v14527_v20  ;;  %v14534_v1 = vpop.eup %7913  ;;  %v4632_v63 = vadd.f32 %v14521_v43, %v4631_v6  ;;  %7933 = vpow2.f32 %v4286_v47  ;;  %7420 = vmatpush1.bf16.msra.mxu0 %v18746_v40  ;;  %v3883_v11 = vsub.f32 %v18748_v26, %v14255_v18  ;;  %v3943_v6 = vsub.f32 %v18751_v41, %v14507_v30  ;;  %v18755_v41 = vld [vmem:[#allocation47_spill] sm:$0xff] }
 0x331   : > { %18745 = vst [vmem:[#allocation109_spill] sm:$0xff] %v14534_v1  ;;  %v14538_v55 = vpop.eup %7915  ;;  %7935 = vpow2.f32 %v4166_v52  ;;  %5685 = vmatprep.mubr.f32.mxu1 %v14534_v1  ;;  %7421 = vmatprep.subr.bf16.mxu0 %v18029_v7  ;;  %v4288_v40 = vmul.f32 1.442695, %v3936_v23  ;;  %v4644_v26 = vadd.f32 %v14321_v4, %v14316_v16  ;;  %v14563_v23 = vadd.f32 %v14374_v36, %v14369_v58  ;;  %v18757_v4 = vld [vmem:[#allocation63_spill] sm:$0xff]  ;;  %v14570_v16 = vpop.xlane.xlu1 %3676  ;;  %v18758_v58 = vld [vmem:[#allocation129_spill] sm:$0xff] }
 0x332   : > { %18747 = vst [vmem:[#allocation57_spill] sm:$0xff] %v14538_v55  ;;  %v14546_v5 = vpop.eup %7917  ;;  %4633 = vadd.xlane.f32.xlu0 %v4632_v63  ;;  %v4637_v47 = vadd.f32 %v14538_v55, %v4636_v61  ;;  %7937 = vpow2.f32 %v4276_v45  ;;  %5686 = vmatmul.mubr.f32.gmra.mrb[196].mxu1 %v14527_v20  ;;  %v18754_v61 = vld [vmem:[#allocation105_spill] sm:$0xff]  ;;  %v4300_v34 = vmul.f32 1.442695, %v3942_v59  ;;  %v3884_v49 = vsub.f32 %v18757_v4, %v14255_v18 }
 0x333   : > { %18750 = vst [vmem:[#allocation101_spill] sm:$0xff] %v14546_v5  ;;  %v14552_v52 = vpop.eup %7919  ;;  %7939 = vpow2.f32 %v4168_v32  ;;  %v3938_v45 = vsub.f32 %v18754_v61, %v14507_v30  ;;  %v4302_v36 = vmul.f32 1.442695, %v3943_v6  ;;  %v3885_v61 = vsub.f32 %v18758_v58, %v14255_v18  ;;  %v18759_v4 = vld [vmem:[#allocation5_spill] sm:$0xff]  ;;  %v18761_v6 = vld [vmem:[#allocation134_spill] sm:$0xff] }
 0x334   : > { %18752 = vst [vmem:[#allocation238_spill] sm:$0xff] %v14552_v52  ;;  %v14556_v43 = vpop.eup %7921  ;;  %v4638_v63 = vadd.f32 %v14552_v52, %v4637_v47  ;;  %7941 = vpow2.f32 %v4170_v14  ;;  %7423 = vmatpush1.bf16.msra.mxu0 %v18755_v41  ;;  %v4645_v59 = vadd.f32 %v14329_v9, %v4644_v26  ;;  %v3886_v52 = vsub.f32 %v18759_v4, %v14255_v18  ;;  %v18762_v58 = vld [vmem:[#allocation49_spill] sm:$0xff] }
 0x335   : > { %18753 = vst [vmem:[#allocation41_spill] sm:$0xff] %v14556_v43  ;;  %v14566_v32 = vpop.eup %7923  ;;  %7943 = vpow2.f32 %v4172_v2  ;;  %7424 = vmatprep.subr.bf16.mxu0 %v18029_v7  ;;  %v4182_v2 = vmul.f32 1.442695, %v3883_v11  ;;  %v4184_v26 = vmul.f32 1.442695, %v3884_v49 }
 0x336   : > { %18756 = vst [vmem:[#allocation59_spill] sm:$0xff] %v14566_v32  ;;  %v14573_v14 = vpop.eup %7925  ;;  %v4639_v47 = vadd.f32 %v14556_v43, %v4638_v63  ;;  %7945 = vpow2.f32 %v4288_v40  ;;  %v4292_v63 = vmul.f32 1.442695, %v3938_v45  ;;  %v3944_v40 = vsub.f32 %v18761_v6, %v14570_v16  ;;  %v18767_v43 = vld [vmem:[#allocation224_spill] sm:$0xff] }
 0x337   : > { %v14578_v41 = vpop.eup %7927  ;;  %7947 = vpow2.f32 %v4290_v54  ;;  %v18763_v54 = vld [vmem:[#allocation136_spill] sm:$0xff]  ;;  %v3950_v9 = vsub.f32 %v18767_v43, %v14570_v16  ;;  %v4653_v43 = vadd.f32 %v14351_v39, %v14347_v3 }
 0x338   : > { %v14583_v55 = vpop.eup %7929  ;;  %v4640_v1 = vadd.f32 %v14566_v32, %v4639_v47  ;;  %7949 = vpow2.f32 %v4174_v19  ;;  %5015 = vmatprep.mubr.f32.mxu0 %v14578_v41  ;;  %7426 = vmatpush1.bf16.msra.mxu0 %v18762_v58  ;;  %v3945_v4 = vsub.f32 %v18763_v54, %v14570_v16  ;;  %v18764_v47 = vld [vmem:[#allocation218_spill] sm:$0xff]  ;;  %v4186_v58 = vmul.f32 1.442695, %v3885_v61 }
 0x339   : > { %18760 = vst [vmem:[#allocation104_spill] sm:$0xff] %v14583_v55  ;;  %v14590_v11 = vpop.eup %7931  ;;  %7951 = vpow2.f32 %v4300_v34  ;;  %5016 = vmatmul.mubr.f32.gmra.mrb[86].mxu0 %v14573_v14  ;;  %7427 = vmatprep.subr.bf16.mxu0 %v18029_v7  ;;  %v3887_v6 = vsub.f32 %v18764_v47, %v14255_v18  ;;  %v18766_v34 = vld [vmem:[#allocation139_spill] sm:$0xff]  ;;  %v4188_v54 = vmul.f32 1.442695, %v3886_v52  ;;  %v18769_v18 = vld [vmem:[#allocation225_spill] sm:$0xff] }
 0x33a   : > { %v14596_v19 = vpop.eup %7933  ;;  %v4641_v45 = vadd.f32 %v14583_v55, %v4640_v1  ;;  %7953 = vpow2.f32 %v4302_v36  ;;  %v3891_v49 = vsub.f32 %v18766_v34, %v14277_v22  ;;  %v3951_v36 = vsub.f32 %v18769_v18, %v14570_v16  ;;  %v18773_v34 = vld [vmem:[#allocation251_spill] sm:$0xff] }
 0x33b   : > { %v14601_v32 = vpop.eup %7935  ;;  %7955 = vpow2.f32 %v4182_v2  ;;  %5690 = vmatprep.mubr.f32.mxu1 %v14596_v19  ;;  %v4304_v61 = vmul.f32 1.442695, %v3944_v40  ;;  %v4306_v52 = vmul.f32 1.442695, %v3945_v4  ;;  %v14620_v2 = vadd.f32 %v14397_v33, %v14390_v62  ;;  %v18775_v62 = vld [vmem:[#allocation133_spill] sm:$0xff]  ;;  %v14633_v33 = vpop.xlane.xlu0 %3685 }
 0x33c   : > { %18765 = vst [vmem:[#allocation58_spill] sm:$0xff] %v14601_v32  ;;  %v14608_v20 = vpop.eup %7937  ;;  %4642 = vadd.xlane.f32.xlu1 %v4641_v45  ;;  %v4646_v1 = vadd.f32 %v14601_v32, %v4645_v59  ;;  %7957 = vpow2.f32 %v4292_v63  ;;  %5691 = vmatmul.mubr.f32.gmra.mrb[198].mxu1 %v14590_v11  ;;  %v18771_v45 = vld [vmem:[#allocation51_spill] sm:$0xff]  ;;  %v4190_v40 = vmul.f32 1.442695, %v3887_v6  ;;  %v3946_v18 = vsub.f32 %v18773_v34, %v14570_v16 }
 0x33d   : > { %18768 = vst [vmem:[#allocation285_spill] sm:$0xff] %v14608_v20  ;;  %v14614_v47 = vpop.eup %7939  ;;  %7959 = vpow2.f32 %v4184_v26  ;;  %7429 = vmatpush1.bf16.msra.mxu0 %v18771_v45  ;;  %v4316_v3 = vmul.f32 1.442695, %v3950_v9  ;;  %v3892_v39 = vsub.f32 %v18775_v62, %v14277_v22  ;;  %v4318_v6 = vmul.f32 1.442695, %v3951_v36  ;;  %v18777_v9 = vld [vmem:[#allocation7_spill] sm:$0xff] }
 0x33e   : > { %18770 = vst [vmem:[#allocation44_spill] sm:$0xff] %v14614_v47  ;;  %v14623_v59 = vpop.eup %7941  ;;  %v4647_v63 = vadd.f32 %v14614_v47, %v4646_v1  ;;  %7961 = vpow2.f32 %v4186_v58  ;;  %7430 = vmatprep.subr.bf16.mxu0 %v18029_v7  ;;  %v18776_v58 = vld [vmem:[#allocation135_spill] sm:$0xff]  ;;  %v4198_v55 = vmul.f32 1.442695, %v3891_v49  ;;  %v3894_v62 = vsub.f32 %v18777_v9, %v14277_v22  ;;  %v18779_v36 = vld [vmem:[#allocation141_spill] sm:$0xff]  ;;  %v18780_v49 = vld [vmem:[#allocation146_spill] sm:$0xff] }
 0x33f   : > { %18772 = vst [vmem:[#allocation110_spill] sm:$0xff] %v14623_v59  ;;  %v14629_v26 = vpop.eup %7943  ;;  %7963 = vpow2.f32 %v4188_v54  ;;  %v3893_v45 = vsub.f32 %v18776_v58, %v14277_v22  ;;  %v4654_v54 = vadd.f32 %v14357_v31, %v4653_v43  ;;  %v3899_v43 = vsub.f32 %v18780_v49, %v14300_v50  ;;  %v18781_v9 = vld [vmem:[#allocation143_spill] sm:$0xff] }
 0x340   : > { %18774 = vst [vmem:[#allocation112_spill] sm:$0xff] %v14629_v26  ;;  %v14635_v4 = vpop.eup %7945  ;;  %v4648_v1 = vadd.f32 %v14623_v59, %v4647_v63  ;;  %7965 = vpow2.f32 %v4304_v61  ;;  %v4308_v63 = vmul.f32 1.442695, %v3946_v18  ;;  %v3952_v61 = vsub.f32 %v18779_v36, %v14633_v33  ;;  %v18783_v18 = vld [vmem:[#allocation226_spill] sm:$0xff] }
 0x341   : > { %v14640_v34 = vpop.eup %7947  ;;  %7967 = vpow2.f32 %v4306_v52  ;;  %v4200_v52 = vmul.f32 1.442695, %v3892_v39  ;;  %v3953_v59 = vsub.f32 %v18781_v9, %v14633_v33  ;;  %v3895_v36 = vsub.f32 %v18783_v18, %v14277_v22  ;;  %v18787_v22 = vld [vmem:[#allocation266_spill] sm:$0xff] }
 0x342   : > { %v14645_v47 = vpop.eup %7949  ;;  %v4649_v32 = vadd.f32 %v14629_v26, %v4648_v1  ;;  %7969 = vpow2.f32 %v4190_v40  ;;  %5020 = vmatprep.mubr.f32.mxu0 %v14640_v34  ;;  %v4202_v26 = vmul.f32 1.442695, %v3893_v45  ;;  %v4204_v49 = vmul.f32 1.442695, %v3894_v62 }
 0x343   : > { %18778 = vst [vmem:[#allocation92_spill] sm:$0xff] %v14645_v47  ;;  %v14651_v58 = vpop.eup %7951  ;;  %7971 = vpow2.f32 %v4316_v3  ;;  %5021 = vmatmul.mubr.f32.gmra.mrb[88].mxu0 %v14635_v4  ;;  %v18785_v3 = vld [vmem:[#allocation250_spill] sm:$0xff]  ;;  %v14669_v9 = vadd.f32 %v14416_v15, %v14411_v42  ;;  %v18789_v42 = vld [vmem:[#allocation253_spill] sm:$0xff]  ;;  %v4322_v62 = vmul.f32 1.442695, %v3953_v59 }
 0x344   : > { %v14658_v1 = vpop.eup %7953  ;;  %v4650_v40 = vadd.f32 %v14645_v47, %v4649_v32  ;;  %7973 = vpow2.f32 %v4318_v6  ;;  %v3958_v39 = vsub.f32 %v18785_v3, %v14633_v33  ;;  %v3959_v6 = vsub.f32 %v18787_v22, %v14633_v33  ;;  %v18792_v22 = vld [vmem:[#allocation66_spill] sm:$0xff] }
 0x345   : > { %18782 = vst [vmem:[#allocation222_spill] sm:$0xff] %v14658_v1  ;;  %v14663_v31 = vpop.eup %7955  ;;  %7975 = vpow2.f32 %v4198_v55  ;;  %5695 = vmatprep.mubr.f32.mxu1 %v14658_v1  ;;  %v4320_v55 = vmul.f32 1.442695, %v3952_v61  ;;  %v3954_v15 = vsub.f32 %v18789_v42, %v14633_v33  ;;  %v4214_v3 = vmul.f32 1.442695, %v3899_v43 }
 0x346   : > { %18784 = vst [vmem:[#allocation182_spill] sm:$0xff] %v14663_v31  ;;  %v14672_v7 = vpop.eup %7957  ;;  %4651 = vadd.xlane.f32.xlu0 %v4650_v40  ;;  %v4655_v32 = vadd.f32 %v14663_v31, %v4654_v54  ;;  %7977 = vpow2.f32 %v4308_v63  ;;  %5696 = vmatmul.mubr.f32.gmra.mrb[200].mxu1 %v14651_v58  ;;  %v4206_v54 = vmul.f32 1.442695, %v3895_v36  ;;  %v4332_v61 = vmul.f32 1.442695, %v3958_v39  ;;  %v14689_v31 = vpop.xlane.xlu1 %3694  ;;  %v18794_v39 = vld [vmem:[#allocation258_spill] sm:$0xff] }
 0x347   : > { %18786 = vst [vmem:[#allocation21_spill] sm:$0xff] %v14672_v7  ;;  %v14678_v45 = vpop.eup %7959  ;;  %7979 = vpow2.f32 %v4200_v52  ;;  %v3900_v47 = vsub.f32 %v18792_v22, %v14300_v50  ;;  %v4334_v42 = vmul.f32 1.442695, %v3959_v6  ;;  %v4663_v43 = vadd.f32 %v14379_v57, %v14563_v23  ;;  %v18796_v6 = vld [vmem:[#allocation140_spill] sm:$0xff] }
 0x348   : > { %18788 = vst [vmem:[#allocation46_spill] sm:$0xff] %v14678_v45  ;;  %v14682_v18 = vpop.eup %7961  ;;  %v4656_v40 = vadd.f32 %v14678_v45, %v4655_v32  ;;  %7981 = vpow2.f32 %v4202_v26  ;;  %v18793_v32 = vld [vmem:[#allocation144_spill] sm:$0xff]  ;;  %v3902_v22 = vsub.f32 %v18794_v39, %v14300_v50  ;;  %v18798_v39 = vld [vmem:[#allocation138_spill] sm:$0xff] }
 0x349   : > { %18790 = vst [vmem:[#allocation114_spill] sm:$0xff] %v14682_v18  ;;  %v14685_v63 = vpop.eup %7963  ;;  %7983 = vpow2.f32 %v4204_v49  ;;  %v3901_v26 = vsub.f32 %v18793_v32, %v14300_v50  ;;  %v4324_v49 = vmul.f32 1.442695, %v3954_v15  ;;  %v4216_v15 = vmul.f32 1.442695, %v3900_v47  ;;  %v18800_v47 = vld [vmem:[#allocation254_spill] sm:$0xff] }
 0x34a   : > { %18791 = vst [vmem:[#allocation118_spill] sm:$0xff] %v14685_v63  ;;  %v14691_v52 = vpop.eup %7965  ;;  %v4657_v59 = vadd.f32 %v14682_v18, %v4656_v40  ;;  %7985 = vpow2.f32 %v4320_v55  ;;  %v3960_v55 = vsub.f32 %v18796_v6, %v14689_v31  ;;  %v14709_v40 = vadd.f32 %v14457_v8, %v14453_v10 }
 0x34b   : > { %v14696_v36 = vpop.eup %7967  ;;  %7987 = vpow2.f32 %v4322_v62  ;;  %v18797_v62 = vld [vmem:[#allocation142_spill] sm:$0xff]  ;;  %v3903_v8 = vsub.f32 %v18798_v39, %v14300_v50  ;;  %v4218_v10 = vmul.f32 1.442695, %v3901_v26 }
 0x34c   : > { %v14702_v45 = vpop.eup %7969  ;;  %v4658_v1 = vadd.f32 %v14685_v63, %v4657_v59  ;;  %7989 = vpow2.f32 %v4206_v54  ;;  %5025 = vmatprep.mubr.f32.mxu0 %v14696_v36  ;;  %v3961_v32 = vsub.f32 %v18797_v62, %v14689_v31  ;;  %v4220_v63 = vmul.f32 1.442695, %v3902_v22 }
 0x34d   : > { %18795 = vst [vmem:[#allocation151_spill] sm:$0xff] %v14702_v45  ;;  %v14712_v23 = vpop.eup %7971  ;;  %7991 = vpow2.f32 %v4332_v61  ;;  %5026 = vmatmul.mubr.f32.gmra.mrb[90].mxu0 %v14691_v52  ;;  %v3966_v61 = vsub.f32 %v18800_v47, %v14689_v31  ;;  %v4336_v50 = vmul.f32 1.442695, %v3960_v55  ;;  %v14737_v47 = vpop.xlane.xlu0 %3703 }
 0x34e   : > { %v14717_v59 = vpop.eup %7973  ;;  %v4659_v54 = vadd.f32 %v14702_v45, %v4658_v1  ;;  %7993 = vpow2.f32 %v4334_v42  ;;  %v18802_v1 = vld [vmem:[#allocation183_spill] sm:$0xff]  ;;  %v4338_v39 = vmul.f32 1.442695, %v3961_v32 }
 0x34f   : > { %v14722_v6 = vpop.eup %7975  ;;  %7995 = vpow2.f32 %v4214_v3  ;;  %5700 = vmatprep.mubr.f32.mxu1 %v14717_v59  ;;  %v3967_v42 = vsub.f32 %v18802_v1, %v14689_v31  ;;  %v18804_v3 = vld [vmem:[#allocation116_spill] sm:$0xff]  ;;  %v4348_v57 = vmul.f32 1.442695, %v3966_v61  ;;  %v4672_v61 = vadd.f32 %v14421_v53, %v14620_v2 }
 0x350   : > { %18799 = vst [vmem:[#allocation48_spill] sm:$0xff] %v14722_v6  ;;  %v14727_v62 = vpop.eup %7977  ;;  %4660 = vadd.xlane.f32.xlu1 %v4659_v54  ;;  %v4664_v18 = vadd.f32 %v14722_v6, %v4663_v43  ;;  %7997 = vpow2.f32 %v4324_v49  ;;  %5701 = vmatmul.mubr.f32.gmra.mrb[202].mxu1 %v14712_v23  ;;  %v3907_v22 = vsub.f32 %v18804_v3, %v14324_v28  ;;  %v4222_v49 = vmul.f32 1.442695, %v3903_v8  ;;  %v18806_v54 = vld [vmem:[#allocation148_spill] sm:$0xff]  ;;  %v18808_v6 = vld [vmem:[#allocation145_spill] sm:$0xff] }
 0x351   : > { %18801 = vst [vmem:[#allocation197_spill] sm:$0xff] %v14727_v62  ;;  %v14733_v26 = vpop.eup %7979  ;;  %7999 = vpow2.f32 %v4216_v15  ;;  %v3908_v55 = vsub.f32 %v18806_v54, %v14324_v28  ;;  %v3909_v3 = vsub.f32 %v18808_v6, %v14324_v28  ;;  %v14750_v15 = vadd.f32 %v14516_v24, %v14510_v29  ;;  %v18810_v28 = vld [vmem:[#allocation154_spill] sm:$0xff] }
 0x352   : > { %18803 = vst [vmem:[#allocation289_spill] sm:$0xff] %v14733_v26  ;;  %v14739_v45 = vpop.eup %7981  ;;  %v4665_v43 = vadd.f32 %v14733_v26, %v4664_v18  ;;  %8001 = vpow2.f32 %v4218_v10  ;;  %v4350_v8 = vmul.f32 1.442695, %v3967_v42  ;;  %v18809_v10 = vld [vmem:[#allocation147_spill] sm:$0xff]  ;;  %v3969_v29 = vsub.f32 %v18810_v28, %v14737_v47  ;;  %v18812_v42 = vld [vmem:[#allocation9_spill] sm:$0xff] }
 0x353   : > { %18805 = vst [vmem:[#allocation60_spill] sm:$0xff] %v14739_v45  ;;  %v14744_v1 = vpop.eup %7983  ;;  %8003 = vpow2.f32 %v4220_v63  ;;  %v3968_v54 = vsub.f32 %v18809_v10, %v14737_v47  ;;  %v4230_v63 = vmul.f32 1.442695, %v3907_v22  ;;  %v4234_v22 = vmul.f32 1.442695, %v3909_v3 }
 0x354   : > { %18807 = vst [vmem:[#allocation50_spill] sm:$0xff] %v14744_v1  ;;  %v14752_v32 = vpop.eup %7985  ;;  %v4666_v18 = vadd.f32 %v14739_v45, %v4665_v43  ;;  %8005 = vpow2.f32 %v4336_v50  ;;  %v3962_v50 = vsub.f32 %v18812_v42, %v14689_v31  ;;  %v4232_v43 = vmul.f32 1.442695, %v3908_v55  ;;  %v18814_v42 = vld [vmem:[#allocation241_spill] sm:$0xff] }
 0x355   : > { %v14757_v26 = vpop.eup %7987  ;;  %8007 = vpow2.f32 %v4338_v39  ;;  %v3974_v2 = vsub.f32 %v13676_v60, %v14737_v47  ;;  %v4352_v55 = vmul.f32 1.442695, %v3968_v54  ;;  %v4354_v3 = vmul.f32 1.442695, %v3969_v29  ;;  %v18818_v29 = vld [vmem:[#allocation153_spill] sm:$0xff] }
 0x356   : > { %v14763_v24 = vpop.eup %7989  ;;  %v4667_v6 = vadd.f32 %v14744_v1, %v4666_v18  ;;  %8009 = vpow2.f32 %v4222_v49  ;;  %5030 = vmatprep.mubr.f32.mxu0 %v14757_v26  ;;  %v3975_v49 = vsub.f32 %v13690_v13, %v14737_v47  ;;  %v14783_v1 = vpop.xlane.xlu1 %3712  ;;  %v18816_v13 = vld [vmem:[#allocation67_spill] sm:$0xff]  ;;  %v14798_v45 = vadd.f32 %v14578_v41, %v14573_v14 }
 0x357   : > { %18811 = vst [vmem:[#allocation61_spill] sm:$0xff] %v14763_v24  ;;  %v14769_v10 = vpop.eup %7991  ;;  %8011 = vpow2.f32 %v4348_v57  ;;  %5031 = vmatmul.mubr.f32.gmra.mrb[92].mxu0 %v14752_v32  ;;  %v3915_v57 = vsub.f32 %v18814_v42, %v14354_v25  ;;  %v3916_v54 = vsub.f32 %v18816_v13, %v14354_v25  ;;  %v3917_v42 = vsub.f32 %v18818_v29, %v14354_v25  ;;  %v18823_v25 = vld [vmem:[#allocation242_spill] sm:$0xff] }
 0x358   : > { %v14774_v39 = vpop.eup %7993  ;;  %v4668_v18 = vadd.f32 %v14763_v24, %v4667_v6  ;;  %8013 = vpow2.f32 %v4350_v8  ;;  %v4340_v6 = vmul.f32 1.442695, %v3962_v50  ;;  %v4366_v50 = vmul.f32 1.442695, %v3975_v49 }
 0x359   : > { %v14779_v28 = vpop.eup %7995  ;;  %8015 = vpow2.f32 %v4230_v63  ;;  %5705 = vmatprep.mubr.f32.mxu1 %v14774_v39  ;;  %v4364_v63 = vmul.f32 1.442695, %v3974_v2  ;;  %v18822_v2 = vld [vmem:[#allocation64_spill] sm:$0xff]  ;;  %v3977_v14 = vsub.f32 %v18823_v25, %v14783_v1  ;;  %v18825_v25 = vld [vmem:[#allocation271_spill] sm:$0xff] }
 0x35a   : > { %18813 = vst [vmem:[#allocation132_spill] sm:$0xff] %v14779_v28  ;;  %v14786_v60 = vpop.eup %7997  ;;  %4669 = vadd.xlane.f32.xlu0 %v4668_v18  ;;  %v4673_v8 = vadd.f32 %v14779_v28, %v4672_v61  ;;  %8017 = vpow2.f32 %v4232_v43  ;;  %5706 = vmatmul.mubr.f32.gmra.mrb[204].mxu1 %v14769_v10  ;;  %v18820_v43 = vld [vmem:[#allocation68_spill] sm:$0xff]  ;;  %v3970_v28 = vsub.f32 %v18822_v2, %v14737_v47 }
 0x35b   : > { %18815 = vst [vmem:[#allocation120_spill] sm:$0xff] %v14786_v60  ;;  %v14792_v24 = vpop.eup %7999  ;;  %8019 = vpow2.f32 %v4234_v22  ;;  %v3976_v13 = vsub.f32 %v18820_v43, %v14783_v1  ;;  %v4246_v22 = vmul.f32 1.442695, %v3915_v57  ;;  %v4250_v57 = vmul.f32 1.442695, %v3917_v42 }
 0x35c   : > { %18817 = vst [vmem:[#allocation122_spill] sm:$0xff] %v14792_v24  ;;  %v14800_v18 = vpop.eup %8001  ;;  %v4674_v61 = vadd.f32 %v14792_v24, %v4673_v8  ;;  %8021 = vpow2.f32 %v4352_v55  ;;  %v4248_v55 = vmul.f32 1.442695, %v3916_v54  ;;  %v4681_v8 = vadd.f32 %v14463_v38, %v14669_v9  ;;  %v18826_v9 = vld [vmem:[#allocation294_spill] sm:$0xff]  ;;  %v18836_v38 = vld [vmem:[#allocation123_spill] sm:$0xff] }
 0x35d   : > { %18819 = vst [vmem:[#allocation52_spill] sm:$0xff] %v14800_v18  ;;  %v14805_v53 = vpop.eup %8003  ;;  %8023 = vpow2.f32 %v4354_v3  ;;  %v3982_v43 = vsub.f32 %v13727_v37, %v14783_v1  ;;  %v4356_v42 = vmul.f32 1.442695, %v3970_v28  ;;  %v4370_v24 = vmul.f32 1.442695, %v3977_v14  ;;  %v14830_v37 = vpop.xlane.xlu0 %3721 }
 0x35e   : > { %18821 = vst [vmem:[#allocation94_spill] sm:$0xff] %v14805_v53  ;;  %v14811_v41 = vpop.eup %8005  ;;  %v4675_v29 = vadd.f32 %v14800_v18, %v4674_v61  ;;  %8025 = vpow2.f32 %v4340_v6  ;;  %v3983_v61 = vsub.f32 %v18825_v25, %v14783_v1  ;;  %v4368_v6 = vmul.f32 1.442695, %v3976_v13  ;;  %v18828_v13 = vld [vmem:[#allocation155_spill] sm:$0xff] }
 0x35f   : > { %v14814_v49 = vpop.eup %8007  ;;  %8027 = vpow2.f32 %v4364_v63  ;;  %v3923_v63 = vsub.f32 %v18826_v9, %v14394_v27  ;;  %v3924_v25 = vsub.f32 %v18828_v13, %v14394_v27  ;;  %v4380_v28 = vmul.f32 1.442695, %v3982_v43  ;;  %v18832_v13 = vld [vmem:[#allocation243_spill] sm:$0xff] }
 0x360   : > { %v14820_v3 = vpop.eup %8009  ;;  %v4676_v2 = vadd.f32 %v14805_v53, %v4675_v29  ;;  %8029 = vpow2.f32 %v4366_v50  ;;  %5035 = vmatprep.mubr.f32.mxu0 %v14814_v49  ;;  %v14840_v53 = vadd.f32 %v14640_v34, %v14635_v4  ;;  %v3984_v4 = vsub.f32 %v18832_v13, %v14830_v37 }
 0x361   : > { %18824 = vst [vmem:[#allocation260_spill] sm:$0xff] %v14820_v3  ;;  %v14826_v54 = vpop.eup %8011  ;;  %8031 = vpow2.f32 %v4246_v22  ;;  %5036 = vmatmul.mubr.f32.gmra.mrb[94].mxu0 %v14811_v41  ;;  %v18830_v22 = vld [vmem:[#allocation69_spill] sm:$0xff] }
 0x362   : > { %v14833_v29 = vpop.eup %8013  ;;  %v4677_v50 = vadd.f32 %v14820_v3, %v4676_v2  ;;  %8033 = vpow2.f32 %v4248_v55  ;;  %v3925_v14 = vsub.f32 %v18830_v22, %v14394_v27  ;;  %v4382_v2 = vmul.f32 1.442695, %v3983_v61  ;;  %v18834_v27 = vld [vmem:[#allocation244_spill] sm:$0xff] }
 0x363   : > { %18827 = vst [vmem:[#allocation237_spill] sm:$0xff] %v14833_v29  ;;  %v14842_v9 = vpop.eup %8015  ;;  %8035 = vpow2.f32 %v4250_v57  ;;  %5710 = vmatprep.mubr.f32.mxu1 %v14833_v29  ;;  %v4262_v57 = vmul.f32 1.442695, %v3923_v63  ;;  %v3985_v43 = vsub.f32 %v18834_v27, %v14830_v37  ;;  %v3990_v63 = vsub.f32 %v18836_v38, %v14830_v37 }
 0x364   : > { %18829 = vst [vmem:[#allocation229_spill] sm:$0xff] %v14842_v9  ;;  %v14847_v18 = vpop.eup %8017  ;;  %4678 = vadd.xlane.f32.xlu1 %v4677_v50  ;;  %v4682_v55 = vadd.f32 %v14842_v9, %v4681_v8  ;;  %8037 = vpow2.f32 %v4368_v6  ;;  %5711 = vmatmul.mubr.f32.gmra.mrb[206].mxu1 %v14826_v54  ;;  %v18835_v8 = vld [vmem:[#allocation240_spill] sm:$0xff]  ;;  %v4264_v6 = vmul.f32 1.442695, %v3924_v25  ;;  %v4266_v13 = vmul.f32 1.442695, %v3925_v14 }
 0x365   : > { %18831 = vst [vmem:[#allocation30_spill] sm:$0xff] %v14847_v18  ;;  %v14853_v34 = vpop.eup %8019  ;;  %8039 = vpow2.f32 %v4370_v24  ;;  %v3978_v61 = vsub.f32 %v18835_v8, %v14783_v1  ;;  %v18837_v24 = vld [vmem:[#allocation228_spill] sm:$0xff]  ;;  %v4386_v38 = vmul.f32 1.442695, %v3985_v43  ;;  %v14878_v8 = vpop.xlane.xlu1 %3730 }
 0x366   : > { %18833 = vst [vmem:[#allocation291_spill] sm:$0xff] %v14853_v34  ;;  %v14857_v22 = vpop.eup %8021  ;;  %v4683_v50 = vadd.f32 %v14847_v18, %v4682_v55  ;;  %8041 = vpow2.f32 %v4356_v42  ;;  %v3991_v9 = vsub.f32 %v18837_v24, %v14830_v37  ;;  %v4690_v42 = vadd.f32 %v14485_v21, %v14709_v40  ;;  %v18840_v24 = vld [vmem:[#allocation156_spill] sm:$0xff] }
 0x367   : > { %v14862_v3 = vpop.eup %8023  ;;  %8043 = vpow2.f32 %v4380_v28  ;;  %v4384_v55 = vmul.f32 1.442695, %v3984_v4  ;;  %v18839_v28 = vld [vmem:[#allocation248_spill] sm:$0xff]  ;;  %v4372_v4 = vmul.f32 1.442695, %v3978_v61  ;;  %v3932_v18 = vsub.f32 %v18840_v24, %v14450_v56 }
 0x368   : > { %v14868_v27 = vpop.eup %8025  ;;  %v4684_v29 = vadd.f32 %v14853_v34, %v4683_v50  ;;  %8045 = vpow2.f32 %v4382_v2  ;;  %5040 = vmatprep.mubr.f32.mxu0 %v14862_v3  ;;  %v3931_v14 = vsub.f32 %v18839_v28, %v14450_v56  ;;  %v14883_v50 = vadd.f32 %v14696_v36, %v14691_v52  ;;  %v18842_v34 = vld [vmem:[#allocation157_spill] sm:$0xff] }
 0x369   : > { %18838 = vst [vmem:[#allocation117_spill] sm:$0xff] %v14868_v27  ;;  %v14874_v25 = vpop.eup %8027  ;;  %8047 = vpow2.f32 %v4262_v57  ;;  %5041 = vmatmul.mubr.f32.gmra.mrb[96].mxu0 %v14857_v22  ;;  %v4396_v57 = vmul.f32 1.442695, %v3990_v63  ;;  %v4398_v43 = vmul.f32 1.442695, %v3991_v9  ;;  %v3933_v21 = vsub.f32 %v18842_v34, %v14450_v56  ;;  %v18846_v56 = vld [vmem:[#allocation246_spill] sm:$0xff] }
 0x36a   : > { %v14885_v40 = vpop.eup %8029  ;;  %v4685_v2 = vadd.f32 %v14427_v48, %v4684_v29  ;;  %8049 = vpow2.f32 %v4264_v6  ;;  %v18844_v29 = vld [vmem:[#allocation245_spill] sm:$0xff]  ;;  %v4278_v9 = vmul.f32 1.442695, %v3931_v14  ;;  %v3993_v34 = vsub.f32 %v18846_v56, %v14878_v8  ;;  %v18847_v63 = vld [vmem:[#allocation22_spill] sm:$0xff]  ;;  %v14927_v56 = vpop.xlane.xlu0 %3739 }
 0x36b   : > { %v14890_v28 = vpop.eup %8031  ;;  %8051 = vpow2.f32 %v4266_v13  ;;  %5715 = vmatprep.mubr.f32.mxu1 %v14885_v40  ;;  %v3992_v61 = vsub.f32 %v18844_v29, %v14878_v8  ;;  %v4282_v24 = vmul.f32 1.442695, %v3933_v21  ;;  %v3998_v14 = vsub.f32 %v13807_v46, %v14878_v8  ;;  %v18849_v21 = vld [vmem:[#allocation25_spill] sm:$0xff] }
 0x36c   : > { %18841 = vst [vmem:[#allocation121_spill] sm:$0xff] %v14890_v28  ;;  %v14895_v52 = vpop.eup %8033  ;;  %v4686_v36 = vadd.f32 %v14432_v0, %v4685_v2  ;;  %v4691_v48 = vadd.f32 %v14890_v28, %v4690_v42  ;;  %8053 = vpow2.f32 %v4384_v55  ;;  %5716 = vmatmul.mubr.f32.gmra.mrb[208].mxu1 %v14874_v25  ;;  %v3986_v42 = vsub.f32 %v18847_v63, %v14830_v37 }
 0x36d   : > { %18843 = vst [vmem:[#allocation181_spill] sm:$0xff] %v14895_v52  ;;  %v14902_v6 = vpop.eup %8035  ;;  %8055 = vpow2.f32 %v4386_v38  ;;  %v4280_v55 = vmul.f32 1.442695, %v3932_v18  ;;  %v3999_v38 = vsub.f32 %v13816_v17, %v14878_v8  ;;  %v4402_v46 = vmul.f32 1.442695, %v3993_v34 }
 0x36e   : > { %18845 = vst [vmem:[#allocation34_spill] sm:$0xff] %v14902_v6  ;;  %v14906_v13 = vpop.eup %8037  ;;  %4687 = vadd.xlane.f32.xlu0 %v4686_v36  ;;  %v4692_v0 = vadd.f32 %v14895_v52, %v4691_v48  ;;  %8057 = vpow2.f32 %v4372_v4  ;;  %v4699_v4 = vadd.f32 %v14546_v5, %v14750_v15  ;;  %v4400_v48 = vmul.f32 1.442695, %v3992_v61  ;;  %v18852_v52 = vld [vmem:[#allocation159_spill] sm:$0xff] }
 0x36f   : > { %v14911_v2 = vpop.eup %8039  ;;  %8059 = vpow2.f32 %v4396_v57  ;;  %v3939_v57 = vsub.f32 %v18849_v21, %v14507_v30  ;;  %v14932_v17 = vadd.f32 %v14757_v26, %v14752_v32  ;;  %v4388_v61 = vmul.f32 1.442695, %v3986_v42  ;;  %v18854_v42 = vld [vmem:[#allocation161_spill] sm:$0xff] }
 0x370   : > { %v14917_v29 = vpop.eup %8041  ;;  %v4693_v36 = vadd.f32 %v14902_v6, %v4692_v0  ;;  %8061 = vpow2.f32 %v4398_v43  ;;  %5045 = vmatprep.mubr.f32.mxu0 %v14911_v2  ;;  %v18850_v0 = vld [vmem:[#allocation158_spill] sm:$0xff]  ;;  %v4414_v34 = vmul.f32 1.442695, %v3999_v38  ;;  %v3941_v6 = vsub.f32 %v18852_v52, %v14507_v30  ;;  %v18856_v52 = vld [vmem:[#allocation163_spill] sm:$0xff] }
 0x371   : > { %18848 = vst [vmem:[#allocation124_spill] sm:$0xff] %v14917_v29  ;;  %v14923_v18 = vpop.eup %8043  ;;  %8063 = vpow2.f32 %v4278_v9  ;;  %5046 = vmatmul.mubr.f32.gmra.mrb[98].mxu0 %v14906_v13  ;;  %v3940_v63 = vsub.f32 %v18850_v0, %v14507_v30  ;;  %v4412_v9 = vmul.f32 1.442695, %v3998_v14  ;;  %v4294_v14 = vmul.f32 1.442695, %v3939_v57 }
 0x372   : > { %v14934_v15 = vpop.eup %8045  ;;  %v4694_v43 = vadd.f32 %v14470_v12, %v4693_v36  ;;  %8065 = vpow2.f32 %v4280_v55  ;;  %v4000_v55 = vsub.f32 %v18854_v42, %v14927_v56  ;;  %v4708_v30 = vadd.f32 %v14608_v20, %v14798_v45  ;;  %v18865_v20 = vld [vmem:[#allocation109_spill] sm:$0xff] }
 0x373   : > { %v14939_v21 = vpop.eup %8047  ;;  %8067 = vpow2.f32 %v4282_v24  ;;  %5720 = vmatprep.mubr.f32.mxu1 %v14934_v15  ;;  %v4001_v38 = vsub.f32 %v18856_v52, %v14927_v56  ;;  %v4298_v57 = vmul.f32 1.442695, %v3941_v6  ;;  %v4006_v45 = vsub.f32 %v13849_v35, %v14927_v56  ;;  %v18859_v6 = vld [vmem:[#allocation29_spill] sm:$0xff] }
 0x374   : > { %18851 = vst [vmem:[#allocation126_spill] sm:$0xff] %v14939_v21  ;;  %v14944_v26 = vpop.eup %8049  ;;  %v4695_v32 = vadd.f32 %v14475_v51, %v4694_v43  ;;  %v4700_v12 = vadd.f32 %v14939_v21, %v4699_v4  ;;  %8069 = vpow2.f32 %v4400_v48  ;;  %5721 = vmatmul.mubr.f32.gmra.mrb[210].mxu1 %v14923_v18  ;;  %v18857_v4 = vld [vmem:[#allocation265_spill] sm:$0xff]  ;;  %v4296_v43 = vmul.f32 1.442695, %v3940_v63 }
 0x375   : > { %18853 = vst [vmem:[#allocation111_spill] sm:$0xff] %v14944_v26  ;;  %v14951_v24 = vpop.eup %8051  ;;  %8071 = vpow2.f32 %v4402_v46  ;;  %v3994_v48 = vsub.f32 %v18857_v4, %v14878_v8  ;;  %v4007_v46 = vsub.f32 %v13858_v44, %v14927_v56  ;;  %v14974_v63 = vadd.f32 %v14814_v49, %v14811_v41  ;;  %v14980_v44 = vpop.xlane.xlu1 %3748  ;;  %v18861_v41 = vld [vmem:[#allocation160_spill] sm:$0xff] }
 0x376   : > { %18855 = vst [vmem:[#allocation18_spill] sm:$0xff] %v14951_v24  ;;  %v14957_v36 = vpop.eup %8053  ;;  %4696 = vadd.xlane.f32.xlu1 %v4695_v32  ;;  %v4701_v51 = vadd.f32 %v14944_v26, %v4700_v12  ;;  %8073 = vpow2.f32 %v4388_v61  ;;  %v4416_v61 = vmul.f32 1.442695, %v4000_v55  ;;  %v3947_v35 = vsub.f32 %v18859_v6, %v14570_v16 }
 0x377   : > { %v14962_v0 = vpop.eup %8055  ;;  %8075 = vpow2.f32 %v4412_v9  ;;  %v4418_v12 = vmul.f32 1.442695, %v4001_v38  ;;  %v3948_v49 = vsub.f32 %v18861_v41, %v14570_v16  ;;  %v4428_v26 = vmul.f32 1.442695, %v4006_v45 }
 0x378   : > { %v14968_v42 = vpop.eup %8057  ;;  %v4702_v32 = vadd.f32 %v14951_v24, %v4701_v51  ;;  %8077 = vpow2.f32 %v4414_v34  ;;  %5050 = vmatprep.mubr.f32.mxu0 %v14962_v0  ;;  %v18860_v34 = vld [vmem:[#allocation37_spill] sm:$0xff]  ;;  %v4404_v51 = vmul.f32 1.442695, %v3994_v48  ;;  %v4430_v6 = vmul.f32 1.442695, %v4007_v46 }
 0x379   : > { %18858 = vst [vmem:[#allocation38_spill] sm:$0xff] %v14968_v42  ;;  %v14976_v9 = vpop.eup %8059  ;;  %8079 = vpow2.f32 %v4294_v14  ;;  %5051 = vmatmul.mubr.f32.gmra.mrb[100].mxu0 %v14957_v36  ;;  %v18863_v14 = vld [vmem:[#allocation162_spill] sm:$0xff]  ;;  %v4310_v45 = vmul.f32 1.442695, %v3947_v35  ;;  %v18868_v46 = vld [vmem:[#allocation189_spill] sm:$0xff] }
 0x37a   : > { %v14983_v52 = vpop.eup %8061  ;;  %v4703_v55 = vadd.f32 %v18860_v34, %v4702_v32  ;;  %8081 = vpow2.f32 %v4296_v43  ;;  %v3949_v38 = vsub.f32 %v18863_v14, %v14570_v16  ;;  %v18866_v43 = vld [vmem:[#allocation252_spill] sm:$0xff]  ;;  %v4002_v16 = vsub.f32 %v18868_v46, %v14927_v56  ;;  %v18869_v34 = vld [vmem:[#allocation167_spill] sm:$0xff]  ;;  %v18871_v46 = vld [vmem:[#allocation277_spill] sm:$0xff] }
 0x37b   : > { %v14988_v4 = vpop.eup %8063  ;;  %8083 = vpow2.f32 %v4298_v57  ;;  %5725 = vmatprep.mubr.f32.mxu1 %v14983_v52  ;;  %v4008_v32 = vsub.f32 %v18866_v43, %v14980_v44  ;;  %v4009_v41 = vsub.f32 %v18869_v34, %v14980_v44  ;;  %v18870_v43 = vld [vmem:[#allocation273_spill] sm:$0xff]  ;;  %v4015_v34 = vsub.f32 %v18871_v46, %v14980_v44  ;;  %v15029_v46 = vpop.xlane.xlu0 %3757 }
 0x37c   : > { %18862 = vst [vmem:[#allocation262_spill] sm:$0xff] %v14988_v4  ;;  %v14993_v24 = vpop.eup %8065  ;;  %v4704_v5 = vadd.f32 %v18865_v20, %v4703_v55  ;;  %v4709_v48 = vadd.f32 %v14988_v4, %v4708_v30  ;;  %8085 = vpow2.f32 %v4416_v61  ;;  %5726 = vmatmul.mubr.f32.gmra.mrb[212].mxu1 %v14976_v9  ;;  %v4717_v30 = vadd.f32 %v14672_v7, %v14840_v53 }
 0x37d   : > { %18864 = vst [vmem:[#allocation108_spill] sm:$0xff] %v14993_v24  ;;  %v15000_v57 = vpop.eup %8067  ;;  %8087 = vpow2.f32 %v4418_v12  ;;  %v4312_v61 = vmul.f32 1.442695, %v3948_v49  ;;  %v4314_v35 = vmul.f32 1.442695, %v3949_v38  ;;  %v4014_v12 = vsub.f32 %v18870_v43, %v14980_v44  ;;  %v18873_v49 = vld [vmem:[#allocation256_spill] sm:$0xff] }
 0x37e   : > { %18867 = vst [vmem:[#allocation12_spill] sm:$0xff] %v15000_v57  ;;  %v15006_v14 = vpop.eup %8069  ;;  %4705 = vadd.xlane.f32.xlu0 %v4704_v5  ;;  %v4710_v20 = vadd.f32 %v14993_v24, %v4709_v48  ;;  %8089 = vpow2.f32 %v4404_v51  ;;  %v4432_v51 = vmul.f32 1.442695, %v4008_v32  ;;  %v15023_v53 = vadd.f32 %v14862_v3, %v14857_v22  ;;  %v18874_v3 = vld [vmem:[#allocation165_spill] sm:$0xff] }
 0x37f   : > { %v15011_v55 = vpop.eup %8071  ;;  %8091 = vpow2.f32 %v4428_v26  ;;  %v3955_v38 = vsub.f32 %v18873_v49, %v14633_v33  ;;  %v4420_v48 = vmul.f32 1.442695, %v4002_v16  ;;  %v4434_v43 = vmul.f32 1.442695, %v4009_v41 }
 0x380   : > { %v15017_v4 = vpop.eup %8073  ;;  %v4711_v5 = vadd.f32 %v15000_v57, %v4710_v20  ;;  %8093 = vpow2.f32 %v4430_v6  ;;  %5055 = vmatprep.mubr.f32.mxu0 %v15011_v55  ;;  %v3956_v22 = vsub.f32 %v18874_v3, %v14633_v33  ;;  %v18875_v20 = vld [vmem:[#allocation175_spill] sm:$0xff]  ;;  %v4446_v16 = vmul.f32 1.442695, %v4015_v34  ;;  %v18881_v34 = vld [vmem:[#allocation174_spill] sm:$0xff] }
 0x381   : > { %18872 = vst [vmem:[#allocation62_spill] sm:$0xff] %v15017_v4  ;;  %v15025_v26 = vpop.eup %8075  ;;  %8095 = vpow2.f32 %v4310_v45  ;;  %5056 = vmatmul.mubr.f32.gmra.mrb[102].mxu0 %v15006_v14  ;;  %v3957_v24 = vsub.f32 %v18875_v20, %v14633_v33  ;;  %v4444_v45 = vmul.f32 1.442695, %v4014_v12  ;;  %v4326_v3 = vmul.f32 1.442695, %v3955_v38  ;;  %v18882_v38 = vld [vmem:[#allocation276_spill] sm:$0xff] }
 0x382   : > { %v15032_v6 = vpop.eup %8077  ;;  %v4712_v32 = vadd.f32 %v14590_v11, %v4711_v5  ;;  %8097 = vpow2.f32 %v4312_v61  ;;  %v18878_v61 = vld [vmem:[#allocation170_spill] sm:$0xff]  ;;  %v4017_v20 = vsub.f32 %v18881_v34, %v15029_v46  ;;  %v15066_v34 = vadd.f32 %v14911_v2, %v14906_v13  ;;  %v15078_v2 = vpop.xlane.xlu1 %3766 }
 0x383   : > { %v15039_v57 = vpop.eup %8079  ;;  %8099 = vpow2.f32 %v4314_v35  ;;  %5730 = vmatprep.mubr.f32.mxu1 %v15032_v6  ;;  %v4016_v5 = vsub.f32 %v18878_v61, %v15029_v46  ;;  %v18880_v35 = vld [vmem:[#allocation150_spill] sm:$0xff]  ;;  %v4022_v61 = vsub.f32 %v18882_v38, %v15029_v46 }
 0x384   : > { %18876 = vst [vmem:[#allocation42_spill] sm:$0xff] %v15039_v57  ;;  %v15042_v41 = vpop.eup %8081  ;;  %v4713_v49 = vadd.f32 %v14596_v19, %v4712_v32  ;;  %v4718_v11 = vadd.f32 %v15039_v57, %v4717_v30  ;;  %8101 = vpow2.f32 %v4432_v51  ;;  %5731 = vmatmul.mubr.f32.gmra.mrb[214].mxu1 %v15025_v26  ;;  %v4010_v12 = vsub.f32 %v18880_v35, %v14980_v44  ;;  %v18883_v35 = vld [vmem:[#allocation95_spill] sm:$0xff] }
 0x385   : > { %18877 = vst [vmem:[#allocation125_spill] sm:$0xff] %v15042_v41  ;;  %v15049_v33 = vpop.eup %8083  ;;  %8103 = vpow2.f32 %v4434_v43  ;;  %v4328_v30 = vmul.f32 1.442695, %v3956_v22  ;;  %v4330_v51 = vmul.f32 1.442695, %v3957_v24  ;;  %v4023_v43 = vsub.f32 %v18883_v35, %v15029_v46  ;;  %v18887_v35 = vld [vmem:[#allocation173_spill] sm:$0xff] }
 0x386   : > { %18879 = vst [vmem:[#allocation255_spill] sm:$0xff] %v15049_v33  ;;  %v15055_v7 = vpop.eup %8085  ;;  %4714 = vadd.xlane.f32.xlu1 %v4713_v49  ;;  %v4719_v19 = vadd.f32 %v15042_v41, %v4718_v11  ;;  %8105 = vpow2.f32 %v4420_v48  ;;  %v4726_v24 = vadd.f32 %v14727_v62, %v14883_v50  ;;  %v4448_v48 = vmul.f32 1.442695, %v4016_v5 }
 0x387   : > { %v15058_v32 = vpop.eup %8087  ;;  %8107 = vpow2.f32 %v4444_v45  ;;  %v18885_v45 = vld [vmem:[#allocation113_spill] sm:$0xff]  ;;  %v4436_v38 = vmul.f32 1.442695, %v4010_v12  ;;  %v4450_v13 = vmul.f32 1.442695, %v4017_v20  ;;  %v3965_v41 = vsub.f32 %v18887_v35, %v14689_v31 }
 0x388   : > { %v15068_v57 = vpop.eup %8089  ;;  %v4720_v49 = vadd.f32 %v15049_v33, %v4719_v19  ;;  %8109 = vpow2.f32 %v4446_v16  ;;  %5060 = vmatprep.mubr.f32.mxu0 %v15058_v32  ;;  %v3963_v11 = vsub.f32 %v18885_v45, %v14689_v31  ;;  %v18886_v16 = vld [vmem:[#allocation85_spill] sm:$0xff]  ;;  %v4462_v12 = vmul.f32 1.442695, %v4023_v43  ;;  %v18890_v45 = vld [vmem:[#allocation222_spill] sm:$0xff]  ;;  %v18894_v43 = vld [vmem:[#allocation180_spill] sm:$0xff] }
 0x389   : > { %18884 = vst [vmem:[#allocation127_spill] sm:$0xff] %v15068_v57  ;;  %v15074_v22 = vpop.eup %8091  ;;  %8111 = vpow2.f32 %v4326_v3  ;;  %5061 = vmatmul.mubr.f32.gmra.mrb[104].mxu0 %v15055_v7  ;;  %v3964_v5 = vsub.f32 %v18886_v16, %v14689_v31  ;;  %v4460_v3 = vmul.f32 1.442695, %v4022_v61  ;;  %v4025_v35 = vsub.f32 %v18894_v43, %v15078_v2 }
 0x38a   : > { %v15081_v19 = vpop.eup %8093  ;;  %v4721_v50 = vadd.f32 %v14651_v58, %v4720_v49  ;;  %8113 = vpow2.f32 %v4328_v30  ;;  %v18891_v30 = vld [vmem:[#allocation178_spill] sm:$0xff]  ;;  %v4342_v16 = vmul.f32 1.442695, %v3963_v11  ;;  %v18895_v11 = vld [vmem:[#allocation172_spill] sm:$0xff]  ;;  %v15115_v43 = vadd.f32 %v14962_v0, %v14957_v36  ;;  %v15127_v0 = vpop.xlane.xlu0 %3775 }
 0x38b   : > { %v15088_v33 = vpop.eup %8095  ;;  %8115 = vpow2.f32 %v4330_v51  ;;  %5735 = vmatprep.mubr.f32.mxu1 %v15081_v19  ;;  %v4024_v49 = vsub.f32 %v18891_v30, %v15078_v2  ;;  %v18893_v51 = vld [vmem:[#allocation264_spill] sm:$0xff]  ;;  %v4030_v30 = vsub.f32 %v18895_v11, %v15078_v2  ;;  %v4466_v36 = vmul.f32 1.442695, %v4025_v35 }
 0x38c   : > { %18888 = vst [vmem:[#allocation214_spill] sm:$0xff] %v15088_v33  ;;  %v15091_v20 = vpop.eup %8097  ;;  %v4722_v62 = vadd.f32 %v18890_v45, %v4721_v50  ;;  %v4727_v58 = vadd.f32 %v15088_v33, %v4726_v24  ;;  %8117 = vpow2.f32 %v4448_v48  ;;  %5736 = vmatmul.mubr.f32.gmra.mrb[216].mxu1 %v15074_v22  ;;  %v4018_v61 = vsub.f32 %v18893_v51, %v15029_v46  ;;  %v18896_v51 = vld [vmem:[#allocation280_spill] sm:$0xff] }
 0x38d   : > { %18889 = vst [vmem:[#allocation128_spill] sm:$0xff] %v15091_v20  ;;  %v15098_v31 = vpop.eup %8099  ;;  %8119 = vpow2.f32 %v4450_v13  ;;  %v4344_v48 = vmul.f32 1.442695, %v3964_v5  ;;  %v4346_v50 = vmul.f32 1.442695, %v3965_v41  ;;  %v4031_v13 = vsub.f32 %v18896_v51, %v15078_v2  ;;  %v18900_v51 = vld [vmem:[#allocation179_spill] sm:$0xff] }
 0x38e   : > { %18892 = vst [vmem:[#allocation45_spill] sm:$0xff] %v15098_v31  ;;  %v15104_v21 = vpop.eup %8101  ;;  %4723 = vadd.xlane.f32.xlu0 %v4722_v62  ;;  %v4728_v24 = vadd.f32 %v15091_v20, %v4727_v58  ;;  %8121 = vpow2.f32 %v4436_v38  ;;  %v4735_v41 = vadd.f32 %v14786_v60, %v14932_v17  ;;  %v4464_v38 = vmul.f32 1.442695, %v4024_v49 }
 0x38f   : > { %v15107_v45 = vpop.eup %8103  ;;  %8123 = vpow2.f32 %v4460_v3  ;;  %v18898_v3 = vld [vmem:[#allocation11_spill] sm:$0xff]  ;;  %v4452_v11 = vmul.f32 1.442695, %v4018_v61  ;;  %v3973_v20 = vsub.f32 %v18900_v51, %v14737_v47  ;;  %v4478_v61 = vmul.f32 1.442695, %v4031_v13  ;;  %v18906_v13 = vld [vmem:[#allocation188_spill] sm:$0xff] }
 0x390   : > { %v15117_v33 = vpop.eup %8105  ;;  %v4729_v62 = vadd.f32 %v15098_v31, %v4728_v24  ;;  %8125 = vpow2.f32 %v4462_v12  ;;  %5065 = vmatprep.mubr.f32.mxu0 %v15107_v45  ;;  %v3971_v58 = vsub.f32 %v18898_v3, %v14737_v47  ;;  %v18899_v12 = vld [vmem:[#allocation177_spill] sm:$0xff]  ;;  %v4033_v51 = vsub.f32 %v18906_v13, %v15127_v0 }
 0x391   : > { %18897 = vst [vmem:[#allocation232_spill] sm:$0xff] %v15117_v33  ;;  %v15123_v5 = vpop.eup %8107  ;;  %8127 = vpow2.f32 %v4342_v16  ;;  %5066 = vmatmul.mubr.f32.gmra.mrb[106].mxu0 %v15104_v21  ;;  %v3972_v49 = vsub.f32 %v18899_v12, %v14737_v47  ;;  %v4476_v16 = vmul.f32 1.442695, %v4030_v30  ;;  %v15164_v13 = vadd.f32 %v15011_v55, %v15006_v14  ;;  %v15176_v14 = vpop.xlane.xlu1 %3784 }
 0x392   : > { %v15130_v24 = vpop.eup %8109  ;;  %v4730_v17 = vadd.f32 %v14712_v23, %v4729_v62  ;;  %8129 = vpow2.f32 %v4344_v48  ;;  %v18903_v48 = vld [vmem:[#allocation185_spill] sm:$0xff]  ;;  %v4358_v12 = vmul.f32 1.442695, %v3971_v58  ;;  %v18907_v58 = vld [vmem:[#allocation115_spill] sm:$0xff] }
 0x393   : > { %v15137_v31 = vpop.eup %8111  ;;  %8131 = vpow2.f32 %v4346_v50  ;;  %5740 = vmatprep.mubr.f32.mxu1 %v15130_v24  ;;  %v4032_v62 = vsub.f32 %v18903_v48, %v15127_v0  ;;  %v18905_v50 = vld [vmem:[#allocation168_spill] sm:$0xff]  ;;  %v4038_v48 = vsub.f32 %v18907_v58, %v15127_v0  ;;  %v4482_v58 = vmul.f32 1.442695, %v4033_v51 }
 0x394   : > { %18901 = vst [vmem:[#allocation263_spill] sm:$0xff] %v15137_v31  ;;  %v15140_v35 = vpop.eup %8113  ;;  %v4731_v3 = vadd.f32 %v14717_v59, %v4730_v17  ;;  %v4736_v23 = vadd.f32 %v15137_v31, %v4735_v41  ;;  %8133 = vpow2.f32 %v4464_v38  ;;  %5741 = vmatmul.mubr.f32.gmra.mrb[218].mxu1 %v15123_v5  ;;  %v4026_v30 = vsub.f32 %v18905_v50, %v15078_v2  ;;  %v18908_v50 = vld [vmem:[#allocation231_spill] sm:$0xff] }
 0x395   : > { %18902 = vst [vmem:[#allocation247_spill] sm:$0xff] %v15140_v35  ;;  %v15147_v47 = vpop.eup %8115  ;;  %8135 = vpow2.f32 %v4466_v36  ;;  %v4360_v41 = vmul.f32 1.442695, %v3972_v49  ;;  %v4362_v38 = vmul.f32 1.442695, %v3973_v20  ;;  %v4039_v36 = vsub.f32 %v18908_v50, %v15127_v0 }
 0x396   : > { %18904 = vst [vmem:[#allocation105_spill] sm:$0xff] %v15147_v47  ;;  %v15153_v60 = vpop.eup %8117  ;;  %4732 = vadd.xlane.f32.xlu1 %v4731_v3  ;;  %v4737_v59 = vadd.f32 %v15140_v35, %v4736_v23  ;;  %8137 = vpow2.f32 %v4452_v11  ;;  %v4744_v20 = vadd.f32 %v14868_v27, %v14974_v63  ;;  %v4480_v11 = vmul.f32 1.442695, %v4032_v62 }
 0x397   : > { %v15156_v17 = vpop.eup %8119  ;;  %8139 = vpow2.f32 %v4476_v16  ;;  %v18910_v16 = vld [vmem:[#allocation152_spill] sm:$0xff]  ;;  %v4468_v63 = vmul.f32 1.442695, %v4026_v30  ;;  %v4492_v35 = vmul.f32 1.442695, %v4038_v48  ;;  %v18915_v30 = vld [vmem:[#allocation190_spill] sm:$0xff] }
 0x398   : > { %v15166_v31 = vpop.eup %8121  ;;  %v4738_v3 = vadd.f32 %v15147_v47, %v4737_v59  ;;  %8141 = vpow2.f32 %v4478_v61  ;;  %5070 = vmatprep.mubr.f32.mxu0 %v15156_v17  ;;  %v3979_v23 = vsub.f32 %v18910_v16, %v14783_v1  ;;  %v18911_v61 = vld [vmem:[#allocation184_spill] sm:$0xff]  ;;  %v4494_v16 = vmul.f32 1.442695, %v4039_v36  ;;  %v18917_v36 = vld [vmem:[#allocation169_spill] sm:$0xff] }
 0x399   : > { %18909 = vst [vmem:[#allocation47_spill] sm:$0xff] %v15166_v31  ;;  %v15172_v49 = vpop.eup %8123  ;;  %8143 = vpow2.f32 %v4358_v12  ;;  %5071 = vmatmul.mubr.f32.gmra.mrb[108].mxu0 %v15153_v60  ;;  %v3980_v62 = vsub.f32 %v18911_v61, %v14783_v1  ;;  %v18913_v12 = vld [vmem:[#allocation186_spill] sm:$0xff] }
 0x39a   : > { %v15179_v55 = vpop.eup %8125  ;;  %v4739_v59 = vadd.f32 %v14769_v10, %v4738_v3  ;;  %8145 = vpow2.f32 %v4360_v41  ;;  %v3981_v51 = vsub.f32 %v18913_v12, %v14783_v1  ;;  %v4040_v41 = vsub.f32 %v18915_v30, %v15176_v14  ;;  %v18918_v3 = vld [vmem:[#allocation192_spill] sm:$0xff] }
 0x39b   : > { %v15184_v50 = vpop.eup %8127  ;;  %8147 = vpow2.f32 %v4362_v38  ;;  %5745 = vmatprep.mubr.f32.mxu1 %v15179_v55  ;;  %v4374_v48 = vmul.f32 1.442695, %v3979_v23  ;;  %v4034_v1 = vsub.f32 %v18917_v36, %v15127_v0  ;;  %v4041_v61 = vsub.f32 %v18918_v3, %v15176_v14  ;;  %v18920_v36 = vld [vmem:[#allocation236_spill] sm:$0xff] }
 0x39c   : > { %18912 = vst [vmem:[#allocation63_spill] sm:$0xff] %v15184_v50  ;;  %v15189_v47 = vpop.eup %8129  ;;  %v4740_v27 = vadd.f32 %v14774_v39, %v4739_v59  ;;  %v4745_v10 = vadd.f32 %v15184_v50, %v4744_v20  ;;  %8149 = vpow2.f32 %v4480_v11  ;;  %5746 = vmatmul.mubr.f32.gmra.mrb[220].mxu1 %v15172_v49  ;;  %v4376_v20 = vmul.f32 1.442695, %v3980_v62 }
 0x39d   : > { %18914 = vst [vmem:[#allocation129_spill] sm:$0xff] %v15189_v47  ;;  %v15196_v38 = vpop.eup %8131  ;;  %8151 = vpow2.f32 %v4482_v58  ;;  %v15207_v11 = vadd.f32 %v15058_v32, %v15055_v7  ;;  %v4378_v23 = vmul.f32 1.442695, %v3981_v51  ;;  %v18919_v58 = vld [vmem:[#allocation283_spill] sm:$0xff]  ;;  %v4047_v3 = vsub.f32 %v18920_v36, %v15176_v14 }
 0x39e   : > { %18916 = vst [vmem:[#allocation5_spill] sm:$0xff] %v15196_v38  ;;  %v15202_v12 = vpop.eup %8133  ;;  %4741 = vadd.xlane.f32.xlu0 %v4740_v27  ;;  %v4746_v39 = vadd.f32 %v15189_v47, %v4745_v10  ;;  %8153 = vpow2.f32 %v4468_v63  ;;  %v4046_v30 = vsub.f32 %v18919_v58, %v15176_v14  ;;  %v4753_v63 = vadd.f32 %v14917_v29, %v15023_v53  ;;  %v15225_v10 = vpop.xlane.xlu0 %3793  ;;  %v18927_v29 = vld [vmem:[#allocation237_spill] sm:$0xff] }
 0x39f   : > { %v15209_v59 = vpop.eup %8135  ;;  %8155 = vpow2.f32 %v4492_v35  ;;  %v4496_v7 = vmul.f32 1.442695, %v4040_v41  ;;  %v18922_v35 = vld [vmem:[#allocation26_spill] sm:$0xff]  ;;  %v4498_v51 = vmul.f32 1.442695, %v4041_v61 }
 0x3a0   : > { %v15215_v50 = vpop.eup %8137  ;;  %v4747_v27 = vadd.f32 %v15196_v38, %v4746_v39  ;;  %8157 = vpow2.f32 %v4494_v16  ;;  %5075 = vmatprep.mubr.f32.mxu0 %v15209_v59  ;;  %v3987_v62 = vsub.f32 %v18922_v35, %v14830_v37  ;;  %v4484_v53 = vmul.f32 1.442695, %v4034_v1  ;;  %v18923_v16 = vld [vmem:[#allocation191_spill] sm:$0xff]  ;;  %v18928_v1 = vld [vmem:[#allocation176_spill] sm:$0xff] }
 0x3a1   : > { %18921 = vst [vmem:[#allocation134_spill] sm:$0xff] %v15215_v50  ;;  %v15221_v32 = vpop.eup %8139  ;;  %8159 = vpow2.f32 %v4374_v48  ;;  %5076 = vmatmul.mubr.f32.gmra.mrb[110].mxu0 %v15202_v12  ;;  %v3988_v41 = vsub.f32 %v18923_v16, %v14830_v37  ;;  %v4508_v47 = vmul.f32 1.442695, %v4046_v30  ;;  %v4510_v35 = vmul.f32 1.442695, %v4047_v3  ;;  %v18925_v48 = vld [vmem:[#allocation193_spill] sm:$0xff] }
 0x3a2   : > { %v15228_v58 = vpop.eup %8141  ;;  %v4748_v39 = vadd.f32 %v14826_v54, %v4747_v27  ;;  %8161 = vpow2.f32 %v4376_v20  ;;  %v3989_v61 = vsub.f32 %v18925_v48, %v14830_v37  ;;  %v4048_v20 = vsub.f32 %v18928_v1, %v15225_v10  ;;  %v18930_v3 = vld [vmem:[#allocation130_spill] sm:$0xff]  ;;  %v18931_v27 = vld [vmem:[#allocation200_spill] sm:$0xff] }
 0x3a3   : > { %v15233_v36 = vpop.eup %8143  ;;  %8163 = vpow2.f32 %v4378_v23  ;;  %5750 = vmatprep.mubr.f32.mxu1 %v15228_v58  ;;  %v4390_v30 = vmul.f32 1.442695, %v3987_v62  ;;  %v4042_v37 = vsub.f32 %v18930_v3, %v15176_v14  ;;  %v4049_v16 = vsub.f32 %v18931_v27, %v15225_v10  ;;  %v18933_v3 = vld [vmem:[#allocation287_spill] sm:$0xff] }
 0x3a4   : > { %18924 = vst [vmem:[#allocation49_spill] sm:$0xff] %v15233_v36  ;;  %v15238_v38 = vpop.eup %8145  ;;  %v4749_v28 = vadd.f32 %v18927_v29, %v4748_v39  ;;  %v4754_v54 = vadd.f32 %v15233_v36, %v4753_v63  ;;  %8165 = vpow2.f32 %v4496_v7  ;;  %5751 = vmatmul.mubr.f32.gmra.mrb[222].mxu1 %v15221_v32  ;;  %v4392_v63 = vmul.f32 1.442695, %v3988_v41 }
 0x3a5   : > { %18926 = vst [vmem:[#allocation136_spill] sm:$0xff] %v15238_v38  ;;  %v15245_v23 = vpop.eup %8147  ;;  %8167 = vpow2.f32 %v4498_v51  ;;  %v15256_v7 = vadd.f32 %v15107_v45, %v15104_v21  ;;  %v4394_v62 = vmul.f32 1.442695, %v3989_v61  ;;  %v18932_v51 = vld [vmem:[#allocation284_spill] sm:$0xff]  ;;  %v4055_v27 = vsub.f32 %v18933_v3, %v15225_v10 }
 0x3a6   : > { %18929 = vst [vmem:[#allocation218_spill] sm:$0xff] %v15245_v23  ;;  %v15251_v48 = vpop.eup %8149  ;;  %4750 = vadd.xlane.f32.xlu1 %v4749_v28  ;;  %v4755_v29 = vadd.f32 %v15238_v38, %v4754_v54  ;;  %8169 = vpow2.f32 %v4484_v53  ;;  %v4054_v1 = vsub.f32 %v18932_v51, %v15225_v10  ;;  %v4762_v53 = vadd.f32 %v14968_v42, %v15066_v34  ;;  %v15274_v54 = vpop.xlane.xlu1 %3802 }
 0x3a7   : > { %v15258_v39 = vpop.eup %8151  ;;  %8171 = vpow2.f32 %v4508_v47  ;;  %v4512_v21 = vmul.f32 1.442695, %v4048_v20  ;;  %v18935_v47 = vld [vmem:[#allocation198_spill] sm:$0xff]  ;;  %v4514_v61 = vmul.f32 1.442695, %v4049_v16 }
 0x3a8   : > { %v15264_v36 = vpop.eup %8153  ;;  %v4756_v28 = vadd.f32 %v15245_v23, %v4755_v29  ;;  %8173 = vpow2.f32 %v4510_v35  ;;  %5080 = vmatprep.mubr.f32.mxu0 %v15258_v39  ;;  %v3995_v41 = vsub.f32 %v18935_v47, %v14878_v8  ;;  %v4500_v34 = vmul.f32 1.442695, %v4042_v37  ;;  %v18936_v35 = vld [vmem:[#allocation97_spill] sm:$0xff]  ;;  %v18940_v37 = vld [vmem:[#allocation202_spill] sm:$0xff] }
 0x3a9   : > { %18934 = vst [vmem:[#allocation139_spill] sm:$0xff] %v15264_v36  ;;  %v15270_v45 = vpop.eup %8155  ;;  %8175 = vpow2.f32 %v4390_v30  ;;  %5081 = vmatmul.mubr.f32.gmra.mrb[112].mxu0 %v15251_v48  ;;  %v3996_v20 = vsub.f32 %v18936_v35, %v14878_v8  ;;  %v4524_v38 = vmul.f32 1.442695, %v4054_v1  ;;  %v4526_v47 = vmul.f32 1.442695, %v4055_v27  ;;  %v18938_v30 = vld [vmem:[#allocation99_spill] sm:$0xff] }
 0x3aa   : > { %v15277_v51 = vpop.eup %8157  ;;  %v4757_v29 = vadd.f32 %v14874_v25, %v4756_v28  ;;  %8177 = vpow2.f32 %v4392_v63  ;;  %v3997_v16 = vsub.f32 %v18938_v30, %v14878_v8  ;;  %v4056_v63 = vsub.f32 %v18940_v37, %v15274_v54  ;;  %v18942_v8 = vld [vmem:[#allocation204_spill] sm:$0xff] }
 0x3ab   : > { %v15282_v3 = vpop.eup %8159  ;;  %8179 = vpow2.f32 %v4394_v62  ;;  %5755 = vmatprep.mubr.f32.mxu1 %v15277_v51  ;;  %v4406_v1 = vmul.f32 1.442695, %v3995_v41  ;;  %v4057_v27 = vsub.f32 %v18942_v8, %v15274_v54  ;;  %v15300_v28 = vadd.f32 %v15156_v17, %v15153_v60  ;;  %v18945_v60 = vld [vmem:[#allocation221_spill] sm:$0xff] }
 0x3ac   : > { %18937 = vst [vmem:[#allocation224_spill] sm:$0xff] %v15282_v3  ;;  %v15287_v23 = vpop.eup %8161  ;;  %v4758_v42 = vadd.f32 %v14885_v40, %v4757_v29  ;;  %v4763_v25 = vadd.f32 %v15282_v3, %v4762_v53  ;;  %8181 = vpow2.f32 %v4512_v21  ;;  %5756 = vmatmul.mubr.f32.gmra.mrb[224].mxu1 %v15270_v45  ;;  %v18943_v21 = vld [vmem:[#allocation171_spill] sm:$0xff]  ;;  %v4408_v35 = vmul.f32 1.442695, %v3996_v20 }
 0x3ad   : > { %18939 = vst [vmem:[#allocation225_spill] sm:$0xff] %v15287_v23  ;;  %v15294_v62 = vpop.eup %8163  ;;  %8183 = vpow2.f32 %v4514_v61  ;;  %v4050_v29 = vsub.f32 %v18943_v21, %v15225_v10  ;;  %v4410_v41 = vmul.f32 1.442695, %v3997_v16  ;;  %v18944_v61 = vld [vmem:[#allocation8_spill] sm:$0xff]  ;;  %v4063_v17 = vsub.f32 %v18945_v60, %v15274_v54 }
 0x3ae   : > { %18941 = vst [vmem:[#allocation51_spill] sm:$0xff] %v15294_v62  ;;  %v15302_v40 = vpop.eup %8165  ;;  %4759 = vadd.xlane.f32.xlu0 %v4758_v42  ;;  %v4764_v53 = vadd.f32 %v15287_v23, %v4763_v25  ;;  %8185 = vpow2.f32 %v4500_v34  ;;  %v4062_v37 = vsub.f32 %v18944_v61, %v15274_v54  ;;  %v4771_v34 = vadd.f32 %v15017_v4, %v15115_v43  ;;  %v15323_v61 = vpop.xlane.xlu0 %3811 }
 0x3af   : > { %v15307_v30 = vpop.eup %8167  ;;  %8187 = vpow2.f32 %v4524_v38  ;;  %v4528_v25 = vmul.f32 1.442695, %v4056_v63  ;;  %v18946_v38 = vld [vmem:[#allocation269_spill] sm:$0xff]  ;;  %v4530_v21 = vmul.f32 1.442695, %v4057_v27 }
 0x3b0   : > { %v15313_v8 = vpop.eup %8169  ;;  %v4765_v42 = vadd.f32 %v15294_v62, %v4764_v53  ;;  %8189 = vpow2.f32 %v4526_v47  ;;  %5085 = vmatprep.mubr.f32.mxu0 %v15307_v30  ;;  %v4003_v16 = vsub.f32 %v18946_v38, %v14927_v56  ;;  %v4516_v43 = vmul.f32 1.442695, %v4050_v29  ;;  %v18947_v47 = vld [vmem:[#allocation100_spill] sm:$0xff]  ;;  %v18951_v29 = vld [vmem:[#allocation267_spill] sm:$0xff] }
 0x3b1   : > { %v15319_v20 = vpop.eup %8171  ;;  %8191 = vpow2.f32 %v4406_v1  ;;  %5086 = vmatmul.mubr.f32.gmra.mrb[114].mxu0 %v15302_v40  ;;  %v4004_v63 = vsub.f32 %v18947_v47, %v14927_v56  ;;  %v4540_v62 = vmul.f32 1.442695, %v4062_v37  ;;  %v4542_v38 = vmul.f32 1.442695, %v4063_v17  ;;  %v18949_v1 = vld [vmem:[#allocation203_spill] sm:$0xff] }
 0x3b2   : > { %v15326_v60 = vpop.eup %8173  ;;  %v4766_v53 = vadd.f32 %v14923_v18, %v4765_v42  ;;  %8193 = vpow2.f32 %v4408_v35  ;;  %v4005_v27 = vsub.f32 %v18949_v1, %v14927_v56  ;;  %v4064_v35 = vsub.f32 %v18951_v29, %v15323_v61  ;;  %v18953_v56 = vld [vmem:[#allocation268_spill] sm:$0xff] }
 0x3b3   : > { %v15331_v23 = vpop.eup %8175  ;;  %8195 = vpow2.f32 %v4410_v41  ;;  %5760 = vmatprep.mubr.f32.mxu1 %v15326_v60  ;;  %v4422_v37 = vmul.f32 1.442695, %v4003_v16  ;;  %v4065_v17 = vsub.f32 %v18953_v56, %v15323_v61  ;;  %v15349_v42 = vadd.f32 %v15209_v59, %v15202_v12  ;;  %v18956_v12 = vld [vmem:[#allocation195_spill] sm:$0xff] }
 0x3b4   : > { %18948 = vst [vmem:[#allocation251_spill] sm:$0xff] %v15331_v23  ;;  %v15336_v4 = vpop.eup %8177  ;;  %v4767_v3 = vadd.f32 %v14934_v15, %v4766_v53  ;;  %v4772_v18 = vadd.f32 %v15331_v23, %v4771_v34  ;;  %8197 = vpow2.f32 %v4528_v25  ;;  %5761 = vmatmul.mubr.f32.gmra.mrb[226].mxu1 %v15319_v20  ;;  %v18954_v25 = vld [vmem:[#allocation199_spill] sm:$0xff]  ;;  %v4424_v47 = vmul.f32 1.442695, %v4004_v63 }
 0x3b5   : > { %18950 = vst [vmem:[#allocation133_spill] sm:$0xff] %v15336_v4  ;;  %v15343_v41 = vpop.eup %8179  ;;  %8199 = vpow2.f32 %v4530_v21  ;;  %v4058_v53 = vsub.f32 %v18954_v25, %v15274_v54  ;;  %v4426_v16 = vmul.f32 1.442695, %v4005_v27  ;;  %v18955_v21 = vld [vmem:[#allocation295_spill] sm:$0xff]  ;;  %v4071_v59 = vsub.f32 %v18956_v12, %v15323_v61 }
 0x3b6   : > { %18952 = vst [vmem:[#allocation135_spill] sm:$0xff] %v15343_v41  ;;  %v15351_v15 = vpop.eup %8181  ;;  %4768 = vadd.xlane.f32.xlu1 %v4767_v3  ;;  %v4773_v34 = vadd.f32 %v15336_v4, %v4772_v18  ;;  %8201 = vpow2.f32 %v4516_v43  ;;  %v4070_v29 = vsub.f32 %v18955_v21, %v15323_v61  ;;  %v4780_v43 = vadd.f32 %v15068_v57, %v15164_v13  ;;  %v15372_v21 = vpop.xlane.xlu1 %3820 }
 0x3b7   : > { %v15356_v1 = vpop.eup %8183  ;;  %8203 = vpow2.f32 %v4540_v62  ;;  %v4544_v18 = vmul.f32 1.442695, %v4064_v35  ;;  %v18957_v62 = vld [vmem:[#allocation164_spill] sm:$0xff]  ;;  %v4546_v25 = vmul.f32 1.442695, %v4065_v17 }
 0x3b8   : > { %v15362_v56 = vpop.eup %8185  ;;  %v4774_v3 = vadd.f32 %v15343_v41, %v4773_v34  ;;  %8205 = vpow2.f32 %v4542_v38  ;;  %5090 = vmatprep.mubr.f32.mxu0 %v15356_v1  ;;  %v4011_v27 = vsub.f32 %v18957_v62, %v14980_v44  ;;  %v4532_v13 = vmul.f32 1.442695, %v4058_v53  ;;  %v18958_v38 = vld [vmem:[#allocation205_spill] sm:$0xff]  ;;  %v18962_v53 = vld [vmem:[#allocation90_spill] sm:$0xff] }
 0x3b9   : > { %v15368_v63 = vpop.eup %8187  ;;  %8207 = vpow2.f32 %v4422_v37  ;;  %5091 = vmatmul.mubr.f32.gmra.mrb[116].mxu0 %v15351_v15  ;;  %v4012_v35 = vsub.f32 %v18958_v38, %v14980_v44  ;;  %v4556_v41 = vmul.f32 1.442695, %v4070_v29  ;;  %v4558_v62 = vmul.f32 1.442695, %v4071_v59  ;;  %v18960_v37 = vld [vmem:[#allocation206_spill] sm:$0xff] }
 0x3ba   : > { %v15375_v12 = vpop.eup %8189  ;;  %v4775_v34 = vadd.f32 %v14976_v9, %v4774_v3  ;;  %8209 = vpow2.f32 %v4424_v47  ;;  %v4013_v17 = vsub.f32 %v18960_v37, %v14980_v44  ;;  %v4072_v47 = vsub.f32 %v18962_v53, %v15372_v21  ;;  %v18964_v44 = vld [vmem:[#allocation209_spill] sm:$0xff] }
 0x3bb   : > { %v15380_v4 = vpop.eup %8191  ;;  %8211 = vpow2.f32 %v4426_v16  ;;  %5765 = vmatprep.mubr.f32.mxu1 %v15375_v12  ;;  %v4438_v29 = vmul.f32 1.442695, %v4011_v27  ;;  %v4073_v59 = vsub.f32 %v18964_v44, %v15372_v21  ;;  %v15398_v3 = vadd.f32 %v15258_v39, %v15251_v48  ;;  %v18967_v48 = vld [vmem:[#allocation65_spill] sm:$0xff] }
 0x3bc   : > { %18959 = vst [vmem:[#allocation7_spill] sm:$0xff] %v15380_v4  ;;  %v15385_v57 = vpop.eup %8193  ;;  %v4776_v23 = vadd.f32 %v14983_v52, %v4775_v34  ;;  %v4781_v9 = vadd.f32 %v15380_v4, %v4780_v43  ;;  %8213 = vpow2.f32 %v4544_v18  ;;  %5766 = vmatmul.mubr.f32.gmra.mrb[228].mxu1 %v15368_v63  ;;  %v18965_v18 = vld [vmem:[#allocation282_spill] sm:$0xff]  ;;  %v4440_v38 = vmul.f32 1.442695, %v4012_v35 }
 0x3bd   : > { %18961 = vst [vmem:[#allocation141_spill] sm:$0xff] %v15385_v57  ;;  %v15392_v16 = vpop.eup %8195  ;;  %8215 = vpow2.f32 %v4546_v25  ;;  %v4066_v34 = vsub.f32 %v18965_v18, %v15323_v61  ;;  %v4442_v27 = vmul.f32 1.442695, %v4013_v17  ;;  %v18966_v25 = vld [vmem:[#allocation235_spill] sm:$0xff]  ;;  %v4079_v39 = vsub.f32 %v18967_v48, %v15372_v21 }
 0x3be   : > { %18963 = vst [vmem:[#allocation146_spill] sm:$0xff] %v15392_v16  ;;  %v15400_v52 = vpop.eup %8197  ;;  %4777 = vadd.xlane.f32.xlu0 %v4776_v23  ;;  %v4782_v43 = vadd.f32 %v15385_v57, %v4781_v9  ;;  %8217 = vpow2.f32 %v4532_v13  ;;  %v4078_v53 = vsub.f32 %v18966_v25, %v15372_v21  ;;  %v4789_v13 = vadd.f32 %v15117_v33, %v15207_v11  ;;  %v15421_v25 = vpop.xlane.xlu0 %3829 }
 0x3bf   : > { %v15405_v37 = vpop.eup %8199  ;;  %8219 = vpow2.f32 %v4556_v41  ;;  %v4560_v9 = vmul.f32 1.442695, %v4072_v47  ;;  %v18969_v41 = vld [vmem:[#allocation272_spill] sm:$0xff]  ;;  %v4562_v18 = vmul.f32 1.442695, %v4073_v59 }
 0x3c0   : > { %v15411_v44 = vpop.eup %8201  ;;  %v4783_v23 = vadd.f32 %v15392_v16, %v4782_v43  ;;  %8221 = vpow2.f32 %v4558_v62  ;;  %5095 = vmatprep.mubr.f32.mxu0 %v15405_v37  ;;  %v4019_v17 = vsub.f32 %v18969_v41, %v15029_v46  ;;  %v4548_v11 = vmul.f32 1.442695, %v4066_v34  ;;  %v18971_v62 = vld [vmem:[#allocation207_spill] sm:$0xff]  ;;  %v18975_v34 = vld [vmem:[#allocation274_spill] sm:$0xff] }
 0x3c1   : > { %v15417_v35 = vpop.eup %8203  ;;  %8223 = vpow2.f32 %v4438_v29  ;;  %5096 = vmatmul.mubr.f32.gmra.mrb[118].mxu0 %v15400_v52  ;;  %v4020_v47 = vsub.f32 %v18971_v62, %v15029_v46  ;;  %v4572_v16 = vmul.f32 1.442695, %v4078_v53  ;;  %v4574_v41 = vmul.f32 1.442695, %v4079_v39  ;;  %v18973_v29 = vld [vmem:[#allocation10_spill] sm:$0xff] }
 0x3c2   : > { %18968 = vst [vmem:[#allocation143_spill] sm:$0xff] %v15417_v35  ;;  %v15424_v48 = vpop.eup %8205  ;;  %v4784_v43 = vadd.f32 %v15025_v26, %v4783_v23  ;;  %8225 = vpow2.f32 %v4440_v38  ;;  %v4021_v59 = vsub.f32 %v18973_v29, %v15029_v46  ;;  %v4080_v38 = vsub.f32 %v18975_v34, %v15421_v25  ;;  %v18977_v46 = vld [vmem:[#allocation212_spill] sm:$0xff]  ;;  %v18980_v34 = vld [vmem:[#allocation297_spill] sm:$0xff] }
 0x3c3   : > { %18970 = vst [vmem:[#allocation226_spill] sm:$0xff] %v15424_v48  ;;  %v15429_v57 = vpop.eup %8207  ;;  %8227 = vpow2.f32 %v4442_v27  ;;  %5770 = vmatprep.mubr.f32.mxu1 %v15424_v48  ;;  %v4454_v53 = vmul.f32 1.442695, %v4019_v17  ;;  %v4081_v39 = vsub.f32 %v18977_v46, %v15421_v25  ;;  %v18979_v17 = vld [vmem:[#allocation296_spill] sm:$0xff]  ;;  %v4087_v46 = vsub.f32 %v18980_v34, %v15421_v25 }
 0x3c4   : > { %18972 = vst [vmem:[#allocation250_spill] sm:$0xff] %v15429_v57  ;;  %v15434_v33 = vpop.eup %8209  ;;  %v4785_v4 = vadd.f32 %v15032_v6, %v4784_v43  ;;  %v4790_v26 = vadd.f32 %v15429_v57, %v4789_v13  ;;  %8229 = vpow2.f32 %v4560_v9  ;;  %5771 = vmatmul.mubr.f32.gmra.mrb[230].mxu1 %v15417_v35  ;;  %v18978_v13 = vld [vmem:[#allocation288_spill] sm:$0xff]  ;;  %v4456_v43 = vmul.f32 1.442695, %v4020_v47 }
 0x3c5   : > { %18974 = vst [vmem:[#allocation266_spill] sm:$0xff] %v15434_v33  ;;  %v15441_v27 = vpop.eup %8211  ;;  %8231 = vpow2.f32 %v4562_v18  ;;  %v4074_v9 = vsub.f32 %v18978_v13, %v15372_v21  ;;  %v4458_v29 = vmul.f32 1.442695, %v4021_v59  ;;  %v4086_v18 = vsub.f32 %v18979_v17, %v15421_v25  ;;  %v18982_v13 = vld [vmem:[#allocation275_spill] sm:$0xff] }
 0x3c6   : > { %18976 = vst [vmem:[#allocation253_spill] sm:$0xff] %v15441_v27  ;;  %v15445_v23 = vpop.eup %8213  ;;  %4786 = vadd.xlane.f32.xlu1 %v4785_v4  ;;  %v4791_v6 = vadd.f32 %v15434_v33, %v4790_v26  ;;  %8233 = vpow2.f32 %v4548_v11  ;;  %v4798_v11 = vadd.f32 %v15166_v31, %v15256_v7  ;;  %v4576_v26 = vmul.f32 1.442695, %v4080_v38  ;;  %v15468_v33 = vpop.xlane.xlu1 %3838  ;;  %v18984_v38 = vld [vmem:[#allocation208_spill] sm:$0xff] }
 0x3c7   : > { %v15450_v62 = vpop.eup %8215  ;;  %8235 = vpow2.f32 %v4572_v16  ;;  %v18981_v16 = vld [vmem:[#allocation270_spill] sm:$0xff]  ;;  %v4035_v17 = vsub.f32 %v18982_v13, %v15127_v0  ;;  %v4578_v34 = vmul.f32 1.442695, %v4081_v39  ;;  %v4590_v13 = vmul.f32 1.442695, %v4087_v46 }
 0x3c8   : > { %v15456_v57 = vpop.eup %8217  ;;  %v4792_v4 = vadd.f32 %v15441_v27, %v4791_v6  ;;  %8237 = vpow2.f32 %v4574_v41  ;;  %5100 = vmatprep.mubr.f32.mxu0 %v15450_v62  ;;  %v4027_v59 = vsub.f32 %v18981_v16, %v15078_v2  ;;  %v4564_v41 = vmul.f32 1.442695, %v4074_v9  ;;  %v18988_v9 = vld [vmem:[#allocation91_spill] sm:$0xff] }
 0x3c9   : > { %v15462_v47 = vpop.eup %8219  ;;  %8239 = vpow2.f32 %v4454_v53  ;;  %5101 = vmatmul.mubr.f32.gmra.mrb[120].mxu0 %v15445_v23  ;;  %v4028_v27 = vsub.f32 %v18984_v38, %v15078_v2  ;;  %v4588_v16 = vmul.f32 1.442695, %v4086_v18  ;;  %v18986_v53 = vld [vmem:[#allocation211_spill] sm:$0xff]  ;;  %v15490_v46 = vmul.f32 1.442695, %v4035_v17 }
 0x3ca   : > { %v15471_v6 = vpop.eup %8221  ;;  %v4793_v7 = vadd.f32 %v15074_v22, %v4792_v4  ;;  %8241 = vpow2.f32 %v4456_v43  ;;  %v4029_v39 = vsub.f32 %v18986_v53, %v15078_v2  ;;  %v4088_v43 = vsub.f32 %v18988_v9, %v15468_v33  ;;  %v18990_v2 = vld [vmem:[#allocation213_spill] sm:$0xff] }
 0x3cb   : > { %18983 = vst [vmem:[#allocation66_spill] sm:$0xff] %v15471_v6  ;;  %v15476_v31 = vpop.eup %8223  ;;  %8243 = vpow2.f32 %v4458_v29  ;;  %5775 = vmatprep.mubr.f32.mxu1 %v15471_v6  ;;  %v4470_v18 = vmul.f32 1.442695, %v4027_v59  ;;  %v4089_v4 = vsub.f32 %v18990_v2, %v15468_v33  ;;  %v4807_v59 = vadd.f32 %v15215_v50, %v15300_v28  ;;  %v18994_v28 = vld [vmem:[#allocation278_spill] sm:$0xff] }
 0x3cc   : > { %18985 = vst [vmem:[#allocation144_spill] sm:$0xff] %v15476_v31  ;;  %v15481_v48 = vpop.eup %8225  ;;  %v4794_v35 = vadd.f32 %v15081_v19, %v4793_v7  ;;  %v4799_v22 = vadd.f32 %v15476_v31, %v4798_v11  ;;  %8245 = vpow2.f32 %v4576_v26  ;;  %5776 = vmatmul.mubr.f32.gmra.mrb[232].mxu1 %v15462_v47  ;;  %v18991_v11 = vld [vmem:[#allocation286_spill] sm:$0xff]  ;;  %v4472_v7 = vmul.f32 1.442695, %v4028_v27 }
 0x3cd   : > { %18987 = vst [vmem:[#allocation258_spill] sm:$0xff] %v15481_v48  ;;  %v15488_v29 = vpop.eup %8227  ;;  %8247 = vpow2.f32 %v4578_v34  ;;  %v4082_v26 = vsub.f32 %v18991_v11, %v15421_v25  ;;  %v4474_v17 = vmul.f32 1.442695, %v4029_v39  ;;  %v18992_v34 = vld [vmem:[#allocation298_spill] sm:$0xff]  ;;  %v4592_v11 = vmul.f32 1.442695, %v4088_v43 }
 0x3ce   : > { %18989 = vst [vmem:[#allocation140_spill] sm:$0xff] %v15488_v29  ;;  %v15494_v38 = vpop.eup %8229  ;;  %4795 = vadd.xlane.f32.xlu0 %v4794_v35  ;;  %v4800_v19 = vadd.f32 %v15481_v48, %v4799_v22  ;;  %8249 = vpow2.f32 %v4564_v41  ;;  %v4094_v9 = vsub.f32 %v18992_v34, %v15468_v33  ;;  %v18993_v41 = vld [vmem:[#allocation299_spill] sm:$0xff]  ;;  %v18995_v39 = vld [vmem:[#allocation88_spill] sm:$0xff]  ;;  %v4594_v34 = vmul.f32 1.442695, %v4089_v4  ;;  %v18997_v43 = vld [vmem:[#allocation290_spill] sm:$0xff] }
 0x3cf   : > { %v15499_v53 = vpop.eup %8231  ;;  %8251 = vpow2.f32 %v4588_v16  ;;  %v4095_v22 = vsub.f32 %v18993_v41, %v15468_v33  ;;  %v4043_v16 = vsub.f32 %v18994_v28, %v15176_v14  ;;  %v4051_v48 = vsub.f32 %v18995_v39, %v15225_v10  ;;  %v18998_v28 = vld [vmem:[#allocation281_spill] sm:$0xff] }
 0x3d0   : > { %v15505_v2 = vpop.eup %8233  ;;  %v4801_v35 = vadd.f32 %v15488_v29, %v4800_v19  ;;  %8253 = vpow2.f32 %v4590_v13  ;;  %5105 = vmatprep.mubr.f32.mxu0 %v15499_v53  ;;  %v4580_v41 = vmul.f32 1.442695, %v4082_v26  ;;  %v4090_v29 = vsub.f32 %v18997_v43, %v15468_v33 }
 0x3d1   : > { %v15511_v27 = vpop.eup %8235  ;;  %8255 = vpow2.f32 %v4470_v18  ;;  %5106 = vmatmul.mubr.f32.gmra.mrb[122].mxu0 %v15494_v38  ;;  %v4059_v31 = vsub.f32 %v18998_v28, %v15274_v54  ;;  %v4604_v39 = vmul.f32 1.442695, %v4094_v9  ;;  %v18999_v18 = vld [vmem:[#allocation249_spill] sm:$0xff]  ;;  %v4502_v43 = vmul.f32 1.442695, %v4043_v16  ;;  %v19002_v9 = vld [vmem:[#allocation131_spill] sm:$0xff] }
 0x3d2   : > { %v15518_v19 = vpop.eup %8237  ;;  %v4802_v13 = vadd.f32 %v15123_v5, %v4801_v35  ;;  %8257 = vpow2.f32 %v4472_v7  ;;  %v4036_v4 = vsub.f32 %v18999_v18, %v15127_v0  ;;  %v4606_v7 = vmul.f32 1.442695, %v4095_v22 }
 0x3d3   : > { %18996 = vst [vmem:[#allocation142_spill] sm:$0xff] %v15518_v19  ;;  %v15523_v50 = vpop.eup %8239  ;;  %8259 = vpow2.f32 %v4474_v17  ;;  %5780 = vmatprep.mubr.f32.mxu1 %v15518_v19  ;;  %v4518_v17 = vmul.f32 1.442695, %v4051_v48  ;;  %v4037_v28 = vsub.f32 %v19002_v9, %v15127_v0 }
 0x3d4   : > { %v15530_v6 = vpop.eup %8241  ;;  %v4803_v5 = vadd.f32 %v15130_v24, %v4802_v13  ;;  %v4808_v26 = vadd.f32 %v15523_v50, %v4807_v59  ;;  %8261 = vpow2.f32 %v4592_v11  ;;  %5781 = vmatmul.mubr.f32.gmra.mrb[234].mxu1 %v15511_v27  ;;  %v4596_v24 = vmul.f32 1.442695, %v4090_v29  ;;  %v19003_v59 = vld [vmem:[#allocation215_spill] sm:$0xff]  ;;  %v19004_v13 = vld [vmem:[#allocation234_spill] sm:$0xff] }
 0x3d5   : > { %19000 = vst [vmem:[#allocation138_spill] sm:$0xff] %v15530_v6  ;;  %v15535_v35 = vpop.eup %8243  ;;  %8263 = vpow2.f32 %v4594_v34  ;;  %v4044_v22 = vsub.f32 %v19003_v59, %v15176_v14  ;;  %v4067_v16 = vsub.f32 %v19004_v13, %v15323_v61  ;;  %v4488_v48 = vmul.f32 1.442695, %v4036_v4  ;;  %v19005_v34 = vld [vmem:[#allocation210_spill] sm:$0xff] }
 0x3d6   : > { %19001 = vst [vmem:[#allocation254_spill] sm:$0xff] %v15535_v35  ;;  %v15539_v18 = vpop.eup %8245  ;;  %4804 = vadd.xlane.f32.xlu1 %v4803_v5  ;;  %v4809_v19 = vadd.f32 %v15530_v6, %v4808_v26  ;;  %8265 = vpow2.f32 %v4580_v41  ;;  %v4045_v0 = vsub.f32 %v19005_v34, %v15176_v14  ;;  %v4534_v5 = vmul.f32 1.442695, %v4059_v31  ;;  %v19006_v59 = vld [vmem:[#allocation102_spill] sm:$0xff]  ;;  %v19007_v14 = vld [vmem:[#allocation257_spill] sm:$0xff] }
 0x3d7   : > { %v15544_v11 = vpop.eup %8247  ;;  %8267 = vpow2.f32 %v4604_v39  ;;  %v4816_v29 = vadd.f32 %v15264_v36, %v15349_v42  ;;  %v4075_v39 = vsub.f32 %v19006_v59, %v15372_v21  ;;  %v4490_v4 = vmul.f32 1.442695, %v4037_v28  ;;  %v19009_v28 = vld [vmem:[#allocation137_spill] sm:$0xff] }
 0x3d8   : > { %v15550_v9 = vpop.eup %8249  ;;  %v4810_v26 = vadd.f32 %v15535_v35, %v4809_v19  ;;  %8269 = vpow2.f32 %v4606_v7  ;;  %5110 = vmatprep.mubr.f32.mxu0 %v15544_v11  ;;  %v4052_v13 = vsub.f32 %v19007_v14, %v15225_v10  ;;  %v19008_v19 = vld [vmem:[#allocation6_spill] sm:$0xff]  ;;  %v4504_v34 = vmul.f32 1.442695, %v4044_v22 }
 0x3d9   : > { %v15556_v41 = vpop.eup %8251  ;;  %8271 = vpow2.f32 %v15490_v46  ;;  %5111 = vmatmul.mubr.f32.gmra.mrb[124].mxu0 %v15539_v18  ;;  %v4083_v7 = vsub.f32 %v19008_v19, %v15421_v25  ;;  %v4550_v59 = vmul.f32 1.442695, %v4067_v16  ;;  %v4506_v46 = vmul.f32 1.442695, %v4045_v0 }
 0x3da   : > { %v15564_v31 = vpop.eup %8253  ;;  %v4811_v42 = vadd.f32 %v15172_v49, %v4810_v26  ;;  %8273 = vpow2.f32 %v4596_v24  ;;  %v4053_v35 = vsub.f32 %v19009_v28, %v15225_v10  ;;  %v19010_v24 = vld [vmem:[#allocation13_spill] sm:$0xff]  ;;  %v4520_v26 = vmul.f32 1.442695, %v4052_v13 }
 0x3db   : > { %v15569_v6 = vpop.eup %8255  ;;  %8275 = vpow2.f32 %v4488_v48  ;;  %5785 = vmatprep.mubr.f32.mxu1 %v15564_v31  ;;  %v4060_v22 = vsub.f32 %v19010_v24, %v15274_v54  ;;  %v15583_v48 = vmul.f32 1.442695, %v4075_v39  ;;  %v19011_v10 = vld [vmem:[#allocation293_spill] sm:$0xff]  ;;  %v4833_v39 = vadd.f32 %v15307_v30, %v15302_v40  ;;  %v19014_v30 = vld [vmem:[#allocation259_spill] sm:$0xff] }
 0x3dc   : > { %v15574_v14 = vpop.eup %8257  ;;  %v4812_v36 = vadd.f32 %v15179_v55, %v4811_v42  ;;  %v4817_v49 = vadd.f32 %v15569_v6, %v4816_v29  ;;  %8277 = vpow2.f32 %v4502_v43  ;;  %5786 = vmatmul.mubr.f32.gmra.mrb[236].mxu1 %v15556_v41  ;;  %v4091_v0 = vsub.f32 %v19011_v10, %v15468_v33  ;;  %v19012_v29 = vld [vmem:[#allocation261_spill] sm:$0xff] }
 0x3dd   : > { %v15581_v16 = vpop.eup %8259  ;;  %8279 = vpow2.f32 %v4490_v4  ;;  %v15589_v55 = vmul.f32 1.442695, %v4083_v7  ;;  %v4061_v42 = vsub.f32 %v19012_v29, %v15274_v54  ;;  %v4522_v24 = vmul.f32 1.442695, %v4053_v35  ;;  %v19013_v4 = vld [vmem:[#allocation149_spill] sm:$0xff] }
 0x3de   : > { %v15587_v19 = vpop.eup %8261  ;;  %4813 = vadd.xlane.f32.xlu0 %v4812_v36  ;;  %v4818_v43 = vadd.f32 %v15574_v14, %v4817_v49  ;;  %8281 = vpow2.f32 %v4504_v34  ;;  %v4068_v13 = vsub.f32 %v19013_v4, %v15323_v61  ;;  %v4825_v7 = vadd.f32 %v15313_v8, %v15398_v3 }
 0x3df   : > { %v15594_v28 = vpop.eup %8263  ;;  %8283 = vpow2.f32 %v4518_v17  ;;  %v4536_v34 = vmul.f32 1.442695, %v4060_v22  ;;  %v15608_v49 = vmul.f32 1.442695, %v4091_v0  ;;  %v4842_v40 = vadd.f32 %v15356_v1, %v15351_v15  ;;  %v19015_v22 = vld [vmem:[#allocation194_spill] sm:$0xff] }
 0x3e0   : > { %v15600_v10 = vpop.eup %8265  ;;  %v4819_v36 = vadd.f32 %v15581_v16, %v4818_v43  ;;  %8285 = vpow2.f32 %v4506_v46  ;;  %5115 = vmatprep.mubr.f32.mxu0 %v15594_v28  ;;  %v4069_v35 = vsub.f32 %v19014_v30, %v15323_v61  ;;  %v4538_v46 = vmul.f32 1.442695, %v4061_v42  ;;  %v19016_v0 = vld [vmem:[#allocation166_spill] sm:$0xff]  ;;  %v19017_v42 = vld [vmem:[#allocation219_spill] sm:$0xff] }
 0x3e1   : > { %v15606_v54 = vpop.eup %8267  ;;  %8287 = vpow2.f32 %v4520_v26  ;;  %5116 = vmatmul.mubr.f32.gmra.mrb[126].mxu0 %v15587_v19  ;;  %v4076_v43 = vsub.f32 %v19016_v0, %v15372_v21  ;;  %v4834_v15 = vadd.f32 %v15362_v56, %v4833_v39  ;;  %v4851_v1 = vadd.f32 %v15405_v37, %v15400_v52  ;;  %v19018_v37 = vld [vmem:[#allocation187_spill] sm:$0xff] }
 0x3e2   : > { %v15615_v17 = vpop.eup %8269  ;;  %v4820_v3 = vadd.f32 %v15221_v32, %v4819_v36  ;;  %8289 = vpow2.f32 %v4534_v5  ;;  %5185 = vmatprep.mubr.f32.mxu0 %v19015_v22  ;;  %v4552_v61 = vmul.f32 1.442695, %v4068_v13  ;;  %v4077_v4 = vsub.f32 %v19017_v42, %v15372_v21  ;;  %v19019_v13 = vld [vmem:[#allocation292_spill] sm:$0xff]  ;;  %v19020_v30 = vld [vmem:[#allocation279_spill] sm:$0xff] }
 0x3e3   : > { %v15621_v26 = vpop.eup %8271  ;;  %8291 = vpow2.f32 %v4522_v24  ;;  %5790 = vmatprep.mubr.f32.mxu1 %v15615_v17  ;;  %v4554_v24 = vmul.f32 1.442695, %v4069_v35  ;;  %v4860_v52 = vadd.f32 %v15450_v62, %v15445_v23  ;;  %v4568_v21 = vmul.f32 1.442695, %v4076_v43  ;;  %v19021_v35 = vld [vmem:[#allocation15_spill] sm:$0xff] }
 0x3e4   : > { %v15627_v29 = vpop.eup %8273  ;;  %v4821_v32 = vadd.f32 %v15228_v58, %v4820_v3  ;;  %v4826_v5 = vadd.f32 %v15621_v26, %v4825_v7  ;;  %8293 = vpow2.f32 %v4536_v34  ;;  %5791 = vmatmul.mubr.f32.gmra.mrb[238].mxu1 %v15606_v54  ;;  %v4084_v58 = vsub.f32 %v19019_v13, %v15421_v25  ;;  %v19022_v3 = vld [vmem:[#allocation233_spill] sm:$0xff]  ;;  %v19026_v13 = vld [vmem:[#allocation107_spill] sm:$0xff] }
 0x3e5   : > { %v15634_v39 = vpop.eup %8275  ;;  %8295 = vpow2.f32 %v4550_v59  ;;  %5186 = vmatmul.mubr.f32.vlgmr.msra.gmra.mrb[64].mxu0 %v19018_v37  ;;  %v4843_v34 = vadd.f32 %v15411_v44, %v4842_v40  ;;  %v4852_v62 = vadd.f32 %v15456_v57, %v4851_v1  ;;  %v4085_v22 = vsub.f32 %v19022_v3, %v15421_v25  ;;  %v19025_v25 = vld [vmem:[#allocation217_spill] sm:$0xff] }
 0x3e6   : > { %v15641_v36 = vpop.eup %8277  ;;  %4822 = vadd.xlane.f32.xlu1 %v4821_v32  ;;  %v4827_v7 = vadd.f32 %v15634_v39, %v4826_v5  ;;  %8297 = vpow2.f32 %v4538_v46  ;;  %5190 = vmatprep.mubr.f32.mxu0 %v19020_v30  ;;  %v4570_v46 = vmul.f32 1.442695, %v4077_v4  ;;  %v19023_v43 = vmov 0.0|0.0   ;;  %v19024_v32 = vld [vmem:[#allocation119_spill] sm:$0xff] }
 0x3e7   : > { %v15646_v59 = vpop.eup %8279  ;;  %v4835_v23 = vadd.f32 %v15641_v36, %v4834_v15  ;;  %8299 = vpow2.f32 %v4552_v61  ;;  %7432 = vmatpush1.bf16.msra.mxu0 %v19021_v35  ;;  %v4092_v15 = vsub.f32 %v19024_v32, %v15468_v33  ;;  %v4861_v61 = vadd.f32 %v15505_v2, %v4860_v52 }
 0x3e8   : > { %v15653_v0 = vpop.eup %8281  ;;  %v4828_v40 = vadd.f32 %v15646_v59, %v4827_v7  ;;  %8301 = vpow2.f32 %v15583_v48  ;;  %7433 = vmatprep.subr.bf16.mxu0 %v19023_v43  ;;  %v4584_v42 = vmul.f32 1.442695, %v4084_v58  ;;  %v19027_v7 = vld [vmem:[#allocation239_spill] sm:$0xff]  ;;  %v4869_v52 = vadd.f32 %v15499_v53, %v15494_v38 }
 0x3e9   : > { %v15660_v5 = vpop.eup %8283  ;;  %v4836_v1 = vadd.f32 %v15653_v0, %v4835_v23  ;;  %8303 = vpow2.f32 %v4554_v24  ;;  %5191 = vmatmul.mubr.f32.gmra.mrb[66].mxu0 %v19025_v25  ;;  %v4093_v30 = vsub.f32 %v19027_v7, %v15468_v33  ;;  %v4586_v58 = vmul.f32 1.442695, %v4085_v22  ;;  %v19028_v23 = vld [vmem:[#allocation19_spill] sm:$0xff] }
 0x3ea   : > { %v15665_v37 = vpop.eup %8285  ;;  %v4829_v48 = vadd.f32 %v15270_v45, %v4828_v40  ;;  %v4844_v4 = vadd.f32 %v15660_v5, %v4843_v34  ;;  %8305 = vpow2.f32 %v4568_v21  ;;  %5195 = vmatprep.mubr.f32.mxu0 %v19026_v13  ;;  %v4600_v33 = vmul.f32 1.442695, %v4092_v15  ;;  %v19029_v53 = vld [vmem:[#allocation103_spill] sm:$0xff] }
 0x3eb   : > { %v15672_v35 = vpop.eup %8287  ;;  %v4837_v24 = vadd.f32 %v15665_v37, %v4836_v1  ;;  %8307 = vpow2.f32 %v15589_v55  ;;  %7435 = vmatpush1.bf16.msra.mxu0 %v19028_v23  ;;  %v4878_v22 = vadd.f32 %v15544_v11, %v15539_v18  ;;  %v4602_v32 = vmul.f32 1.442695, %v4093_v30  ;;  %v19031_v25 = vld [vmem:[#allocation23_spill] sm:$0xff]  ;;  %v19033_v30 = vld [vmem:[#allocation58_spill] sm:$0xff] }
 0x3ec   : > { %v15679_v45 = vpop.eup %8289  ;;  %v4830_v34 = vadd.f32 %v15277_v51, %v4829_v48  ;;  %v4845_v21 = vadd.f32 %v15672_v35, %v4844_v4  ;;  %8309 = vpow2.f32 %v4570_v46  ;;  %7436 = vmatprep.subr.bf16.mxu0 %v19023_v43  ;;  %v19030_v46 = vld [vmem:[#allocation57_spill] sm:$0xff]  ;;  %v4870_v1 = vadd.f32 %v15550_v9, %v4869_v52  ;;  %v19032_v4 = vld [vmem:[#allocation86_spill] sm:$0xff]  ;;  %v19034_v52 = vld [vmem:[#allocation143_spill] sm:$0xff] }
 0x3ed   : > { %v15684_v3 = vpop.eup %8291  ;;  %v4838_v40 = vadd.f32 %v15319_v20, %v4837_v24  ;;  %v4853_v38 = vadd.f32 %v15679_v45, %v4852_v62  ;;  %8311 = vpow2.f32 %v4584_v42  ;;  %5196 = vmatmul.mubr.f32.gmra.mrb[68].mxu0 %v19029_v53  ;;  %v4887_v48 = vadd.f32 %v15594_v28, %v15587_v19  ;;  %v19035_v19 = vld [vmem:[#allocation27_spill] sm:$0xff] }
 0x3ee   : > { %v15689_v55 = vpop.eup %8293  ;;  %4831 = vadd.xlane.f32.xlu0 %v4830_v34  ;;  %v4846_v51 = vadd.f32 %v15684_v3, %v4845_v21  ;;  %5200 = vmatprep.mubr.f32.mxu0 %v19030_v46  ;;  %8313 = vpow2.f32 %v15608_v49 }
 0x3ef   : > { %v15696_v15 = vpop.eup %8295  ;;  %v4839_v20 = vadd.f32 %v15326_v60, %v4838_v40  ;;  %v4854_v62 = vadd.f32 %v15689_v55, %v4853_v38  ;;  %8315 = vpow2.f32 %v4586_v58  ;;  %7438 = vmatpush1.bf16.msra.mxu0 %v19031_v25  ;;  %v4888_v53 = vadd.f32 %v15627_v29, %v4887_v48 }
 0x3f0   : > { %v15702_v42 = vpop.eup %8297  ;;  %v4847_v18 = vadd.f32 %v15368_v63, %v4846_v51  ;;  %v4862_v11 = vadd.f32 %v15696_v15, %v4861_v61  ;;  %8317 = vpow2.f32 %v4600_v33  ;;  %7439 = vmatprep.subr.bf16.mxu0 %v19023_v43  ;;  %v4879_v61 = vadd.f32 %v15600_v10, %v4878_v22  ;;  %v19036_v33 = vld [vmem:[#allocation226_spill] sm:$0xff] }
 0x3f1   : > { %v15707_v49 = vpop.eup %8299  ;;  %4840 = vadd.xlane.f32.xlu1 %v4839_v20  ;;  %v4855_v60 = vadd.f32 %v15702_v42, %v4854_v62  ;;  %5201 = vmatmul.mubr.f32.gmra.mrb[70].mxu0 %v19032_v4  ;;  %8319 = vpow2.f32 %v4602_v32  ;;  %v19037_v51 = vld [vmem:[#allocation106_spill] sm:$0xff] }
 0x3f2   : > { %v15713_v13 = vpop.eup %8301  ;;  %v4848_v7 = vadd.f32 %v15375_v12, %v4847_v18  ;;  %v4863_v63 = vadd.f32 %v15707_v49, %v4862_v11  ;;  %5205 = vmatprep.mubr.f32.mxu0 %v19033_v30  ;;  %v19038_v62 = vld [vmem:[#allocation182_spill] sm:$0xff]  ;;  %v19039_v18 = vld [vmem:[#allocation31_spill] sm:$0xff] }
 0x3f3   : > { %v15719_v24 = vpop.eup %8303  ;;  %v4856_v58 = vadd.f32 %v19034_v52, %v4855_v60  ;;  %v4871_v23 = vadd.f32 %v15713_v13, %v4870_v1  ;;  %7441 = vmatpush1.bf16.msra.mxu0 %v19035_v19  ;;  %v19040_v60 = vld [vmem:[#allocation66_spill] sm:$0xff] }
 0x3f4   : > { %v15724_v28 = vpop.eup %8305  ;;  %4849 = vadd.xlane.f32.xlu0 %v4848_v7  ;;  %v4864_v12 = vadd.f32 %v15719_v24, %v4863_v63  ;;  %7442 = vmatprep.subr.bf16.mxu0 %v19023_v43  ;;  %v15728_v34 = vpop.f32.mrb[192].mxu1 }
 0x3f5   : > { %v15730_v21 = vpop.eup %8307  ;;  %v4857_v40 = vadd.f32 %v19036_v33, %v4856_v58  ;;  %v4872_v38 = vadd.f32 %v15724_v28, %v4871_v23  ;;  %5206 = vmatmul.mubr.f32.gmra.mrb[72].mxu0 %v19037_v51  ;;  %v5679_v22 = vpop.f32.mrb[193].mxu1  ;;  %v19042_v58 = vld [vmem:[#allocation48_spill] sm:$0xff]  ;;  %v19043_v23 = vld [vmem:[#allocation142_spill] sm:$0xff]  ;;  %v19044_v33 = vld [vmem:[#allocation35_spill] sm:$0xff] }
 0x3f6   : > { %v15736_v46 = vpop.eup %8309  ;;  %v4865_v32 = vadd.f32 %v15462_v47, %v4864_v12  ;;  %v4880_v20 = vadd.f32 %v15730_v21, %v4879_v61  ;;  %5210 = vmatprep.mubr.f32.mxu0 %v19038_v62  ;;  %v19041_v61 = vld [vmem:[#allocation87_spill] sm:$0xff]  ;;  %v19045_v22 = vld [vmem:[#allocation196_spill] sm:$0xff] }
 0x3f7   : > { %v15741_v1 = vpop.eup %8311  ;;  %4858 = vadd.xlane.f32.xlu1 %v4857_v40  ;;  %v4873_v25 = vadd.f32 %v15736_v46, %v4872_v38  ;;  %7444 = vmatpush1.bf16.msra.mxu0 %v19039_v18  ;;  %v19048_v18 = vld [vmem:[#allocation227_spill] sm:$0xff] }
 0x3f8   : > { %v15745_v11 = vpop.eup %8313  ;;  %v4866_v48 = vadd.f32 %v19040_v60, %v4865_v32  ;;  %v4881_v4 = vadd.f32 %v15741_v1, %v4880_v20  ;;  %7445 = vmatprep.subr.bf16.mxu0 %v19023_v43  ;;  %v19046_v20 = vld [vmem:[#allocation132_spill] sm:$0xff]  ;;  %v19049_v60 = vld [vmem:[#allocation229_spill] sm:$0xff] }
 0x3f9   : > { %v15750_v47 = vpop.eup %8315  ;;  %v4874_v7 = vadd.f32 %v15511_v27, %v4873_v25  ;;  %v4889_v63 = vadd.f32 %v15745_v11, %v4888_v53  ;;  %5211 = vmatmul.mubr.f32.gmra.mrb[74].mxu0 %v19041_v61  ;;  %v19047_v25 = vld [vmem:[#allocation39_spill] sm:$0xff]  ;;  %v19055_v61 = vld [vmem:[#allocation126_spill] sm:$0xff] }
 0x3fa   : > { %v15755_v30 = vpop.eup %8317  ;;  %4867 = vadd.xlane.f32.xlu0 %v4866_v48  ;;  %v4882_v52 = vadd.f32 %v15750_v47, %v4881_v4  ;;  %5215 = vmatprep.mubr.f32.mxu0 %v19042_v58  ;;  %v19050_v48 = vld [vmem:[#allocation43_spill] sm:$0xff]  ;;  %v19057_v58 = vld [vmem:[#allocation101_spill] sm:$0xff] }
 0x3fb   : > { %v4875_v19 = vadd.f32 %v19043_v23, %v4874_v7  ;;  %v4890_v12 = vadd.f32 %v15755_v30, %v4889_v63  ;;  %7447 = vmatpush1.bf16.msra.mxu0 %v19044_v33  ;;  %v15762_v40 = vpop.f32.mrb[194].mxu1  ;;  %v15764_v27 = vpop.eup %8319  ;;  %v19053_v63 = vld [vmem:[#allocation14_spill] sm:$0xff] }
 0x3fc   : > { %v4883_v38 = vadd.f32 %v15556_v41, %v4882_v52  ;;  %7448 = vmatprep.subr.bf16.mxu0 %v19023_v43  ;;  %v5684_v53 = vpop.f32.mrb[195].mxu1  ;;  %v19056_v52 = vld [vmem:[#allocation16_spill] sm:$0xff]  ;;  %v19058_v23 = vld [vmem:[#allocation262_spill] sm:$0xff] }
 0x3fd   : > { %4876 = vadd.xlane.f32.xlu1 %v4875_v19  ;;  %v4891_v51 = vadd.f32 %v15764_v27, %v4890_v12  ;;  %5216 = vmatmul.mubr.f32.gmra.mrb[76].mxu0 %v19045_v22  ;;  %v19059_v19 = vld [vmem:[#allocation20_spill] sm:$0xff]  ;;  %v19061_v53 = vld [vmem:[#allocation42_spill] sm:$0xff]  ;;  %v19063_v22 = vld [vmem:[#allocation21_spill] sm:$0xff] }
 0x3fe   : > { %v4884_v32 = vadd.f32 %v15564_v31, %v4883_v38  ;;  %5220 = vmatprep.mubr.f32.mxu0 %v19046_v20  ;;  %v19051_v31 = vld [vmem:[#allocation56_spill] sm:$0xff]  ;;  %v19060_v38 = vld [vmem:[#allocation285_spill] sm:$0xff] }
 0x3ff   : > { %v4892_v62 = vadd.f32 %v15606_v54, %v4891_v51  ;;  %7450 = vmatpush1.bf16.msra.mxu0 %v19047_v25  ;;  %v19052_v54 = vld [vmem:[#allocation121_spill] sm:$0xff]  ;;  %v19062_v51 = vld [vmem:[#allocation24_spill] sm:$0xff] }
 0x400   : > { %4885 = vadd.xlane.f32.xlu0 %v4884_v32  ;;  %7451 = vmatprep.subr.bf16.mxu0 %v19023_v43  ;;  %v19064_v32 = vld [vmem:[#allocation214_spill] sm:$0xff]  ;;  %v19065_v20 = vld [vmem:[#allocation28_spill] sm:$0xff] }
 0x401   : > { %v4893_v41 = vadd.f32 %v15615_v17, %v4892_v62  ;;  %5221 = vmatmul.mubr.f32.gmra.mrb[78].mxu0 %v19048_v18  ;;  %v19054_v17 = vld [vmem:[#allocation33_spill] sm:$0xff] }
 0x402   : > { %5225 = vmatprep.mubr.f32.mxu0 %v19049_v60  ;;  %v19066_v62 = vld [vmem:[#allocation197_spill] sm:$0xff]  ;;  %v19068_v60 = vld [vmem:[#allocation32_spill] sm:$0xff] }
 0x403   : > { %4894 = vadd.xlane.f32.xlu1 %v4893_v41  ;;  %7453 = vmatpush1.bf16.msra.mxu0 %v19050_v48  ;;  %v19067_v41 = vld [vmem:[#allocation263_spill] sm:$0xff]  ;;  %v19069_v48 = vld [vmem:[#allocation120_spill] sm:$0xff] }
 0x404   : > { %7454 = vmatprep.subr.bf16.mxu0 %v19023_v43 }
 0x405   : > { %5226 = vmatmul.mubr.f32.gmra.mrb[80].mxu0 %v19051_v31  ;;  %v15781_v4 = vpop.f32.mrb[196].mxu1  ;;  %v19070_v31 = vld [vmem:[#allocation63_spill] sm:$0xff] }
 0x406   : > { %5230 = vmatprep.mubr.f32.mxu0 %v19052_v54  ;;  %v5689_v7 = vpop.f32.mrb[197].mxu1  ;;  %v19071_v54 = vld [vmem:[#allocation36_spill] sm:$0xff] }
 0x407   : > { %7456 = vmatpush1.bf16.msra.mxu0 %v19053_v63  ;;  %v19072_v7 = vld [vmem:[#allocation117_spill] sm:$0xff] }
 0x408   : > { %7457 = vmatprep.subr.bf16.mxu0 %v19023_v43  ;;  %v19073_v63 = vld [vmem:[#allocation49_spill] sm:$0xff] }
 0x409   : > { %5231 = vmatmul.mubr.f32.gmra.mrb[82].mxu0 %v19054_v17  ;;  %v19074_v17 = vld [vmem:[#allocation40_spill] sm:$0xff] }
 0x40a   : > { %5235 = vmatprep.mubr.f32.mxu0 %v19055_v61 }
 0x40b   : > { %7459 = vmatpush1.bf16.msra.mxu0 %v19056_v52 }
 0x40c   : > { %7460 = vmatprep.subr.bf16.mxu0 %v19023_v43 }
 0x40d   : > { %5236 = vmatmul.mubr.f32.gmra.mrb[84].mxu0 %v19057_v58  ;;  %v19075_v58 = vld [vmem:[#allocation124_spill] sm:$0xff] }
 0x40e   : > { %5240 = vmatprep.mubr.f32.mxu0 %v19058_v23  ;;  %v19076_v23 = vld [vmem:[#allocation224_spill] sm:$0xff] }
 0x40f   : > { %7462 = vmatpush1.bf16.msra.mxu0 %v19059_v19  ;;  %v15793_v12 = vpop.f32.mrb[198].mxu1  ;;  %v19077_v19 = vld [vmem:[#allocation38_spill] sm:$0xff] }
 0x410   : > { %7463 = vmatprep.subr.bf16.mxu0 %v19023_v43  ;;  %v5694_v33 = vpop.f32.mrb[199].mxu1 }
 0x411   : > { %5241 = vmatmul.mubr.f32.gmra.mrb[86].mxu0 %v19060_v38  ;;  %v19078_v33 = vld [vmem:[#allocation251_spill] sm:$0xff]  ;;  %v19079_v38 = vld [vmem:[#allocation62_spill] sm:$0xff] }
 0x412   : > { %5245 = vmatprep.mubr.f32.mxu0 %v19061_v53 }
 0x413   : > { %7465 = vmatpush1.bf16.msra.mxu0 %v19062_v51  ;;  %v19080_v51 = vld [vmem:[#allocation7_spill] sm:$0xff] }
 0x414   : > { %7466 = vmatprep.subr.bf16.mxu0 %v19023_v43 }
 0x415   : > { %5246 = vmatmul.mubr.f32.gmra.mrb[88].mxu0 %v19063_v22 }
 0x416   : > { %5250 = vmatprep.mubr.f32.mxu0 %v19064_v32  ;;  %v19081_v32 = vld [vmem:[#allocation127_spill] sm:$0xff] }
 0x417   : > { %7468 = vmatpush1.bf16.msra.mxu0 %v19065_v20  ;;  %v19082_v20 = vld [vmem:[#allocation250_spill] sm:$0xff] }
 0x418   : > { %7469 = vmatprep.subr.bf16.mxu0 %v19023_v43 }
 0x419   : > { %5251 = vmatmul.mubr.f32.gmra.mrb[90].mxu0 %v19066_v62  ;;  %v15805_v25 = vpop.f32.mrb[200].mxu1  ;;  %v19083_v62 = vld [vmem:[#allocation232_spill] sm:$0xff] }
 0x41a   : > { %5255 = vmatprep.mubr.f32.mxu0 %v19067_v41  ;;  %v5699_v18 = vpop.f32.mrb[201].mxu1  ;;  %v19084_v41 = vld [vmem:[#allocation144_spill] sm:$0xff] }
 0x41b   : > { %7471 = vmatpush1.bf16.msra.mxu0 %v19068_v60 }
 0x41c   : > { %7472 = vmatprep.subr.bf16.mxu0 %v19023_v43 }
 0x41d   : > { %5256 = vmatmul.mubr.f32.gmra.mrb[92].mxu0 %v19069_v48  ;;  %v19085_v48 = vld [vmem:[#allocation47_spill] sm:$0xff] }
 0x41e   : > { %5260 = vmatprep.mubr.f32.mxu0 %v19070_v31  ;;  %v19086_v31 = vld [vmem:[#allocation134_spill] sm:$0xff] }
 0x41f   : > { %7474 = vmatpush1.bf16.msra.mxu0 %v19071_v54 }
 0x420   : > { %7475 = vmatprep.subr.bf16.mxu0 %v19023_v43 }
 0x421   : > { %5261 = vmatmul.mubr.f32.gmra.mrb[94].mxu0 %v19072_v7 }
 0x422   : > { %5265 = vmatprep.mubr.f32.mxu0 %v19073_v63  ;;  %v19087_v63 = vld [vmem:[#allocation139_spill] sm:$0xff] }
 0x423   : > { %7477 = vmatpush1.bf16.msra.mxu0 %v19074_v17  ;;  %v15817_v61 = vpop.f32.mrb[202].mxu1 }
 0x424   : > { %7478 = vmatprep.subr.bf16.mxu0 %v19023_v43  ;;  %v5704_v52 = vpop.f32.mrb[203].mxu1 }
 0x425   : > { %5266 = vmatmul.mubr.f32.gmra.mrb[96].mxu0 %v19075_v58 }
 0x426   : > { %5270 = vmatprep.mubr.f32.mxu0 %v19076_v23 }
 0x429   : > { %5271 = vmatmul.mubr.f32.gmra.mrb[98].mxu0 %v19077_v19  ;;  %v19098_v19 = vld [vmem:[#allocation238_spill] sm:$0xff] }
 0x42a   : > { %5275 = vmatprep.mubr.f32.mxu0 %v19078_v33  ;;  %v19099_v33 = vld [vmem:[#allocation110_spill] sm:$0xff] }
 0x42d   : > { %5276 = vmatmul.mubr.f32.gmra.mrb[100].mxu0 %v19079_v38  ;;  %v15825_v53 = vpop.f32.mrb[204].mxu1  ;;  %v19100_v38 = vld [vmem:[#allocation76_spill] sm:$0xff] }
 0x42e   : > { %5280 = vmatprep.mubr.f32.mxu0 %v19080_v51  ;;  %v5709_v22 = vpop.f32.mrb[205].mxu1  ;;  %v19101_v51 = vld [vmem:[#allocation44_spill] sm:$0xff] }
 0x42f   : > { %v19102_v22 = vld [vmem:[#allocation114_spill] sm:$0xff] }
 0x431   : > { %5281 = vmatmul.mubr.f32.gmra.mrb[102].mxu0 %v19081_v32  ;;  %v19103_v32 = vld [vmem:[#allocation78_spill] sm:$0xff] }
 0x432   : > { %5285 = vmatprep.mubr.f32.mxu0 %v19082_v20 }
 0x435   : > { %5286 = vmatmul.mubr.f32.gmra.mrb[104].mxu0 %v19083_v62 }
 0x436   : > { %5290 = vmatprep.mubr.f32.mxu0 %v19084_v41  ;;  %v19104_v41 = vld [vmem:[#allocation46_spill] sm:$0xff] }
 0x437   : > { %v15832_v18 = vpop.f32.mrb[206].mxu1 }
 0x438   : > { %v5714_v60 = vpop.f32.mrb[207].mxu1 }
 0x439   : > { %5291 = vmatmul.mubr.f32.gmra.mrb[106].mxu0 %v19085_v48  ;;  %v19105_v60 = vld [vmem:[#allocation60_spill] sm:$0xff] }
 0x43a   : > { %5295 = vmatprep.mubr.f32.mxu0 %v15523_v50  ;;  %v19106_v48 = vld [vmem:[#allocation80_spill] sm:$0xff] }
 0x43d   : > { %5296 = vmatmul.mubr.f32.gmra.mrb[108].mxu0 %v19086_v31  ;;  %v19107_v31 = vld [vmem:[#allocation289_spill] sm:$0xff] }
 0x43e   : > { %5300 = vmatprep.mubr.f32.mxu0 %v15569_v6 }
 0x43f   : > { %v15838_v54 = vpop.f32.mrb[208].mxu1 }
 0x440   : > { %v5719_v7 = vpop.f32.mrb[209].mxu1 }
 0x441   : > { %5301 = vmatmul.mubr.f32.gmra.mrb[110].mxu0 %v19087_v63  ;;  %v19108_v7 = vld [vmem:[#allocation52_spill] sm:$0xff]  ;;  %v19109_v63 = vld [vmem:[#allocation82_spill] sm:$0xff] }
 0x442   : > { %5305 = vmatprep.mubr.f32.mxu0 %v15621_v26  ;;  %v19088_v26 = vld [vmem:[#allocation201_spill] sm:$0xff] }
 0x445   : > { %5306 = vmatmul.mubr.f32.gmra.mrb[112].mxu0 %v15313_v8 }
 0x446   : > { %5310 = vmatprep.mubr.f32.mxu0 %v15641_v36  ;;  %v19090_v36 = vld [vmem:[#allocation55_spill] sm:$0xff] }
 0x447   : > { %v15844_v17 = vpop.f32.mrb[210].mxu1 }
 0x448   : > { %v5724_v52 = vpop.f32.mrb[211].mxu1 }
 0x449   : > { %5311 = vmatmul.mubr.f32.gmra.mrb[114].mxu0 %v15362_v56 }
 0x44a   : > { %5315 = vmatprep.mubr.f32.mxu0 %v15660_v5  ;;  %v19091_v5 = vld [vmem:[#allocation70_spill] sm:$0xff] }
 0x44d   : > { %5316 = vmatmul.mubr.f32.gmra.mrb[116].mxu0 %v15411_v44 }
 0x44e   : > { %5320 = vmatprep.mubr.f32.mxu0 %v15679_v45  ;;  %v19092_v45 = vld [vmem:[#allocation89_spill] sm:$0xff] }
 0x44f   : > { %v15850_v50 = vpop.f32.mrb[212].mxu1 }
 0x450   : > { %v5729_v6 = vpop.f32.mrb[213].mxu1 }
 0x451   : > { %5321 = vmatmul.mubr.f32.gmra.mrb[118].mxu0 %v15456_v57 }
 0x452   : > { %5325 = vmatprep.mubr.f32.mxu0 %v15696_v15  ;;  %v19093_v15 = vld [vmem:[#allocation96_spill] sm:$0xff] }
 0x455   : > { %5326 = vmatmul.mubr.f32.gmra.mrb[120].mxu0 %v15505_v2  ;;  %v19089_v2 = vld [vmem:[#allocation216_spill] sm:$0xff] }
 0x456   : > { %5330 = vmatprep.mubr.f32.mxu0 %v15713_v13  ;;  %v19094_v13 = vld [vmem:[#allocation72_spill] sm:$0xff] }
 0x457   : > { %v15856_v8 = vpop.f32.mrb[214].mxu1 }
 0x458   : > { %v5734_v56 = vpop.f32.mrb[215].mxu1 }
 0x459   : > { %5331 = vmatmul.mubr.f32.gmra.mrb[122].mxu0 %v15550_v9  ;;  %v19110_v56 = vld [vmem:[#allocation122_spill] sm:$0xff] }
 0x45a   : > { %5335 = vmatprep.mubr.f32.mxu0 %v15730_v21  ;;  %v19096_v21 = vld [vmem:[#allocation41_spill] sm:$0xff] }
 0x45d   : > { %5336 = vmatmul.mubr.f32.gmra.mrb[124].mxu0 %v15600_v10 }
 0x45e   : > { %5340 = vmatprep.mubr.f32.mxu0 %v15745_v11  ;;  %v19097_v11 = vld [vmem:[#allocation74_spill] sm:$0xff] }
 0x45f   : > { %v15862_v44 = vpop.f32.mrb[216].mxu1 }
 0x460   : > { %v5739_v57 = vpop.f32.mrb[217].mxu1 }
 0x461   : > { %5341 = vmatmul.mubr.f32.gmra.mrb[126].mxu0 %v15627_v29  ;;  %v19095_v29 = vld [vmem:[#allocation223_spill] sm:$0xff] }
 0x462   : > { %5410 = vmatprep.mubr.f32.mxu0 %v19088_v26  ;;  %v19111_v57 = vld [vmem:[#allocation291_spill] sm:$0xff]  ;;  %v19112_v26 = vld [vmem:[#allocation84_spill] sm:$0xff] }
 0x465   : > { %5411 = vmatmul.mubr.f32.vlgmr.msra.gmra.mrb[64].mxu0 %v19089_v2  ;;  %v19113_v2 = vld [vmem:[#allocation30_spill] sm:$0xff] }
 0x466   : > { %5415 = vmatprep.mubr.f32.mxu0 %v19090_v36  ;;  %7480 = vmatpush1.bf16.msra.mxu0 %v19091_v5  ;;  %v19114_v36 = vld [vmem:[#allocation34_spill] sm:$0xff]  ;;  %v19115_v5 = vld [vmem:[#allocation53_spill] sm:$0xff] }
 0x467   : > { %7481 = vmatprep.subr.bf16.mxu0 %v19023_v43  ;;  %v15870_v9 = vpop.f32.mrb[218].mxu1 }
 0x468   : > { %v5744_v10 = vpop.f32.mrb[219].mxu1 }
 0x469   : > { %5416 = vmatmul.mubr.f32.gmra.mrb[66].mxu0 %v19092_v45 }
 0x46a   : > { %5420 = vmatprep.mubr.f32.mxu0 %v19093_v15  ;;  %7483 = vmatpush1.bf16.msra.mxu0 %v19094_v13  ;;  %v19116_v15 = vld [vmem:[#allocation181_spill] sm:$0xff]  ;;  %v19117_v13 = vld [vmem:[#allocation18_spill] sm:$0xff] }
 0x46b   : > { %7484 = vmatprep.subr.bf16.mxu0 %v19023_v43 }
 0x46d   : > { %5421 = vmatmul.mubr.f32.gmra.mrb[68].mxu0 %v19095_v29  ;;  %v19118_v29 = vld [vmem:[#allocation71_spill] sm:$0xff] }
 0x46e   : > { %5425 = vmatprep.mubr.f32.mxu0 %v19096_v21  ;;  %7486 = vmatpush1.bf16.msra.mxu0 %v19097_v11  ;;  %v19119_v21 = vld [vmem:[#allocation111_spill] sm:$0xff]  ;;  %v19120_v11 = vld [vmem:[#allocation12_spill] sm:$0xff] }
 0x46f   : > { %7487 = vmatprep.subr.bf16.mxu0 %v19023_v43  ;;  %v15880_v58 = vpop.f32.mrb[220].mxu1 }
 0x470   : > { %v5749_v23 = vpop.f32.mrb[221].mxu1 }
 0x471   : > { %5426 = vmatmul.mubr.f32.gmra.mrb[70].mxu0 %v19098_v19  ;;  %v19121_v23 = vld [vmem:[#allocation73_spill] sm:$0xff] }
 0x472   : > { %5430 = vmatprep.mubr.f32.mxu0 %v19099_v33  ;;  %7489 = vmatpush1.bf16.msra.mxu0 %v19100_v38  ;;  %v19122_v38 = vld [vmem:[#allocation108_spill] sm:$0xff] }
 0x473   : > { %7490 = vmatprep.subr.bf16.mxu0 %v19023_v43 }
 0x475   : > { %5431 = vmatmul.mubr.f32.gmra.mrb[72].mxu0 %v19101_v51  ;;  %v19123_v51 = vld [vmem:[#allocation255_spill] sm:$0xff] }
 0x476   : > { %5435 = vmatprep.mubr.f32.mxu0 %v19102_v22  ;;  %7492 = vmatpush1.bf16.msra.mxu0 %v19103_v32  ;;  %v19124_v22 = vld [vmem:[#allocation75_spill] sm:$0xff]  ;;  %v19125_v32 = vld [vmem:[#allocation125_spill] sm:$0xff] }
 0x477   : > { %7493 = vmatprep.subr.bf16.mxu0 %v19023_v43  ;;  %v15890_v20 = vpop.f32.mrb[222].mxu1 }
 0x478   : > { %v5754_v62 = vpop.f32.mrb[223].mxu1 }
 0x479   : > { %5436 = vmatmul.mubr.f32.gmra.mrb[74].mxu0 %v19104_v41  ;;  %v19126_v62 = vld [vmem:[#allocation45_spill] sm:$0xff] }
 0x47a   : > { %5440 = vmatprep.mubr.f32.mxu0 %v19105_v60  ;;  %7495 = vmatpush1.bf16.msra.mxu0 %v19106_v48  ;;  %v19127_v41 = vld [vmem:[#allocation77_spill] sm:$0xff] }
 0x47b   : > { %7496 = vmatprep.subr.bf16.mxu0 %v19023_v43 }
 0x47d   : > { %5441 = vmatmul.mubr.f32.gmra.mrb[76].mxu0 %v19107_v31  ;;  %v19128_v31 = vld [vmem:[#allocation128_spill] sm:$0xff] }
 0x47e   : > { %5445 = vmatprep.mubr.f32.mxu0 %v19108_v7  ;;  %7498 = vmatpush1.bf16.msra.mxu0 %v19109_v63  ;;  %v19129_v7 = vld [vmem:[#allocation105_spill] sm:$0xff]  ;;  %v19130_v63 = vld [vmem:[#allocation79_spill] sm:$0xff] }
 0x47f   : > { %v15899_v52 = vpop.f32.mrb[224].mxu1  ;;  %7499 = vmatprep.subr.bf16.mxu0 %v19023_v43 }
 0x480   : > { %v5759_v6 = vpop.f32.mrb[225].mxu1 }
 0x481   : > { %5446 = vmatmul.mubr.f32.gmra.mrb[78].mxu0 %v19110_v56  ;;  %v19131_v6 = vld [vmem:[#allocation247_spill] sm:$0xff]  ;;  %v19132_v56 = vld [vmem:[#allocation5_spill] sm:$0xff] }
 0x482   : > { %5450 = vmatprep.mubr.f32.mxu0 %v19111_v57  ;;  %7501 = vmatpush1.bf16.msra.mxu0 %v19112_v26  ;;  %v19133_v57 = vld [vmem:[#allocation81_spill] sm:$0xff] }
 0x483   : > { %7502 = vmatprep.subr.bf16.mxu0 %v19023_v43 }
 0x485   : > { %5451 = vmatmul.mubr.f32.gmra.mrb[80].mxu0 %v19113_v2 }
 0x486   : > { %5455 = vmatprep.mubr.f32.mxu0 %v19114_v36  ;;  %7504 = vmatpush1.bf16.msra.mxu0 %v19115_v5  ;;  %v19134_v36 = vld [vmem:[#allocation129_spill] sm:$0xff]  ;;  %v19135_v5 = vld [vmem:[#allocation218_spill] sm:$0xff] }
 0x487   : > { %v15909_v10 = vpop.f32.mrb[226].mxu1  ;;  %7505 = vmatprep.subr.bf16.mxu0 %v19023_v43 }
 0x488   : > { %v5764_v45 = vpop.f32.mrb[227].mxu1 }
 0x489   : > { %5456 = vmatmul.mubr.f32.gmra.mrb[82].mxu0 %v19116_v15  ;;  %v19136_v45 = vld [vmem:[#allocation83_spill] sm:$0xff]  ;;  %v19137_v15 = vld [vmem:[#allocation136_spill] sm:$0xff] }
 0x48a   : > { %5460 = vmatprep.mubr.f32.mxu0 %v19117_v13  ;;  %7507 = vmatpush1.bf16.msra.mxu0 %v19118_v29  ;;  %v19138_v13 = vld [vmem:[#allocation51_spill] sm:$0xff] }
 0x48b   : > { %7508 = vmatprep.subr.bf16.mxu0 %v19023_v43 }
 0x48d   : > { %5461 = vmatmul.mubr.f32.gmra.mrb[84].mxu0 %v19119_v21 }
 0x48e   : > { %5465 = vmatprep.mubr.f32.mxu0 %v19120_v11  ;;  %7510 = vmatpush1.bf16.msra.mxu0 %v19121_v23  ;;  %v19139_v11 = vld [vmem:[#allocation225_spill] sm:$0xff]  ;;  %v19140_v23 = vld [vmem:[#allocation135_spill] sm:$0xff] }
 0x48f   : > { %v15919_v19 = vpop.f32.mrb[228].mxu1  ;;  %7511 = vmatprep.subr.bf16.mxu0 %v19023_v43 }
 0x490   : > { %v5769_v33 = vpop.f32.mrb[229].mxu1 }
 0x491   : > { %5466 = vmatmul.mubr.f32.gmra.mrb[86].mxu0 %v19122_v38  ;;  %v19141_v33 = vld [vmem:[#allocation133_spill] sm:$0xff] }
 0x492   : > { %5470 = vmatprep.mubr.f32.mxu0 %v19123_v51  ;;  %7513 = vmatpush1.bf16.msra.mxu0 %v19124_v22  ;;  %v19143_v22 = vld [vmem:[#allocation141_spill] sm:$0xff] }
 0x493   : > { %7514 = vmatprep.subr.bf16.mxu0 %v19023_v43 }
 0x495   : > { %5471 = vmatmul.mubr.f32.gmra.mrb[88].mxu0 %v19125_v32  ;;  %v19144_v32 = vld [vmem:[#allocation253_spill] sm:$0xff] }
 0x496   : > { %5475 = vmatprep.mubr.f32.mxu0 %v19126_v62  ;;  %7516 = vmatpush1.bf16.msra.mxu0 %v19127_v41  ;;  %v19145_v62 = vld [vmem:[#allocation266_spill] sm:$0xff]  ;;  %v19146_v41 = vld [vmem:[#allocation140_spill] sm:$0xff] }
 0x497   : > { %v15929_v60 = vpop.f32.mrb[230].mxu1  ;;  %7517 = vmatprep.subr.bf16.mxu0 %v19023_v43 }
 0x498   : > { %v5774_v48 = vpop.f32.mrb[231].mxu1 }
 0x499   : > { %5476 = vmatmul.mubr.f32.gmra.mrb[90].mxu0 %v19128_v31 }
 0x49a   : > { %5480 = vmatprep.mubr.f32.mxu0 %v19129_v7  ;;  %7519 = vmatpush1.bf16.msra.mxu0 %v19130_v63  ;;  %v19147_v7 = vld [vmem:[#allocation258_spill] sm:$0xff] }
 0x49b   : > { %7520 = vmatprep.subr.bf16.mxu0 %v19023_v43  ;;  %v19148_v63 = vld [vmem:[#allocation254_spill] sm:$0xff] }
 0x49d   : > { %5481 = vmatmul.mubr.f32.gmra.mrb[92].mxu0 %v19131_v6  ;;  %v19149_v6 = vld [vmem:[#allocation138_spill] sm:$0xff] }
 0x49e   : > { %5485 = vmatprep.mubr.f32.mxu0 %v19132_v56  ;;  %7522 = vmatpush1.bf16.msra.mxu0 %v19133_v57  ;;  %v19165_v56 = vld [vmem:[#allocation94_spill] sm:$0xff]  ;;  %v5862_v57 = vld [vmem:[%s16279_s3 + $0x10] sm:$0xff] }
 0x49f   : > { %v15939_v26 = vpop.f32.mrb[232].mxu1  ;;  %7523 = vmatprep.subr.bf16.mxu0 %v19023_v43  ;;  %v19142_v43 = vld [vmem:[#allocation146_spill] sm:$0xff] }
 0x4a0   : > { %v5779_v2 = vpop.f32.mrb[233].mxu1 }
 0x4a1   : > { %5486 = vmatmul.mubr.f32.gmra.mrb[94].mxu0 %v19134_v36  ;;  %v5863_v2 = vld [vmem:[%s16279_s3 + $0x18] sm:$0xff] }
 0x4a2   : > { %5490 = vmatprep.mubr.f32.mxu0 %v19135_v5  ;;  %7525 = vmatpush1.bf16.msra.mxu0 %v19136_v45  ;;  %v7530_v36 = vpack.c.bf16 %v5863_v2, %v5862_v57 }
 0x4a5   : > { %5491 = vmatmul.mubr.f32.gmra.mrb[96].mxu0 %v19137_v15 }
 0x4a6   : > { %5495 = vmatprep.mubr.f32.mxu0 %v19138_v13 }
 0x4a7   : > { %v15947_v29 = vpop.f32.mrb[234].mxu1 }
 0x4a8   : > { %v5784_v21 = vpop.f32.mrb[235].mxu1 }
 0x4a9   : > { %5496 = vmatmul.mubr.f32.gmra.mrb[98].mxu0 %v19139_v11 }
 0x4aa   : > { %5500 = vmatprep.mubr.f32.mxu0 %v19140_v23 }
 0x4ad   : > { %5501 = vmatmul.mubr.f32.gmra.mrb[100].mxu0 %v19141_v33 }
 0x4ae   : > { %5505 = vmatprep.mubr.f32.mxu0 %v19142_v43 }
 0x4af   : > { %v15953_v38 = vpop.f32.mrb[236].mxu1 }
 0x4b0   : > { %v5789_v51 = vpop.f32.mrb[237].mxu1 }
 0x4b1   : > { %5506 = vmatmul.mubr.f32.gmra.mrb[102].mxu0 %v19143_v22 }
 0x4b2   : > { %5510 = vmatprep.mubr.f32.mxu0 %v19144_v32 }
 0x4b5   : > { %5511 = vmatmul.mubr.f32.gmra.mrb[104].mxu0 %v19145_v62 }
 0x4b6   : > { %5515 = vmatprep.mubr.f32.mxu0 %v19146_v41 }
 0x4b7   : > { %v15959_v48 = vpop.f32.mrb[238].mxu1 }
 0x4b8   : > { %v5794_v31 = vpop.f32.mrb[239].mxu1 }
 0x4b9   : > { %5516 = vmatmul.mubr.f32.gmra.mrb[106].mxu0 %v19147_v7 }
 0x4ba   : > { %5520 = vmatprep.mubr.f32.mxu0 %v19148_v63 }
 0x4bd   : > { %5521 = vmatmul.mubr.f32.gmra.mrb[108].mxu0 %v19149_v6 }
 0x4be   : > { %5525 = vmatprep.mubr.f32.mxu0 %v15581_v16  ;;  %v19151_v16 = vld [vmem:[#allocation220_spill] sm:$0xff] }
 0x4c1   : > { %5526 = vmatmul.mubr.f32.gmra.mrb[110].mxu0 %v15574_v14  ;;  %v19150_v14 = vld [vmem:[#allocation54_spill] sm:$0xff] }
 0x4c2   : > { %5530 = vmatprep.mubr.f32.mxu0 %v15646_v59  ;;  %v19153_v59 = vld [vmem:[#allocation17_spill] sm:$0xff] }
 0x4c5   : > { %5531 = vmatmul.mubr.f32.gmra.mrb[112].mxu0 %v15634_v39  ;;  %v19152_v39 = vld [vmem:[#allocation93_spill] sm:$0xff] }
 0x4c6   : > { %5535 = vmatprep.mubr.f32.mxu0 %v15665_v37  ;;  %v5860_v37 = vld [vmem:[%s16279_s3] sm:$0xff] }
 0x4c9   : > { %5536 = vmatmul.mubr.f32.gmra.mrb[114].mxu0 %v15653_v0  ;;  %v19154_v0 = vld [vmem:[#allocation230_spill] sm:$0xff] }
 0x4ca   : > { %5540 = vmatprep.mubr.f32.mxu0 %v15684_v3 }
 0x4cd   : > { %5541 = vmatmul.mubr.f32.gmra.mrb[116].mxu0 %v15672_v35  ;;  %v5861_v35 = vld [vmem:[%s16279_s3 + $0x8] sm:$0xff] }
 0x4ce   : > { %5545 = vmatprep.mubr.f32.mxu0 %v15702_v42  ;;  %v7526_v3 = vpack.c.bf16 %v5861_v35, %v5860_v37  ;;  %v19156_v42 = vld [vmem:[#allocation104_spill] sm:$0xff] }
 0x4d0   : > { %7527 = vmatprep.subr.bf16.mxu1 %v7526_v3 }
 0x4d1   : > { %5546 = vmatmul.mubr.f32.gmra.mrb[118].mxu0 %v15689_v55  ;;  %v19155_v55 = vld [vmem:[#allocation98_spill] sm:$0xff]  ;;  %7529 = vmatpush3.bf16.msra.mxu1 %v7526_v3 }
 0x4d2   : > { %5550 = vmatprep.mubr.f32.mxu0 %v15719_v24  ;;  %v19158_v24 = vld [vmem:[#allocation92_spill] sm:$0xff]  ;;  %7531 = vmatprep.subr.bf16.mxu1 %v7530_v36 }
 0x4d5   : > { %5551 = vmatmul.mubr.f32.gmra.mrb[120].mxu0 %v15707_v49  ;;  %v19157_v49 = vld [vmem:[#allocation59_spill] sm:$0xff]  ;;  %7533 = vmatpush3.bf16.msra.mxu1 %v7530_v36 }
 0x4d6   : > { %5555 = vmatprep.mubr.f32.mxu0 %v15736_v46  ;;  %v19160_v46 = vld [vmem:[#allocation151_spill] sm:$0xff] }
 0x4d9   : > { %5556 = vmatmul.mubr.f32.gmra.mrb[122].mxu0 %v15724_v28  ;;  %v19159_v28 = vld [vmem:[#allocation112_spill] sm:$0xff] }
 0x4da   : > { %5560 = vmatprep.mubr.f32.mxu0 %v15750_v47  ;;  %v19162_v47 = vld [vmem:[#allocation61_spill] sm:$0xff] }
 0x4dd   : > { %5561 = vmatmul.mubr.f32.gmra.mrb[124].mxu0 %v15741_v1  ;;  %v19161_v1 = vld [vmem:[#allocation118_spill] sm:$0xff] }
 0x4de   : > { %5565 = vmatprep.mubr.f32.mxu0 %v15764_v27  ;;  %v19164_v27 = vld [vmem:[#allocation260_spill] sm:$0xff] }
 0x4e1   : > { %5566 = vmatmul.mubr.f32.gmra.mrb[126].mxu0 %v15755_v30  ;;  %v19163_v30 = vld [vmem:[#allocation50_spill] sm:$0xff] }
 0x4e2   : > { %5635 = vmatprep.mubr.f32.mxu0 %v19150_v14 }
 0x4e5   : > { %5636 = vmatmul.mubr.f32.vlgmr.msra.gmra.mrb[64].mxu0 %v19151_v16 }
 0x4e6   : > { %5640 = vmatprep.mubr.f32.mxu0 %v19152_v39 }
 0x4e9   : > { %5641 = vmatmul.mubr.f32.gmra.mrb[66].mxu0 %v19153_v59 }
 0x4ea   : > { %5645 = vmatprep.mubr.f32.mxu0 %v19154_v0 }
 0x4ed   : > { %5646 = vmatmul.mubr.f32.gmra.mrb[68].mxu0 %v19155_v55 }
 0x4ee   : > { %5650 = vmatprep.mubr.f32.mxu0 %v19156_v42 }
 0x4f1   : > { %5651 = vmatmul.mubr.f32.gmra.mrb[70].mxu0 %v19157_v49 }
 0x4f2   : > { %5655 = vmatprep.mubr.f32.mxu0 %v19158_v24 }
 0x4f5   : > { %5656 = vmatmul.mubr.f32.gmra.mrb[72].mxu0 %v19159_v28 }
 0x4f6   : > { %5660 = vmatprep.mubr.f32.mxu0 %v19160_v46 }
 0x4f9   : > { %5661 = vmatmul.mubr.f32.gmra.mrb[74].mxu0 %v19161_v1 }
 0x4fa   : > { %5665 = vmatprep.mubr.f32.mxu0 %v19162_v47 }
 0x4fd   : > { %5666 = vmatmul.mubr.f32.gmra.mrb[76].mxu0 %v19163_v30 }
 0x4fe   : > { %5670 = vmatprep.mubr.f32.mxu0 %v19164_v27 }
 0x501   : > { %5671 = vmatmul.mubr.f32.gmra.mrb[78].mxu0 %v19165_v56 }
 0x558   : > { %v5452_v5 = vpop.f32.mrb[80].mxu0 }
 0x559   : > { %v16011_v45 = vadd.f32 %v15728_v34, %v5452_v5  ;;  %v5454_v15 = vpop.f32.mrb[81].mxu0 }
 0x55c   : > { %v5457_v13 = vpop.f32.mrb[82].mxu0 }
 0x55d   : > { %v16014_v21 = vadd.f32 %v15762_v40, %v5457_v13  ;;  %v5459_v11 = vpop.f32.mrb[83].mxu0 }
 0x560   : > { %v5462_v23 = vpop.f32.mrb[84].mxu0 }
 0x561   : > { %v16017_v33 = vadd.f32 %v15781_v4, %v5462_v23  ;;  %v5464_v43 = vpop.f32.mrb[85].mxu0 }
 0x564   : > { %v5467_v51 = vpop.f32.mrb[86].mxu0 }
 0x565   : > { %v16020_v22 = vadd.f32 %v15793_v12, %v5467_v51  ;;  %v5469_v32 = vpop.f32.mrb[87].mxu0  ;;  %v4616_v51 = vpop.xlane.xlu0 %4615 }
 0x566   : > { %8321 = vrcp.f32 %v4616_v51 }
 0x568   : > { %v5472_v62 = vpop.f32.mrb[88].mxu0 }
 0x569   : > { %v16023_v34 = vadd.f32 %v15805_v25, %v5472_v62  ;;  %v5474_v41 = vpop.f32.mrb[89].mxu0 }
 0x56c   : > { %v5477_v31 = vpop.f32.mrb[90].mxu0 }
 0x56d   : > { %v16026_v40 = vadd.f32 %v15817_v61, %v5477_v31  ;;  %v5479_v7 = vpop.f32.mrb[91].mxu0 }
 0x56e   : > { %v4634_v7 = vpop.xlane.xlu0 %4633 }
 0x570   : > { %v5482_v63 = vpop.f32.mrb[92].mxu0 }
 0x571   : > { %v16029_v4 = vadd.f32 %v15825_v53, %v5482_v63  ;;  %v5484_v6 = vpop.f32.mrb[93].mxu0 }
 0x574   : > { %v5487_v14 = vpop.f32.mrb[94].mxu0 }
 0x575   : > { %v16032_v12 = vadd.f32 %v15832_v18, %v5487_v14  ;;  %v5489_v16 = vpop.f32.mrb[95].mxu0 }
 0x576   : > { %v8322_v16 = vpop.eup %8321 }
 0x578   : > { %v5492_v39 = vpop.f32.mrb[96].mxu0 }
 0x579   : > { %v16035_v25 = vadd.f32 %v15838_v54, %v5492_v39  ;;  %v5494_v59 = vpop.f32.mrb[97].mxu0 }
 0x57c   : > { %v5497_v0 = vpop.f32.mrb[98].mxu0 }
 0x57d   : > { %v16038_v61 = vadd.f32 %v15844_v17, %v5497_v0  ;;  %v5499_v37 = vpop.f32.mrb[99].mxu0  ;;  %v4652_v0 = vpop.xlane.xlu0 %4651 }
 0x580   : > { %v5502_v35 = vpop.f32.mrb[100].mxu0 }
 0x581   : > { %v16041_v53 = vadd.f32 %v15850_v50, %v5502_v35  ;;  %v5504_v3 = vpop.f32.mrb[101].mxu0 }
 0x584   : > { %v5507_v55 = vpop.f32.mrb[102].mxu0 }
 0x585   : > { %v16044_v18 = vadd.f32 %v15856_v8, %v5507_v55  ;;  %v5509_v42 = vpop.f32.mrb[103].mxu0 }
 0x588   : > { %v5512_v49 = vpop.f32.mrb[104].mxu0 }
 0x589   : > { %v16047_v54 = vadd.f32 %v15862_v44, %v5512_v49  ;;  %v5514_v24 = vpop.f32.mrb[105].mxu0 }
 0x58c   : > { %v5517_v28 = vpop.f32.mrb[106].mxu0 }
 0x58d   : > { %v16050_v17 = vadd.f32 %v15870_v9, %v5517_v28  ;;  %v5519_v46 = vpop.f32.mrb[107].mxu0  ;;  %v4670_v28 = vpop.xlane.xlu0 %4669 }
 0x590   : > { %v5522_v1 = vpop.f32.mrb[108].mxu0 }
 0x591   : > { %v16053_v50 = vadd.f32 %v15880_v58, %v5522_v1  ;;  %v5524_v47 = vpop.f32.mrb[109].mxu0 }
 0x594   : > { %v5527_v30 = vpop.f32.mrb[110].mxu0 }
 0x595   : > { %v16056_v8 = vadd.f32 %v15890_v20, %v5527_v30  ;;  %v5529_v27 = vpop.f32.mrb[111].mxu0 }
 0x598   : > { %v5532_v56 = vpop.f32.mrb[112].mxu0 }
 0x599   : > { %v16059_v44 = vadd.f32 %v15899_v52, %v5532_v56  ;;  %v5534_v57 = vpop.f32.mrb[113].mxu0 }
 0x59a   : > { %v4688_v57 = vpop.xlane.xlu0 %4687 }
 0x59c   : > { %v5537_v2 = vpop.f32.mrb[114].mxu0 }
 0x59d   : > { %v16062_v9 = vadd.f32 %v15909_v10, %v5537_v2  ;;  %v5539_v36 = vpop.f32.mrb[115].mxu0 }
 0x5a0   : > { %v5542_v5 = vpop.f32.mrb[116].mxu0 }
 0x5a1   : > { %v16065_v58 = vadd.f32 %v15919_v19, %v5542_v5  ;;  %v5544_v15 = vpop.f32.mrb[117].mxu0  ;;  %v4625_v19 = vpop.xlane.xlu1 %4624 }
 0x5a2   : > { %8323 = vrcp.f32 %v4625_v19 }
 0x5a3   : > { %8325 = vrcp.f32 %v4634_v7 }
 0x5a4   : > { %v5547_v13 = vpop.f32.mrb[118].mxu0 }
 0x5a5   : > { %v16068_v20 = vadd.f32 %v15929_v60, %v5547_v13  ;;  %v5549_v11 = vpop.f32.mrb[119].mxu0  ;;  %v4643_v14 = vpop.xlane.xlu1 %4642 }
 0x5a6   : > { %8327 = vrcp.f32 %v4643_v14  ;;  %v4706_v11 = vpop.xlane.xlu0 %4705 }
 0x5a7   : > { %8329 = vrcp.f32 %v4652_v0 }
 0x5a8   : > { %v5552_v23 = vpop.f32.mrb[120].mxu0 }
 0x5a9   : > { %v16071_v52 = vadd.f32 %v15939_v26, %v5552_v23  ;;  %v5554_v43 = vpop.f32.mrb[121].mxu0  ;;  %v4661_v55 = vpop.xlane.xlu1 %4660 }
 0x5aa   : > { %8331 = vrcp.f32 %v4661_v55  ;;  %v4724_v19 = vpop.xlane.xlu0 %4723 }
 0x5ab   : > { %8333 = vrcp.f32 %v4670_v28 }
 0x5ac   : > { %v5557_v32 = vpop.f32.mrb[122].mxu0 }
 0x5ad   : > { %v16074_v10 = vadd.f32 %v15947_v29, %v5557_v32  ;;  %v5559_v62 = vpop.f32.mrb[123].mxu0  ;;  %v4679_v27 = vpop.xlane.xlu1 %4678 }
 0x5ae   : > { %8335 = vrcp.f32 %v4679_v27  ;;  %v4742_v14 = vpop.xlane.xlu0 %4741 }
 0x5af   : > { %8337 = vrcp.f32 %v4688_v57 }
 0x5b0   : > { %v5562_v41 = vpop.f32.mrb[124].mxu0 }
 0x5b1   : > { %v16077_v31 = vadd.f32 %v15953_v38, %v5562_v41  ;;  %v5564_v60 = vpop.f32.mrb[125].mxu0  ;;  %v8324_v38 = vpop.eup %8323 }
 0x5b2   : > { %v4697_v15 = vpop.xlane.xlu1 %4696 }
 0x5b3   : > { %8339 = vrcp.f32 %v4697_v15 }
 0x5b4   : > { %v5567_v63 = vpop.f32.mrb[126].mxu0  ;;  %8341 = vrcp.f32 %v4706_v11 }
 0x5b5   : > { %v16080_v26 = vadd.f32 %v15959_v48, %v5567_v63  ;;  %v5569_v6 = vpop.f32.mrb[127].mxu0  ;;  %v8326_v48 = vpop.eup %8325 }
 0x5b6   : > { %v8328_v46 = vpop.eup %8327  ;;  %v4715_v32 = vpop.xlane.xlu1 %4714 }
 0x5b7   : > { %v8330_v56 = vpop.eup %8329  ;;  %8343 = vrcp.f32 %v4715_v32 }
 0x5b8   : > { %v5637_v29 = vpop.f32.mrb[64].mxu0  ;;  %v8332_v13 = vpop.eup %8331  ;;  %8345 = vrcp.f32 %v4724_v19 }
 0x5b9   : > { %v5828_v39 = vmul.f32 %v8322_v16, %v5637_v29  ;;  %v5639_v59 = vpop.f32.mrb[65].mxu0  ;;  %v8334_v62 = vpop.eup %8333 }
 0x5ba   : > { %v4733_v63 = vpop.xlane.xlu1 %4732  ;;  %v8336_v6 = vpop.eup %8335 }
 0x5bb   : > { %7094 = vmatprep.mubr.msk.f32.mxu1 %vm19166_vm4, %v5828_v39  ;;  %v8338_v29 = vpop.eup %8337  ;;  %8347 = vrcp.f32 %v4733_v63  ;;  %vm19182_vm4 = vmmov %vm19171_vm0 }
 0x5bc   : > { %v5642_v37 = vpop.f32.mrb[66].mxu0  ;;  %v5836_v0 = vmul.f32 %v8338_v29, %v16011_v45  ;;  %8349 = vrcp.f32 %v4742_v14 }
 0x5bd   : > { %v5829_v35 = vmul.f32 %v8324_v38, %v5642_v37  ;;  %v5644_v3 = vpop.f32.mrb[67].mxu0  ;;  %v8340_v37 = vpop.eup %8339 }
 0x5be   : > { %v4751_v38 = vpop.xlane.xlu1 %4750  ;;  %v8342_v3 = vpop.eup %8341  ;;  %v5837_v55 = vmul.f32 %v8340_v37, %v16014_v21 }
 0x5bf   : > { %7095 = vmatmul.mubr.msk.f32.vlgmr.msra.gmra.mrb[240].mxu1 %vm19167_vm15, %v5829_v35  ;;  %v4760_v35 = vpop.xlane.xlu0 %4759  ;;  %8351 = vrcp.f32 %v4751_v38  ;;  %vm19183_vm15 = vmmov %vm19171_vm0 }
 0x5c0   : > { %v5647_v42 = vpop.f32.mrb[68].mxu0  ;;  %8353 = vrcp.f32 %v4760_v35 }
 0x5c1   : > { %v5830_v49 = vmul.f32 %v8326_v48, %v5647_v42  ;;  %v5649_v24 = vpop.f32.mrb[69].mxu0  ;;  %v5838_v48 = vmul.f32 %v8342_v3, %v16017_v33 }
 0x5c2   : > { %v4769_v42 = vpop.xlane.xlu1 %4768 }
 0x5c3   : > { %7097 = vmatprep.mubr.msk.f32.mxu1 %vm19168_vm11, %v5830_v49  ;;  %v8344_v49 = vpop.eup %8343  ;;  %v4778_v45 = vpop.xlane.xlu0 %4777  ;;  %8355 = vrcp.f32 %v4769_v42  ;;  %vm19184_vm11 = vmmov %vm19171_vm0 }
 0x5c4   : > { %v5652_v1 = vpop.f32.mrb[70].mxu0  ;;  %v8346_v24 = vpop.eup %8345  ;;  %v5839_v28 = vmul.f32 %v8344_v49, %v16020_v22  ;;  %8357 = vrcp.f32 %v4778_v45 }
 0x5c5   : > { %v5831_v47 = vmul.f32 %v8328_v46, %v5652_v1  ;;  %v5654_v30 = vpop.f32.mrb[71].mxu0  ;;  %v5840_v46 = vmul.f32 %v8346_v24, %v16023_v34  ;;  %v8348_v21 = vpop.eup %8347 }
 0x5c6   : > { %v4787_v1 = vpop.xlane.xlu1 %4786  ;;  %v5841_v30 = vmul.f32 %v8348_v21, %v16026_v40 }
 0x5c7   : > { %7098 = vmatmul.mubr.msk.f32.gmra.mrb[242].mxu1 %vm19169_vm3, %v5831_v47  ;;  %v4796_v33 = vpop.xlane.xlu0 %4795  ;;  %v8350_v47 = vpop.eup %8349  ;;  %8359 = vrcp.f32 %v4787_v1  ;;  %vm19185_vm3 = vmmov %vm19171_vm0 }
 0x5c8   : > { %v5657_v2 = vpop.f32.mrb[72].mxu0  ;;  %v5842_v27 = vmul.f32 %v8350_v47, %v16029_v4  ;;  %8361 = vrcp.f32 %v4796_v33 }
 0x5c9   : > { %v5832_v36 = vmul.f32 %v8330_v56, %v5657_v2  ;;  %v5659_v5 = vpop.f32.mrb[73].mxu0  ;;  %v8352_v22 = vpop.eup %8351 }
 0x5ca   : > { %v4805_v56 = vpop.xlane.xlu1 %4804  ;;  %v8354_v57 = vpop.eup %8353  ;;  %v5843_v2 = vmul.f32 %v8352_v22, %v16032_v12 }
 0x5cb   : > { %7100 = vmatprep.mubr.msk.f32.mxu1 %vm19170_vm13, %v5832_v36  ;;  %v4814_v34 = vpop.xlane.xlu0 %4813  ;;  %8363 = vrcp.f32 %v4805_v56  ;;  %v5844_v36 = vmul.f32 %v8354_v57, %v16035_v25  ;;  %vm19186_vm13 = vmmov %vm19171_vm0 }
 0x5cc   : > { %v5662_v23 = vpop.f32.mrb[74].mxu0  ;;  %8365 = vrcp.f32 %v4814_v34 }
 0x5cd   : > { %v5833_v43 = vmul.f32 %v8332_v13, %v5662_v23  ;;  %v5664_v51 = vpop.f32.mrb[75].mxu0  ;;  %v8356_v40 = vpop.eup %8355 }
 0x5ce   : > { %v4823_v5 = vpop.xlane.xlu1 %4822  ;;  %v8358_v15 = vpop.eup %8357  ;;  %v5845_v13 = vmul.f32 %v8356_v40, %v16038_v61 }
 0x5cf   : > { %7101 = vmatmul.mubr.msk.f32.gmra.mrb[244].mxu1 %vm19171_vm0, %v5833_v43  ;;  %v4832_v4 = vpop.xlane.xlu0 %4831  ;;  %8367 = vrcp.f32 %v4823_v5  ;;  %v5846_v11 = vmul.f32 %v8358_v15, %v16041_v53 }
 0x5d0   : > { %v5667_v41 = vpop.f32.mrb[76].mxu0  ;;  %8369 = vrcp.f32 %v4832_v4 }
 0x5d1   : > { %v5834_v60 = vmul.f32 %v8334_v62, %v5667_v41  ;;  %v5669_v7 = vpop.f32.mrb[77].mxu0  ;;  %v8360_v12 = vpop.eup %8359 }
 0x5d2   : > { %v4841_v23 = vpop.xlane.xlu1 %4840  ;;  %v8362_v43 = vpop.eup %8361  ;;  %v5847_v51 = vmul.f32 %v8360_v12, %v16044_v18 }
 0x5d3   : > { %7103 = vmatprep.mubr.msk.f32.mxu1 %vm19172_vm6, %v5834_v60  ;;  %v4850_v25 = vpop.xlane.xlu0 %4849  ;;  %8371 = vrcp.f32 %v4841_v23  ;;  %v5848_v32 = vmul.f32 %v8362_v43, %v16047_v54  ;;  %vm19187_vm6 = vmmov %vm19171_vm0 }
 0x5d4   : > { %v5672_v16 = vpop.f32.mrb[78].mxu0  ;;  %8373 = vrcp.f32 %v4850_v25 }
 0x5d5   : > { %v5835_v39 = vmul.f32 %v8336_v6, %v5672_v16  ;;  %v5674_v59 = vpop.f32.mrb[79].mxu0  ;;  %v8364_v61 = vpop.eup %8363 }
 0x5d6   : > { %v4859_v62 = vpop.xlane.xlu1 %4858  ;;  %v8366_v19 = vpop.eup %8365  ;;  %v5849_v41 = vmul.f32 %v8364_v61, %v16050_v17 }
 0x5d7   : > { %7104 = vmatmul.mubr.msk.f32.gmra.mrb[246].mxu1 %vm19173_vm9, %v5835_v39  ;;  %v4868_v53 = vpop.xlane.xlu0 %4867  ;;  %8375 = vrcp.f32 %v4859_v62  ;;  %v5850_v60 = vmul.f32 %v8366_v19, %v16053_v50  ;;  %vm19188_vm9 = vmmov %vm19171_vm0 }
 0x5d8   : > { %7106 = vmatprep.mubr.msk.f32.mxu1 %vm19174_vm8, %v5836_v0  ;;  %8377 = vrcp.f32 %v4868_v53  ;;  %vm19189_vm8 = vmmov %vm19171_vm0 }
 0x5d9   : > { %v8368_v18 = vpop.eup %8367 }
 0x5da   : > { %v4877_v7 = vpop.xlane.xlu1 %4876  ;;  %v8370_v63 = vpop.eup %8369  ;;  %v5851_v6 = vmul.f32 %v8368_v18, %v16056_v8 }
 0x5db   : > { %7107 = vmatmul.mubr.msk.f32.gmra.mrb[248].mxu1 %vm19175_vm5, %v5837_v55  ;;  %v4886_v54 = vpop.xlane.xlu0 %4885  ;;  %8379 = vrcp.f32 %v4877_v7  ;;  %v5852_v14 = vmul.f32 %v8370_v63, %v16059_v44  ;;  %vm19190_vm5 = vmmov %vm19171_vm0 }
 0x5dc   : > { %7109 = vmatprep.mubr.msk.f32.mxu1 %vm19176_vm12, %v5838_v48  ;;  %8381 = vrcp.f32 %v4886_v54  ;;  %vm19191_vm12 = vmmov %vm19171_vm0 }
 0x5dd   : > { %v8372_v17 = vpop.eup %8371 }
 0x5de   : > { %v4895_v16 = vpop.xlane.xlu1 %4894  ;;  %v8374_v50 = vpop.eup %8373  ;;  %v5853_v29 = vmul.f32 %v8372_v17, %v16062_v9 }
 0x5df   : > { %7110 = vmatmul.mubr.msk.f32.gmra.mrb[250].mxu1 %vm19177_vm10, %v5839_v28  ;;  %8383 = vrcp.f32 %v4895_v16  ;;  %v5854_v39 = vmul.f32 %v8374_v50, %v16065_v58  ;;  %vm19192_vm10 = vmmov %vm19171_vm0 }
 0x5e0   : > { %7112 = vmatprep.mubr.msk.f32.mxu1 %vm19178_vm1, %v5840_v46  ;;  %vm19193_vm1 = vmmov %vm19171_vm0 }
 0x5e1   : > { %v8376_v59 = vpop.eup %8375 }
 0x5e2   : > { %v8378_v8 = vpop.eup %8377  ;;  %v5855_v44 = vmul.f32 %v8376_v59, %v16068_v20  ;;  %v16144_v20 = vld [vmem:[%s16280_s4] ss:$0 sm:$0xff] }
 0x5e3   : > { %7113 = vmatmul.mubr.msk.f32.gmra.mrb[252].mxu1 %vm19179_vm7, %v5841_v30  ;;  %v5856_v0 = vmul.f32 %v8378_v8, %v16071_v52  ;;  %vm19194_vm7 = vmmov %vm19171_vm0 }
 0x5e4   : > { %7115 = vmatprep.mubr.msk.f32.mxu1 %vm19180_vm14, %v5842_v27  ;;  %vm19195_vm14 = vmmov %vm19171_vm0 }
 0x5e5   : > { %v8380_v38 = vpop.eup %8379 }
 0x5e6   : > { %v8382_v9 = vpop.eup %8381  ;;  %v5857_v58 = vmul.f32 %v8380_v38, %v16074_v10 }
 0x5e7   : > { %7116 = vmatmul.mubr.msk.f32.gmra.mrb[254].mxu1 %vm19181_vm2, %v5843_v2  ;;  %v5858_v37 = vmul.f32 %v8382_v9, %v16077_v31  ;;  %vm19196_vm2 = vmmov %vm19171_vm0 }
 0x5e8   : > { %7118 = vmatprep.mubr.msk.f32.mxu1 %vm19182_vm4, %v5844_v36 }
 0x5e9   : > { %v8384_v35 = vpop.eup %8383 }
 0x5ea   : > { %v5859_v3 = vmul.f32 %v8384_v35, %v16080_v26 }
 0x5eb   : > { %7119 = vmatmul.mubr.msk.f32.gmra.mrb[0].mxu1 %vm19183_vm15, %v5845_v13 }
 0x5ec   : > { %7121 = vmatprep.mubr.msk.f32.mxu1 %vm19184_vm11, %v5846_v11 }
 0x5ef   : > { %7122 = vmatmul.mubr.msk.f32.gmra.mrb[2].mxu1 %vm19185_vm3, %v5847_v51 }
 0x5f0   : > { %7124 = vmatprep.mubr.msk.f32.mxu1 %vm19186_vm13, %v5848_v32 }
 0x5f3   : > { %7125 = vmatmul.mubr.msk.f32.gmra.mrb[4].mxu1 %vm19171_vm0, %v5849_v41 }
 0x5f4   : > { %7127 = vmatprep.mubr.msk.f32.mxu1 %vm19187_vm6, %v5850_v60 }
 0x5f7   : > { %7128 = vmatmul.mubr.msk.f32.gmra.mrb[6].mxu1 %vm19188_vm9, %v5851_v6 }
 0x5f8   : > { %7130 = vmatprep.mubr.msk.f32.mxu1 %vm19189_vm8, %v5852_v14 }
 0x5fb   : > { %7131 = vmatmul.mubr.msk.f32.gmra.mrb[8].mxu1 %vm19190_vm5, %v5853_v29 }
 0x5fc   : > { %7133 = vmatprep.mubr.msk.f32.mxu1 %vm19191_vm12, %v5854_v39 }
 0x5ff   : > { %7134 = vmatmul.mubr.msk.f32.gmra.mrb[10].mxu1 %vm19192_vm10, %v5855_v44 }
 0x600   : > { %7136 = vmatprep.mubr.msk.f32.mxu1 %vm19193_vm1, %v5856_v0 }
 0x603   : > { %7137 = vmatmul.mubr.msk.f32.gmra.mrb[12].mxu1 %vm19194_vm7, %v5857_v58 }
 0x604   : > { %7139 = vmatprep.mubr.msk.f32.mxu1 %vm19195_vm14, %v5858_v37 }
 0x607   : > { %7140 = vmatmul.mubr.msk.f32.gmra.mrb[14].mxu1 %vm19196_vm2, %v5859_v3 }
 0x692   : > { %v7096_v52 = vpop.f32.mrb[240].mxu1 }
 0x693   : > { %v6039_v10 = vadd.f32 %v7096_v52, %v16144_v20  ;;  %v6033_v31 = vpop.f32.mrb[241].mxu1 }
 0x694   : > { %v6034_v55 = vadd.f32 %v16144_v20, %v6033_v31 }
 0x695   : > { %6193 = vst [vmem:[%s16148_s27 + $0x8] sm:$0xff] %v6039_v10 }
 0x696   : > { %6192 = vst [vmem:[%s16148_s27] sm:$0xff] %v6034_v55 }
 0x69a   : > { %v7099_v26 = vpop.f32.mrb[242].mxu1 }
 0x69b   : > { %v6049_v48 = vadd.f32 %v7099_v26, %v16144_v20  ;;  %v6043_v42 = vpop.f32.mrb[243].mxu1 }
 0x69c   : > { %v6044_v49 = vadd.f32 %v16144_v20, %v6043_v42 }
 0x69d   : > { %6195 = vst [vmem:[%s16148_s27 + $0x18] sm:$0xff] %v6049_v48 }
 0x69e   : > { %6194 = vst [vmem:[%s16148_s27 + $0x10] sm:$0xff] %v6044_v49 }
 0x6a2   : > { %v7102_v45 = vpop.f32.mrb[244].mxu1 }
 0x6a3   : > { %v6059_v24 = vadd.f32 %v7102_v45, %v16144_v20  ;;  %v6053_v28 = vpop.f32.mrb[245].mxu1 }
 0x6a4   : > { %v6054_v46 = vadd.f32 %v16144_v20, %v6053_v28 }
 0x6a5   : > { %6197 = vst [vmem:[%s16148_s27 + $0x28] sm:$0xff] %v6059_v24 }
 0x6a6   : > { %6196 = vst [vmem:[%s16148_s27 + $0x20] sm:$0xff] %v6054_v46 }
 0x6aa   : > { %v7105_v1 = vpop.f32.mrb[246].mxu1 }
 0x6ab   : > { %v6069_v21 = vadd.f32 %v7105_v1, %v16144_v20  ;;  %v6063_v33 = vpop.f32.mrb[247].mxu1 }
 0x6ac   : > { %v6064_v47 = vadd.f32 %v16144_v20, %v6063_v33 }
 0x6ad   : > { %6199 = vst [vmem:[%s16148_s27 + $0x38] sm:$0xff] %v6069_v21 }
 0x6ae   : > { %6198 = vst [vmem:[%s16148_s27 + $0x30] sm:$0xff] %v6064_v47  ;;  %v7108_v30 = vpop.f32.mrb[248].mxu1 }
 0x6af   : > { %v6079_v27 = vadd.f32 %v7108_v30, %v16144_v20  ;;  %v6073_v56 = vpop.f32.mrb[249].mxu1 }
 0x6b0   : > { %v6074_v22 = vadd.f32 %v16144_v20, %v6073_v56 }
 0x6b1   : > { %6201 = vst [vmem:[%s16148_s27 + $0x48] sm:$0xff] %v6079_v27 }
 0x6b2   : > { %6200 = vst [vmem:[%s16148_s27 + $0x40] sm:$0xff] %v6074_v22  ;;  %v7111_v34 = vpop.f32.mrb[250].mxu1 }
 0x6b3   : > { %v6089_v57 = vadd.f32 %v7111_v34, %v16144_v20  ;;  %v6083_v2 = vpop.f32.mrb[251].mxu1 }
 0x6b4   : > { %v6084_v36 = vadd.f32 %v16144_v20, %v6083_v2 }
 0x6b5   : > { %6203 = vst [vmem:[%s16148_s27 + $0x58] sm:$0xff] %v6089_v57 }
 0x6b6   : > { %6202 = vst [vmem:[%s16148_s27 + $0x50] sm:$0xff] %v6084_v36  ;;  %v7114_v5 = vpop.f32.mrb[252].mxu1 }
 0x6b7   : > { %v6099_v40 = vadd.f32 %v7114_v5, %v16144_v20  ;;  %v6093_v4 = vpop.f32.mrb[253].mxu1 }
 0x6b8   : > { %v6094_v15 = vadd.f32 %v16144_v20, %v6093_v4 }
 0x6b9   : > { %6205 = vst [vmem:[%s16148_s27 + $0x68] sm:$0xff] %v6099_v40 }
 0x6ba   : > { %6204 = vst [vmem:[%s16148_s27 + $0x60] sm:$0xff] %v6094_v15  ;;  %v7117_v13 = vpop.f32.mrb[254].mxu1 }
 0x6bb   : > { %v6109_v11 = vadd.f32 %v7117_v13, %v16144_v20  ;;  %v6103_v23 = vpop.f32.mrb[255].mxu1 }
 0x6bc   : > { %v6104_v12 = vadd.f32 %v16144_v20, %v6103_v23 }
 0x6bd   : > { %6207 = vst [vmem:[%s16148_s27 + $0x78] sm:$0xff] %v6109_v11 }
 0x6be   : > { %6206 = vst [vmem:[%s16148_s27 + $0x70] sm:$0xff] %v6104_v12  ;;  %v7120_v25 = vpop.f32.mrb[0].mxu1 }
 0x6bf   : > { %v6119_v43 = vadd.f32 %v7120_v25, %v16144_v20  ;;  %v6113_v51 = vpop.f32.mrb[1].mxu1 }
 0x6c0   : > { %v6114_v32 = vadd.f32 %v16144_v20, %v6113_v51 }
 0x6c1   : > { %6209 = vst [vmem:[%s16148_s27 + $0x88] sm:$0xff] %v6119_v43 }
 0x6c2   : > { %6208 = vst [vmem:[%s16148_s27 + $0x80] sm:$0xff] %v6114_v32  ;;  %v7123_v62 = vpop.f32.mrb[2].mxu1 }
 0x6c3   : > { %v6129_v61 = vadd.f32 %v7123_v62, %v16144_v20  ;;  %v6123_v53 = vpop.f32.mrb[3].mxu1 }
 0x6c4   : > { %v6124_v19 = vadd.f32 %v16144_v20, %v6123_v53 }
 0x6c5   : > { %6211 = vst [vmem:[%s16148_s27 + $0x98] sm:$0xff] %v6129_v61 }
 0x6c6   : > { %6210 = vst [vmem:[%s16148_s27 + $0x90] sm:$0xff] %v6124_v19  ;;  %v7126_v41 = vpop.f32.mrb[4].mxu1 }
 0x6c7   : > { %v6139_v60 = vadd.f32 %v7126_v41, %v16144_v20  ;;  %v6133_v7 = vpop.f32.mrb[5].mxu1 }
 0x6c8   : > { %v6134_v18 = vadd.f32 %v16144_v20, %v6133_v7 }
 0x6c9   : > { %6213 = vst [vmem:[%s16148_s27 + $0xa8] sm:$0xff] %v6139_v60 }
 0x6ca   : > { %6212 = vst [vmem:[%s16148_s27 + $0xa0] sm:$0xff] %v6134_v18  ;;  %v7129_v54 = vpop.f32.mrb[6].mxu1 }
 0x6cb   : > { %v6149_v63 = vadd.f32 %v7129_v54, %v16144_v20  ;;  %v6143_v6 = vpop.f32.mrb[7].mxu1 }
 0x6cc   : > { %v6144_v14 = vadd.f32 %v16144_v20, %v6143_v6 }
 0x6cd   : > { %6215 = vst [vmem:[%s16148_s27 + $0xb8] sm:$0xff] %v6149_v63 }
 0x6ce   : > { %6214 = vst [vmem:[%s16148_s27 + $0xb0] sm:$0xff] %v6144_v14  ;;  %v7132_v16 = vpop.f32.mrb[8].mxu1 }
 0x6cf   : > { %v6159_v17 = vadd.f32 %v7132_v16, %v16144_v20  ;;  %v6153_v50 = vpop.f32.mrb[9].mxu1 }
 0x6d0   : > { %v6154_v29 = vadd.f32 %v16144_v20, %v6153_v50 }
 0x6d1   : > { %6217 = vst [vmem:[%s16148_s27 + $0xc8] sm:$0xff] %v6159_v17 }
 0x6d2   : > { %6216 = vst [vmem:[%s16148_s27 + $0xc0] sm:$0xff] %v6154_v29  ;;  %v7135_v39 = vpop.f32.mrb[10].mxu1 }
 0x6d3   : > { %v6169_v59 = vadd.f32 %v7135_v39, %v16144_v20  ;;  %v6163_v8 = vpop.f32.mrb[11].mxu1 }
 0x6d4   : > { %v6164_v44 = vadd.f32 %v16144_v20, %v6163_v8 }
 0x6d5   : > { %6219 = vst [vmem:[%s16148_s27 + $0xd8] sm:$0xff] %v6169_v59 }
 0x6d6   : > { %6218 = vst [vmem:[%s16148_s27 + $0xd0] sm:$0xff] %v6164_v44  ;;  %v7138_v0 = vpop.f32.mrb[12].mxu1 }
 0x6d7   : > { %v6179_v38 = vadd.f32 %v7138_v0, %v16144_v20  ;;  %v6173_v9 = vpop.f32.mrb[13].mxu1 }
 0x6d8   : > { %v6174_v58 = vadd.f32 %v16144_v20, %v6173_v9 }
 0x6d9   : > { %6221 = vst [vmem:[%s16148_s27 + $0xe8] sm:$0xff] %v6179_v38 }
 0x6da   : > { %6220 = vst [vmem:[%s16148_s27 + $0xe0] sm:$0xff] %v6174_v58  ;;  %v7141_v37 = vpop.f32.mrb[14].mxu1 }
 0x6db   : > { %v6189_v35 = vadd.f32 %v7141_v37, %v16144_v20  ;;  %v6183_v3 = vpop.f32.mrb[15].mxu1 }
 0x6dc   : > { %v6184_v52 = vadd.f32 %v16144_v20, %v6183_v3 }
 0x6dd   : > { %6223 = vst [vmem:[%s16148_s27 + $0xf8] sm:$0xff] %v6189_v35 }
 0x6de   : > { %6222 = vst [vmem:[%s16148_s27 + $0xf0] sm:$0xff] %v6184_v52 }
 0x6df   : > { %8398 = shalt.err (!%p8395_p9)
}
 0x6e0   : > { %s8399_s13 = scalar_lea.hbm %s16213_s12, 4096  ;;  %s8403_s10 = scalar_lea.hbm %s16281_s5, 32768 }
 0x6e1   : > { %p8400_p10 = scmp.ne.s32.totalorder %s16213_s12, %s8399_s13  ;;  %p8404_p13 = scmp.lt.u32.totalorder %s16213_s12, %s16281_s5 }
 0x6e2   : > { %p8405_p0 = scmp.lt.u32.totalorder %s8403_s10, %s8399_s13  ;;  %p8407_p2 = scmp.lt.u32.totalorder %s8399_s13, %s16213_s12 }
 0x6e3   : > { %p8401_p11 = pnand %p8400_p10, %p8567_p3 }
 0x6e4   : > { %p8406_p1 = por %p8405_p0, %p8404_p13 }
 0x6e5   : > { %p8402_p12 = pneg %p8401_p11 }
 0x6e6   : > { %p8408_p4 = por %p8407_p2, %p8406_p1 }
 0x6e8   : > { %p8409_p5 = pnand %p8408_p4, %p8402_p12 }
 0x6ea   : > { %8412 = shalt.err (!%p8409_p5)
}
 0x6eb   : > { %s8484_s21 = smov 128   ;;  %s8485_s17 = smov 8  }
 0x6ec   : > { %7734 = dma.vmem_to_hbm [thread:$0]  (%p8567_p3), %s16217_s22, 4096, %s16213_s12, %s16224_s16, %s8484_s21, %s8484_s21, %s8485_s17  }
 0x6ed PF: > { %p7740_p6 = scmp.ge.s32.totalorder %s8479_s25, 2  ;;  %s6255_s26 = sand.u32 1, %s8451_s18  }
 0x6ee   : > { %s6256_s30 = scalar_lea.sflag [#allocation3], %s6255_s26 }
 0x6ef   : > { %p7737_p7 = pnand %p7740_p6, %p8576_p8 }
 0x6f1   : > { %8446 = dma.done.wait (!%p7737_p7), %s6256_s30, 4096  }
 0x6f2   : > { %8448 = vsyncadd (!%p7737_p7), %s6256_s30, 4294963200  ;;  %s18_s25 = sadd.s32 1, %s8479_s25   ;;  %s19197_s18 = smov %s8455_s19 }
 0x6f3   : > { %p15_p9 = scmp.ge.s32.totalorder %s18_s25, 10   ;;  %s19198_s19 = smov %s8459_s20 }
 0x6f4   : > { %s19199_s20 = smov %s8585_s11  ;;  %s19200_s21 = smov %s8471_s23 }
 0x6f5   : > { %s19201_s22 = smov %s8475_s24  ;;  %s19202_s23 = smov %s19205_s28 }
 0x6f6   : > { %s19203_s24 = smov %s19209_s29  ;;  %17 = sbr.rel (!%p15_p9) target bundleno = 5 (0x5), region = 81 }
 0x6fd   :  { %6261 = vsyncpa [#allocation3], 1 }
 0x6fe   :  { %6263 = vsyncpa [#allocation3 + $0x1], 1 }

</bundles_post_ra>
